<compile_context>
chip_gen: v7x
topology: tpu7x:2x2x1
jax: 0.10.0
libtpu: 0.0.40
codegen_flags: <defaults>
</compile_context>

<pallas_src>
import functools

import jax
import jax.numpy as jnp
from jax.experimental import pallas as pl
from jax.experimental.pallas import tpu as pltpu

BN_EPS = 1e-5
C_PAD = 128             # lane-pad every conv C_out to 128
HEAD_PAD = 128          # fused actor+critic output width (>= action_dim + 1)
A_H1, A_H2 = 512, 128   # actor hidden widths padded to lane-aligned sizes (400->512, 100->128)
C_H1, C_H2 = 512, 128   # critic hidden widths padded likewise
K_ALIGN = 16            # pad im2col K to a multiple of 16 (bf16 sublane packing)
TM_CAP = 1024           # conv M-tile cap (review: 1024 fits comfortably even on v7x)
TMH_CAP = 256           # head batch-row tile cap
VMEM_LIMIT = 48 * 1024 * 1024   # safe on v7x (64 MiB); raise on v5e/v6e 128 MiB parts

# (k, stride, pad, c_out) per encoder conv layer
CONV_CFG = [(5, 2, 2, 16), (3, 2, 1, 32), (3, 2, 1, 64), (3, 2, 1, 128), (3, 2, 1, 128)]


def _round_up(x, m):
    return -(-x // m) * m


# ---------------------------------------------------------------------------
# Pallas kernels
# ---------------------------------------------------------------------------
def conv_bn_kernel(p_ref, w_ref, b_ref, g_ref, bt_ref, o_ref,
                   y_scr, stat_ref, bn_ref, *, tm, m_true):
    """Fused Conv(+bias)+ReLU+BatchNorm for one layer, 2-phase grid.

    grid = (phase, tile).  Phase 0: matmul+ReLU into VMEM scratch + masked
    partial BN stats.  Phase 1: compute scale/shift once, apply per tile,
    store bf16 output.

    p_ref:  (tm, K)   bf16 im2col patches (phase-0 tiles; pinned in phase 1)
    w_ref:  (K, C)    bf16 conv weights
    b_ref:  (1, C)    f32 conv bias
    g_ref:  (1, C)    f32 BN gamma
    bt_ref: (1, C)    f32 BN beta
    o_ref:  (tm, C)   bf16 output tile
    y_scr:  (n_tiles, tm, C) bf16 pre-BN activation (whole layer, VMEM resident)
    stat_ref: (2, C)  f32 [sum; sum_sq] accumulated over real rows
    bn_ref:   (2, C)  f32 [scale; shift]
    """
    phase = pl.program_id(0)
    i = pl.program_id(1)

    @pl.when((phase == 0) & (i == 0))
    def _():
        stat_ref[...] = jnp.zeros_like(stat_ref)

    @pl.when(phase == 0)
    def _():
        y = jnp.dot(p_ref[...], w_ref[...], preferred_element_type=jnp.float32)
        y = jnp.maximum(y + b_ref[...], 0.0)          # ReLU before BN, as in the module
        y_scr[i] = y.astype(y_scr.dtype)
        # Mask rows that were only added to pad M up to a tile multiple
        # (they would contribute relu(bias) != 0 to the statistics).
        row = jax.lax.broadcasted_iota(jnp.int32, (tm, 1), 0) + i * tm
        msk = (row < m_true).astype(jnp.float32)
        ym = y * msk
        stat_ref[0:1, :] += jnp.sum(ym, axis=0, keepdims=True)
        stat_ref[1:2, :] += jnp.sum(ym * y, axis=0, keepdims=True)

    @pl.when((phase == 1) & (i == 0))
    def _():
        inv_cnt = jnp.float32(1.0 / m_true)
        mean = stat_ref[0:1, :] * inv_cnt
        var = jnp.maximum(stat_ref[1:2, :] * inv_cnt - mean * mean, 0.0)  # biased var
        scale = g_ref[...] * jax.lax.rsqrt(var + BN_EPS)
        bn_ref[0:1, :] = scale
        bn_ref[1:2, :] = bt_ref[...] - mean * scale

    @pl.when(phase == 1)
    def _():
        yv = y_scr[i].astype(jnp.float32)
        o_ref[...] = (yv * bn_ref[0:1, :] + bn_ref[1:2, :]).astype(o_ref.dtype)


def heads_kernel(x_ref, w1_ref, b1_ref, w2_ref, b2_ref, w3_ref, b3_ref, o_ref, *, adim):
    """Fused actor+critic MLPs on one batch-row tile (lane-aligned widths).

    Columns [0, adim) of the output are the actor mean (Tanh applied);
    column adim is the critic value; remaining columns are zero padding.
    """
    h = jnp.dot(x_ref[...], w1_ref[...], preferred_element_type=jnp.float32) + b1_ref[...]
    h = jnp.maximum(h, 0.0)
    h = jnp.dot(h.astype(jnp.bfloat16), w2_ref[...],
                preferred_element_type=jnp.float32) + b2_ref[...]
    h = jnp.maximum(h, 0.0)
    out = jnp.dot(h.astype(jnp.bfloat16), w3_ref[...],
                  preferred_element_type=jnp.float32) + b3_ref[...]
    col = jax.lax.broadcasted_iota(jnp.int32, out.shape, 1)
    o_ref[...] = jnp.where(col < adim, jnp.tanh(out), out)


# ---------------------------------------------------------------------------
# Wrappers
# ---------------------------------------------------------------------------
def _im2col(x_nhwc, k, stride, pad):
    """(M, K) patches; K order is (kh, kw, Cin), K zero-padded to K_ALIGN."""
    n, h, w, c = x_nhwc.shape
    xp = jnp.pad(x_nhwc, ((0, 0), (pad, pad), (pad, pad), (0, 0)))
    ho = (h + 2 * pad - k) // stride + 1
    wo = (w + 2 * pad - k) // stride + 1
    cols = []
    for i in range(k):
        for j in range(k):
            cols.append(xp[:, i:i + stride * ho:stride, j:j + stride * wo:stride, :])
    p = jnp.stack(cols, axis=3).reshape(n * ho * wo, k * k * c)
    kk = k * k * c
    kk_pad = _round_up(kk, K_ALIGN)
    if kk_pad != kk:
        p = jnp.pad(p, ((0, 0), (0, kk_pad - kk)))
    return p, ho, wo


def conv_bn_relu(x_nhwc, lp, k, stride, pad, tm_cap=TM_CAP):
    """One Conv2d->ReLU->BatchNorm2d layer, single fused pallas_call."""
    patches, ho, wo = _im2col(x_nhwc, k, stride, pad)
    m, kk = patches.shape
    c = lp["w"].shape[1]                                  # = C_PAD

    tm = min(tm_cap, _round_up(m, 8))
    m_pad = _round_up(m, tm)
    if m_pad != m:
        patches = jnp.pad(patches, ((0, m_pad - m), (0, 0)))
    n_tiles = m_pad // tm
    last = n_tiles - 1

    cp = pltpu.CompilerParams(dimension_semantics=("arbitrary", "arbitrary"),
                              vmem_limit_bytes=VMEM_LIMIT)

    out = pl.pallas_call(
        functools.partial(conv_bn_kernel, tm=tm, m_true=m),
        grid=(2, n_tiles),
        out_shape=jax.ShapeDtypeStruct((m_pad, c), jnp.bfloat16),
        in_specs=[
            # phase 0: stream patch tiles; phase 1: stay pinned on the last
            # tile so no extra patch DMAs are issued.
            pl.BlockSpec((tm, kk), lambda p, i: (i * (1 - p) + last * p, 0)),
            pl.BlockSpec((kk, c), lambda p, i: (0, 0)),
            pl.BlockSpec((1, c), lambda p, i: (0, 0)),
            pl.BlockSpec((1, c), lambda p, i: (0, 0)),
            pl.BlockSpec((1, c), lambda p, i: (0, 0)),
        ],
        # phase 0 pins the output on block 0 (never written, never flushed);
        # phase 1 visits every block exactly once -> single bf16 HBM write.
        out_specs=pl.BlockSpec((tm, c), lambda p, i: (i * p, 0)),
        scratch_shapes=[pltpu.VMEM((n_tiles, tm, c), jnp.bfloat16),
                        pltpu.VMEM((2, c), jnp.float32),
                        pltpu.VMEM((2, c), jnp.float32)],
        compiler_params=cp,
    )(patches, lp["w"], lp["b"], lp["gamma"], lp["beta"])

    n = x_nhwc.shape[0]
    return out[:m].reshape(n, ho, wo, c)


def encoder(params, state_nchw):
    x = jnp.transpose(state_nchw, (0, 2, 3, 1)).astype(jnp.bfloat16)   # NCHW -> NHWC
    for lp, (k, s, pad, c_out) in zip(params["conv"], CONV_CFG):
        x = conv_bn_relu(x, lp, k, s, pad)
        x = x[..., :c_out]            # drop lane-padding channels (fuses into next gather)
    n = x.shape[0]
    # Flatten in NHWC order; the head w1 is initialized for this ordering.
    # (Loading PyTorch NCHW-flatten weights would require permuting w1's rows.)
    return x.reshape(n, -1)


def fused_heads(params, latent, adim, tm_cap=TMH_CAP):
    n = latent.shape[0]
    latent = latent.astype(jnp.bfloat16)
    tm = min(tm_cap, _round_up(n, 8))
    n_pad = _round_up(n, tm)
    if n_pad != n:
        latent = jnp.pad(latent, ((0, n_pad - n), (0, 0)))
    d = latent.shape[1]
    hp = params["heads"]

    out = pl.pallas_call(
        functools.partial(heads_kernel, adim=adim),
        grid=(n_pad // tm,),
        out_shape=jax.ShapeDtypeStruct((n_pad, HEAD_PAD), jnp.float32),
        in_specs=[pl.BlockSpec((tm, d), lambda i: (i, 0)),
                  pl.BlockSpec(hp["w1"].shape, lambda i: (0, 0)),
                  pl.BlockSpec(hp["b1"].shape, lambda i: (0, 0)),
                  pl.BlockSpec(hp["w2"].shape, lambda i: (0, 0)),
                  pl.BlockSpec(hp["b2"].shape, lambda i: (0, 0)),
                  pl.BlockSpec(hp["w3"].shape, lambda i: (0, 0)),
                  pl.BlockSpec(hp["b3"].shape, lambda i: (0, 0))],
        out_specs=pl.BlockSpec((tm, HEAD_PAD), lambda i: (i, 0)),
        compiler_params=pltpu.CompilerParams(dimension_semantics=("parallel",),
                                             vmem_limit_bytes=VMEM_LIMIT),
    )(latent, hp["w1"], hp["b1"], hp["w2"], hp["b2"], hp["w3"], hp["b3"])
    return out[:n]


def evaluate(params, state_nchw, action):
    """Mirror of ActorCritic.evaluate: (action_logprobs, state_value, dist_entropy)."""
    adim = action.shape[-1]
    latent = encoder(params, state_nchw)
    heads = fused_heads(params, latent, adim)
    action_mean = heads[:, :adim]
    state_value = heads[:, adim]                      # (batch,) even for batch==1

    # MultivariateNormal with diagonal covariance: closed-form log_prob / entropy.
    var = params["action_var"]                        # (action_dim,)
    diff = action - action_mean
    logp = (-0.5 * jnp.sum(diff * diff / var, axis=-1)
            - 0.5 * adim * jnp.log(2.0 * jnp.pi)
            - 0.5 * jnp.sum(jnp.log(var)))
    ent = 0.5 * adim * (1.0 + jnp.log(2.0 * jnp.pi)) + 0.5 * jnp.sum(jnp.log(var))
    ent = jnp.broadcast_to(ent, (action.shape[0],))
    # TODO(synk): act()'s MultivariateNormal.sample() is stochastic and not implemented.
    return logp, state_value, ent


# ---------------------------------------------------------------------------
# Deterministic parameter initialization (synthetic, matches module shapes,
# laid out lane-padded / fused / lane-aligned for the kernels above).
# ---------------------------------------------------------------------------
def init_params(key, img_stack, action_dim, action_std, latent_dim):
    params = {"conv": []}
    c_in = img_stack * 3
    for (k, _, _, c_out) in CONV_CFG:
        key, kw, kb = jax.random.split(key, 3)
        kk_true = k * k * c_in
        kk_pad = _round_up(kk_true, K_ALIGN)
        w = 0.05 * jax.random.normal(kw, (kk_true, c_out), jnp.float32)
        b = 0.05 * jax.random.normal(kb, (c_out,), jnp.float32)
        w_pad = jnp.zeros((kk_pad, C_PAD), jnp.float32).at[:kk_true, :c_out].set(w)
        b_pad = jnp.zeros((1, C_PAD), jnp.float32).at[0, :c_out].set(b)
        gamma = jnp.zeros((1, C_PAD), jnp.float32).at[0, :c_out].set(1.0)  # BN default
        beta = jnp.zeros((1, C_PAD), jnp.float32)
        params["conv"].append({"w": w_pad.astype(jnp.bfloat16), "b": b_pad,
                               "gamma": gamma, "beta": beta})
        c_in = c_out

    def linear(key, d_in, d_out):
        kw, kb = jax.random.split(key)
        return (0.05 * jax.random.normal(kw, (d_in, d_out), jnp.float32),
                0.05 * jax.random.normal(kb, (d_out,), jnp.float32))

    key, k1, k2, k3, k4, k5, k6 = jax.random.split(key, 7)
    aw1, ab1 = linear(k1, latent_dim, 400)
    aw2, ab2 = linear(k2, 400, 100)
    aw3, ab3 = linear(k3, 100, action_dim)
    cw1, cb1 = linear(k4, latent_dim, 400)
    cw2, cb2 = linear(k5, 400, 100)
    cw3, cb3 = linear(k6, 100, 1)

    # Fused actor+critic head with lane-aligned hidden widths:
    #   w1: (latent, 1024)  actor cols [0,400), critic cols [512,912)
    #   w2: (1024, 256)     block-diagonal, actor -> cols [0,100), critic -> [128,228)
    #   w3: (256, HEAD_PAD) actor -> cols [0,adim), critic -> col adim
    h1 = A_H1 + C_H1
    h2 = A_H2 + C_H2
    w1 = (jnp.zeros((latent_dim, h1), jnp.float32)
          .at[:, :400].set(aw1).at[:, A_H1:A_H1 + 400].set(cw1))
    b1 = (jnp.zeros((1, h1), jnp.float32)
          .at[0, :400].set(ab1).at[0, A_H1:A_H1 + 400].set(cb1))
    w2 = (jnp.zeros((h1, h2), jnp.float32)
          .at[:400, :100].set(aw2).at[A_H1:A_H1 + 400, A_H2:A_H2 + 100].set(cw2))
    b2 = (jnp.zeros((1, h2), jnp.float32)
          .at[0, :100].set(ab2).at[0, A_H2:A_H2 + 100].set(cb2))
    w3 = (jnp.zeros((h2, HEAD_PAD), jnp.float32)
          .at[:100, :action_dim].set(aw3)
          .at[A_H2:A_H2 + 100, action_dim:action_dim + 1].set(cw3))
    b3 = (jnp.zeros((1, HEAD_PAD), jnp.float32)
          .at[0, :action_dim].set(ab3).at[0, action_dim].set(cb3[0]))
    params["heads"] = {"w1": w1.astype(jnp.bfloat16), "b1": b1,
                       "w2": w2.astype(jnp.bfloat16), "b2": b2,
                       "w3": w3.astype(jnp.bfloat16), "b3": b3}
    params["action_var"] = jnp.full((action_dim,), action_std * action_std, jnp.float32)
    return params


# ---------------------------------------------------------------------------
if __name__ == "__main__":
    key = jax.random.PRNGKey(0)
    img_stack = 1
    action_dim = 3
    action_std = 0.5
    batch, height, width = 2, 64, 64

    # 64 -> 32 -> 16 -> 8 -> 4 -> 2 spatially; latent_dim = 128 * 2 * 2
    spatial = height
    for (k, s, p, _) in CONV_CFG:
        spatial = (spatial + 2 * p - k) // s + 1
    latent_dim = CONV_CFG[-1][3] * spatial * spatial

    key, k_param, k_state, k_action = jax.random.split(key, 4)
    params = init_params(k_param, img_stack, action_dim, action_std, latent_dim)
    state = jax.random.normal(k_state, (batch, img_stack * 3, height, width), jnp.float32)
    action = jax.random.normal(k_action, (batch, action_dim), jnp.float32)

    logp, value, entropy = jax.jit(evaluate)(params, state, action)
    jax.block_until_ready((logp, value, entropy))

    assert logp.shape == (batch,)
    assert value.shape == (batch,)
    assert entropy.shape == (batch,)
    assert jnp.all(jnp.isfinite(logp)) and jnp.all(jnp.isfinite(value))
    assert jnp.all(jnp.isfinite(entropy))
    print("KERNEL_OK")
</pallas_src>

<mosaic_0001>
module attributes {stable_mosaic.version = 11 : i64} {
  func.func @conv_bn_kernel(%arg0: i32, %arg1: i32, %arg2: memref<1024x80xbf16, #tpu.memory_space<vmem>>, %arg3: memref<80x128xbf16, #tpu.memory_space<vmem>>, %arg4: memref<1x128xf32, #tpu.memory_space<vmem>>, %arg5: memref<1x128xf32, #tpu.memory_space<vmem>>, %arg6: memref<1x128xf32, #tpu.memory_space<vmem>>, %arg7: memref<1024x128xbf16, #tpu.memory_space<vmem>>, %arg8: memref<2x1024x128xbf16, #tpu.memory_space<vmem>>, %arg9: memref<2x128xf32, #tpu.memory_space<vmem>>, %arg10: memref<2x128xf32, #tpu.memory_space<vmem>>) attributes {dimension_semantics = [#tpu.dimension_semantics<arbitrary>, #tpu.dimension_semantics<arbitrary>], iteration_bounds = array<i64: 2, 2>, scalar_prefetch = 0 : i64, scratch_operands = 3 : i64, tpu.core_type = #tpu.core_type<tc>, window_params = [{transform_indices = @transform_0, window_bounds = array<i64: 1024, 80>}, {pipeline_mode = #tpu.pipeline_mode<synchronous>, transform_indices = @transform_1, window_bounds = array<i64: 80, 128>}, {pipeline_mode = #tpu.pipeline_mode<synchronous>, transform_indices = @transform_2, window_bounds = array<i64: 1, 128>}, {pipeline_mode = #tpu.pipeline_mode<synchronous>, transform_indices = @transform_3, window_bounds = array<i64: 1, 128>}, {pipeline_mode = #tpu.pipeline_mode<synchronous>, transform_indices = @transform_4, window_bounds = array<i64: 1, 128>}, {transform_indices = @transform_5, window_bounds = array<i64: 1024, 128>}]} {
    %c0_i32 = arith.constant 0 : i32
    %0 = arith.cmpi eq, %arg0, %c0_i32 : i32
    %c0_i32_0 = arith.constant 0 : i32
    %1 = arith.cmpi eq, %arg1, %c0_i32_0 : i32
    %2 = arith.andi %0, %1 : i1
    %3 = arith.extui %2 : i1 to i32
    %c0_i32_1 = arith.constant 0 : i32
    %4 = arith.cmpi ne, %3, %c0_i32_1 : i32
    scf.if %4 {
      %cst = arith.constant 0.000000e+00 : f32
      %16 = vector.broadcast %cst : f32 to vector<2x128xf32>
      %c0 = arith.constant 0 : index
      %c0_8 = arith.constant 0 : index
      %17 = vector.load %arg9[%c0, %c0_8] : memref<2x128xf32, #tpu.memory_space<vmem>>, vector<2x128xf32>
      tpu.vector_store %arg9[%c0, %c0_8], %16 {strides = array<i32>} : memref<2x128xf32, #tpu.memory_space<vmem>>, vector<2x128xf32>,
    } else {
    }
    %c0_i32_2 = arith.constant 0 : i32
    %5 = arith.cmpi eq, %arg0, %c0_i32_2 : i32
    %6 = arith.extui %5 : i1 to i32
    %c0_i32_3 = arith.constant 0 : i32
    %7 = arith.cmpi ne, %6, %c0_i32_3 : i32
    scf.if %7 {
      %c0 = arith.constant 0 : index
      %c0_8 = arith.constant 0 : index
      %16 = vector.load %arg2[%c0, %c0_8] : memref<1024x80xbf16, #tpu.memory_space<vmem>>, vector<1024x80xbf16>
      %c0_9 = arith.constant 0 : index
      %c0_10 = arith.constant 0 : index
      %17 = vector.load %arg3[%c0_9, %c0_10] : memref<80x128xbf16, #tpu.memory_space<vmem>>, vector<80x128xbf16>
      %cst = arith.constant dense<0.000000e+00> : vector<1024x128xf32>
      %18 = tpu.matmul %16, %17, %cst {dimension_numbers = #tpu.dot_dimension_numbers<[1], [0], [0], [1], [0, 0, 1, 1], [], []>} : vector<1024x80xbf16>, vector<80x128xbf16>, vector<1024x128xf32> -> vector<1024x128xf32>
      %c0_11 = arith.constant 0 : index
      %c0_12 = arith.constant 0 : index
      %19 = vector.load %arg4[%c0_11, %c0_12] : memref<1x128xf32, #tpu.memory_space<vmem>>, vector<1x128xf32>
      %20 = vector.broadcast %19 : vector<1x128xf32> to vector<1024x128xf32>
      %21 = arith.addf %18, %20 : vector<1024x128xf32>
      %cst_13 = arith.constant 0.000000e+00 : f32
      %22 = vector.broadcast %cst_13 : f32 to vector<1024x128xf32>
      %23 = arith.maximumf %21, %22 : vector<1024x128xf32>
      %24 = arith.truncf %23 : vector<1024x128xf32> to vector<1024x128xbf16>
      %25 = arith.index_cast %arg1 : i32 to index
      %c0_14 = arith.constant 0 : index
      %c0_15 = arith.constant 0 : index
      %26 = vector.load %arg8[%25, %c0_14, %c0_15] : memref<2x1024x128xbf16, #tpu.memory_space<vmem>>, vector<1x1024x128xbf16>
      %27 = vector.shape_cast %26 : vector<1x1024x128xbf16> to vector<1024x128xbf16>
      %28 = vector.shape_cast %24 : vector<1024x128xbf16> to vector<1x1024x128xbf16>
      tpu.vector_store %arg8[%25, %c0_14, %c0_15], %28 {strides = array<i32>} : memref<2x1024x128xbf16, #tpu.memory_space<vmem>>, vector<1x1024x128xbf16>,
      %29 = tpu.iota {dimensions = array<i32: 0>} : vector<1024x1xi32>
      %c1024_i32 = arith.constant 1024 : i32
      %30 = arith.muli %arg1, %c1024_i32 : i32
      %31 = vector.broadcast %30 : i32 to vector<1024x1xi32>
      %32 = arith.addi %29, %31 : vector<1024x1xi32>
      %c2048_i32 = arith.constant 2048 : i32
      %33 = vector.broadcast %c2048_i32 : i32 to vector<1024x1xi32>
      %34 = arith.cmpi slt, %32, %33 : vector<1024x1xi32>
      %35 = arith.extui %34 : vector<1024x1xi1> to vector<1024x1xi32>
      %36 = arith.sitofp %35 : vector<1024x1xi32> to vector<1024x1xf32>
      %37 = vector.broadcast %36 : vector<1024x1xf32> to vector<1024x128xf32>
      %38 = arith.mulf %23, %37 : vector<1024x128xf32>
      %c0_16 = arith.constant 0 : index
      %c0_17 = arith.constant 0 : index
      %39 = vector.load %arg9[%c0_16, %c0_17] : memref<2x128xf32, #tpu.memory_space<vmem>>, vector<1x128xf32>
      %cst_18 = arith.constant dense<0.000000e+00> : vector<128xf32>
      %40 = vector.multi_reduction <add>, %38, %cst_18 [0] : vector<1024x128xf32> to vector<128xf32>
      %41 = vector.shape_cast %40 : vector<128xf32> to vector<1x128xf32>
      %42 = arith.addf %39, %41 : vector<1x128xf32>
      %c0_19 = arith.constant 0 : index
      %c0_20 = arith.constant 0 : index
      %43 = vector.load %arg9[%c0_19, %c0_20] : memref<2x128xf32, #tpu.memory_space<vmem>>, vector<1x128xf32>
      tpu.vector_store %arg9[%c0_19, %c0_20], %42 {strides = array<i32>} : memref<2x128xf32, #tpu.memory_space<vmem>>, vector<1x128xf32>,
      %c1 = arith.constant 1 : index
      %c0_21 = arith.constant 0 : index
      %44 = vector.load %arg9[%c1, %c0_21] : memref<2x128xf32, #tpu.memory_space<vmem>>, vector<1x128xf32>
      %45 = arith.mulf %38, %23 : vector<1024x128xf32>
      %cst_22 = arith.constant dense<0.000000e+00> : vector<128xf32>
      %46 = vector.multi_reduction <add>, %45, %cst_22 [0] : vector<1024x128xf32> to vector<128xf32>
      %47 = vector.shape_cast %46 : vector<128xf32> to vector<1x128xf32>
      %48 = arith.addf %44, %47 : vector<1x128xf32>
      %c1_23 = arith.constant 1 : index
      %c0_24 = arith.constant 0 : index
      %49 = vector.load %arg9[%c1_23, %c0_24] : memref<2x128xf32, #tpu.memory_space<vmem>>, vector<1x128xf32>
      tpu.vector_store %arg9[%c1_23, %c0_24], %48 {strides = array<i32>} : memref<2x128xf32, #tpu.memory_space<vmem>>, vector<1x128xf32>,
    } else {
    }
    %c1_i32 = arith.constant 1 : i32
    %8 = arith.cmpi eq, %arg0, %c1_i32 : i32
    %c0_i32_4 = arith.constant 0 : i32
    %9 = arith.cmpi eq, %arg1, %c0_i32_4 : i32
    %10 = arith.andi %8, %9 : i1
    %11 = arith.extui %10 : i1 to i32
    %c0_i32_5 = arith.constant 0 : i32
    %12 = arith.cmpi ne, %11, %c0_i32_5 : i32
    scf.if %12 {
      %c0 = arith.constant 0 : index
      %c0_8 = arith.constant 0 : index
      %16 = vector.load %arg9[%c0, %c0_8] : memref<2x128xf32, #tpu.memory_space<vmem>>, vector<1x128xf32>
      %cst = arith.constant 4.8828125E-4 : f32
      %17 = vector.broadcast %cst : f32 to vector<1x128xf32>
      %18 = arith.mulf %16, %17 : vector<1x128xf32>
      %c1 = arith.constant 1 : index
      %c0_9 = arith.constant 0 : index
      %19 = vector.load %arg9[%c1, %c0_9] : memref<2x128xf32, #tpu.memory_space<vmem>>, vector<1x128xf32>
      %cst_10 = arith.constant 4.8828125E-4 : f32
      %20 = vector.broadcast %cst_10 : f32 to vector<1x128xf32>
      %21 = arith.mulf %19, %20 : vector<1x128xf32>
      %22 = arith.mulf %18, %18 : vector<1x128xf32>
      %23 = arith.subf %21, %22 : vector<1x128xf32>
      %cst_11 = arith.constant 0.000000e+00 : f32
      %24 = vector.broadcast %cst_11 : f32 to vector<1x128xf32>
      %25 = arith.maximumf %23, %24 : vector<1x128xf32>
      %c0_12 = arith.constant 0 : index
      %c0_13 = arith.constant 0 : index
      %26 = vector.load %arg5[%c0_12, %c0_13] : memref<1x128xf32, #tpu.memory_space<vmem>>, vector<1x128xf32>
      %cst_14 = arith.constant 9.99999974E-6 : f32
      %27 = vector.broadcast %cst_14 : f32 to vector<1x128xf32>
      %28 = arith.addf %25, %27 : vector<1x128xf32>
      %29 = math.rsqrt %28 : vector<1x128xf32>
      %30 = arith.mulf %26, %29 : vector<1x128xf32>
      %c0_15 = arith.constant 0 : index
      %c0_16 = arith.constant 0 : index
      %31 = vector.load %arg10[%c0_15, %c0_16] : memref<2x128xf32, #tpu.memory_space<vmem>>, vector<1x128xf32>
      tpu.vector_store %arg10[%c0_15, %c0_16], %30 {strides = array<i32>} : memref<2x128xf32, #tpu.memory_space<vmem>>, vector<1x128xf32>,
      %c0_17 = arith.constant 0 : index
      %c0_18 = arith.constant 0 : index
      %32 = vector.load %arg6[%c0_17, %c0_18] : memref<1x128xf32, #tpu.memory_space<vmem>>, vector<1x128xf32>
      %33 = arith.mulf %18, %30 : vector<1x128xf32>
      %34 = arith.subf %32, %33 : vector<1x128xf32>
      %c1_19 = arith.constant 1 : index
      %c0_20 = arith.constant 0 : index
      %35 = vector.load %arg10[%c1_19, %c0_20] : memref<2x128xf32, #tpu.memory_space<vmem>>, vector<1x128xf32>
      tpu.vector_store %arg10[%c1_19, %c0_20], %34 {strides = array<i32>} : memref<2x128xf32, #tpu.memory_space<vmem>>, vector<1x128xf32>,
    } else {
    }
    %c1_i32_6 = arith.constant 1 : i32
    %13 = arith.cmpi eq, %arg0, %c1_i32_6 : i32
    %14 = arith.extui %13 : i1 to i32
    %c0_i32_7 = arith.constant 0 : i32
    %15 = arith.cmpi ne, %14, %c0_i32_7 : i32
    scf.if %15 {
      %16 = arith.index_cast %arg1 : i32 to index
      %c0 = arith.constant 0 : index
      %c0_8 = arith.constant 0 : index
      %17 = vector.load %arg8[%16, %c0, %c0_8] : memref<2x1024x128xbf16, #tpu.memory_space<vmem>>, vector<1x1024x128xbf16>
      %18 = vector.shape_cast %17 : vector<1x1024x128xbf16> to vector<1024x128xbf16>
      %19 = arith.extf %18 : vector<1024x128xbf16> to vector<1024x128xf32>
      %c0_9 = arith.constant 0 : index
      %c0_10 = arith.constant 0 : index
      %20 = vector.load %arg10[%c0_9, %c0_10] : memref<2x128xf32, #tpu.memory_space<vmem>>, vector<1x128xf32>
      %21 = vector.broadcast %20 : vector<1x128xf32> to vector<1024x128xf32>
      %22 = arith.mulf %19, %21 : vector<1024x128xf32>
      %c1 = arith.constant 1 : index
      %c0_11 = arith.constant 0 : index
      %23 = vector.load %arg10[%c1, %c0_11] : memref<2x128xf32, #tpu.memory_space<vmem>>, vector<1x128xf32>
      %24 = vector.broadcast %23 : vector<1x128xf32> to vector<1024x128xf32>
      %25 = arith.addf %22, %24 : vector<1024x128xf32>
      %26 = arith.truncf %25 : vector<1024x128xf32> to vector<1024x128xbf16>
      %c0_12 = arith.constant 0 : index
      %c0_13 = arith.constant 0 : index
      %27 = vector.load %arg7[%c0_12, %c0_13] : memref<1024x128xbf16, #tpu.memory_space<vmem>>, vector<1024x128xbf16>
      tpu.vector_store %arg7[%c0_12, %c0_13], %26 {strides = array<i32>} : memref<1024x128xbf16, #tpu.memory_space<vmem>>, vector<1024x128xbf16>,
    } else {
    }
    return
  }
  func.func @transform_0(%arg0: i32, %arg1: i32) -> (i32, i32) {
    %c1_i32 = arith.constant 1 : i32
    %0 = arith.subi %c1_i32, %arg0 : i32
    %1 = arith.muli %arg1, %0 : i32
    %c1_i32_0 = arith.constant 1 : i32
    %2 = arith.muli %c1_i32_0, %arg0 : i32
    %3 = arith.addi %1, %2 : i32
    %c0_i32 = arith.constant 0 : i32
    %c0_i32_1 = arith.constant 0 : i32
    return %3, %c0_i32 : i32, i32
  }
  func.func @transform_1(%arg0: i32, %arg1: i32) -> (i32, i32) {
    %c0_i32 = arith.constant 0 : i32
    %c0_i32_0 = arith.constant 0 : i32
    %c0_i32_1 = arith.constant 0 : i32
    return %c0_i32, %c0_i32_0 : i32, i32
  }
  func.func @transform_2(%arg0: i32, %arg1: i32) -> (i32, i32) {
    %c0_i32 = arith.constant 0 : i32
    %c0_i32_0 = arith.constant 0 : i32
    %c0_i32_1 = arith.constant 0 : i32
    return %c0_i32, %c0_i32_0 : i32, i32
  }
  func.func @transform_3(%arg0: i32, %arg1: i32) -> (i32, i32) {
    %c0_i32 = arith.constant 0 : i32
    %c0_i32_0 = arith.constant 0 : i32
    %c0_i32_1 = arith.constant 0 : i32
    return %c0_i32, %c0_i32_0 : i32, i32
  }
  func.func @transform_4(%arg0: i32, %arg1: i32) -> (i32, i32) {
    %c0_i32 = arith.constant 0 : i32
    %c0_i32_0 = arith.constant 0 : i32
    %c0_i32_1 = arith.constant 0 : i32
    return %c0_i32, %c0_i32_0 : i32, i32
  }
  func.func @transform_5(%arg0: i32, %arg1: i32) -> (i32, i32) {
    %0 = arith.muli %arg1, %arg0 : i32
    %c0_i32 = arith.constant 0 : i32
    %c0_i32_0 = arith.constant 0 : i32
    return %0, %c0_i32 : i32, i32
  }
}

module attributes {stable_mosaic.version = 11 : i64} {
  func.func @conv_bn_kernel(%arg0: i32, %arg1: i32, %arg2: memref<512x144xbf16, #tpu.memory_space<vmem>>, %arg3: memref<144x128xbf16, #tpu.memory_space<vmem>>, %arg4: memref<1x128xf32, #tpu.memory_space<vmem>>, %arg5: memref<1x128xf32, #tpu.memory_space<vmem>>, %arg6: memref<1x128xf32, #tpu.memory_space<vmem>>, %arg7: memref<512x128xbf16, #tpu.memory_space<vmem>>, %arg8: memref<1x512x128xbf16, #tpu.memory_space<vmem>>, %arg9: memref<2x128xf32, #tpu.memory_space<vmem>>, %arg10: memref<2x128xf32, #tpu.memory_space<vmem>>) attributes {dimension_semantics = [#tpu.dimension_semantics<arbitrary>, #tpu.dimension_semantics<arbitrary>], iteration_bounds = array<i64: 2, 1>, scalar_prefetch = 0 : i64, scratch_operands = 3 : i64, tpu.core_type = #tpu.core_type<tc>, window_params = [{transform_indices = @transform_0, window_bounds = array<i64: 512, 144>}, {pipeline_mode = #tpu.pipeline_mode<synchronous>, transform_indices = @transform_1, window_bounds = array<i64: 144, 128>}, {pipeline_mode = #tpu.pipeline_mode<synchronous>, transform_indices = @transform_2, window_bounds = array<i64: 1, 128>}, {pipeline_mode = #tpu.pipeline_mode<synchronous>, transform_indices = @transform_3, window_bounds = array<i64: 1, 128>}, {pipeline_mode = #tpu.pipeline_mode<synchronous>, transform_indices = @transform_4, window_bounds = array<i64: 1, 128>}, {transform_indices = @transform_5, window_bounds = array<i64: 512, 128>}]} {
    %c0_i32 = arith.constant 0 : i32
    %0 = arith.cmpi eq, %arg0, %c0_i32 : i32
    %c0_i32_0 = arith.constant 0 : i32
    %1 = arith.cmpi eq, %arg1, %c0_i32_0 : i32
    %2 = arith.andi %0, %1 : i1
    %3 = arith.extui %2 : i1 to i32
    %c0_i32_1 = arith.constant 0 : i32
    %4 = arith.cmpi ne, %3, %c0_i32_1 : i32
    scf.if %4 {
      %cst = arith.constant 0.000000e+00 : f32
      %16 = vector.broadcast %cst : f32 to vector<2x128xf32>
      %c0 = arith.constant 0 : index
      %c0_8 = arith.constant 0 : index
      %17 = vector.load %arg9[%c0, %c0_8] : memref<2x128xf32, #tpu.memory_space<vmem>>, vector<2x128xf32>
      tpu.vector_store %arg9[%c0, %c0_8], %16 {strides = array<i32>} : memref<2x128xf32, #tpu.memory_space<vmem>>, vector<2x128xf32>,
    } else {
    }
    %c0_i32_2 = arith.constant 0 : i32
    %5 = arith.cmpi eq, %arg0, %c0_i32_2 : i32
    %6 = arith.extui %5 : i1 to i32
    %c0_i32_3 = arith.constant 0 : i32
    %7 = arith.cmpi ne, %6, %c0_i32_3 : i32
    scf.if %7 {
      %c0 = arith.constant 0 : index
      %c0_8 = arith.constant 0 : index
      %16 = vector.load %arg2[%c0, %c0_8] : memref<512x144xbf16, #tpu.memory_space<vmem>>, vector<512x144xbf16>
      %c0_9 = arith.constant 0 : index
      %c0_10 = arith.constant 0 : index
      %17 = vector.load %arg3[%c0_9, %c0_10] : memref<144x128xbf16, #tpu.memory_space<vmem>>, vector<144x128xbf16>
      %cst = arith.constant dense<0.000000e+00> : vector<512x128xf32>
      %18 = tpu.matmul %16, %17, %cst {dimension_numbers = #tpu.dot_dimension_numbers<[1], [0], [0], [1], [0, 0, 1, 1], [], []>} : vector<512x144xbf16>, vector<144x128xbf16>, vector<512x128xf32> -> vector<512x128xf32>
      %c0_11 = arith.constant 0 : index
      %c0_12 = arith.constant 0 : index
      %19 = vector.load %arg4[%c0_11, %c0_12] : memref<1x128xf32, #tpu.memory_space<vmem>>, vector<1x128xf32>
      %20 = vector.broadcast %19 : vector<1x128xf32> to vector<512x128xf32>
      %21 = arith.addf %18, %20 : vector<512x128xf32>
      %cst_13 = arith.constant 0.000000e+00 : f32
      %22 = vector.broadcast %cst_13 : f32 to vector<512x128xf32>
      %23 = arith.maximumf %21, %22 : vector<512x128xf32>
      %24 = arith.truncf %23 : vector<512x128xf32> to vector<512x128xbf16>
      %25 = arith.index_cast %arg1 : i32 to index
      %c0_14 = arith.constant 0 : index
      %c0_15 = arith.constant 0 : index
      %26 = vector.load %arg8[%25, %c0_14, %c0_15] : memref<1x512x128xbf16, #tpu.memory_space<vmem>>, vector<1x512x128xbf16>
      %27 = vector.shape_cast %26 : vector<1x512x128xbf16> to vector<512x128xbf16>
      %28 = vector.shape_cast %24 : vector<512x128xbf16> to vector<1x512x128xbf16>
      tpu.vector_store %arg8[%25, %c0_14, %c0_15], %28 {strides = array<i32>} : memref<1x512x128xbf16, #tpu.memory_space<vmem>>, vector<1x512x128xbf16>,
      %29 = tpu.iota {dimensions = array<i32: 0>} : vector<512x1xi32>
      %c512_i32 = arith.constant 512 : i32
      %30 = arith.muli %arg1, %c512_i32 : i32
      %31 = vector.broadcast %30 : i32 to vector<512x1xi32>
      %32 = arith.addi %29, %31 : vector<512x1xi32>
      %c512_i32_16 = arith.constant 512 : i32
      %33 = vector.broadcast %c512_i32_16 : i32 to vector<512x1xi32>
      %34 = arith.cmpi slt, %32, %33 : vector<512x1xi32>
      %35 = arith.extui %34 : vector<512x1xi1> to vector<512x1xi32>
      %36 = arith.sitofp %35 : vector<512x1xi32> to vector<512x1xf32>
      %37 = vector.broadcast %36 : vector<512x1xf32> to vector<512x128xf32>
      %38 = arith.mulf %23, %37 : vector<512x128xf32>
      %c0_17 = arith.constant 0 : index
      %c0_18 = arith.constant 0 : index
      %39 = vector.load %arg9[%c0_17, %c0_18] : memref<2x128xf32, #tpu.memory_space<vmem>>, vector<1x128xf32>
      %cst_19 = arith.constant dense<0.000000e+00> : vector<128xf32>
      %40 = vector.multi_reduction <add>, %38, %cst_19 [0] : vector<512x128xf32> to vector<128xf32>
      %41 = vector.shape_cast %40 : vector<128xf32> to vector<1x128xf32>
      %42 = arith.addf %39, %41 : vector<1x128xf32>
      %c0_20 = arith.constant 0 : index
      %c0_21 = arith.constant 0 : index
      %43 = vector.load %arg9[%c0_20, %c0_21] : memref<2x128xf32, #tpu.memory_space<vmem>>, vector<1x128xf32>
      tpu.vector_store %arg9[%c0_20, %c0_21], %42 {strides = array<i32>} : memref<2x128xf32, #tpu.memory_space<vmem>>, vector<1x128xf32>,
      %c1 = arith.constant 1 : index
      %c0_22 = arith.constant 0 : index
      %44 = vector.load %arg9[%c1, %c0_22] : memref<2x128xf32, #tpu.memory_space<vmem>>, vector<1x128xf32>
      %45 = arith.mulf %38, %23 : vector<512x128xf32>
      %cst_23 = arith.constant dense<0.000000e+00> : vector<128xf32>
      %46 = vector.multi_reduction <add>, %45, %cst_23 [0] : vector<512x128xf32> to vector<128xf32>
      %47 = vector.shape_cast %46 : vector<128xf32> to vector<1x128xf32>
      %48 = arith.addf %44, %47 : vector<1x128xf32>
      %c1_24 = arith.constant 1 : index
      %c0_25 = arith.constant 0 : index
      %49 = vector.load %arg9[%c1_24, %c0_25] : memref<2x128xf32, #tpu.memory_space<vmem>>, vector<1x128xf32>
      tpu.vector_store %arg9[%c1_24, %c0_25], %48 {strides = array<i32>} : memref<2x128xf32, #tpu.memory_space<vmem>>, vector<1x128xf32>,
    } else {
    }
    %c1_i32 = arith.constant 1 : i32
    %8 = arith.cmpi eq, %arg0, %c1_i32 : i32
    %c0_i32_4 = arith.constant 0 : i32
    %9 = arith.cmpi eq, %arg1, %c0_i32_4 : i32
    %10 = arith.andi %8, %9 : i1
    %11 = arith.extui %10 : i1 to i32
    %c0_i32_5 = arith.constant 0 : i32
    %12 = arith.cmpi ne, %11, %c0_i32_5 : i32
    scf.if %12 {
      %c0 = arith.constant 0 : index
      %c0_8 = arith.constant 0 : index
      %16 = vector.load %arg9[%c0, %c0_8] : memref<2x128xf32, #tpu.memory_space<vmem>>, vector<1x128xf32>
      %cst = arith.constant 0.001953125 : f32
      %17 = vector.broadcast %cst : f32 to vector<1x128xf32>
      %18 = arith.mulf %16, %17 : vector<1x128xf32>
      %c1 = arith.constant 1 : index
      %c0_9 = arith.constant 0 : index
      %19 = vector.load %arg9[%c1, %c0_9] : memref<2x128xf32, #tpu.memory_space<vmem>>, vector<1x128xf32>
      %cst_10 = arith.constant 0.001953125 : f32
      %20 = vector.broadcast %cst_10 : f32 to vector<1x128xf32>
      %21 = arith.mulf %19, %20 : vector<1x128xf32>
      %22 = arith.mulf %18, %18 : vector<1x128xf32>
      %23 = arith.subf %21, %22 : vector<1x128xf32>
      %cst_11 = arith.constant 0.000000e+00 : f32
      %24 = vector.broadcast %cst_11 : f32 to vector<1x128xf32>
      %25 = arith.maximumf %23, %24 : vector<1x128xf32>
      %c0_12 = arith.constant 0 : index
      %c0_13 = arith.constant 0 : index
      %26 = vector.load %arg5[%c0_12, %c0_13] : memref<1x128xf32, #tpu.memory_space<vmem>>, vector<1x128xf32>
      %cst_14 = arith.constant 9.99999974E-6 : f32
      %27 = vector.broadcast %cst_14 : f32 to vector<1x128xf32>
      %28 = arith.addf %25, %27 : vector<1x128xf32>
      %29 = math.rsqrt %28 : vector<1x128xf32>
      %30 = arith.mulf %26, %29 : vector<1x128xf32>
      %c0_15 = arith.constant 0 : index
      %c0_16 = arith.constant 0 : index
      %31 = vector.load %arg10[%c0_15, %c0_16] : memref<2x128xf32, #tpu.memory_space<vmem>>, vector<1x128xf32>
      tpu.vector_store %arg10[%c0_15, %c0_16], %30 {strides = array<i32>} : memref<2x128xf32, #tpu.memory_space<vmem>>, vector<1x128xf32>,
      %c0_17 = arith.constant 0 : index
      %c0_18 = arith.constant 0 : index
      %32 = vector.load %arg6[%c0_17, %c0_18] : memref<1x128xf32, #tpu.memory_space<vmem>>, vector<1x128xf32>
      %33 = arith.mulf %18, %30 : vector<1x128xf32>
      %34 = arith.subf %32, %33 : vector<1x128xf32>
      %c1_19 = arith.constant 1 : index
      %c0_20 = arith.constant 0 : index
      %35 = vector.load %arg10[%c1_19, %c0_20] : memref<2x128xf32, #tpu.memory_space<vmem>>, vector<1x128xf32>
      tpu.vector_store %arg10[%c1_19, %c0_20], %34 {strides = array<i32>} : memref<2x128xf32, #tpu.memory_space<vmem>>, vector<1x128xf32>,
    } else {
    }
    %c1_i32_6 = arith.constant 1 : i32
    %13 = arith.cmpi eq, %arg0, %c1_i32_6 : i32
    %14 = arith.extui %13 : i1 to i32
    %c0_i32_7 = arith.constant 0 : i32
    %15 = arith.cmpi ne, %14, %c0_i32_7 : i32
    scf.if %15 {
      %16 = arith.index_cast %arg1 : i32 to index
      %c0 = arith.constant 0 : index
      %c0_8 = arith.constant 0 : index
      %17 = vector.load %arg8[%16, %c0, %c0_8] : memref<1x512x128xbf16, #tpu.memory_space<vmem>>, vector<1x512x128xbf16>
      %18 = vector.shape_cast %17 : vector<1x512x128xbf16> to vector<512x128xbf16>
      %19 = arith.extf %18 : vector<512x128xbf16> to vector<512x128xf32>
      %c0_9 = arith.constant 0 : index
      %c0_10 = arith.constant 0 : index
      %20 = vector.load %arg10[%c0_9, %c0_10] : memref<2x128xf32, #tpu.memory_space<vmem>>, vector<1x128xf32>
      %21 = vector.broadcast %20 : vector<1x128xf32> to vector<512x128xf32>
      %22 = arith.mulf %19, %21 : vector<512x128xf32>
      %c1 = arith.constant 1 : index
      %c0_11 = arith.constant 0 : index
      %23 = vector.load %arg10[%c1, %c0_11] : memref<2x128xf32, #tpu.memory_space<vmem>>, vector<1x128xf32>
      %24 = vector.broadcast %23 : vector<1x128xf32> to vector<512x128xf32>
      %25 = arith.addf %22, %24 : vector<512x128xf32>
      %26 = arith.truncf %25 : vector<512x128xf32> to vector<512x128xbf16>
      %c0_12 = arith.constant 0 : index
      %c0_13 = arith.constant 0 : index
      %27 = vector.load %arg7[%c0_12, %c0_13] : memref<512x128xbf16, #tpu.memory_space<vmem>>, vector<512x128xbf16>
      tpu.vector_store %arg7[%c0_12, %c0_13], %26 {strides = array<i32>} : memref<512x128xbf16, #tpu.memory_space<vmem>>, vector<512x128xbf16>,
    } else {
    }
    return
  }
  func.func @transform_0(%arg0: i32, %arg1: i32) -> (i32, i32) {
    %c1_i32 = arith.constant 1 : i32
    %0 = arith.subi %c1_i32, %arg0 : i32
    %1 = arith.muli %arg1, %0 : i32
    %c0_i32 = arith.constant 0 : i32
    %2 = arith.muli %c0_i32, %arg0 : i32
    %3 = arith.addi %1, %2 : i32
    %c0_i32_0 = arith.constant 0 : i32
    %c0_i32_1 = arith.constant 0 : i32
    return %3, %c0_i32_0 : i32, i32
  }
  func.func @transform_1(%arg0: i32, %arg1: i32) -> (i32, i32) {
    %c0_i32 = arith.constant 0 : i32
    %c0_i32_0 = arith.constant 0 : i32
    %c0_i32_1 = arith.constant 0 : i32
    return %c0_i32, %c0_i32_0 : i32, i32
  }
  func.func @transform_2(%arg0: i32, %arg1: i32) -> (i32, i32) {
    %c0_i32 = arith.constant 0 : i32
    %c0_i32_0 = arith.constant 0 : i32
    %c0_i32_1 = arith.constant 0 : i32
    return %c0_i32, %c0_i32_0 : i32, i32
  }
  func.func @transform_3(%arg0: i32, %arg1: i32) -> (i32, i32) {
    %c0_i32 = arith.constant 0 : i32
    %c0_i32_0 = arith.constant 0 : i32
    %c0_i32_1 = arith.constant 0 : i32
    return %c0_i32, %c0_i32_0 : i32, i32
  }
  func.func @transform_4(%arg0: i32, %arg1: i32) -> (i32, i32) {
    %c0_i32 = arith.constant 0 : i32
    %c0_i32_0 = arith.constant 0 : i32
    %c0_i32_1 = arith.constant 0 : i32
    return %c0_i32, %c0_i32_0 : i32, i32
  }
  func.func @transform_5(%arg0: i32, %arg1: i32) -> (i32, i32) {
    %0 = arith.muli %arg1, %arg0 : i32
    %c0_i32 = arith.constant 0 : i32
    %c0_i32_0 = arith.constant 0 : i32
    return %0, %c0_i32 : i32, i32
  }
}

module attributes {stable_mosaic.version = 11 : i64} {
  func.func @conv_bn_kernel(%arg0: i32, %arg1: i32, %arg2: memref<128x288xbf16, #tpu.memory_space<vmem>>, %arg3: memref<288x128xbf16, #tpu.memory_space<vmem>>, %arg4: memref<1x128xf32, #tpu.memory_space<vmem>>, %arg5: memref<1x128xf32, #tpu.memory_space<vmem>>, %arg6: memref<1x128xf32, #tpu.memory_space<vmem>>, %arg7: memref<128x128xbf16, #tpu.memory_space<vmem>>, %arg8: memref<1x128x128xbf16, #tpu.memory_space<vmem>>, %arg9: memref<2x128xf32, #tpu.memory_space<vmem>>, %arg10: memref<2x128xf32, #tpu.memory_space<vmem>>) attributes {dimension_semantics = [#tpu.dimension_semantics<arbitrary>, #tpu.dimension_semantics<arbitrary>], iteration_bounds = array<i64: 2, 1>, scalar_prefetch = 0 : i64, scratch_operands = 3 : i64, tpu.core_type = #tpu.core_type<tc>, window_params = [{transform_indices = @transform_0, window_bounds = array<i64: 128, 288>}, {pipeline_mode = #tpu.pipeline_mode<synchronous>, transform_indices = @transform_1, window_bounds = array<i64: 288, 128>}, {pipeline_mode = #tpu.pipeline_mode<synchronous>, transform_indices = @transform_2, window_bounds = array<i64: 1, 128>}, {pipeline_mode = #tpu.pipeline_mode<synchronous>, transform_indices = @transform_3, window_bounds = array<i64: 1, 128>}, {pipeline_mode = #tpu.pipeline_mode<synchronous>, transform_indices = @transform_4, window_bounds = array<i64: 1, 128>}, {transform_indices = @transform_5, window_bounds = array<i64: 128, 128>}]} {
    %c0_i32 = arith.constant 0 : i32
    %0 = arith.cmpi eq, %arg0, %c0_i32 : i32
    %c0_i32_0 = arith.constant 0 : i32
    %1 = arith.cmpi eq, %arg1, %c0_i32_0 : i32
    %2 = arith.andi %0, %1 : i1
    %3 = arith.extui %2 : i1 to i32
    %c0_i32_1 = arith.constant 0 : i32
    %4 = arith.cmpi ne, %3, %c0_i32_1 : i32
    scf.if %4 {
      %cst = arith.constant 0.000000e+00 : f32
      %16 = vector.broadcast %cst : f32 to vector<2x128xf32>
      %c0 = arith.constant 0 : index
      %c0_8 = arith.constant 0 : index
      %17 = vector.load %arg9[%c0, %c0_8] : memref<2x128xf32, #tpu.memory_space<vmem>>, vector<2x128xf32>
      tpu.vector_store %arg9[%c0, %c0_8], %16 {strides = array<i32>} : memref<2x128xf32, #tpu.memory_space<vmem>>, vector<2x128xf32>,
    } else {
    }
    %c0_i32_2 = arith.constant 0 : i32
    %5 = arith.cmpi eq, %arg0, %c0_i32_2 : i32
    %6 = arith.extui %5 : i1 to i32
    %c0_i32_3 = arith.constant 0 : i32
    %7 = arith.cmpi ne, %6, %c0_i32_3 : i32
    scf.if %7 {
      %c0 = arith.constant 0 : index
      %c0_8 = arith.constant 0 : index
      %16 = vector.load %arg2[%c0, %c0_8] : memref<128x288xbf16, #tpu.memory_space<vmem>>, vector<128x288xbf16>
      %c0_9 = arith.constant 0 : index
      %c0_10 = arith.constant 0 : index
      %17 = vector.load %arg3[%c0_9, %c0_10] : memref<288x128xbf16, #tpu.memory_space<vmem>>, vector<288x128xbf16>
      %cst = arith.constant dense<0.000000e+00> : vector<128x128xf32>
      %18 = tpu.matmul %16, %17, %cst {dimension_numbers = #tpu.dot_dimension_numbers<[1], [0], [0], [1], [0, 0, 1, 1], [], []>} : vector<128x288xbf16>, vector<288x128xbf16>, vector<128x128xf32> -> vector<128x128xf32>
      %c0_11 = arith.constant 0 : index
      %c0_12 = arith.constant 0 : index
      %19 = vector.load %arg4[%c0_11, %c0_12] : memref<1x128xf32, #tpu.memory_space<vmem>>, vector<1x128xf32>
      %20 = vector.broadcast %19 : vector<1x128xf32> to vector<128x128xf32>
      %21 = arith.addf %18, %20 : vector<128x128xf32>
      %cst_13 = arith.constant 0.000000e+00 : f32
      %22 = vector.broadcast %cst_13 : f32 to vector<128x128xf32>
      %23 = arith.maximumf %21, %22 : vector<128x128xf32>
      %24 = arith.truncf %23 : vector<128x128xf32> to vector<128x128xbf16>
      %25 = arith.index_cast %arg1 : i32 to index
      %c0_14 = arith.constant 0 : index
      %c0_15 = arith.constant 0 : index
      %26 = vector.load %arg8[%25, %c0_14, %c0_15] : memref<1x128x128xbf16, #tpu.memory_space<vmem>>, vector<1x128x128xbf16>
      %27 = vector.shape_cast %26 : vector<1x128x128xbf16> to vector<128x128xbf16>
      %28 = vector.shape_cast %24 : vector<128x128xbf16> to vector<1x128x128xbf16>
      tpu.vector_store %arg8[%25, %c0_14, %c0_15], %28 {strides = array<i32>} : memref<1x128x128xbf16, #tpu.memory_space<vmem>>, vector<1x128x128xbf16>,
      %29 = tpu.iota {dimensions = array<i32: 0>} : vector<128x1xi32>
      %c128_i32 = arith.constant 128 : i32
      %30 = arith.muli %arg1, %c128_i32 : i32
      %31 = vector.broadcast %30 : i32 to vector<128x1xi32>
      %32 = arith.addi %29, %31 : vector<128x1xi32>
      %c128_i32_16 = arith.constant 128 : i32
      %33 = vector.broadcast %c128_i32_16 : i32 to vector<128x1xi32>
      %34 = arith.cmpi slt, %32, %33 : vector<128x1xi32>
      %35 = arith.extui %34 : vector<128x1xi1> to vector<128x1xi32>
      %36 = arith.sitofp %35 : vector<128x1xi32> to vector<128x1xf32>
      %37 = vector.broadcast %36 : vector<128x1xf32> to vector<128x128xf32>
      %38 = arith.mulf %23, %37 : vector<128x128xf32>
      %c0_17 = arith.constant 0 : index
      %c0_18 = arith.constant 0 : index
      %39 = vector.load %arg9[%c0_17, %c0_18] : memref<2x128xf32, #tpu.memory_space<vmem>>, vector<1x128xf32>
      %cst_19 = arith.constant dense<0.000000e+00> : vector<128xf32>
      %40 = vector.multi_reduction <add>, %38, %cst_19 [0] : vector<128x128xf32> to vector<128xf32>
      %41 = vector.shape_cast %40 : vector<128xf32> to vector<1x128xf32>
      %42 = arith.addf %39, %41 : vector<1x128xf32>
      %c0_20 = arith.constant 0 : index
      %c0_21 = arith.constant 0 : index
      %43 = vector.load %arg9[%c0_20, %c0_21] : memref<2x128xf32, #tpu.memory_space<vmem>>, vector<1x128xf32>
      tpu.vector_store %arg9[%c0_20, %c0_21], %42 {strides = array<i32>} : memref<2x128xf32, #tpu.memory_space<vmem>>, vector<1x128xf32>,
      %c1 = arith.constant 1 : index
      %c0_22 = arith.constant 0 : index
      %44 = vector.load %arg9[%c1, %c0_22] : memref<2x128xf32, #tpu.memory_space<vmem>>, vector<1x128xf32>
      %45 = arith.mulf %38, %23 : vector<128x128xf32>
      %cst_23 = arith.constant dense<0.000000e+00> : vector<128xf32>
      %46 = vector.multi_reduction <add>, %45, %cst_23 [0] : vector<128x128xf32> to vector<128xf32>
      %47 = vector.shape_cast %46 : vector<128xf32> to vector<1x128xf32>
      %48 = arith.addf %44, %47 : vector<1x128xf32>
      %c1_24 = arith.constant 1 : index
      %c0_25 = arith.constant 0 : index
      %49 = vector.load %arg9[%c1_24, %c0_25] : memref<2x128xf32, #tpu.memory_space<vmem>>, vector<1x128xf32>
      tpu.vector_store %arg9[%c1_24, %c0_25], %48 {strides = array<i32>} : memref<2x128xf32, #tpu.memory_space<vmem>>, vector<1x128xf32>,
    } else {
    }
    %c1_i32 = arith.constant 1 : i32
    %8 = arith.cmpi eq, %arg0, %c1_i32 : i32
    %c0_i32_4 = arith.constant 0 : i32
    %9 = arith.cmpi eq, %arg1, %c0_i32_4 : i32
    %10 = arith.andi %8, %9 : i1
    %11 = arith.extui %10 : i1 to i32
    %c0_i32_5 = arith.constant 0 : i32
    %12 = arith.cmpi ne, %11, %c0_i32_5 : i32
    scf.if %12 {
      %c0 = arith.constant 0 : index
      %c0_8 = arith.constant 0 : index
      %16 = vector.load %arg9[%c0, %c0_8] : memref<2x128xf32, #tpu.memory_space<vmem>>, vector<1x128xf32>
      %cst = arith.constant 7.812500e-03 : f32
      %17 = vector.broadcast %cst : f32 to vector<1x128xf32>
      %18 = arith.mulf %16, %17 : vector<1x128xf32>
      %c1 = arith.constant 1 : index
      %c0_9 = arith.constant 0 : index
      %19 = vector.load %arg9[%c1, %c0_9] : memref<2x128xf32, #tpu.memory_space<vmem>>, vector<1x128xf32>
      %cst_10 = arith.constant 7.812500e-03 : f32
      %20 = vector.broadcast %cst_10 : f32 to vector<1x128xf32>
      %21 = arith.mulf %19, %20 : vector<1x128xf32>
      %22 = arith.mulf %18, %18 : vector<1x128xf32>
      %23 = arith.subf %21, %22 : vector<1x128xf32>
      %cst_11 = arith.constant 0.000000e+00 : f32
      %24 = vector.broadcast %cst_11 : f32 to vector<1x128xf32>
      %25 = arith.maximumf %23, %24 : vector<1x128xf32>
      %c0_12 = arith.constant 0 : index
      %c0_13 = arith.constant 0 : index
      %26 = vector.load %arg5[%c0_12, %c0_13] : memref<1x128xf32, #tpu.memory_space<vmem>>, vector<1x128xf32>
      %cst_14 = arith.constant 9.99999974E-6 : f32
      %27 = vector.broadcast %cst_14 : f32 to vector<1x128xf32>
      %28 = arith.addf %25, %27 : vector<1x128xf32>
      %29 = math.rsqrt %28 : vector<1x128xf32>
      %30 = arith.mulf %26, %29 : vector<1x128xf32>
      %c0_15 = arith.constant 0 : index
      %c0_16 = arith.constant 0 : index
      %31 = vector.load %arg10[%c0_15, %c0_16] : memref<2x128xf32, #tpu.memory_space<vmem>>, vector<1x128xf32>
      tpu.vector_store %arg10[%c0_15, %c0_16], %30 {strides = array<i32>} : memref<2x128xf32, #tpu.memory_space<vmem>>, vector<1x128xf32>,
      %c0_17 = arith.constant 0 : index
      %c0_18 = arith.constant 0 : index
      %32 = vector.load %arg6[%c0_17, %c0_18] : memref<1x128xf32, #tpu.memory_space<vmem>>, vector<1x128xf32>
      %33 = arith.mulf %18, %30 : vector<1x128xf32>
      %34 = arith.subf %32, %33 : vector<1x128xf32>
      %c1_19 = arith.constant 1 : index
      %c0_20 = arith.constant 0 : index
      %35 = vector.load %arg10[%c1_19, %c0_20] : memref<2x128xf32, #tpu.memory_space<vmem>>, vector<1x128xf32>
      tpu.vector_store %arg10[%c1_19, %c0_20], %34 {strides = array<i32>} : memref<2x128xf32, #tpu.memory_space<vmem>>, vector<1x128xf32>,
    } else {
    }
    %c1_i32_6 = arith.constant 1 : i32
    %13 = arith.cmpi eq, %arg0, %c1_i32_6 : i32
    %14 = arith.extui %13 : i1 to i32
    %c0_i32_7 = arith.constant 0 : i32
    %15 = arith.cmpi ne, %14, %c0_i32_7 : i32
    scf.if %15 {
      %16 = arith.index_cast %arg1 : i32 to index
      %c0 = arith.constant 0 : index
      %c0_8 = arith.constant 0 : index
      %17 = vector.load %arg8[%16, %c0, %c0_8] : memref<1x128x128xbf16, #tpu.memory_space<vmem>>, vector<1x128x128xbf16>
      %18 = vector.shape_cast %17 : vector<1x128x128xbf16> to vector<128x128xbf16>
      %19 = arith.extf %18 : vector<128x128xbf16> to vector<128x128xf32>
      %c0_9 = arith.constant 0 : index
      %c0_10 = arith.constant 0 : index
      %20 = vector.load %arg10[%c0_9, %c0_10] : memref<2x128xf32, #tpu.memory_space<vmem>>, vector<1x128xf32>
      %21 = vector.broadcast %20 : vector<1x128xf32> to vector<128x128xf32>
      %22 = arith.mulf %19, %21 : vector<128x128xf32>
      %c1 = arith.constant 1 : index
      %c0_11 = arith.constant 0 : index
      %23 = vector.load %arg10[%c1, %c0_11] : memref<2x128xf32, #tpu.memory_space<vmem>>, vector<1x128xf32>
      %24 = vector.broadcast %23 : vector<1x128xf32> to vector<128x128xf32>
      %25 = arith.addf %22, %24 : vector<128x128xf32>
      %26 = arith.truncf %25 : vector<128x128xf32> to vector<128x128xbf16>
      %c0_12 = arith.constant 0 : index
      %c0_13 = arith.constant 0 : index
      %27 = vector.load %arg7[%c0_12, %c0_13] : memref<128x128xbf16, #tpu.memory_space<vmem>>, vector<128x128xbf16>
      tpu.vector_store %arg7[%c0_12, %c0_13], %26 {strides = array<i32>} : memref<128x128xbf16, #tpu.memory_space<vmem>>, vector<128x128xbf16>,
    } else {
    }
    return
  }
  func.func @transform_0(%arg0: i32, %arg1: i32) -> (i32, i32) {
    %c1_i32 = arith.constant 1 : i32
    %0 = arith.subi %c1_i32, %arg0 : i32
    %1 = arith.muli %arg1, %0 : i32
    %c0_i32 = arith.constant 0 : i32
    %2 = arith.muli %c0_i32, %arg0 : i32
    %3 = arith.addi %1, %2 : i32
    %c0_i32_0 = arith.constant 0 : i32
    %c0_i32_1 = arith.constant 0 : i32
    return %3, %c0_i32_0 : i32, i32
  }
  func.func @transform_1(%arg0: i32, %arg1: i32) -> (i32, i32) {
    %c0_i32 = arith.constant 0 : i32
    %c0_i32_0 = arith.constant 0 : i32
    %c0_i32_1 = arith.constant 0 : i32
    return %c0_i32, %c0_i32_0 : i32, i32
  }
  func.func @transform_2(%arg0: i32, %arg1: i32) -> (i32, i32) {
    %c0_i32 = arith.constant 0 : i32
    %c0_i32_0 = arith.constant 0 : i32
    %c0_i32_1 = arith.constant 0 : i32
    return %c0_i32, %c0_i32_0 : i32, i32
  }
  func.func @transform_3(%arg0: i32, %arg1: i32) -> (i32, i32) {
    %c0_i32 = arith.constant 0 : i32
    %c0_i32_0 = arith.constant 0 : i32
    %c0_i32_1 = arith.constant 0 : i32
    return %c0_i32, %c0_i32_0 : i32, i32
  }
  func.func @transform_4(%arg0: i32, %arg1: i32) -> (i32, i32) {
    %c0_i32 = arith.constant 0 : i32
    %c0_i32_0 = arith.constant 0 : i32
    %c0_i32_1 = arith.constant 0 : i32
    return %c0_i32, %c0_i32_0 : i32, i32
  }
  func.func @transform_5(%arg0: i32, %arg1: i32) -> (i32, i32) {
    %0 = arith.muli %arg1, %arg0 : i32
    %c0_i32 = arith.constant 0 : i32
    %c0_i32_0 = arith.constant 0 : i32
    return %0, %c0_i32 : i32, i32
  }
}

module attributes {stable_mosaic.version = 11 : i64} {
  func.func @conv_bn_kernel(%arg0: i32, %arg1: i32, %arg2: memref<32x576xbf16, #tpu.memory_space<vmem>>, %arg3: memref<576x128xbf16, #tpu.memory_space<vmem>>, %arg4: memref<1x128xf32, #tpu.memory_space<vmem>>, %arg5: memref<1x128xf32, #tpu.memory_space<vmem>>, %arg6: memref<1x128xf32, #tpu.memory_space<vmem>>, %arg7: memref<32x128xbf16, #tpu.memory_space<vmem>>, %arg8: memref<1x32x128xbf16, #tpu.memory_space<vmem>>, %arg9: memref<2x128xf32, #tpu.memory_space<vmem>>, %arg10: memref<2x128xf32, #tpu.memory_space<vmem>>) attributes {dimension_semantics = [#tpu.dimension_semantics<arbitrary>, #tpu.dimension_semantics<arbitrary>], iteration_bounds = array<i64: 2, 1>, scalar_prefetch = 0 : i64, scratch_operands = 3 : i64, tpu.core_type = #tpu.core_type<tc>, window_params = [{transform_indices = @transform_0, window_bounds = array<i64: 32, 576>}, {pipeline_mode = #tpu.pipeline_mode<synchronous>, transform_indices = @transform_1, window_bounds = array<i64: 576, 128>}, {pipeline_mode = #tpu.pipeline_mode<synchronous>, transform_indices = @transform_2, window_bounds = array<i64: 1, 128>}, {pipeline_mode = #tpu.pipeline_mode<synchronous>, transform_indices = @transform_3, window_bounds = array<i64: 1, 128>}, {pipeline_mode = #tpu.pipeline_mode<synchronous>, transform_indices = @transform_4, window_bounds = array<i64: 1, 128>}, {transform_indices = @transform_5, window_bounds = array<i64: 32, 128>}]} {
    %c0_i32 = arith.constant 0 : i32
    %0 = arith.cmpi eq, %arg0, %c0_i32 : i32
    %c0_i32_0 = arith.constant 0 : i32
    %1 = arith.cmpi eq, %arg1, %c0_i32_0 : i32
    %2 = arith.andi %0, %1 : i1
    %3 = arith.extui %2 : i1 to i32
    %c0_i32_1 = arith.constant 0 : i32
    %4 = arith.cmpi ne, %3, %c0_i32_1 : i32
    scf.if %4 {
      %cst = arith.constant 0.000000e+00 : f32
      %16 = vector.broadcast %cst : f32 to vector<2x128xf32>
      %c0 = arith.constant 0 : index
      %c0_8 = arith.constant 0 : index
      %17 = vector.load %arg9[%c0, %c0_8] : memref<2x128xf32, #tpu.memory_space<vmem>>, vector<2x128xf32>
      tpu.vector_store %arg9[%c0, %c0_8], %16 {strides = array<i32>} : memref<2x128xf32, #tpu.memory_space<vmem>>, vector<2x128xf32>,
    } else {
    }
    %c0_i32_2 = arith.constant 0 : i32
    %5 = arith.cmpi eq, %arg0, %c0_i32_2 : i32
    %6 = arith.extui %5 : i1 to i32
    %c0_i32_3 = arith.constant 0 : i32
    %7 = arith.cmpi ne, %6, %c0_i32_3 : i32
    scf.if %7 {
      %c0 = arith.constant 0 : index
      %c0_8 = arith.constant 0 : index
      %16 = vector.load %arg2[%c0, %c0_8] : memref<32x576xbf16, #tpu.memory_space<vmem>>, vector<32x576xbf16>
      %c0_9 = arith.constant 0 : index
      %c0_10 = arith.constant 0 : index
      %17 = vector.load %arg3[%c0_9, %c0_10] : memref<576x128xbf16, #tpu.memory_space<vmem>>, vector<576x128xbf16>
      %cst = arith.constant dense<0.000000e+00> : vector<32x128xf32>
      %18 = tpu.matmul %16, %17, %cst {dimension_numbers = #tpu.dot_dimension_numbers<[1], [0], [0], [1], [0, 0, 1, 1], [], []>} : vector<32x576xbf16>, vector<576x128xbf16>, vector<32x128xf32> -> vector<32x128xf32>
      %c0_11 = arith.constant 0 : index
      %c0_12 = arith.constant 0 : index
      %19 = vector.load %arg4[%c0_11, %c0_12] : memref<1x128xf32, #tpu.memory_space<vmem>>, vector<1x128xf32>
      %20 = vector.broadcast %19 : vector<1x128xf32> to vector<32x128xf32>
      %21 = arith.addf %18, %20 : vector<32x128xf32>
      %cst_13 = arith.constant 0.000000e+00 : f32
      %22 = vector.broadcast %cst_13 : f32 to vector<32x128xf32>
      %23 = arith.maximumf %21, %22 : vector<32x128xf32>
      %24 = arith.truncf %23 : vector<32x128xf32> to vector<32x128xbf16>
      %25 = arith.index_cast %arg1 : i32 to index
      %c0_14 = arith.constant 0 : index
      %c0_15 = arith.constant 0 : index
      %26 = vector.load %arg8[%25, %c0_14, %c0_15] : memref<1x32x128xbf16, #tpu.memory_space<vmem>>, vector<1x32x128xbf16>
      %27 = vector.shape_cast %26 : vector<1x32x128xbf16> to vector<32x128xbf16>
      %28 = vector.shape_cast %24 : vector<32x128xbf16> to vector<1x32x128xbf16>
      tpu.vector_store %arg8[%25, %c0_14, %c0_15], %28 {strides = array<i32>} : memref<1x32x128xbf16, #tpu.memory_space<vmem>>, vector<1x32x128xbf16>,
      %29 = tpu.iota {dimensions = array<i32: 0>} : vector<32x1xi32>
      %c32_i32 = arith.constant 32 : i32
      %30 = arith.muli %arg1, %c32_i32 : i32
      %31 = vector.broadcast %30 : i32 to vector<32x1xi32>
      %32 = arith.addi %29, %31 : vector<32x1xi32>
      %c32_i32_16 = arith.constant 32 : i32
      %33 = vector.broadcast %c32_i32_16 : i32 to vector<32x1xi32>
      %34 = arith.cmpi slt, %32, %33 : vector<32x1xi32>
      %35 = arith.extui %34 : vector<32x1xi1> to vector<32x1xi32>
      %36 = arith.sitofp %35 : vector<32x1xi32> to vector<32x1xf32>
      %37 = vector.broadcast %36 : vector<32x1xf32> to vector<32x128xf32>
      %38 = arith.mulf %23, %37 : vector<32x128xf32>
      %c0_17 = arith.constant 0 : index
      %c0_18 = arith.constant 0 : index
      %39 = vector.load %arg9[%c0_17, %c0_18] : memref<2x128xf32, #tpu.memory_space<vmem>>, vector<1x128xf32>
      %cst_19 = arith.constant dense<0.000000e+00> : vector<128xf32>
      %40 = vector.multi_reduction <add>, %38, %cst_19 [0] : vector<32x128xf32> to vector<128xf32>
      %41 = vector.shape_cast %40 : vector<128xf32> to vector<1x128xf32>
      %42 = arith.addf %39, %41 : vector<1x128xf32>
      %c0_20 = arith.constant 0 : index
      %c0_21 = arith.constant 0 : index
      %43 = vector.load %arg9[%c0_20, %c0_21] : memref<2x128xf32, #tpu.memory_space<vmem>>, vector<1x128xf32>
      tpu.vector_store %arg9[%c0_20, %c0_21], %42 {strides = array<i32>} : memref<2x128xf32, #tpu.memory_space<vmem>>, vector<1x128xf32>,
      %c1 = arith.constant 1 : index
      %c0_22 = arith.constant 0 : index
      %44 = vector.load %arg9[%c1, %c0_22] : memref<2x128xf32, #tpu.memory_space<vmem>>, vector<1x128xf32>
      %45 = arith.mulf %38, %23 : vector<32x128xf32>
      %cst_23 = arith.constant dense<0.000000e+00> : vector<128xf32>
      %46 = vector.multi_reduction <add>, %45, %cst_23 [0] : vector<32x128xf32> to vector<128xf32>
      %47 = vector.shape_cast %46 : vector<128xf32> to vector<1x128xf32>
      %48 = arith.addf %44, %47 : vector<1x128xf32>
      %c1_24 = arith.constant 1 : index
      %c0_25 = arith.constant 0 : index
      %49 = vector.load %arg9[%c1_24, %c0_25] : memref<2x128xf32, #tpu.memory_space<vmem>>, vector<1x128xf32>
      tpu.vector_store %arg9[%c1_24, %c0_25], %48 {strides = array<i32>} : memref<2x128xf32, #tpu.memory_space<vmem>>, vector<1x128xf32>,
    } else {
    }
    %c1_i32 = arith.constant 1 : i32
    %8 = arith.cmpi eq, %arg0, %c1_i32 : i32
    %c0_i32_4 = arith.constant 0 : i32
    %9 = arith.cmpi eq, %arg1, %c0_i32_4 : i32
    %10 = arith.andi %8, %9 : i1
    %11 = arith.extui %10 : i1 to i32
    %c0_i32_5 = arith.constant 0 : i32
    %12 = arith.cmpi ne, %11, %c0_i32_5 : i32
    scf.if %12 {
      %c0 = arith.constant 0 : index
      %c0_8 = arith.constant 0 : index
      %16 = vector.load %arg9[%c0, %c0_8] : memref<2x128xf32, #tpu.memory_space<vmem>>, vector<1x128xf32>
      %cst = arith.constant 3.125000e-02 : f32
      %17 = vector.broadcast %cst : f32 to vector<1x128xf32>
      %18 = arith.mulf %16, %17 : vector<1x128xf32>
      %c1 = arith.constant 1 : index
      %c0_9 = arith.constant 0 : index
      %19 = vector.load %arg9[%c1, %c0_9] : memref<2x128xf32, #tpu.memory_space<vmem>>, vector<1x128xf32>
      %cst_10 = arith.constant 3.125000e-02 : f32
      %20 = vector.broadcast %cst_10 : f32 to vector<1x128xf32>
      %21 = arith.mulf %19, %20 : vector<1x128xf32>
      %22 = arith.mulf %18, %18 : vector<1x128xf32>
      %23 = arith.subf %21, %22 : vector<1x128xf32>
      %cst_11 = arith.constant 0.000000e+00 : f32
      %24 = vector.broadcast %cst_11 : f32 to vector<1x128xf32>
      %25 = arith.maximumf %23, %24 : vector<1x128xf32>
      %c0_12 = arith.constant 0 : index
      %c0_13 = arith.constant 0 : index
      %26 = vector.load %arg5[%c0_12, %c0_13] : memref<1x128xf32, #tpu.memory_space<vmem>>, vector<1x128xf32>
      %cst_14 = arith.constant 9.99999974E-6 : f32
      %27 = vector.broadcast %cst_14 : f32 to vector<1x128xf32>
      %28 = arith.addf %25, %27 : vector<1x128xf32>
      %29 = math.rsqrt %28 : vector<1x128xf32>
      %30 = arith.mulf %26, %29 : vector<1x128xf32>
      %c0_15 = arith.constant 0 : index
      %c0_16 = arith.constant 0 : index
      %31 = vector.load %arg10[%c0_15, %c0_16] : memref<2x128xf32, #tpu.memory_space<vmem>>, vector<1x128xf32>
      tpu.vector_store %arg10[%c0_15, %c0_16], %30 {strides = array<i32>} : memref<2x128xf32, #tpu.memory_space<vmem>>, vector<1x128xf32>,
      %c0_17 = arith.constant 0 : index
      %c0_18 = arith.constant 0 : index
      %32 = vector.load %arg6[%c0_17, %c0_18] : memref<1x128xf32, #tpu.memory_space<vmem>>, vector<1x128xf32>
      %33 = arith.mulf %18, %30 : vector<1x128xf32>
      %34 = arith.subf %32, %33 : vector<1x128xf32>
      %c1_19 = arith.constant 1 : index
      %c0_20 = arith.constant 0 : index
      %35 = vector.load %arg10[%c1_19, %c0_20] : memref<2x128xf32, #tpu.memory_space<vmem>>, vector<1x128xf32>
      tpu.vector_store %arg10[%c1_19, %c0_20], %34 {strides = array<i32>} : memref<2x128xf32, #tpu.memory_space<vmem>>, vector<1x128xf32>,
    } else {
    }
    %c1_i32_6 = arith.constant 1 : i32
    %13 = arith.cmpi eq, %arg0, %c1_i32_6 : i32
    %14 = arith.extui %13 : i1 to i32
    %c0_i32_7 = arith.constant 0 : i32
    %15 = arith.cmpi ne, %14, %c0_i32_7 : i32
    scf.if %15 {
      %16 = arith.index_cast %arg1 : i32 to index
      %c0 = arith.constant 0 : index
      %c0_8 = arith.constant 0 : index
      %17 = vector.load %arg8[%16, %c0, %c0_8] : memref<1x32x128xbf16, #tpu.memory_space<vmem>>, vector<1x32x128xbf16>
      %18 = vector.shape_cast %17 : vector<1x32x128xbf16> to vector<32x128xbf16>
      %19 = arith.extf %18 : vector<32x128xbf16> to vector<32x128xf32>
      %c0_9 = arith.constant 0 : index
      %c0_10 = arith.constant 0 : index
      %20 = vector.load %arg10[%c0_9, %c0_10] : memref<2x128xf32, #tpu.memory_space<vmem>>, vector<1x128xf32>
      %21 = vector.broadcast %20 : vector<1x128xf32> to vector<32x128xf32>
      %22 = arith.mulf %19, %21 : vector<32x128xf32>
      %c1 = arith.constant 1 : index
      %c0_11 = arith.constant 0 : index
      %23 = vector.load %arg10[%c1, %c0_11] : memref<2x128xf32, #tpu.memory_space<vmem>>, vector<1x128xf32>
      %24 = vector.broadcast %23 : vector<1x128xf32> to vector<32x128xf32>
      %25 = arith.addf %22, %24 : vector<32x128xf32>
      %26 = arith.truncf %25 : vector<32x128xf32> to vector<32x128xbf16>
      %c0_12 = arith.constant 0 : index
      %c0_13 = arith.constant 0 : index
      %27 = vector.load %arg7[%c0_12, %c0_13] : memref<32x128xbf16, #tpu.memory_space<vmem>>, vector<32x128xbf16>
      tpu.vector_store %arg7[%c0_12, %c0_13], %26 {strides = array<i32>} : memref<32x128xbf16, #tpu.memory_space<vmem>>, vector<32x128xbf16>,
    } else {
    }
    return
  }
  func.func @transform_0(%arg0: i32, %arg1: i32) -> (i32, i32) {
    %c1_i32 = arith.constant 1 : i32
    %0 = arith.subi %c1_i32, %arg0 : i32
    %1 = arith.muli %arg1, %0 : i32
    %c0_i32 = arith.constant 0 : i32
    %2 = arith.muli %c0_i32, %arg0 : i32
    %3 = arith.addi %1, %2 : i32
    %c0_i32_0 = arith.constant 0 : i32
    %c0_i32_1 = arith.constant 0 : i32
    return %3, %c0_i32_0 : i32, i32
  }
  func.func @transform_1(%arg0: i32, %arg1: i32) -> (i32, i32) {
    %c0_i32 = arith.constant 0 : i32
    %c0_i32_0 = arith.constant 0 : i32
    %c0_i32_1 = arith.constant 0 : i32
    return %c0_i32, %c0_i32_0 : i32, i32
  }
  func.func @transform_2(%arg0: i32, %arg1: i32) -> (i32, i32) {
    %c0_i32 = arith.constant 0 : i32
    %c0_i32_0 = arith.constant 0 : i32
    %c0_i32_1 = arith.constant 0 : i32
    return %c0_i32, %c0_i32_0 : i32, i32
  }
  func.func @transform_3(%arg0: i32, %arg1: i32) -> (i32, i32) {
    %c0_i32 = arith.constant 0 : i32
    %c0_i32_0 = arith.constant 0 : i32
    %c0_i32_1 = arith.constant 0 : i32
    return %c0_i32, %c0_i32_0 : i32, i32
  }
  func.func @transform_4(%arg0: i32, %arg1: i32) -> (i32, i32) {
    %c0_i32 = arith.constant 0 : i32
    %c0_i32_0 = arith.constant 0 : i32
    %c0_i32_1 = arith.constant 0 : i32
    return %c0_i32, %c0_i32_0 : i32, i32
  }
  func.func @transform_5(%arg0: i32, %arg1: i32) -> (i32, i32) {
    %0 = arith.muli %arg1, %arg0 : i32
    %c0_i32 = arith.constant 0 : i32
    %c0_i32_0 = arith.constant 0 : i32
    return %0, %c0_i32 : i32, i32
  }
}

module attributes {stable_mosaic.version = 11 : i64} {
  func.func @heads_kernel(%arg0: i32, %arg1: memref<8x512xbf16, #tpu.memory_space<vmem>>, %arg2: memref<512x1024xbf16, #tpu.memory_space<vmem>>, %arg3: memref<1x1024xf32, #tpu.memory_space<vmem>>, %arg4: memref<1024x256xbf16, #tpu.memory_space<vmem>>, %arg5: memref<1x256xf32, #tpu.memory_space<vmem>>, %arg6: memref<256x128xbf16, #tpu.memory_space<vmem>>, %arg7: memref<1x128xf32, #tpu.memory_space<vmem>>, %arg8: memref<8x128xf32, #tpu.memory_space<vmem>>) attributes {dimension_semantics = [#tpu.dimension_semantics<parallel>], iteration_bounds = array<i64: 1>, scalar_prefetch = 0 : i64, scratch_operands = 0 : i64, tpu.core_type = #tpu.core_type<tc>, window_params = [{transform_indices = @transform_0, window_bounds = array<i64: 8, 512>}, {pipeline_mode = #tpu.pipeline_mode<synchronous>, transform_indices = @transform_1, window_bounds = array<i64: 512, 1024>}, {pipeline_mode = #tpu.pipeline_mode<synchronous>, transform_indices = @transform_2, window_bounds = array<i64: 1, 1024>}, {pipeline_mode = #tpu.pipeline_mode<synchronous>, transform_indices = @transform_3, window_bounds = array<i64: 1024, 256>}, {pipeline_mode = #tpu.pipeline_mode<synchronous>, transform_indices = @transform_4, window_bounds = array<i64: 1, 256>}, {pipeline_mode = #tpu.pipeline_mode<synchronous>, transform_indices = @transform_5, window_bounds = array<i64: 256, 128>}, {pipeline_mode = #tpu.pipeline_mode<synchronous>, transform_indices = @transform_6, window_bounds = array<i64: 1, 128>}, {transform_indices = @transform_7, window_bounds = array<i64: 8, 128>}]} {
    %c0 = arith.constant 0 : index
    %c0_0 = arith.constant 0 : index
    %0 = vector.load %arg1[%c0, %c0_0] : memref<8x512xbf16, #tpu.memory_space<vmem>>, vector<8x512xbf16>
    %c0_1 = arith.constant 0 : index
    %c0_2 = arith.constant 0 : index
    %1 = vector.load %arg2[%c0_1, %c0_2] : memref<512x1024xbf16, #tpu.memory_space<vmem>>, vector<512x1024xbf16>
    %cst = arith.constant dense<0.000000e+00> : vector<8x1024xf32>
    %2 = tpu.matmul %0, %1, %cst {dimension_numbers = #tpu.dot_dimension_numbers<[1], [0], [0], [1], [0, 0, 1, 1], [], []>} : vector<8x512xbf16>, vector<512x1024xbf16>, vector<8x1024xf32> -> vector<8x1024xf32>
    %c0_3 = arith.constant 0 : index
    %c0_4 = arith.constant 0 : index
    %3 = vector.load %arg3[%c0_3, %c0_4] : memref<1x1024xf32, #tpu.memory_space<vmem>>, vector<1x1024xf32>
    %4 = vector.broadcast %3 : vector<1x1024xf32> to vector<8x1024xf32>
    %5 = arith.addf %2, %4 : vector<8x1024xf32>
    %cst_5 = arith.constant 0.000000e+00 : f32
    %6 = vector.broadcast %cst_5 : f32 to vector<8x1024xf32>
    %7 = arith.maximumf %5, %6 : vector<8x1024xf32>
    %8 = arith.truncf %7 : vector<8x1024xf32> to vector<8x1024xbf16>
    %c0_6 = arith.constant 0 : index
    %c0_7 = arith.constant 0 : index
    %9 = vector.load %arg4[%c0_6, %c0_7] : memref<1024x256xbf16, #tpu.memory_space<vmem>>, vector<1024x256xbf16>
    %cst_8 = arith.constant dense<0.000000e+00> : vector<8x256xf32>
    %10 = tpu.matmul %8, %9, %cst_8 {dimension_numbers = #tpu.dot_dimension_numbers<[1], [0], [0], [1], [0, 0, 1, 1], [], []>} : vector<8x1024xbf16>, vector<1024x256xbf16>, vector<8x256xf32> -> vector<8x256xf32>
    %c0_9 = arith.constant 0 : index
    %c0_10 = arith.constant 0 : index
    %11 = vector.load %arg5[%c0_9, %c0_10] : memref<1x256xf32, #tpu.memory_space<vmem>>, vector<1x256xf32>
    %12 = vector.broadcast %11 : vector<1x256xf32> to vector<8x256xf32>
    %13 = arith.addf %10, %12 : vector<8x256xf32>
    %cst_11 = arith.constant 0.000000e+00 : f32
    %14 = vector.broadcast %cst_11 : f32 to vector<8x256xf32>
    %15 = arith.maximumf %13, %14 : vector<8x256xf32>
    %16 = arith.truncf %15 : vector<8x256xf32> to vector<8x256xbf16>
    %c0_12 = arith.constant 0 : index
    %c0_13 = arith.constant 0 : index
    %17 = vector.load %arg6[%c0_12, %c0_13] : memref<256x128xbf16, #tpu.memory_space<vmem>>, vector<256x128xbf16>
    %cst_14 = arith.constant dense<0.000000e+00> : vector<8x128xf32>
    %18 = tpu.matmul %16, %17, %cst_14 {dimension_numbers = #tpu.dot_dimension_numbers<[1], [0], [0], [1], [0, 0, 1, 1], [], []>} : vector<8x256xbf16>, vector<256x128xbf16>, vector<8x128xf32> -> vector<8x128xf32>
    %c0_15 = arith.constant 0 : index
    %c0_16 = arith.constant 0 : index
    %19 = vector.load %arg7[%c0_15, %c0_16] : memref<1x128xf32, #tpu.memory_space<vmem>>, vector<1x128xf32>
    %20 = vector.broadcast %19 : vector<1x128xf32> to vector<8x128xf32>
    %21 = arith.addf %18, %20 : vector<8x128xf32>
    %22 = tpu.iota {dimensions = array<i32: 1>} : vector<8x128xi32>
    %c3_i32 = arith.constant 3 : i32
    %23 = vector.broadcast %c3_i32 : i32 to vector<8x128xi32>
    %24 = arith.cmpi slt, %22, %23 : vector<8x128xi32>
    %25 = math.tanh %21 : vector<8x128xf32>
    %26 = arith.select %24, %25, %21 : vector<8x128xi1>, vector<8x128xf32>
    %c0_17 = arith.constant 0 : index
    %c0_18 = arith.constant 0 : index
    %27 = vector.load %arg8[%c0_17, %c0_18] : memref<8x128xf32, #tpu.memory_space<vmem>>, vector<8x128xf32>
    tpu.vector_store %arg8[%c0_17, %c0_18], %26 {strides = array<i32>} : memref<8x128xf32, #tpu.memory_space<vmem>>, vector<8x128xf32>,
    return
  }
  func.func @transform_0(%arg0: i32) -> (i32, i32) {
    %c0_i32 = arith.constant 0 : i32
    %c0_i32_0 = arith.constant 0 : i32
    return %arg0, %c0_i32 : i32, i32
  }
  func.func @transform_1(%arg0: i32) -> (i32, i32) {
    %c0_i32 = arith.constant 0 : i32
    %c0_i32_0 = arith.constant 0 : i32
    %c0_i32_1 = arith.constant 0 : i32
    return %c0_i32, %c0_i32_0 : i32, i32
  }
  func.func @transform_2(%arg0: i32) -> (i32, i32) {
    %c0_i32 = arith.constant 0 : i32
    %c0_i32_0 = arith.constant 0 : i32
    %c0_i32_1 = arith.constant 0 : i32
    return %c0_i32, %c0_i32_0 : i32, i32
  }
  func.func @transform_3(%arg0: i32) -> (i32, i32) {
    %c0_i32 = arith.constant 0 : i32
    %c0_i32_0 = arith.constant 0 : i32
    %c0_i32_1 = arith.constant 0 : i32
    return %c0_i32, %c0_i32_0 : i32, i32
  }
  func.func @transform_4(%arg0: i32) -> (i32, i32) {
    %c0_i32 = arith.constant 0 : i32
    %c0_i32_0 = arith.constant 0 : i32
    %c0_i32_1 = arith.constant 0 : i32
    return %c0_i32, %c0_i32_0 : i32, i32
  }
  func.func @transform_5(%arg0: i32) -> (i32, i32) {
    %c0_i32 = arith.constant 0 : i32
    %c0_i32_0 = arith.constant 0 : i32
    %c0_i32_1 = arith.constant 0 : i32
    return %c0_i32, %c0_i32_0 : i32, i32
  }
  func.func @transform_6(%arg0: i32) -> (i32, i32) {
    %c0_i32 = arith.constant 0 : i32
    %c0_i32_0 = arith.constant 0 : i32
    %c0_i32_1 = arith.constant 0 : i32
    return %c0_i32, %c0_i32_0 : i32, i32
  }
  func.func @transform_7(%arg0: i32) -> (i32, i32) {
    %c0_i32 = arith.constant 0 : i32
    %c0_i32_0 = arith.constant 0 : i32
    return %arg0, %c0_i32 : i32, i32
  }
}

module attributes {stable_mosaic.version = 11 : i64} {
  func.func @conv_bn_kernel(%arg0: i32, %arg1: i32, %arg2: memref<8x1152xbf16, #tpu.memory_space<vmem>>, %arg3: memref<1152x128xbf16, #tpu.memory_space<vmem>>, %arg4: memref<1x128xf32, #tpu.memory_space<vmem>>, %arg5: memref<1x128xf32, #tpu.memory_space<vmem>>, %arg6: memref<1x128xf32, #tpu.memory_space<vmem>>, %arg7: memref<8x128xbf16, #tpu.memory_space<vmem>>, %arg8: memref<1x8x128xbf16, #tpu.memory_space<vmem>>, %arg9: memref<2x128xf32, #tpu.memory_space<vmem>>, %arg10: memref<2x128xf32, #tpu.memory_space<vmem>>) attributes {dimension_semantics = [#tpu.dimension_semantics<arbitrary>, #tpu.dimension_semantics<arbitrary>], iteration_bounds = array<i64: 2, 1>, scalar_prefetch = 0 : i64, scratch_operands = 3 : i64, tpu.core_type = #tpu.core_type<tc>, window_params = [{transform_indices = @transform_0, window_bounds = array<i64: 8, 1152>}, {pipeline_mode = #tpu.pipeline_mode<synchronous>, transform_indices = @transform_1, window_bounds = array<i64: 1152, 128>}, {pipeline_mode = #tpu.pipeline_mode<synchronous>, transform_indices = @transform_2, window_bounds = array<i64: 1, 128>}, {pipeline_mode = #tpu.pipeline_mode<synchronous>, transform_indices = @transform_3, window_bounds = array<i64: 1, 128>}, {pipeline_mode = #tpu.pipeline_mode<synchronous>, transform_indices = @transform_4, window_bounds = array<i64: 1, 128>}, {transform_indices = @transform_5, window_bounds = array<i64: 8, 128>}]} {
    %c0_i32 = arith.constant 0 : i32
    %0 = arith.cmpi eq, %arg0, %c0_i32 : i32
    %c0_i32_0 = arith.constant 0 : i32
    %1 = arith.cmpi eq, %arg1, %c0_i32_0 : i32
    %2 = arith.andi %0, %1 : i1
    %3 = arith.extui %2 : i1 to i32
    %c0_i32_1 = arith.constant 0 : i32
    %4 = arith.cmpi ne, %3, %c0_i32_1 : i32
    scf.if %4 {
      %cst = arith.constant 0.000000e+00 : f32
      %16 = vector.broadcast %cst : f32 to vector<2x128xf32>
      %c0 = arith.constant 0 : index
      %c0_8 = arith.constant 0 : index
      %17 = vector.load %arg9[%c0, %c0_8] : memref<2x128xf32, #tpu.memory_space<vmem>>, vector<2x128xf32>
      tpu.vector_store %arg9[%c0, %c0_8], %16 {strides = array<i32>} : memref<2x128xf32, #tpu.memory_space<vmem>>, vector<2x128xf32>,
    } else {
    }
    %c0_i32_2 = arith.constant 0 : i32
    %5 = arith.cmpi eq, %arg0, %c0_i32_2 : i32
    %6 = arith.extui %5 : i1 to i32
    %c0_i32_3 = arith.constant 0 : i32
    %7 = arith.cmpi ne, %6, %c0_i32_3 : i32
    scf.if %7 {
      %c0 = arith.constant 0 : index
      %c0_8 = arith.constant 0 : index
      %16 = vector.load %arg2[%c0, %c0_8] : memref<8x1152xbf16, #tpu.memory_space<vmem>>, vector<8x1152xbf16>
      %c0_9 = arith.constant 0 : index
      %c0_10 = arith.constant 0 : index
      %17 = vector.load %arg3[%c0_9, %c0_10] : memref<1152x128xbf16, #tpu.memory_space<vmem>>, vector<1152x128xbf16>
      %cst = arith.constant dense<0.000000e+00> : vector<8x128xf32>
      %18 = tpu.matmul %16, %17, %cst {dimension_numbers = #tpu.dot_dimension_numbers<[1], [0], [0], [1], [0, 0, 1, 1], [], []>} : vector<8x1152xbf16>, vector<1152x128xbf16>, vector<8x128xf32> -> vector<8x128xf32>
      %c0_11 = arith.constant 0 : index
      %c0_12 = arith.constant 0 : index
      %19 = vector.load %arg4[%c0_11, %c0_12] : memref<1x128xf32, #tpu.memory_space<vmem>>, vector<1x128xf32>
      %20 = vector.broadcast %19 : vector<1x128xf32> to vector<8x128xf32>
      %21 = arith.addf %18, %20 : vector<8x128xf32>
      %cst_13 = arith.constant 0.000000e+00 : f32
      %22 = vector.broadcast %cst_13 : f32 to vector<8x128xf32>
      %23 = arith.maximumf %21, %22 : vector<8x128xf32>
      %24 = arith.truncf %23 : vector<8x128xf32> to vector<8x128xbf16>
      %25 = arith.index_cast %arg1 : i32 to index
      %c0_14 = arith.constant 0 : index
      %c0_15 = arith.constant 0 : index
      %26 = vector.load %arg8[%25, %c0_14, %c0_15] : memref<1x8x128xbf16, #tpu.memory_space<vmem>>, vector<1x8x128xbf16>
      %27 = vector.shape_cast %26 : vector<1x8x128xbf16> to vector<8x128xbf16>
      %28 = vector.shape_cast %24 : vector<8x128xbf16> to vector<1x8x128xbf16>
      tpu.vector_store %arg8[%25, %c0_14, %c0_15], %28 {strides = array<i32>} : memref<1x8x128xbf16, #tpu.memory_space<vmem>>, vector<1x8x128xbf16>,
      %29 = tpu.iota {dimensions = array<i32: 0>} : vector<8x1xi32>
      %c8_i32 = arith.constant 8 : i32
      %30 = arith.muli %arg1, %c8_i32 : i32
      %31 = vector.broadcast %30 : i32 to vector<8x1xi32>
      %32 = arith.addi %29, %31 : vector<8x1xi32>
      %c8_i32_16 = arith.constant 8 : i32
      %33 = vector.broadcast %c8_i32_16 : i32 to vector<8x1xi32>
      %34 = arith.cmpi slt, %32, %33 : vector<8x1xi32>
      %35 = arith.extui %34 : vector<8x1xi1> to vector<8x1xi32>
      %36 = arith.sitofp %35 : vector<8x1xi32> to vector<8x1xf32>
      %37 = vector.broadcast %36 : vector<8x1xf32> to vector<8x128xf32>
      %38 = arith.mulf %23, %37 : vector<8x128xf32>
      %c0_17 = arith.constant 0 : index
      %c0_18 = arith.constant 0 : index
      %39 = vector.load %arg9[%c0_17, %c0_18] : memref<2x128xf32, #tpu.memory_space<vmem>>, vector<1x128xf32>
      %cst_19 = arith.constant dense<0.000000e+00> : vector<128xf32>
      %40 = vector.multi_reduction <add>, %38, %cst_19 [0] : vector<8x128xf32> to vector<128xf32>
      %41 = vector.shape_cast %40 : vector<128xf32> to vector<1x128xf32>
      %42 = arith.addf %39, %41 : vector<1x128xf32>
      %c0_20 = arith.constant 0 : index
      %c0_21 = arith.constant 0 : index
      %43 = vector.load %arg9[%c0_20, %c0_21] : memref<2x128xf32, #tpu.memory_space<vmem>>, vector<1x128xf32>
      tpu.vector_store %arg9[%c0_20, %c0_21], %42 {strides = array<i32>} : memref<2x128xf32, #tpu.memory_space<vmem>>, vector<1x128xf32>,
      %c1 = arith.constant 1 : index
      %c0_22 = arith.constant 0 : index
      %44 = vector.load %arg9[%c1, %c0_22] : memref<2x128xf32, #tpu.memory_space<vmem>>, vector<1x128xf32>
      %45 = arith.mulf %38, %23 : vector<8x128xf32>
      %cst_23 = arith.constant dense<0.000000e+00> : vector<128xf32>
      %46 = vector.multi_reduction <add>, %45, %cst_23 [0] : vector<8x128xf32> to vector<128xf32>
      %47 = vector.shape_cast %46 : vector<128xf32> to vector<1x128xf32>
      %48 = arith.addf %44, %47 : vector<1x128xf32>
      %c1_24 = arith.constant 1 : index
      %c0_25 = arith.constant 0 : index
      %49 = vector.load %arg9[%c1_24, %c0_25] : memref<2x128xf32, #tpu.memory_space<vmem>>, vector<1x128xf32>
      tpu.vector_store %arg9[%c1_24, %c0_25], %48 {strides = array<i32>} : memref<2x128xf32, #tpu.memory_space<vmem>>, vector<1x128xf32>,
    } else {
    }
    %c1_i32 = arith.constant 1 : i32
    %8 = arith.cmpi eq, %arg0, %c1_i32 : i32
    %c0_i32_4 = arith.constant 0 : i32
    %9 = arith.cmpi eq, %arg1, %c0_i32_4 : i32
    %10 = arith.andi %8, %9 : i1
    %11 = arith.extui %10 : i1 to i32
    %c0_i32_5 = arith.constant 0 : i32
    %12 = arith.cmpi ne, %11, %c0_i32_5 : i32
    scf.if %12 {
      %c0 = arith.constant 0 : index
      %c0_8 = arith.constant 0 : index
      %16 = vector.load %arg9[%c0, %c0_8] : memref<2x128xf32, #tpu.memory_space<vmem>>, vector<1x128xf32>
      %cst = arith.constant 1.250000e-01 : f32
      %17 = vector.broadcast %cst : f32 to vector<1x128xf32>
      %18 = arith.mulf %16, %17 : vector<1x128xf32>
      %c1 = arith.constant 1 : index
      %c0_9 = arith.constant 0 : index
      %19 = vector.load %arg9[%c1, %c0_9] : memref<2x128xf32, #tpu.memory_space<vmem>>, vector<1x128xf32>
      %cst_10 = arith.constant 1.250000e-01 : f32
      %20 = vector.broadcast %cst_10 : f32 to vector<1x128xf32>
      %21 = arith.mulf %19, %20 : vector<1x128xf32>
      %22 = arith.mulf %18, %18 : vector<1x128xf32>
      %23 = arith.subf %21, %22 : vector<1x128xf32>
      %cst_11 = arith.constant 0.000000e+00 : f32
      %24 = vector.broadcast %cst_11 : f32 to vector<1x128xf32>
      %25 = arith.maximumf %23, %24 : vector<1x128xf32>
      %c0_12 = arith.constant 0 : index
      %c0_13 = arith.constant 0 : index
      %26 = vector.load %arg5[%c0_12, %c0_13] : memref<1x128xf32, #tpu.memory_space<vmem>>, vector<1x128xf32>
      %cst_14 = arith.constant 9.99999974E-6 : f32
      %27 = vector.broadcast %cst_14 : f32 to vector<1x128xf32>
      %28 = arith.addf %25, %27 : vector<1x128xf32>
      %29 = math.rsqrt %28 : vector<1x128xf32>
      %30 = arith.mulf %26, %29 : vector<1x128xf32>
      %c0_15 = arith.constant 0 : index
      %c0_16 = arith.constant 0 : index
      %31 = vector.load %arg10[%c0_15, %c0_16] : memref<2x128xf32, #tpu.memory_space<vmem>>, vector<1x128xf32>
      tpu.vector_store %arg10[%c0_15, %c0_16], %30 {strides = array<i32>} : memref<2x128xf32, #tpu.memory_space<vmem>>, vector<1x128xf32>,
      %c0_17 = arith.constant 0 : index
      %c0_18 = arith.constant 0 : index
      %32 = vector.load %arg6[%c0_17, %c0_18] : memref<1x128xf32, #tpu.memory_space<vmem>>, vector<1x128xf32>
      %33 = arith.mulf %18, %30 : vector<1x128xf32>
      %34 = arith.subf %32, %33 : vector<1x128xf32>
      %c1_19 = arith.constant 1 : index
      %c0_20 = arith.constant 0 : index
      %35 = vector.load %arg10[%c1_19, %c0_20] : memref<2x128xf32, #tpu.memory_space<vmem>>, vector<1x128xf32>
      tpu.vector_store %arg10[%c1_19, %c0_20], %34 {strides = array<i32>} : memref<2x128xf32, #tpu.memory_space<vmem>>, vector<1x128xf32>,
    } else {
    }
    %c1_i32_6 = arith.constant 1 : i32
    %13 = arith.cmpi eq, %arg0, %c1_i32_6 : i32
    %14 = arith.extui %13 : i1 to i32
    %c0_i32_7 = arith.constant 0 : i32
    %15 = arith.cmpi ne, %14, %c0_i32_7 : i32
    scf.if %15 {
      %16 = arith.index_cast %arg1 : i32 to index
      %c0 = arith.constant 0 : index
      %c0_8 = arith.constant 0 : index
      %17 = vector.load %arg8[%16, %c0, %c0_8] : memref<1x8x128xbf16, #tpu.memory_space<vmem>>, vector<1x8x128xbf16>
      %18 = vector.shape_cast %17 : vector<1x8x128xbf16> to vector<8x128xbf16>
      %19 = arith.extf %18 : vector<8x128xbf16> to vector<8x128xf32>
      %c0_9 = arith.constant 0 : index
      %c0_10 = arith.constant 0 : index
      %20 = vector.load %arg10[%c0_9, %c0_10] : memref<2x128xf32, #tpu.memory_space<vmem>>, vector<1x128xf32>
      %21 = vector.broadcast %20 : vector<1x128xf32> to vector<8x128xf32>
      %22 = arith.mulf %19, %21 : vector<8x128xf32>
      %c1 = arith.constant 1 : index
      %c0_11 = arith.constant 0 : index
      %23 = vector.load %arg10[%c1, %c0_11] : memref<2x128xf32, #tpu.memory_space<vmem>>, vector<1x128xf32>
      %24 = vector.broadcast %23 : vector<1x128xf32> to vector<8x128xf32>
      %25 = arith.addf %22, %24 : vector<8x128xf32>
      %26 = arith.truncf %25 : vector<8x128xf32> to vector<8x128xbf16>
      %c0_12 = arith.constant 0 : index
      %c0_13 = arith.constant 0 : index
      %27 = vector.load %arg7[%c0_12, %c0_13] : memref<8x128xbf16, #tpu.memory_space<vmem>>, vector<8x128xbf16>
      tpu.vector_store %arg7[%c0_12, %c0_13], %26 {strides = array<i32>} : memref<8x128xbf16, #tpu.memory_space<vmem>>, vector<8x128xbf16>,
    } else {
    }
    return
  }
  func.func @transform_0(%arg0: i32, %arg1: i32) -> (i32, i32) {
    %c1_i32 = arith.constant 1 : i32
    %0 = arith.subi %c1_i32, %arg0 : i32
    %1 = arith.muli %arg1, %0 : i32
    %c0_i32 = arith.constant 0 : i32
    %2 = arith.muli %c0_i32, %arg0 : i32
    %3 = arith.addi %1, %2 : i32
    %c0_i32_0 = arith.constant 0 : i32
    %c0_i32_1 = arith.constant 0 : i32
    return %3, %c0_i32_0 : i32, i32
  }
  func.func @transform_1(%arg0: i32, %arg1: i32) -> (i32, i32) {
    %c0_i32 = arith.constant 0 : i32
    %c0_i32_0 = arith.constant 0 : i32
    %c0_i32_1 = arith.constant 0 : i32
    return %c0_i32, %c0_i32_0 : i32, i32
  }
  func.func @transform_2(%arg0: i32, %arg1: i32) -> (i32, i32) {
    %c0_i32 = arith.constant 0 : i32
    %c0_i32_0 = arith.constant 0 : i32
    %c0_i32_1 = arith.constant 0 : i32
    return %c0_i32, %c0_i32_0 : i32, i32
  }
  func.func @transform_3(%arg0: i32, %arg1: i32) -> (i32, i32) {
    %c0_i32 = arith.constant 0 : i32
    %c0_i32_0 = arith.constant 0 : i32
    %c0_i32_1 = arith.constant 0 : i32
    return %c0_i32, %c0_i32_0 : i32, i32
  }
  func.func @transform_4(%arg0: i32, %arg1: i32) -> (i32, i32) {
    %c0_i32 = arith.constant 0 : i32
    %c0_i32_0 = arith.constant 0 : i32
    %c0_i32_1 = arith.constant 0 : i32
    return %c0_i32, %c0_i32_0 : i32, i32
  }
  func.func @transform_5(%arg0: i32, %arg1: i32) -> (i32, i32) {
    %0 = arith.muli %arg1, %arg0 : i32
    %c0_i32 = arith.constant 0 : i32
    %c0_i32_0 = arith.constant 0 : i32
    return %0, %c0_i32 : i32, i32
  }
}

</mosaic_0001>

<bundles_post_ra>
// kernel: evaluate.6
= control target key start
LH: loop header
LB: loop body
LE: loop exit
PB: predicated region body
PF: predicated region fallthrough
CT: control target
= control target key end

     0   :  { %s5469_s18 = smov 0   ;;  %s5471_s19 = smov 0   ;;  %s7372_s0 = inlined_call_operand.vmem [shape: bf16[2048,80], index: 0, kind: input, shape index: {}]   ;;  %s7373_s1 = inlined_call_operand.vmem [shape: bf16[80,128], index: 1, kind: input, shape index: {}]   ;;  %s7374_s2 = inlined_call_operand.vmem [shape: f32[1,128], index: 2, kind: input, shape index: {}]   ;;  %s7375_s3 = inlined_call_operand.vmem [shape: f32[1,128], index: 3, kind: input, shape index: {}]   ;;  %s7376_s4 = inlined_call_operand.vmem [shape: f32[1,128], index: 4, kind: input, shape index: {}]   ;;  %s7377_s5 = inlined_call_operand.vmem [shape: bf16[2048,128], index: 5, kind: output, shape index: {}]  }
   0x1   :  { %s5473_s20 = smov 0   ;;  %s5475_s21 = smov 0  }
   0x2   :  { %s5477_s22 = smov 0  }
   0x3 LB: > { %s24_s23 = sadd.s32 1, %s5427_s20  ;;  %s27_s24 = sadd.s32 1, %s5431_s21  ;;  %s5435_s22 = sphi %s5477_s22, %s15_s22   ;;  %s5431_s21 = sphi %s5475_s21, %s7522_s21   ;;  %s5427_s20 = sphi %s5473_s20, %s7521_s20   ;;  %s5423_s19 = sphi %s5471_s19, %s7520_s19   ;;  %s5419_s18 = sphi %s5469_s18, %s7519_s18  }
   0x4   : > { %p25_p0 = scmp.ge.s32.totalorder %s24_s23, 2  ;;  %p4144_p1 = scmp.ge.s32.totalorder %s5435_s22, 1 }
   0x5   : > { %p214_p2 = scmp.lt.s32.totalorder %s5435_s22, 5 }
   0x6   : > { %s7524_s23 = smov (%p25_p0, %s24_s23), 0  ;;  %s7526_s24 = smov (!%p25_p0, %s27_s24), %s5431_s21 }
   0x7   : > { %p215_p3 = pnand %p4144_p1, %p214_p2  ;;  %p29_p4 = scmp.ge.s32.totalorder %s7526_s24, 2 }
   0x8   : > { %s246_s25 = ssub.s32 (!%p215_p3), 1, %s5423_s19  ;;  %s258_s26 = smul.u32 (!%p215_p3), %s5419_s18, %s5423_s19 }
   0x9   : > { %s7528_s24 = smov (%p29_p4, %s7526_s24), 0  ;;  %218 = sbr.rel (%p215_p3) target bundleno = 716 (0x2cc), region = 40 }
   0xa   : > { %s247_s27 = smul.u32 (!%p215_p3), %s5419_s18, %s246_s25  ;;  %p267_p5 = scmp.eq.s32.totalorder (!%p215_p3), %s5423_s19, 0 }
   0xb   : > { %s4147_s28 = sshll.u32 (!%p215_p3), %s258_s26, 7  ;;  %p268_p6 = scmp.eq.s32.totalorder (!%p215_p3), %s5419_s18, 0 }
   0xc   : > { %s248_s29 = sadd.s32 (!%p215_p3), %s5423_s19, %s247_s27  ;;  %p260_p7 = scmp.lt.s32.totalorder (!%p215_p3), %s4147_s28, 255 }
   0xd   : > { %s4145_s30 = sshll.u32 (!%p215_p3), %s248_s29, 7  ;;  %p269_p8 = pnand (!%p215_p3), %p268_p6, %p267_p5 }
   0xe   : > { %p250_p9 = scmp.lt.s32.totalorder (!%p215_p3), %s4145_s30, 255 }
  0x10   : > { %s7530_s28 = smov (!%p260_p7, %s4147_s28), 255  ;;  %s7532_s30 = smov (!%p250_p9, %s4145_s30), 255 }
  0x11   : > { %s4148_s6 = sshll.u32 %s7530_s28, 2  ;;  %s4146_s7 = sshll.u32 %s7532_s30, 2  ;;  %v5437_v0 = vmov (!%p269_p8), 0.0  }
  0x12   : > { %s5515_s10 = scalar_lea.vmem %s7377_s5, %s4148_s6  ;;  %s5520_s13 = scalar_lea.vmem %s7372_s0, %s4146_s7  ;;  %273 = vst [vmem:[#allocation3] sm:$0x3] (!%p269_p8), %v5437_v0 }
  0x13   : > { %272 = sbr.rel (%p269_p8) target bundleno = 26 (0x1a), region = 44 }
  0x1a PF: > { %p4149_p10 = scmp.ne.s32.totalorder %s5423_s19, 0 }
  0x1c   : > { %276 = sbr.rel (%p4149_p10) target bundleno = 562 (0x232), region = 48 }
  0x23   : > { %v5322_v1 = vld [vmem:[%s7373_s1] sm:$0xff]   ;;  %v5323_v2 = vld [vmem:[%s7373_s1 + $0x8] sm:$0xff]   ;;  %v5324_v3 = vld [vmem:[%s7373_s1 + $0x10] sm:$0xff]   ;;  %vm772_vm0 = vcmask 654336   ;;  %s4286_s6 = sshll.u32 %s5419_s18, 10  ;;  %s4550_s9 = sshll.u32 %s5419_s18, 9 }
  0x24   : > { %5132 = vmatprep.subr.bf16.mxu0 %v5322_v1  ;;  %5270 = vmatprep.subr.bf16.mxu1 %v5322_v1  ;;  %v5327_v4 = vld [vmem:[%s5520_s13] sm:$0xff]   ;;  %v5325_v5 = vld [vmem:[%s7373_s1 + $0x18] sm:$0xff]   ;;  %v5328_v7 = vld [vmem:[%s5520_s13 + $0x8] sm:$0xff]   ;;  %s6053_s11 = scalar_lea.vmem [#allocation2], %s4550_s9 }
  0x25   : > { %5133 = vmatpush3.bf16.msra.mxu0 %v5322_v1  ;;  %5275 = vmatpush3.bf16.msra.mxu1 %v5322_v1  ;;  %v5326_v6 = vld [vmem:[%s7373_s1 + $0x20] sm:$0xff]   ;;  %v5329_v8 = vld [vmem:[%s5520_s13 + $0x10] sm:$0xff]   ;;  %v5330_v9 = vld [vmem:[%s5520_s13 + $0x18] sm:$0xff]  }
  0x26   : > { %5134 = vmatprep.subr.bf16.mxu0 %v5323_v2  ;;  %5271 = vmatprep.subr.bf16.mxu1 %v5323_v2  ;;  %v5331_v10 = vld [vmem:[%s5520_s13 + $0x20] sm:$0xff]   ;;  %v5332_v11 = vld [vmem:[%s5520_s13 + $0x28] sm:$0xff]   ;;  %v5333_v12 = vld [vmem:[%s5520_s13 + $0x30] sm:$0xff]  }
  0x27   : > { %5142 = vmatprep.mubr.msk.bf16.mxu0 %vm772_vm0, %v5327_v4  ;;  %v5359_v13 = vld [vmem:[%s5520_s13 + $0x100] sm:$0xff]   ;;  %v5360_v14 = vld [vmem:[%s5520_s13 + $0x108] sm:$0xff]   ;;  %v5361_v15 = vld [vmem:[%s5520_s13 + $0x110] sm:$0xff]  }
  0x28   : > { %5206 = vmatprep.mubr.msk.bf16.mxu1 %vm772_vm0, %v5359_v13  ;;  %v5334_v16 = vld [vmem:[%s5520_s13 + $0x38] sm:$0xff]   ;;  %v5335_v17 = vld [vmem:[%s5520_s13 + $0x40] sm:$0xff]   ;;  %v5336_v20 = vld [vmem:[%s5520_s13 + $0x48] sm:$0xff]  }
  0x29   : > { %5135 = vmatpush3.bf16.msra.mxu0 %v5323_v2  ;;  %5276 = vmatpush3.bf16.msra.mxu1 %v5323_v2  ;;  %v5362_v18 = vld [vmem:[%s5520_s13 + $0x118] sm:$0xff]   ;;  %v5363_v19 = vld [vmem:[%s5520_s13 + $0x120] sm:$0xff]   ;;  %v5337_v21 = vld [vmem:[%s5520_s13 + $0x50] sm:$0xff]  }
  0x2a   : > { %5136 = vmatprep.subr.bf16.mxu0 %v5324_v3  ;;  %5272 = vmatprep.subr.bf16.mxu1 %v5324_v3  ;;  %v5364_v22 = vld [vmem:[%s5520_s13 + $0x128] sm:$0xff]   ;;  %v5365_v23 = vld [vmem:[%s5520_s13 + $0x130] sm:$0xff]   ;;  %v5338_v24 = vld [vmem:[%s5520_s13 + $0x58] sm:$0xff]  }
  0x2b   : > { %v5339_v25 = vld [vmem:[%s5520_s13 + $0x60] sm:$0xff]   ;;  %v5366_v26 = vld [vmem:[%s5520_s13 + $0x138] sm:$0xff]   ;;  %v5340_v28 = vld [vmem:[%s5520_s13 + $0x68] sm:$0xff]  }
  0x2c   : > { %v5367_v27 = vld [vmem:[%s5520_s13 + $0x140] sm:$0xff]   ;;  %v5341_v29 = vld [vmem:[%s5520_s13 + $0x70] sm:$0xff]   ;;  %v5368_v30 = vld [vmem:[%s5520_s13 + $0x148] sm:$0xff]  }
  0x2d   : > { %5137 = vmatpush3.bf16.msra.mxu0 %v5324_v3  ;;  %5277 = vmatpush3.bf16.msra.mxu1 %v5324_v3  ;;  %v5369_v31 = vld [vmem:[%s5520_s13 + $0x150] sm:$0xff]   ;;  %v5342_v32 = vld [vmem:[%s5520_s13 + $0x78] sm:$0xff]   ;;  %v5343_v33 = vld [vmem:[%s5520_s13 + $0x80] sm:$0xff]  }
  0x2e   : > { %5138 = vmatprep.subr.bf16.mxu0 %v5325_v5  ;;  %5273 = vmatprep.subr.bf16.mxu1 %v5325_v5  ;;  %v5370_v34 = vld [vmem:[%s5520_s13 + $0x158] sm:$0xff]   ;;  %v5371_v35 = vld [vmem:[%s5520_s13 + $0x160] sm:$0xff]   ;;  %v5344_v36 = vld [vmem:[%s5520_s13 + $0x88] sm:$0xff]  }
  0x2f   : > { %v5345_v37 = vld [vmem:[%s5520_s13 + $0x90] sm:$0xff]   ;;  %v5372_v38 = vld [vmem:[%s5520_s13 + $0x168] sm:$0xff]   ;;  %v5346_v40 = vld [vmem:[%s5520_s13 + $0x98] sm:$0xff]  }
  0x30   : > { %v5373_v39 = vld [vmem:[%s5520_s13 + $0x170] sm:$0xff]   ;;  %v5347_v41 = vld [vmem:[%s5520_s13 + $0xa0] sm:$0xff]   ;;  %v5374_v42 = vld [vmem:[%s5520_s13 + $0x178] sm:$0xff]  }
  0x31   : > { %5139 = vmatpush3.bf16.msra.mxu0 %v5325_v5  ;;  %5278 = vmatpush3.bf16.msra.mxu1 %v5325_v5  ;;  %v5375_v43 = vld [vmem:[%s5520_s13 + $0x180] sm:$0xff]   ;;  %v5348_v44 = vld [vmem:[%s5520_s13 + $0xa8] sm:$0xff]   ;;  %v5349_v45 = vld [vmem:[%s5520_s13 + $0xb0] sm:$0xff]   ;;  %v1769_v5 = vlaneseq }
  0x32   : > { %5140 = vmatprep.subr.bf16.mxu0 %v5326_v6  ;;  %5274 = vmatprep.subr.bf16.mxu1 %v5326_v6  ;;  %v5376_v46 = vld [vmem:[%s5520_s13 + $0x188] sm:$0xff]   ;;  %v5377_v47 = vld [vmem:[%s5520_s13 + $0x190] sm:$0xff]   ;;  %v5350_v48 = vld [vmem:[%s5520_s13 + $0xb8] sm:$0xff]  }
  0x33   : > { %v5351_v49 = vld [vmem:[%s5520_s13 + $0xc0] sm:$0xff]   ;;  %v5378_v50 = vld [vmem:[%s5520_s13 + $0x198] sm:$0xff]   ;;  %v5352_v52 = vld [vmem:[%s5520_s13 + $0xc8] sm:$0xff]  }
  0x34   : > { %v5379_v51 = vld [vmem:[%s5520_s13 + $0x1a0] sm:$0xff]   ;;  %v5353_v53 = vld [vmem:[%s5520_s13 + $0xd0] sm:$0xff]   ;;  %v5380_v54 = vld [vmem:[%s5520_s13 + $0x1a8] sm:$0xff]  }
  0x35   : > { %5141 = vmatpush3.bf16.msra.mxu0 %v5326_v6  ;;  %5279 = vmatpush3.bf16.msra.mxu1 %v5326_v6  ;;  %v5381_v55 = vld [vmem:[%s5520_s13 + $0x1b0] sm:$0xff]   ;;  %v5354_v56 = vld [vmem:[%s5520_s13 + $0xd8] sm:$0xff]   ;;  %v5355_v57 = vld [vmem:[%s5520_s13 + $0xe0] sm:$0xff]  }
  0x36   : > { %v5382_v58 = vld [vmem:[%s5520_s13 + $0x1b8] sm:$0xff]   ;;  %v5383_v59 = vld [vmem:[%s5520_s13 + $0x1c0] sm:$0xff]   ;;  %v5356_v60 = vld [vmem:[%s5520_s13 + $0xe8] sm:$0xff]  }
  0x37   : > { %v5357_v61 = vld [vmem:[%s5520_s13 + $0xf0] sm:$0xff]   ;;  %v5384_v62 = vld [vmem:[%s5520_s13 + $0x1c8] sm:$0xff]   ;;  %v5358_v0 = vld [vmem:[%s5520_s13 + $0xf8] sm:$0xff]  }
  0x38   : > { %5143 = vmatmul.mubr.msk.bf16.vlgmr.msra.gmra.mrb[0].mxu0 %vm772_vm0, %v5328_v7  ;;  %5207 = vmatmul.mubr.msk.bf16.vlgmr.msra.gmra.mrb[0].mxu1 %vm772_vm0, %v5360_v14  ;;  %v5385_v63 = vld [vmem:[%s5520_s13 + $0x1d0] sm:$0xff]   ;;  %v5386_v1 = vld [vmem:[%s5520_s13 + $0x1d8] sm:$0xff]   ;;  %v5387_v2 = vld [vmem:[%s5520_s13 + $0x1e0] sm:$0xff]   ;;  %v5665_v7 = vshrl.u32 %v1769_v5, 7 }
  0x39   : > { %5146 = vmatprep.mubr.msk.bf16.mxu0 %vm772_vm0, %v5329_v8  ;;  %5210 = vmatprep.mubr.msk.bf16.mxu1 %vm772_vm0, %v5361_v15  ;;  %v5388_v3 = vld [vmem:[%s5520_s13 + $0x1e8] sm:$0xff]   ;;  %v5389_v4 = vld [vmem:[%s5520_s13 + $0x1f0] sm:$0xff]   ;;  %v5390_v6 = vld [vmem:[%s5520_s13 + $0x1f8] sm:$0xff]  }
  0x3a   : > { %v1772_v8 = vadd.s32 16, %v5665_v7 }
  0x40   : > { %5147 = vmatmul.mubr.msk.bf16.gmra.mrb[4].mxu0 %vm772_vm0, %v5330_v9  ;;  %5211 = vmatmul.mubr.msk.bf16.gmra.mrb[4].mxu1 %vm772_vm0, %v5362_v18  ;;  %v5670_v9 = vstv %s4286_s6  ;;  %v1777_v18 = vadd.s32 56, %v5665_v7 }
  0x41   : > { %5150 = vmatprep.mubr.msk.bf16.mxu0 %vm772_vm0, %v5331_v10  ;;  %5214 = vmatprep.mubr.msk.bf16.mxu1 %vm772_vm0, %v5363_v19  ;;  %v1773_v10 = vadd.s32 24, %v5665_v7  ;;  %v1900_v13 = vadd.s32 %v5670_v9, %v5665_v7  ;;  %v1775_v19 = vadd.s32 40, %v5665_v7 }
  0x43   : > { %v1903_v14 = vadd.s32 %v5670_v9, %v1773_v10  ;;  %vm2028_vm2 = vcmp.lt.s32.totalorder %v1900_v13, 2048 }
  0x45   : > { %vm2031_vm3 = vcmp.lt.s32.totalorder %v1903_v14, 2048 }
  0x48   : > { %5151 = vmatmul.mubr.msk.bf16.gmra.mrb[8].mxu0 %vm772_vm0, %v5332_v11  ;;  %5215 = vmatmul.mubr.msk.bf16.gmra.mrb[8].mxu1 %vm772_vm0, %v5364_v22  ;;  %v1771_v11 = vadd.s32 8, %v5665_v7  ;;  %v1781_v22 = vadd.s32 88, %v5665_v7 }
  0x49   : > { %5154 = vmatprep.mubr.msk.bf16.mxu0 %vm772_vm0, %v5333_v12  ;;  %5218 = vmatprep.mubr.msk.bf16.mxu1 %vm772_vm0, %v5365_v23  ;;  %v1902_v12 = vadd.s32 %v5670_v9, %v1772_v8 }
  0x4a   : > { %v1901_v15 = vadd.s32 %v5670_v9, %v1771_v11 }
  0x4b   : > { %vm2030_vm1 = vcmp.lt.s32.totalorder %v1902_v12, 2048 }
  0x4c   : > { %vm2029_vm4 = vcmp.lt.s32.totalorder %v1901_v15, 2048  ;;  %v1795_v15 = vadd.s32 200, %v5665_v7 }
  0x50   : > { %5155 = vmatmul.mubr.msk.bf16.gmra.mrb[12].mxu0 %vm772_vm0, %v5334_v16  ;;  %5219 = vmatmul.mubr.msk.bf16.gmra.mrb[12].mxu1 %vm772_vm0, %v5366_v26  ;;  %v1776_v16 = vadd.s32 48, %v5665_v7  ;;  %v1905_v26 = vadd.s32 %v5670_v9, %v1775_v19 }
  0x51   : > { %5158 = vmatprep.mubr.msk.bf16.mxu0 %vm772_vm0, %v5335_v17  ;;  %5222 = vmatprep.mubr.msk.bf16.mxu1 %vm772_vm0, %v5367_v27  ;;  %v1774_v17 = vadd.s32 32, %v5665_v7 }
  0x52   : > { %v1906_v23 = vadd.s32 %v5670_v9, %v1776_v16  ;;  %vm2033_vm8 = vcmp.lt.s32.totalorder %v1905_v26, 2048  ;;  %v1800_v16 = vadd.s32 240, %v5665_v7 }
  0x54   : > { %vm2034_vm5 = vcmp.lt.s32.totalorder %v1906_v23, 2048 }
  0x58   : > { %5159 = vmatmul.mubr.msk.bf16.gmra.mrb[16].mxu0 %vm772_vm0, %v5336_v20  ;;  %5223 = vmatmul.mubr.msk.bf16.gmra.mrb[16].mxu1 %vm772_vm0, %v5368_v30  ;;  %v1780_v20 = vadd.s32 80, %v5665_v7  ;;  %v1779_v30 = vadd.s32 72, %v5665_v7 }
  0x59   : > { %5162 = vmatprep.mubr.msk.bf16.mxu0 %vm772_vm0, %v5337_v21  ;;  %5226 = vmatprep.mubr.msk.bf16.mxu1 %vm772_vm0, %v5369_v31  ;;  %v1778_v21 = vadd.s32 64, %v5665_v7  ;;  %v1784_v31 = vadd.s32 112, %v5665_v7 }
  0x5a   : > { %v1910_v27 = vadd.s32 %v5670_v9, %v1780_v20  ;;  %v1798_v20 = vadd.s32 224, %v5665_v7 }
  0x5c   : > { %vm2038_vm9 = vcmp.lt.s32.totalorder %v1910_v27, 2048  ;;  %v1928_v26 = vadd.s32 %v5670_v9, %v1798_v20  ;;  %v1801_v27 = vadd.s32 248, %v5665_v7  ;;  %v1816_v20 = vadd.s32 368, %v5665_v7 }
  0x60   : > { %5163 = vmatmul.mubr.msk.bf16.gmra.mrb[20].mxu0 %vm772_vm0, %v5338_v24  ;;  %5227 = vmatmul.mubr.msk.bf16.gmra.mrb[20].mxu1 %vm772_vm0, %v5370_v34  ;;  %v1904_v24 = vadd.s32 %v5670_v9, %v1774_v17  ;;  %v1782_v34 = vadd.s32 96, %v5665_v7 }
  0x61   : > { %5166 = vmatprep.mubr.msk.bf16.mxu0 %vm772_vm0, %v5339_v25  ;;  %5230 = vmatprep.mubr.msk.bf16.mxu1 %vm772_vm0, %v5371_v35  ;;  %v1907_v25 = vadd.s32 %v5670_v9, %v1777_v18 }
  0x62   : > { %vm2032_vm6 = vcmp.lt.s32.totalorder %v1904_v24, 2048  ;;  %v1925_v24 = vadd.s32 %v5670_v9, %v1795_v15 }
  0x63   : > { %vm2035_vm7 = vcmp.lt.s32.totalorder %v1907_v25, 2048  ;;  %v1930_v25 = vadd.s32 %v5670_v9, %v1800_v16 }
  0x68   : > { %5167 = vmatmul.mubr.msk.bf16.gmra.mrb[24].mxu0 %vm772_vm0, %v5340_v28  ;;  %5231 = vmatmul.mubr.msk.bf16.gmra.mrb[24].mxu1 %vm772_vm0, %v5372_v38  ;;  %v1908_v28 = vadd.s32 %v5670_v9, %v1778_v21  ;;  %v1909_v38 = vadd.s32 %v5670_v9, %v1779_v30 }
  0x69   : > { %5170 = vmatprep.mubr.msk.bf16.mxu0 %vm772_vm0, %v5341_v29  ;;  %5234 = vmatprep.mubr.msk.bf16.mxu1 %vm772_vm0, %v5373_v39  ;;  %v1911_v29 = vadd.s32 %v5670_v9, %v1781_v22  ;;  %v1914_v39 = vadd.s32 %v5670_v9, %v1784_v31  ;;  %v1802_v31 = vadd.s32 256, %v5665_v7 }
  0x6a   : > { %vm2036_vm10 = vcmp.lt.s32.totalorder %v1908_v28, 2048  ;;  %vm2037_vm12 = vcmp.lt.s32.totalorder %v1909_v38, 2048  ;;  %v1799_v28 = vadd.s32 232, %v5665_v7  ;;  %v1803_v38 = vadd.s32 264, %v5665_v7 }
  0x6b   : > { %vm2039_vm11 = vcmp.lt.s32.totalorder %v1911_v29, 2048  ;;  %vm2042_vm13 = vcmp.lt.s32.totalorder %v1914_v39, 2048  ;;  %v1804_v29 = vadd.s32 272, %v5665_v7 }
  0x70   : > { %5171 = vmatmul.mubr.msk.bf16.gmra.mrb[28].mxu0 %vm772_vm0, %v5342_v32  ;;  %5235 = vmatmul.mubr.msk.bf16.gmra.mrb[28].mxu1 %vm772_vm0, %v5374_v42  ;;  %v7378_v32 = vmov 0.0   ;;  %v1783_v42 = vadd.s32 104, %v5665_v7 }
  0x71   : > { %5174 = vmatprep.mubr.msk.bf16.mxu0 %vm772_vm0, %v5343_v33  ;;  %5238 = vmatprep.mubr.msk.bf16.mxu1 %vm772_vm0, %v5375_v43  ;;  %v5696_v33 = vsel %vm2030_vm1, 1.0, %v7378_v32  ;;  %v5700_v35 = vsel %vm2028_vm2, 1.0, %v7378_v32  ;;  %v1788_v43 = vadd.s32 144, %v5665_v7 }
  0x78   : > { %5175 = vmatmul.mubr.msk.bf16.gmra.mrb[32].mxu0 %vm772_vm0, %v5344_v36  ;;  %5239 = vmatmul.mubr.msk.bf16.gmra.mrb[32].mxu1 %vm772_vm0, %v5376_v46  ;;  %v5703_v36 = vsel %vm2031_vm3, 1.0, %v7378_v32  ;;  %v1789_v46 = vadd.s32 152, %v5665_v7 }
  0x79   : > { %5178 = vmatprep.mubr.msk.bf16.mxu0 %vm772_vm0, %v5345_v37  ;;  %5242 = vmatprep.mubr.msk.bf16.mxu1 %vm772_vm0, %v5377_v47  ;;  %v5706_v37 = vsel %vm2029_vm4, 1.0, %v7378_v32  ;;  %v1787_v47 = vadd.s32 136, %v5665_v7 }
  0x80   : > { %5179 = vmatmul.mubr.msk.bf16.gmra.mrb[36].mxu0 %vm772_vm0, %v5346_v40  ;;  %5243 = vmatmul.mubr.msk.bf16.gmra.mrb[36].mxu1 %vm772_vm0, %v5378_v50  ;;  %v1912_v40 = vadd.s32 %v5670_v9, %v1782_v34  ;;  %v5730_v50 = vsel %vm2033_vm8, 1.0, %v7378_v32  ;;  %v1805_v34 = vadd.s32 280, %v5665_v7 }
  0x81   : > { %5182 = vmatprep.mubr.msk.bf16.mxu0 %vm772_vm0, %v5347_v41  ;;  %5246 = vmatprep.mubr.msk.bf16.mxu1 %vm772_vm0, %v5379_v51  ;;  %v1785_v41 = vadd.s32 120, %v5665_v7  ;;  %v5734_v51 = vsel %vm2038_vm9, 1.0, %v7378_v32 }
  0x82   : > { %vm2040_vm14 = vcmp.lt.s32.totalorder %v1912_v40, 2048 }
  0x83   : > { %v5765_v5 = vsel %vm2040_vm14, 1.0, %v7378_v32  ;;  %vm2056_vm14 = vcmp.lt.s32.totalorder %v1928_v26, 2048 }
  0x88   : > { %5183 = vmatmul.mubr.msk.bf16.gmra.mrb[40].mxu0 %vm772_vm0, %v5348_v44  ;;  %5247 = vmatmul.mubr.msk.bf16.gmra.mrb[40].mxu1 %vm772_vm0, %v5380_v54  ;;  %v5715_v44 = vsel %vm2034_vm5, 1.0, %v7378_v32  ;;  %v1915_v54 = vadd.s32 %v5670_v9, %v1785_v41 }
  0x89   : > { %5186 = vmatprep.mubr.msk.bf16.mxu0 %vm772_vm0, %v5349_v45  ;;  %5250 = vmatprep.mubr.msk.bf16.mxu1 %vm772_vm0, %v5381_v55  ;;  %v1786_v45 = vadd.s32 128, %v5665_v7  ;;  %v1913_v55 = vadd.s32 %v5670_v9, %v1783_v42 }
  0x8a   : > { %vm2043_vm15 = vcmp.lt.s32.totalorder %v1915_v54, 2048  ;;  %v1934_v54 = vadd.s32 %v5670_v9, %v1804_v29 }
  0x8b   : > { %v5777_v17 = vsel %vm2043_vm15, 1.0, %v7378_v32 }
  0x90   : > { %5187 = vmatmul.mubr.msk.bf16.gmra.mrb[44].mxu0 %vm772_vm0, %v5350_v48  ;;  %5251 = vmatmul.mubr.msk.bf16.gmra.mrb[44].mxu1 %vm772_vm0, %v5382_v58  ;;  %v5722_v48 = vsel %vm2032_vm6, 1.0, %v7378_v32  ;;  %v1919_v58 = vadd.s32 %v5670_v9, %v1789_v46  ;;  %v1931_v46 = vadd.s32 %v5670_v9, %v1801_v27  ;;  %v1814_v27 = vadd.s32 352, %v5665_v7 }
  0x91   : > { %5190 = vmatprep.mubr.msk.bf16.mxu0 %vm772_vm0, %v5351_v49  ;;  %5254 = vmatprep.mubr.msk.bf16.mxu1 %vm772_vm0, %v5383_v59  ;;  %v5726_v49 = vsel %vm2035_vm7, 1.0, %v7378_v32  ;;  %v1917_v59 = vadd.s32 %v5670_v9, %v1787_v47  ;;  %v1929_v47 = vadd.s32 %v5670_v9, %v1799_v28 }
  0x92   : > { %vm2047_vm3 = vcmp.lt.s32.totalorder %v1919_v58, 2048  ;;  %v1808_v58 = vadd.s32 304, %v5665_v7  ;;  %vm2059_vm15 = vcmp.lt.s32.totalorder %v1931_v46, 2048  ;;  %v1944_v46 = vadd.s32 %v5670_v9, %v1814_v27 }
  0x93   : > { %vm2045_vm4 = vcmp.lt.s32.totalorder %v1917_v59, 2048  ;;  %v5792_v22 = vsel %vm2047_vm3, 1.0, %v7378_v32  ;;  %v1822_v27 = vadd.s32 416, %v5665_v7 }
  0x94   : > { %v5796_v23 = vsel %vm2045_vm4, 1.0, %v7378_v32 }
  0x98   : > { %5191 = vmatmul.mubr.msk.bf16.gmra.mrb[48].mxu0 %vm772_vm0, %v5352_v52  ;;  %5255 = vmatmul.mubr.msk.bf16.gmra.mrb[48].mxu1 %vm772_vm0, %v5384_v62  ;;  %v5738_v52 = vsel %vm2036_vm10, 1.0, %v7378_v32  ;;  %v1793_v62 = vadd.s32 184, %v5665_v7 }
  0x99   : > { %5194 = vmatprep.mubr.msk.bf16.mxu0 %vm772_vm0, %v5353_v53  ;;  %5258 = vmatprep.mubr.msk.bf16.mxu1 %vm772_vm0, %v5385_v63  ;;  %v5742_v53 = vsel %vm2039_vm11, 1.0, %v7378_v32  ;;  %v1791_v63 = vadd.s32 168, %v5665_v7 }
  0x9a   : > { %v1923_v10 = vadd.s32 %v5670_v9, %v1793_v62  ;;  %v1807_v62 = vadd.s32 296, %v5665_v7 }
  0x9b   : > { %v1921_v11 = vadd.s32 %v5670_v9, %v1791_v63 }
  0x9c   : > { %vm2051_vm7 = vcmp.lt.s32.totalorder %v1923_v10, 2048 }
  0x9d   : > { %vm2049_vm8 = vcmp.lt.s32.totalorder %v1921_v11, 2048  ;;  %v5816_v40 = vsel %vm2051_vm7, 1.0, %v7378_v32 }
  0x9e   : > { %v5820_v41 = vsel %vm2049_vm8, 1.0, %v7378_v32 }
  0xa0   : > { %5195 = vmatmul.mubr.msk.bf16.gmra.mrb[52].mxu0 %vm772_vm0, %v5354_v56  ;;  %5259 = vmatmul.mubr.msk.bf16.gmra.mrb[52].mxu1 %vm772_vm0, %v5386_v1  ;;  %v1918_v56 = vadd.s32 %v5670_v9, %v1788_v43  ;;  %v5756_v1 = vsel %vm2037_vm12, 1.0, %v7378_v32  ;;  %vm2053_vm12 = vcmp.lt.s32.totalorder %v1925_v24, 2048  ;;  %v5867_v24 = vsel %vm2059_vm15, 1.0, %v7378_v32 }
  0xa1   : > { %5198 = vmatprep.mubr.msk.bf16.mxu0 %vm772_vm0, %v5355_v57  ;;  %5262 = vmatprep.mubr.msk.bf16.mxu1 %vm772_vm0, %v5387_v2  ;;  %v1916_v57 = vadd.s32 %v5670_v9, %v1786_v45  ;;  %v5759_v2 = vsel %vm2042_vm13, 1.0, %v7378_v32  ;;  %vm2058_vm13 = vcmp.lt.s32.totalorder %v1930_v25, 2048  ;;  %v5842_v59 = vsel %vm2053_vm12, 1.0, %v7378_v32 }
  0xa2   : > { %vm2046_vm1 = vcmp.lt.s32.totalorder %v1918_v56, 2048  ;;  %v1935_v56 = vadd.s32 %v5670_v9, %v1805_v34  ;;  %v5848_v63 = vsel %vm2058_vm13, 1.0, %v7378_v32 }
  0xa3   : > { %vm2044_vm2 = vcmp.lt.s32.totalorder %v1916_v57, 2048  ;;  %v5783_v19 = vsel %vm2046_vm1, 1.0, %v7378_v32  ;;  %v1933_v57 = vadd.s32 %v5670_v9, %v1803_v38  ;;  %vm2062_vm1 = vcmp.lt.s32.totalorder %v1934_v54, 2048 }
  0xa4   : > { %v5788_v21 = vsel %vm2044_vm2, 1.0, %v7378_v32  ;;  %vm2063_vm3 = vcmp.lt.s32.totalorder %v1935_v56, 2048  ;;  %v5873_v26 = vsel %vm2062_vm1, 1.0, %v7378_v32  ;;  %v1946_v38 = vadd.s32 %v5670_v9, %v1816_v20 }
  0xa5   : > { %vm2061_vm4 = vcmp.lt.s32.totalorder %v1933_v57, 2048  ;;  %7382 = vst [vmem:[#allocation5_spill] sm:$0xff] %v5873_v26  ;;  %v5882_v29 = vsel %vm2063_vm3, 1.0, %v7378_v32  ;;  %v1815_v54 = vadd.s32 360, %v5665_v7  ;;  %v1824_v20 = vadd.s32 432, %v5665_v7 }
  0xa6   : > { %7384 = vst [vmem:[#allocation7_spill] sm:$0xff] %v5882_v29  ;;  %vm2074_vm13 = vcmp.lt.s32.totalorder %v1946_v38, 2048  ;;  %v1823_v38 = vadd.s32 424, %v5665_v7 }
  0xa8   : > { %5199 = vmatmul.mubr.msk.bf16.gmra.mrb[56].mxu0 %vm772_vm0, %v5356_v60  ;;  %5263 = vmatmul.mubr.msk.bf16.gmra.mrb[56].mxu1 %vm772_vm0, %v5388_v3  ;;  %v1792_v60 = vadd.s32 176, %v5665_v7  ;;  %v1794_v3 = vadd.s32 192, %v5665_v7 }
  0xa9   : > { %5202 = vmatprep.mubr.msk.bf16.mxu0 %vm772_vm0, %v5357_v61  ;;  %5266 = vmatprep.mubr.msk.bf16.mxu1 %vm772_vm0, %v5389_v4  ;;  %v1790_v61 = vadd.s32 160, %v5665_v7  ;;  %v1797_v4 = vadd.s32 216, %v5665_v7 }
  0xaa   : > { %v1924_v13 = vadd.s32 %v5670_v9, %v1794_v3  ;;  %v1810_v3 = vadd.s32 320, %v5665_v7 }
  0xab   : > { %v1920_v8 = vadd.s32 %v5670_v9, %v1790_v61  ;;  %v1927_v14 = vadd.s32 %v5670_v9, %v1797_v4  ;;  %v1809_v61 = vadd.s32 312, %v5665_v7  ;;  %v1813_v4 = vadd.s32 344, %v5665_v7 }
  0xac   : > { %vm2052_vm10 = vcmp.lt.s32.totalorder %v1924_v13, 2048  ;;  %v1811_v13 = vadd.s32 328, %v5665_v7  ;;  %v1940_v15 = vadd.s32 %v5670_v9, %v1810_v3 }
  0xad   : > { %vm2048_vm6 = vcmp.lt.s32.totalorder %v1920_v8, 2048  ;;  %vm2055_vm11 = vcmp.lt.s32.totalorder %v1927_v14, 2048  ;;  %v5828_v43 = vsel %vm2052_vm10, 1.0, %v7378_v32  ;;  %v1938_v8 = vadd.s32 %v5670_v9, %v1808_v58 }
  0xae   : > { %v5812_v39 = vsel %vm2048_vm6, 1.0, %v7378_v32  ;;  %v5832_v45 = vsel %vm2055_vm11, 1.0, %v7378_v32  ;;  %v1939_v11 = vadd.s32 %v5670_v9, %v1809_v61  ;;  %v1943_v16 = vadd.s32 %v5670_v9, %v1813_v4 }
  0xaf   : > { %v1941_v34 = vadd.s32 %v5670_v9, %v1811_v13  ;;  %vm2068_vm10 = vcmp.lt.s32.totalorder %v1940_v15, 2048  ;;  %v1818_v58 = vadd.s32 384, %v5665_v7 }
  0xb0   : > { %5203 = vmatmul.mubr.msk.bf16.gmra.mrb[60].mxu0 %vm772_vm0, %v5358_v0  ;;  %5267 = vmatmul.mubr.msk.bf16.gmra.mrb[60].mxu1 %vm772_vm0, %v5390_v6  ;;  %v1796_v0 = vadd.s32 208, %v5665_v7  ;;  %vm2041_vm0 = vcmp.lt.s32.totalorder %v1913_v55, 2048  ;;  %v1922_v6 = vadd.s32 %v5670_v9, %v1792_v60  ;;  %v1932_v55 = vadd.s32 %v5670_v9, %v1802_v31 }
  0xb1   : > { %v5780_v18 = vsel %vm2041_vm0, 1.0, %v7378_v32  ;;  %v1806_v60 = vadd.s32 288, %v5665_v7  ;;  %vm2057_vm0 = vcmp.lt.s32.totalorder %v1929_v47, 2048  ;;  %v5886_v31 = vsel %vm2061_vm4, 1.0, %v7378_v32 }
  0xb2   : > { %v1926_v12 = vadd.s32 %v5670_v9, %v1796_v0  ;;  %vm2050_vm5 = vcmp.lt.s32.totalorder %v1922_v6, 2048  ;;  %v1812_v0 = vadd.s32 336, %v5665_v7  ;;  %v5855_v6 = vsel %vm2056_vm14, 1.0, %v7378_v32  ;;  %7385 = vst [vmem:[#allocation8_spill] sm:$0xff] %v5886_v31 }
  0xb3   : > { %v5805_v30 = vsel %vm2050_vm5, 1.0, %v7378_v32  ;;  %vm2060_vm2 = vcmp.lt.s32.totalorder %v1932_v55, 2048  ;;  %v1936_v10 = vadd.s32 %v5670_v9, %v1806_v60  ;;  %v5870_v25 = vsel %vm2057_vm0, 1.0, %v7378_v32 }
  0xb4   : > { %vm2054_vm9 = vcmp.lt.s32.totalorder %v1926_v12, 2048  ;;  %v1937_v12 = vadd.s32 %v5670_v9, %v1807_v62  ;;  %v1942_v14 = vadd.s32 %v5670_v9, %v1812_v0  ;;  %v5878_v28 = vsel %vm2060_vm2, 1.0, %v7378_v32 }
  0xb5   : > { %v5824_v42 = vsel %vm2054_vm9, 1.0, %v7378_v32  ;;  %7383 = vst [vmem:[#allocation6_spill] sm:$0xff] %v5878_v28  ;;  %vm2066_vm5 = vcmp.lt.s32.totalorder %v1938_v8, 2048  ;;  %vm2064_vm6 = vcmp.lt.s32.totalorder %v1936_v10, 2048  ;;  %vm2067_vm7 = vcmp.lt.s32.totalorder %v1939_v11, 2048 }
  0xb6   : > { %vm2065_vm8 = vcmp.lt.s32.totalorder %v1937_v12, 2048  ;;  %vm2070_vm9 = vcmp.lt.s32.totalorder %v1942_v14, 2048  ;;  %vm2071_vm11 = vcmp.lt.s32.totalorder %v1943_v16, 2048  ;;  %v1817_v47 = vadd.s32 376, %v5665_v7 }
  0xb7   : > { %v1820_v55 = vadd.s32 400, %v5665_v7  ;;  %v5895_v56 = vsel %vm2066_vm5, 1.0, %v7378_v32  ;;  %v5898_v57 = vsel %vm2064_vm6, 1.0, %v7378_v32  ;;  %v1821_v60 = vadd.s32 408, %v5665_v7 }
  0xb8   : > { %7386 = vst [vmem:[#allocation9_spill] sm:$0xff] %v5895_v56  ;;  %7387 = vst [vmem:[#allocation10_spill] sm:$0xff] %v5898_v57  ;;  %v5903_v61 = vsel %vm2067_vm7, 1.0, %v7378_v32  ;;  %v5906_v62 = vsel %vm2065_vm8, 1.0, %v7378_v32  ;;  %vm2069_vm12 = vcmp.lt.s32.totalorder %v1941_v34, 2048  ;;  %v1819_v0 = vadd.s32 392, %v5665_v7 }
  0xb9   : > { %7388 = vst [vmem:[#allocation11_spill] sm:$0xff] %v5903_v61  ;;  %7389 = vst [vmem:[#allocation12_spill] sm:$0xff] %v5906_v62  ;;  %v5911_v3 = vsel %vm2070_vm9, 1.0, %v7378_v32  ;;  %v5915_v4 = vsel %vm2068_vm10, 1.0, %v7378_v32  ;;  %v5919_v8 = vsel %vm2071_vm11, 1.0, %v7378_v32  ;;  %vm2072_vm14 = vcmp.lt.s32.totalorder %v1944_v46, 2048 }
  0xba   : > { %7390 = vst [vmem:[#allocation13_spill] sm:$0xff] %v5911_v3  ;;  %7391 = vst [vmem:[#allocation14_spill] sm:$0xff] %v5915_v4  ;;  %v1947_v10 = vadd.s32 %v5670_v9, %v1817_v47  ;;  %v1945_v11 = vadd.s32 %v5670_v9, %v1815_v54  ;;  %v1950_v12 = vadd.s32 %v5670_v9, %v1820_v55  ;;  %v5925_v13 = vsel %vm2069_vm12, 1.0, %v7378_v32 }
  0xbb   : > { %7392 = vst [vmem:[#allocation15_spill] sm:$0xff] %v5919_v8  ;;  %7393 = vst [vmem:[#allocation16_spill] sm:$0xff] %v5925_v13  ;;  %v1948_v14 = vadd.s32 %v5670_v9, %v1818_v58  ;;  %v1951_v15 = vadd.s32 %v5670_v9, %v1821_v60  ;;  %v1949_v16 = vadd.s32 %v5670_v9, %v1819_v0  ;;  %v1825_v34 = vadd.s32 440, %v5665_v7 }
  0xbc   : > { %v5935_v46 = vsel %vm2074_vm13, 1.0, %v7378_v32  ;;  %v5938_v47 = vsel %vm2072_vm14, 1.0, %v7378_v32  ;;  %v1828_v54 = vadd.s32 464, %v5665_v7  ;;  %v1826_v55 = vadd.s32 448, %v5665_v7 }
  0xbd   : > { %7394 = vst [vmem:[#allocation17_spill] sm:$0xff] %v5935_v46  ;;  %7395 = vst [vmem:[#allocation18_spill] sm:$0xff] %v5938_v47  ;;  %vm2075_vm15 = vcmp.lt.s32.totalorder %v1947_v10, 2048  ;;  %vm2073_vm0 = vcmp.lt.s32.totalorder %v1945_v11, 2048  ;;  %vm2078_vm1 = vcmp.lt.s32.totalorder %v1950_v12, 2048  ;;  %v1829_v58 = vadd.s32 472, %v5665_v7 }
  0xbe   : > { %vm2076_vm2 = vcmp.lt.s32.totalorder %v1948_v14, 2048  ;;  %vm2079_vm3 = vcmp.lt.s32.totalorder %v1951_v15, 2048  ;;  %v1954_v60 = vadd.s32 %v5670_v9, %v1824_v20  ;;  %v1827_v0 = vadd.s32 456, %v5665_v7 }
  0xbf   : > { %vm2077_vm4 = vcmp.lt.s32.totalorder %v1949_v16, 2048  ;;  %v1952_v46 = vadd.s32 %v5670_v9, %v1822_v27  ;;  %v1955_v32 = vadd.s32 %v5670_v9, %v1825_v34  ;;  %v1953_v47 = vadd.s32 %v5670_v9, %v1823_v38 }
  0xc0   : > { %v7396_v8 = vmov 0.0   ;;  %v1958_v11 = vadd.s32 %v5670_v9, %v1828_v54  ;;  %v1956_v12 = vadd.s32 %v5670_v9, %v1826_v55  ;;  %v1959_v16 = vadd.s32 %v5670_v9, %v1829_v58 }
  0xc1   : > { %v5949_v13 = vsel %vm2075_vm15, 1.0, %v7396_v8  ;;  %v5952_v10 = vsel %vm2073_vm0, 1.0, %v7396_v8  ;;  %v5957_v14 = vsel %vm2078_vm1, 1.0, %v7396_v8  ;;  %v5960_v15 = vsel %vm2076_vm2, 1.0, %v7396_v8 }
  0xc2   : > { %7397 = vst [vmem:[#allocation19_spill] sm:$0xff] %v5949_v13  ;;  %7398 = vst [vmem:[#allocation20_spill] sm:$0xff] %v5952_v10  ;;  %v5963_v20 = vsel %vm2079_vm3, 1.0, %v7396_v8  ;;  %v5967_v27 = vsel %vm2077_vm4, 1.0, %v7396_v8  ;;  %vm2082_vm5 = vcmp.lt.s32.totalorder %v1954_v60, 2048  ;;  %v1957_v34 = vadd.s32 %v5670_v9, %v1827_v0 }
  0xc3   : > { %7399 = vst [vmem:[#allocation21_spill] sm:$0xff] %v5957_v14  ;;  %7400 = vst [vmem:[#allocation22_spill] sm:$0xff] %v5960_v15  ;;  %v1832_v38 = vadd.s32 496, %v5665_v7  ;;  %vm2080_vm6 = vcmp.lt.s32.totalorder %v1952_v46, 2048  ;;  %vm2083_vm7 = vcmp.lt.s32.totalorder %v1955_v32, 2048  ;;  %vm2081_vm8 = vcmp.lt.s32.totalorder %v1953_v47, 2048 }
  0xc4   : > { %7401 = vst [vmem:[#allocation23_spill] sm:$0xff] %v5963_v20  ;;  %7402 = vst [vmem:[#allocation24_spill] sm:$0xff] %v5967_v27  ;;  %v1830_v54 = vadd.s32 480, %v5665_v7  ;;  %vm2086_vm9 = vcmp.lt.s32.totalorder %v1958_v11, 2048  ;;  %vm2084_vm10 = vcmp.lt.s32.totalorder %v1956_v12, 2048  ;;  %v1833_v20 = vadd.s32 504, %v5665_v7 }
  0xc5   : > { %v1962_v55 = vadd.s32 %v5670_v9, %v1832_v38  ;;  %v5975_v58 = vsel %vm2082_vm5, 1.0, %v7396_v8  ;;  %vm2087_vm11 = vcmp.lt.s32.totalorder %v1959_v16, 2048  ;;  %v1831_v0 = vadd.s32 488, %v5665_v7 }
  0xc6   : > { %7403 = vst [vmem:[#allocation25_spill] sm:$0xff] %v5975_v58  ;;  %v1960_v60 = vadd.s32 %v5670_v9, %v1830_v54  ;;  %v5980_v46 = vsel %vm2080_vm6, 1.0, %v7396_v8  ;;  %v5983_v32 = vsel %vm2083_vm7, 1.0, %v7396_v8  ;;  %vm2085_vm12 = vcmp.lt.s32.totalorder %v1957_v34, 2048  ;;  %v5999_v54 = vld [vmem:[%s7374_s2] ss:$0 sm:$0xff] }
  0xc7   : > { %7404 = vst [vmem:[#allocation26_spill] sm:$0xff] %v5980_v46  ;;  %7405 = vst [vmem:[#allocation27_spill] sm:$0xff] %v5983_v32  ;;  %v1963_v47 = vadd.s32 %v5670_v9, %v1833_v20  ;;  %v5987_v11 = vsel %vm2081_vm8, 1.0, %v7396_v8  ;;  %v5990_v12 = vsel %vm2086_vm9, 1.0, %v7396_v8  ;;  %v5993_v16 = vsel %vm2084_vm10, 1.0, %v7396_v8 }
  0xc8   : > { %7406 = vst [vmem:[#allocation28_spill] sm:$0xff] %v5987_v11  ;;  %7407 = vst [vmem:[#allocation29_spill] sm:$0xff] %v5990_v12  ;;  %v1961_v38 = vadd.s32 %v5670_v9, %v1831_v0  ;;  %v6002_v34 = vsel %vm2087_vm11, 1.0, %v7396_v8  ;;  %vm2090_vm13 = vcmp.lt.s32.totalorder %v1962_v55, 2048  ;;  %v1836_v20 = vadd.s32 528, %v5665_v7 }
  0xc9   : > { %7408 = vst [vmem:[#allocation30_spill] sm:$0xff] %v5993_v16  ;;  %7409 = vst [vmem:[#allocation31_spill] sm:$0xff] %v6002_v34  ;;  %v1834_v11 = vadd.s32 512, %v5665_v7  ;;  %v6007_v12 = vsel %vm2085_vm12, 1.0, %v7396_v8  ;;  %vm2088_vm14 = vcmp.lt.s32.totalorder %v1960_v60, 2048  ;;  %v1837_v16 = vadd.s32 536, %v5665_v7 }
  0xca   : > { %7410 = vst [vmem:[#allocation32_spill] sm:$0xff] %v6007_v12  ;;  %v1835_v0 = vadd.s32 520, %v5665_v7  ;;  %vm2091_vm15 = vcmp.lt.s32.totalorder %v1963_v47, 2048  ;;  %vm2089_vm0 = vcmp.lt.s32.totalorder %v1961_v38, 2048  ;;  %v1966_v46 = vadd.s32 %v5670_v9, %v1836_v20 }
  0xcb   : > { %v1964_v55 = vadd.s32 %v5670_v9, %v1834_v11  ;;  %v6015_v27 = vsel %vm2090_vm13, 1.0, %v7396_v8  ;;  %v1967_v60 = vadd.s32 %v5670_v9, %v1837_v16  ;;  %v6021_v13 = vsel %vm2088_vm14, 1.0, %v7396_v8 }
  0xcc   : > { %7411 = vst [vmem:[#allocation33_spill] sm:$0xff] %v6015_v27  ;;  %v1965_v12 = vadd.s32 %v5670_v9, %v1835_v0  ;;  %7412 = vst [vmem:[#allocation34_spill] sm:$0xff] %v6021_v13  ;;  %vm2094_vm1 = vcmp.lt.s32.totalorder %v1966_v46, 2048  ;;  %v6027_v27 = vsel %vm2091_vm15, 1.0, %v7396_v8  ;;  %v6031_v16 = vsel %vm2089_vm0, 1.0, %v7396_v8 }
  0xcd   : > { %vm2092_vm2 = vcmp.lt.s32.totalorder %v1964_v55, 2048  ;;  %7413 = vst [vmem:[#allocation35_spill] sm:$0xff] %v6027_v27  ;;  %7414 = vst [vmem:[#allocation36_spill] sm:$0xff] %v6031_v16  ;;  %vm2095_vm3 = vcmp.lt.s32.totalorder %v1967_v60, 2048  ;;  %v1840_v38 = vadd.s32 560, %v5665_v7 }
  0xce   : > { %vm2093_vm4 = vcmp.lt.s32.totalorder %v1965_v12, 2048  ;;  %v6039_v55 = vsel %vm2092_vm2, 1.0, %v7396_v8  ;;  %v6045_v60 = vsel %vm2095_vm3, 1.0, %v7396_v8  ;;  %v1841_v12 = vadd.s32 568, %v5665_v7 }
 0x10b   : > { %v5144_v32 = vpop.f32.mrb[0].mxu0 }
 0x10c   : > { %v1008_v34 = vadd.f32 %v5144_v32, %v5999_v54  ;;  %v999_v58 = vpop.f32.mrb[1].mxu0 }
 0x10d   : > { %v1000_v14 = vadd.f32 %v5999_v54, %v999_v58  ;;  %v5145_v15 = vpop.f32.mrb[2].mxu0 }
 0x10e   : > { %v1512_v20 = vmax.f32 %v1008_v34, 0.0  ;;  %v1011_v11 = vadd.f32 %v5145_v15, %v5999_v54  ;;  %v1002_v32 = vpop.f32.mrb[3].mxu0  ;;  %v6036_v15 = vsel %vm2094_vm1, 1.0, %v7396_v8 }
 0x10f   : > { %v1510_v58 = vmax.f32 %v1000_v14, 0.0  ;;  %v1003_v0 = vadd.f32 %v5999_v54, %v1002_v32  ;;  %v1838_v14 = vadd.s32 544, %v5665_v7 }
 0x110   : > { %v2414_v46 = vmul.f32 %v5696_v33, %v1512_v20  ;;  %v1513_v34 = vmax.f32 %v1011_v11, 0.0  ;;  %v6048_v33 = vsel %vm2093_vm4, 1.0, %v7396_v8 }
 0x111   : > { %v2412_v47 = vmul.f32 %v5700_v35, %v1510_v58  ;;  %v1511_v27 = vmax.f32 %v1003_v0, 0.0  ;;  %v1970_v35 = vadd.s32 %v5670_v9, %v1840_v38  ;;  %v1968_v62 = vadd.s32 %v5670_v9, %v1838_v14 }
 0x112   : > { %v1639_v16 = vpack.c.bf16 %v1513_v34, %v1512_v20  ;;  %v2679_v11 = vmul.f32 %v2414_v46, %v1512_v20  ;;  %v2415_v0 = vmul.f32 %v5703_v36, %v1513_v34  ;;  %v1971_v20 = vadd.s32 %v5670_v9, %v1841_v12 }
 0x113   : > { %v1638_v32 = vpack.c.bf16 %v1511_v27, %v1510_v58  ;;  %v2413_v13 = vmul.f32 %v5706_v37, %v1511_v27  ;;  %v5148_v10 = vpop.f32.mrb[4].mxu0  ;;  %v2677_v61 = vmul.f32 %v2412_v47, %v1510_v58  ;;  %vm2098_vm5 = vcmp.lt.s32.totalorder %v1970_v35, 2048 }
 0x114   : > { %1706 = vst [vmem:[%s6053_s11 + $0x8] sm:$0xff] %v1639_v16  ;;  %v1024_v4 = vadd.f32 %v5148_v10, %v5999_v54  ;;  %v1015_v3 = vpop.f32.mrb[5].mxu0  ;;  %vm2096_vm6 = vcmp.lt.s32.totalorder %v1968_v62, 2048  ;;  %v2680_v26 = vmul.f32 %v2415_v0, %v1513_v34  ;;  %vm2099_vm7 = vcmp.lt.s32.totalorder %v1971_v20, 2048 }
 0x115   : > { %1705 = vst [vmem:[%s6053_s11] sm:$0xff] %v1638_v32  ;;  %v2541_v37 = vadd.f32 %v2413_v13, %v2412_v47  ;;  %v2678_v57 = vmul.f32 %v2413_v13, %v1511_v27  ;;  %v1016_v38 = vadd.f32 %v5999_v54, %v1015_v3  ;;  %v5149_v56 = vpop.f32.mrb[6].mxu0  ;;  %v6080_v35 = vsel %vm2099_vm7, 1.0, %v7396_v8 }
 0x116   : > { %v1516_v29 = vmax.f32 %v1024_v4, 0.0  ;;  %v1027_v31 = vadd.f32 %v5149_v56, %v5999_v54  ;;  %v1018_v16 = vpop.f32.mrb[7].mxu0 }
 0x117   : > { %v2542_v36 = vadd.f32 %v2541_v37, %v2414_v46  ;;  %v2805_v10 = vadd.f32 %v2678_v57, %v2677_v61  ;;  %v1514_v28 = vmax.f32 %v1016_v38, 0.0  ;;  %v1019_v14 = vadd.f32 %v5999_v54, %v1018_v16  ;;  %v5208_v16 = vpop.f32.mrb[0].mxu1 }
 0x118   : > { %v2418_v58 = vmul.f32 %v5715_v44, %v1516_v29  ;;  %v1517_v12 = vmax.f32 %v1027_v31, 0.0  ;;  %v6069_v57 = vsel %vm2098_vm5, 1.0, %v7396_v8  ;;  %v6073_v61 = vsel %vm2096_vm6, 1.0, %v7396_v8 }
 0x119   : > { %v2543_v13 = vadd.f32 %v2542_v36, %v2415_v0  ;;  %v2806_v3 = vadd.f32 %v2805_v10, %v2679_v11  ;;  %v2416_v4 = vmul.f32 %v5722_v48, %v1514_v28  ;;  %v1515_v27 = vmax.f32 %v1019_v14, 0.0 }
 0x11a   : > { %v1641_v56 = vpack.c.bf16 %v1517_v12, %v1516_v29  ;;  %v2419_v47 = vmul.f32 %v5726_v49, %v1517_v12  ;;  %v2683_v32 = vmul.f32 %v2418_v58, %v1516_v29 }
 0x11b   : > { %v2807_v44 = vadd.f32 %v2806_v3, %v2680_v26  ;;  %v2544_v31 = vadd.f32 %v2543_v13, %v2416_v4  ;;  %v2681_v46 = vmul.f32 %v2416_v4, %v1514_v28  ;;  %v1640_v34 = vpack.c.bf16 %v1515_v27, %v1514_v28  ;;  %v5152_v11 = vpop.f32.mrb[8].mxu0  ;;  %v1255_v13 = vpop.f32.mrb[1].mxu1 }
 0x11c   : > { %1708 = vst [vmem:[%s6053_s11 + $0x18] sm:$0xff] %v1641_v56  ;;  %v2417_v48 = vmul.f32 %v5730_v50, %v1515_v27  ;;  %v1040_v49 = vadd.f32 %v5152_v11, %v5999_v54  ;;  %v1031_v0 = vpop.f32.mrb[9].mxu0  ;;  %v2684_v62 = vmul.f32 %v2419_v47, %v1517_v12  ;;  %v6085_v28 = vadd.s32 552, %v5665_v7  ;;  %v5209_v56 = vpop.f32.mrb[2].mxu1 }
 0x11d   : > { %v2808_v37 = vadd.f32 %v2807_v44, %v2681_v46  ;;  %1707 = vst [vmem:[%s6053_s11 + $0x10] sm:$0xff] %v1640_v34  ;;  %v1032_v26 = vadd.f32 %v5999_v54, %v1031_v0  ;;  %v5153_v38 = vpop.f32.mrb[10].mxu0  ;;  %v1264_v12 = vadd.f32 %v5208_v16, %v5999_v54  ;;  %v1256_v4 = vadd.f32 %v5999_v54, %v1255_v13  ;;  %v1258_v11 = vpop.f32.mrb[3].mxu1 }
 0x11e   : > { %v2545_v29 = vadd.f32 %v2544_v31, %v2417_v48  ;;  %v2682_v36 = vmul.f32 %v2417_v48, %v1515_v27  ;;  %v1520_v50 = vmax.f32 %v1040_v49, 0.0  ;;  %v1043_v10 = vadd.f32 %v5153_v38, %v5999_v54  ;;  %v1034_v14 = vpop.f32.mrb[11].mxu0 }
 0x11f   : > { %v1518_v20 = vmax.f32 %v1032_v26, 0.0  ;;  %v1035_v3 = vadd.f32 %v5999_v54, %v1034_v14  ;;  %v6092_v31 = vadd.s32 592, %v5665_v7  ;;  %v6096_v0 = vmax.f32 %v1264_v12, 0.0 }
 0x120   : > { %v2546_v44 = vadd.f32 %v2545_v29, %v2418_v58  ;;  %v2809_v46 = vadd.f32 %v2808_v37, %v2682_v36  ;;  %v1521_v34 = vmax.f32 %v1043_v10, 0.0  ;;  %v2422_v27 = vmul.f32 %v5734_v51, %v1520_v50 }
 0x121   : > { %v2420_v48 = vmul.f32 %v5738_v52, %v1518_v20  ;;  %v1519_v49 = vmax.f32 %v1035_v3, 0.0  ;;  %v6098_v14 = vmax.f32 %v1256_v4, 0.0 }
 0x122   : > { %v2547_v26 = vadd.f32 %v2546_v44, %v2419_v47  ;;  %v2810_v38 = vadd.f32 %v2809_v46, %v2683_v32  ;;  %v1643_v16 = vpack.c.bf16 %v1521_v34, %v1520_v50  ;;  %v2423_v37 = vmul.f32 %v5742_v53, %v1521_v34 }
 0x123   : > { %v2685_v58 = vmul.f32 %v2420_v48, %v1518_v20  ;;  %v1642_v29 = vpack.c.bf16 %v1519_v49, %v1518_v20  ;;  %v2421_v36 = vmul.f32 %v5756_v1, %v1519_v49  ;;  %v5156_v10 = vpop.f32.mrb[12].mxu0  ;;  %v6106_v47 = vmul.f32 %v6036_v15, %v6096_v0  ;;  %v6110_v20 = vpop.f32.mrb[4].mxu1 }
 0x124   : > { %v2811_v13 = vadd.f32 %v2810_v38, %v2684_v62  ;;  %v2548_v51 = vadd.f32 %v2547_v26, %v2420_v48  ;;  %1710 = vst [vmem:[%s6053_s11 + $0x28] sm:$0xff] %v1643_v16  ;;  %v1056_v52 = vadd.f32 %v5156_v10, %v5999_v54  ;;  %v1047_v3 = vpop.f32.mrb[13].mxu0  ;;  %v2687_v32 = vmul.f32 %v2422_v27, %v1520_v50  ;;  %v6120_v50 = vpop.f32.mrb[5].mxu1 }
 0x125   : > { %7415 = vst [vmem:[#allocation37_spill] sm:$0xff] %v6106_v47  ;;  %1709 = vst [vmem:[%s6053_s11 + $0x20] sm:$0xff] %v1642_v29  ;;  %v2686_v12 = vmul.f32 %v2421_v36, %v1519_v49  ;;  %v1048_v4 = vadd.f32 %v5999_v54, %v1047_v3  ;;  %v5157_v53 = vpop.f32.mrb[14].mxu0  ;;  %v6113_v1 = vadd.s32 576, %v5665_v7  ;;  %v6118_v15 = vmul.f32 %v6039_v55, %v6098_v14  ;;  %v6123_v29 = vpop.f32.mrb[6].mxu1 }
 0x126   : > { %v2812_v62 = vadd.f32 %v2811_v13, %v2685_v58  ;;  %v2549_v44 = vadd.f32 %v2548_v51, %v2421_v36  ;;  %v1059_v46 = vadd.f32 %v5157_v53, %v5999_v54  ;;  %v1050_v48 = vpop.f32.mrb[15].mxu0  ;;  %v2688_v49 = vmul.f32 %v2423_v37, %v1521_v34  ;;  %v6129_v13 = vpop.f32.mrb[7].mxu1 }
 0x127   : > { %v1524_v26 = vmax.f32 %v1056_v52, 0.0  ;;  %v1522_v38 = vmax.f32 %v1048_v4, 0.0  ;;  %v1051_v16 = vadd.f32 %v5999_v54, %v1050_v48  ;;  %v6127_v36 = vmul.f32 %v6106_v47, %v6096_v0 }
 0x128   : > { %v2550_v10 = vadd.f32 %v2549_v44, %v2422_v27  ;;  %v2813_v3 = vadd.f32 %v2812_v62, %v2686_v12  ;;  %v1525_v58 = vmax.f32 %v1059_v46, 0.0  ;;  %v1267_v34 = vadd.f32 %v5209_v56, %v5999_v54 }
 0x129   : > { %7416 = vst [vmem:[#allocation38_spill] sm:$0xff] %v6127_v36  ;;  %v2424_v55 = vmul.f32 %v5765_v5, %v1522_v38  ;;  %v1523_v51 = vmax.f32 %v1051_v16, 0.0  ;;  %v1259_v52 = vadd.f32 %v5999_v54, %v1258_v11  ;;  %v6136_v12 = vmul.f32 %v6118_v15, %v6098_v14 }
 0x12a   : > { %v2551_v4 = vadd.f32 %v2550_v10, %v2423_v37  ;;  %v2814_v53 = vadd.f32 %v2813_v3, %v2687_v32  ;;  %v1645_v27 = vpack.c.bf16 %v1525_v58, %v1524_v26  ;;  %v2426_v62 = vmul.f32 %v5759_v2, %v1524_v26 }
 0x12b   : > { %7417 = vst [vmem:[#allocation39_spill] sm:$0xff] %v6136_v12  ;;  %v2689_v44 = vmul.f32 %v2424_v55, %v1522_v38  ;;  %v1644_v46 = vpack.c.bf16 %v1523_v51, %v1522_v38  ;;  %v2425_v48 = vmul.f32 %v5780_v18, %v1523_v51  ;;  %v5160_v5 = vpop.f32.mrb[16].mxu0  ;;  %v1577_v37 = vmax.f32 %v1267_v34, 0.0  ;;  %v6147_v38 = vpop.f32.mrb[8].mxu1 }
 0x12c   : > { %v2815_v16 = vadd.f32 %v2814_v53, %v2688_v49  ;;  %v2552_v36 = vadd.f32 %v2551_v4, %v2424_v55  ;;  %1712 = vst [vmem:[%s6053_s11 + $0x38] sm:$0xff] %v1645_v27  ;;  %v1072_v56 = vadd.f32 %v5160_v5, %v5999_v54  ;;  %v1063_v11 = vpop.f32.mrb[17].mxu0  ;;  %v2427_v32 = vmul.f32 %v5777_v17, %v1525_v58  ;;  %v6150_v53 = vpop.f32.mrb[9].mxu1 }
 0x12d   : > { %1711 = vst [vmem:[%s6053_s11 + $0x30] sm:$0xff] %v1644_v46  ;;  %v2690_v10 = vmul.f32 %v2425_v48, %v1523_v51  ;;  %v1064_v3 = vadd.f32 %v5999_v54, %v1063_v11  ;;  %v5161_v47 = vpop.f32.mrb[18].mxu0  ;;  %v6145_v2 = vmax.f32 %v1259_v52, 0.0  ;;  %v1671_v51 = vpack.c.bf16 %v1577_v37, %v6096_v0  ;;  %v6157_v52 = vpop.f32.mrb[10].mxu1 }
 0x12e   : > { %v2816_v18 = vadd.f32 %v2815_v16, %v2689_v44  ;;  %v2553_v12 = vadd.f32 %v2552_v36, %v2425_v48  ;;  %v1528_v49 = vmax.f32 %v1072_v56, 0.0  ;;  %v1075_v55 = vadd.f32 %v5161_v47, %v5999_v54  ;;  %v1066_v4 = vpop.f32.mrb[19].mxu0  ;;  %v6159_v47 = vpop.f32.mrb[11].mxu1 }
 0x12f   : > { %v1526_v34 = vmax.f32 %v1064_v3, 0.0  ;;  %v1067_v17 = vadd.f32 %v5999_v54, %v1066_v4  ;;  %v6155_v27 = vmul.f32 %v6045_v60, %v1577_v37  ;;  %v2691_v46 = vmul.f32 %v2426_v62, %v1524_v26  ;;  %1738 = vst [vmem:[%s6053_s11 + $0x108] sm:$0xff] %v1671_v51  ;;  %v6182_v51 = vpop.f32.mrb[12].mxu1 }
 0x130   : > { %v2554_v44 = vadd.f32 %v2553_v12, %v2426_v62  ;;  %v2817_v36 = vadd.f32 %v2816_v18, %v2690_v10  ;;  %v1529_v48 = vmax.f32 %v1075_v55, 0.0  ;;  %v2692_v5 = vmul.f32 %v2427_v32, %v1525_v58 }
 0x131   : > { %v2428_v16 = vmul.f32 %v5788_v21, %v1526_v34  ;;  %v1527_v56 = vmax.f32 %v1067_v17, 0.0  ;;  %v1670_v0 = vpack.c.bf16 %v6145_v2, %v6098_v14  ;;  %v2430_v26 = vmul.f32 %v5783_v19, %v1528_v49 }
 0x132   : > { %v2555_v60 = vadd.f32 %v2554_v44, %v2427_v32  ;;  %v2818_v11 = vadd.f32 %v2817_v36, %v2691_v46  ;;  %v1647_v12 = vpack.c.bf16 %v1529_v48, %v1528_v49  ;;  %v6168_v58 = vmul.f32 %v6155_v27, %v1577_v37 }
 0x133   : > { %v2693_v62 = vmul.f32 %v2428_v16, %v1526_v34  ;;  %v1646_v10 = vpack.c.bf16 %v1527_v56, %v1526_v34  ;;  %v2429_v3 = vmul.f32 %v5796_v23, %v1527_v56  ;;  %v5164_v18 = vpop.f32.mrb[20].mxu0  ;;  %1737 = vst [vmem:[%s6053_s11 + $0x100] sm:$0xff] %v1670_v0  ;;  %v2431_v14 = vmul.f32 %v5792_v22, %v1529_v48 }
 0x134   : > { %v2819_v21 = vadd.f32 %v2818_v11, %v2692_v5  ;;  %v2556_v55 = vadd.f32 %v2555_v60, %v2428_v16  ;;  %1714 = vst [vmem:[%s6053_s11 + $0x48] sm:$0xff] %v1647_v12  ;;  %v1088_v32 = vadd.f32 %v5164_v18, %v5999_v54  ;;  %v1079_v4 = vpop.f32.mrb[21].mxu0  ;;  %v6178_v23 = vmul.f32 %v6048_v33, %v6145_v2  ;;  %v6185_v16 = vpop.f32.mrb[13].mxu1 }
 0x135   : > { %1713 = vst [vmem:[%s6053_s11 + $0x40] sm:$0xff] %v1646_v10  ;;  %v2694_v19 = vmul.f32 %v2429_v3, %v1527_v56  ;;  %v1080_v17 = vadd.f32 %v5999_v54, %v1079_v4  ;;  %v5165_v34 = vpop.f32.mrb[22].mxu0  ;;  %v1280_v37 = vadd.f32 %v6110_v20, %v5999_v54  ;;  %v2695_v56 = vmul.f32 %v2430_v26, %v1528_v49  ;;  %v6190_v33 = vpop.f32.mrb[14].mxu1 }
 0x136   : > { %v2820_v46 = vadd.f32 %v2819_v21, %v2693_v62  ;;  %v2557_v44 = vadd.f32 %v2556_v55, %v2429_v3  ;;  %v1532_v22 = vmax.f32 %v1088_v32, 0.0  ;;  %v1091_v36 = vadd.f32 %v5165_v34, %v5999_v54  ;;  %v1082_v5 = vpop.f32.mrb[23].mxu0  ;;  %v6192_v62 = vpop.f32.mrb[15].mxu1 }
 0x137   : > { %v1530_v0 = vmax.f32 %v1080_v17, 0.0  ;;  %v1083_v60 = vadd.f32 %v5999_v54, %v1082_v5  ;;  %v6188_v11 = vmax.f32 %v1280_v37, 0.0  ;;  %v2696_v12 = vmul.f32 %v2431_v14, %v1529_v48 }
 0x138   : > { %v2558_v20 = vadd.f32 %v2557_v44, %v2430_v26  ;;  %v2821_v10 = vadd.f32 %v2820_v46, %v2694_v19  ;;  %v1533_v18 = vmax.f32 %v1091_v36, 0.0  ;;  %v2434_v3 = vmul.f32 %v5805_v30, %v1532_v22 }
 0x139   : > { %v2432_v21 = vmul.f32 %v5812_v39, %v1530_v0  ;;  %v1531_v55 = vmax.f32 %v1083_v60, 0.0  ;;  %v1272_v49 = vadd.f32 %v5999_v54, %v6120_v50  ;;  %v6200_v48 = vmul.f32 %v6178_v23, %v6145_v2 }
 0x13a   : > { %v2559_v32 = vadd.f32 %v2558_v20, %v2431_v14  ;;  %v2822_v4 = vadd.f32 %v2821_v10, %v2695_v56  ;;  %v1649_v17 = vpack.c.bf16 %v1533_v18, %v1532_v22  ;;  %v6205_v30 = vmul.f32 %v6069_v57, %v6188_v11 }
 0x13b   : > { %v2697_v26 = vmul.f32 %v2432_v21, %v1530_v0  ;;  %v1648_v19 = vpack.c.bf16 %v1531_v55, %v1530_v0  ;;  %v2433_v34 = vmul.f32 %v5820_v41, %v1531_v55  ;;  %v5168_v37 = vpop.f32.mrb[24].mxu0  ;;  %v2435_v50 = vmul.f32 %v5816_v40, %v1533_v18  ;;  %v6214_v0 = vpop.f32.mrb[16].mxu1 }
 0x13c   : > { %v2823_v39 = vadd.f32 %v2822_v4, %v2696_v12  ;;  %v2560_v46 = vadd.f32 %v2559_v32, %v2432_v21  ;;  %1716 = vst [vmem:[%s6053_s11 + $0x58] sm:$0xff] %v1649_v17  ;;  %v1104_v14 = vadd.f32 %v5168_v37, %v5999_v54  ;;  %v1095_v44 = vpop.f32.mrb[25].mxu0  ;;  %v2699_v36 = vmul.f32 %v2434_v3, %v1532_v22  ;;  %v6217_v40 = vpop.f32.mrb[17].mxu1 }
 0x13d   : > { %1715 = vst [vmem:[%s6053_s11 + $0x50] sm:$0xff] %v1648_v19  ;;  %v2698_v2 = vmul.f32 %v2433_v34, %v1531_v55  ;;  %v1096_v5 = vadd.f32 %v5999_v54, %v1095_v44  ;;  %v5169_v56 = vpop.f32.mrb[26].mxu0  ;;  %v6212_v41 = vmax.f32 %v1272_v49, 0.0  ;;  %v6222_v55 = vmul.f32 %v6205_v30, %v6188_v11  ;;  %v6226_v32 = vpop.f32.mrb[18].mxu1 }
 0x13e   : > { %v2824_v57 = vadd.f32 %v2823_v39, %v2697_v26  ;;  %v2561_v60 = vadd.f32 %v2560_v46, %v2433_v34  ;;  %v1536_v12 = vmax.f32 %v1104_v14, 0.0  ;;  %v1107_v20 = vadd.f32 %v5169_v56, %v5999_v54  ;;  %v1098_v10 = vpop.f32.mrb[27].mxu0  ;;  %v6228_v34 = vpop.f32.mrb[19].mxu1 }
 0x13f   : > { %v1534_v21 = vmax.f32 %v1096_v5, 0.0  ;;  %v1099_v22 = vadd.f32 %v5999_v54, %v1098_v10  ;;  %v1283_v49 = vadd.f32 %v6123_v29, %v5999_v54  ;;  %v2700_v4 = vmul.f32 %v2435_v50, %v1533_v18 }
 0x140   : > { %v2562_v17 = vadd.f32 %v2561_v60, %v2434_v3  ;;  %v2825_v26 = vadd.f32 %v2824_v57, %v2698_v2  ;;  %v1537_v19 = vmax.f32 %v1107_v20, 0.0  ;;  %v2438_v37 = vmul.f32 %v5824_v42, %v1536_v12 }
 0x141   : > { %v2436_v39 = vmul.f32 %v5828_v43, %v1534_v21  ;;  %v1535_v46 = vmax.f32 %v1099_v22, 0.0  ;;  %v6234_v14 = vmul.f32 %v6073_v61, %v6212_v41  ;;  %v6236_v18 = vmax.f32 %v1283_v49, 0.0 }
 0x142   : > { %v2563_v44 = vadd.f32 %v2562_v17, %v2435_v50  ;;  %v2826_v29 = vadd.f32 %v2825_v26, %v2699_v36  ;;  %v1651_v5 = vpack.c.bf16 %v1537_v19, %v1536_v12  ;;  %v2439_v2 = vmul.f32 %v5832_v45, %v1537_v19 }
 0x143   : > { %v2701_v3 = vmul.f32 %v2436_v39, %v1534_v21  ;;  %v1650_v56 = vpack.c.bf16 %v1535_v46, %v1534_v21  ;;  %v2437_v57 = vmul.f32 %v5842_v59, %v1535_v46  ;;  %v5172_v42 = vpop.f32.mrb[28].mxu0  ;;  %v1673_v50 = vpack.c.bf16 %v6236_v18, %v6188_v11  ;;  %v6250_v21 = vpop.f32.mrb[20].mxu1 }
 0x144   : > { %v2827_v60 = vadd.f32 %v2826_v29, %v2700_v4  ;;  %v2564_v43 = vadd.f32 %v2563_v44, %v2436_v39  ;;  %1718 = vst [vmem:[%s6053_s11 + $0x68] sm:$0xff] %v1651_v5  ;;  %v1120_v61 = vadd.f32 %v5172_v42, %v5999_v54  ;;  %v1111_v20 = vpop.f32.mrb[29].mxu0  ;;  %v2703_v36 = vmul.f32 %v2438_v37, %v1536_v12  ;;  %v6254_v11 = vpop.f32.mrb[21].mxu1 }
 0x145   : > { %1717 = vst [vmem:[%s6053_s11 + $0x60] sm:$0xff] %v1650_v56  ;;  %v2702_v10 = vmul.f32 %v2437_v57, %v1535_v46  ;;  %v1112_v22 = vadd.f32 %v5999_v54, %v1111_v20  ;;  %v5173_v45 = vpop.f32.mrb[30].mxu0  ;;  %v6248_v59 = vmul.f32 %v6234_v14, %v6212_v41  ;;  %1740 = vst [vmem:[%s6053_s11 + $0x118] sm:$0xff] %v1673_v50  ;;  %v6259_v5 = vpop.f32.mrb[22].mxu1 }
 0x146   : > { %v2828_v49 = vadd.f32 %v2827_v60, %v2701_v3  ;;  %v2565_v4 = vadd.f32 %v2564_v43, %v2437_v57  ;;  %v1540_v17 = vmax.f32 %v1120_v61, 0.0  ;;  %v1123_v26 = vadd.f32 %v5173_v45, %v5999_v54  ;;  %v1114_v39 = vpop.f32.mrb[31].mxu0  ;;  %v6262_v60 = vpop.f32.mrb[23].mxu1 }
 0x147   : > { %v2704_v12 = vmul.f32 %v2439_v2, %v1537_v19  ;;  %v1538_v46 = vmax.f32 %v1112_v22, 0.0  ;;  %v1115_v44 = vadd.f32 %v5999_v54, %v1114_v39  ;;  %v1275_v29 = vadd.f32 %v5999_v54, %v6129_v13 }
 0x148   : > { %v2566_v56 = vadd.f32 %v2565_v4, %v2438_v37  ;;  %v2829_v42 = vadd.f32 %v2828_v49, %v2702_v10  ;;  %v2442_v3 = vmul.f32 %v5848_v63, %v1540_v17  ;;  %v1541_v57 = vmax.f32 %v1123_v26, 0.0 }
 0x149   : > { %v2440_v43 = vmul.f32 %v5855_v6, %v1538_v46  ;;  %v1539_v61 = vmax.f32 %v1115_v44, 0.0  ;;  %v6267_v19 = vmul.f32 %v6080_v35, %v6236_v18  ;;  %v1969_v13 = vadd.s32 %v5670_v9, %v6085_v28 }
 0x14a   : > { %v2567_v20 = vadd.f32 %v2566_v56, %v2439_v2  ;;  %v2830_v37 = vadd.f32 %v2829_v42, %v2703_v36  ;;  %v1653_v50 = vpack.c.bf16 %v1541_v57, %v1540_v17  ;;  %v6271_v10 = vmax.f32 %v1275_v29, 0.0 }
 0x14b   : > { %v2707_v63 = vmul.f32 %v2442_v3, %v1540_v17  ;;  %v2705_v22 = vmul.f32 %v2440_v43, %v1538_v46  ;;  %v1652_v45 = vpack.c.bf16 %v1539_v61, %v1538_v46  ;;  %v2441_v49 = vmul.f32 %v5870_v25, %v1539_v61  ;;  %v5176_v6 = vpop.f32.mrb[32].mxu0  ;;  %v6281_v25 = vpop.f32.mrb[24].mxu1 }
 0x14c   : > { %v2831_v4 = vadd.f32 %v2830_v37, %v2704_v12  ;;  %v2568_v26 = vadd.f32 %v2567_v20, %v2440_v43  ;;  %1720 = vst [vmem:[%s6053_s11 + $0x78] sm:$0xff] %v1653_v50  ;;  %v1136_v35 = vadd.f32 %v5176_v6, %v5999_v54  ;;  %v1127_v39 = vpop.f32.mrb[33].mxu0  ;;  %v1672_v28 = vpack.c.bf16 %v6271_v10, %v6212_v41  ;;  %v6285_v43 = vpop.f32.mrb[25].mxu1 }
 0x14d   : > { %v2443_v2 = vmul.f32 %v5867_v24, %v1541_v57  ;;  %1719 = vst [vmem:[%s6053_s11 + $0x70] sm:$0xff] %v1652_v45  ;;  %v2706_v36 = vmul.f32 %v2441_v49, %v1539_v61  ;;  %v1128_v17 = vadd.f32 %v5999_v54, %v1127_v39  ;;  %v5177_v46 = vpop.f32.mrb[34].mxu0  ;;  %vm2097_vm8 = vcmp.lt.s32.totalorder %v1969_v13, 2048  ;;  %7418 = vst [vmem:[#allocation40_spill] sm:$0xff] %v6285_v43  ;;  %v6291_v13 = vpop.f32.mrb[26].mxu1 }
 0x14e   : > { %v2832_v12 = vadd.f32 %v2831_v4, %v2705_v22  ;;  %v2569_v44 = vadd.f32 %v2568_v26, %v2441_v49  ;;  %v1544_v29 = vmax.f32 %v1136_v35, 0.0  ;;  %v1139_v56 = vadd.f32 %v5177_v46, %v5999_v54  ;;  %v1130_v42 = vpop.f32.mrb[35].mxu0  ;;  %1739 = vst [vmem:[%s6053_s11 + $0x110] sm:$0xff] %v1672_v28  ;;  %7419 = vst [vmem:[#allocation41_spill] sm:$0xff] %v6291_v13  ;;  %v7420_v22 = vld [vmem:[#allocation5_spill] sm:$0xff]  ;;  %v6294_v6 = vpop.f32.mrb[27].mxu1 }
 0x14f   : > { %v1542_v41 = vmax.f32 %v1128_v17, 0.0  ;;  %v1131_v24 = vadd.f32 %v5999_v54, %v1130_v42  ;;  %v4356_v61 = vsel %vm2097_vm8, 1.0, %v7396_v8  ;;  %v1296_v20 = vadd.f32 %v6147_v38, %v5999_v54  ;;  %7421 = vst [vmem:[#allocation5_spill] sm:$0xff] %v6294_v6  ;;  %v7422_v26 = vld [vmem:[#allocation6_spill] sm:$0xff] }
 0x150   : > { %v2570_v37 = vadd.f32 %v2569_v44, %v2442_v3  ;;  %v2833_v50 = vadd.f32 %v2832_v12, %v2706_v36  ;;  %v2446_v45 = vmul.f32 %v7420_v22, %v1544_v29  ;;  %v1545_v49 = vmax.f32 %v1139_v56, 0.0  ;;  %v7423_v44 = vld [vmem:[#allocation8_spill] sm:$0xff] }
 0x151   : > { %v2708_v4 = vmul.f32 %v2443_v2, %v1541_v57  ;;  %v2444_v35 = vmul.f32 %v7422_v26, %v1542_v41  ;;  %v1543_v39 = vmax.f32 %v1131_v24, 0.0  ;;  %v6299_v28 = vmul.f32 %v6267_v19, %v6236_v18 }
 0x152   : > { %v2571_v17 = vadd.f32 %v2570_v37, %v2443_v2  ;;  %v2834_v38 = vadd.f32 %v2833_v50, %v2707_v63  ;;  %v1655_v46 = vpack.c.bf16 %v1545_v49, %v1544_v29  ;;  %v6302_v3 = vmul.f32 %v4356_v61, %v6271_v10  ;;  %v7424_v37 = vld [vmem:[#allocation7_spill] sm:$0xff] }
 0x153   : > { %v2709_v36 = vmul.f32 %v2444_v35, %v1542_v41  ;;  %v1654_v12 = vpack.c.bf16 %v1543_v39, %v1542_v41  ;;  %v2445_v56 = vmul.f32 %v7423_v44, %v1543_v39  ;;  %v5180_v57 = vpop.f32.mrb[36].mxu0  ;;  %v6305_v42 = vmax.f32 %v1296_v20, 0.0  ;;  %v6314_v44 = vpop.f32.mrb[28].mxu1 }
 0x154   : > { %v2835_v22 = vadd.f32 %v2834_v38, %v2708_v4  ;;  %v2711_v24 = vmul.f32 %v2446_v45, %v1544_v29  ;;  %v2572_v26 = vadd.f32 %v2571_v17, %v2444_v35  ;;  %1722 = vst [vmem:[%s6053_s11 + $0x88] sm:$0xff] %v1655_v46  ;;  %v1152_v18 = vadd.f32 %v5180_v57, %v5999_v54  ;;  %v1143_v2 = vpop.f32.mrb[37].mxu0  ;;  %v6317_v38 = vpop.f32.mrb[29].mxu1 }
 0x155   : > { %v2447_v63 = vmul.f32 %v7424_v37, %v1545_v49  ;;  %1721 = vst [vmem:[%s6053_s11 + $0x80] sm:$0xff] %v1654_v12  ;;  %v2710_v50 = vmul.f32 %v2445_v56, %v1543_v39  ;;  %v1144_v61 = vadd.f32 %v5999_v54, %v1143_v2  ;;  %v5181_v6 = vpop.f32.mrb[38].mxu0  ;;  %v1974_v41 = vadd.s32 %v5670_v9, %v6092_v31  ;;  %v6324_v57 = vpop.f32.mrb[30].mxu1  ;;  %v7430_v37 = vld [vmem:[#allocation10_spill] sm:$0xff] }
 0x156   : > { %7425 = vst [vmem:[#allocation6_spill] sm:$0xff] %v6314_v44  ;;  %v2836_v20 = vadd.f32 %v2835_v22, %v2709_v36  ;;  %v2573_v4 = vadd.f32 %v2572_v26, %v2445_v56  ;;  %v1548_v29 = vmax.f32 %v1152_v18, 0.0  ;;  %v1155_v35 = vadd.f32 %v5181_v6, %v5999_v54  ;;  %v1146_v17 = vpop.f32.mrb[39].mxu0  ;;  %7426 = vst [vmem:[#allocation8_spill] sm:$0xff] %v6317_v38  ;;  %v6328_v6 = vpop.f32.mrb[31].mxu1  ;;  %v7429_v26 = vld [vmem:[#allocation9_spill] sm:$0xff] }
 0x157   : > { %v1546_v46 = vmax.f32 %v1144_v61, 0.0  ;;  %v1147_v12 = vadd.f32 %v5999_v54, %v1146_v17  ;;  %v6322_v39 = vmul.f32 %v6302_v3, %v6271_v10  ;;  %vm2102_vm9 = vcmp.lt.s32.totalorder %v1974_v41, 2048  ;;  %7427 = vst [vmem:[#allocation7_spill] sm:$0xff] %v6324_v57  ;;  %7428 = vst [vmem:[#allocation42_spill] sm:$0xff] %v6328_v6 }
 0x158   : > { %v2574_v31 = vadd.f32 %v2573_v4, %v2446_v45  ;;  %v2837_v2 = vadd.f32 %v2836_v20, %v2710_v50  ;;  %v1549_v36 = vmax.f32 %v1155_v35, 0.0  ;;  %v1288_v56 = vadd.f32 %v5999_v54, %v6150_v53  ;;  %v7431_v20 = vld [vmem:[#allocation11_spill] sm:$0xff]  ;;  %v7432_v53 = vld [vmem:[#allocation12_spill] sm:$0xff] }
 0x159   : > { %v2712_v22 = vmul.f32 %v2447_v63, %v1545_v49  ;;  %v2450_v18 = vmul.f32 %v7429_v26, %v1548_v29  ;;  %v2448_v61 = vmul.f32 %v7430_v37, %v1546_v46  ;;  %v1547_v17 = vmax.f32 %v1147_v12, 0.0 }
 0x15a   : > { %v2575_v10 = vadd.f32 %v2574_v31, %v2447_v63  ;;  %v2838_v41 = vadd.f32 %v2837_v2, %v2711_v24  ;;  %v1657_v38 = vpack.c.bf16 %v1549_v36, %v1548_v29  ;;  %v4361_v45 = vsel %vm2102_vm9, 1.0, %v7396_v8 }
 0x15b   : > { %v2713_v50 = vmul.f32 %v2448_v61, %v1546_v46  ;;  %v2451_v4 = vmul.f32 %v7431_v20, %v1549_v36  ;;  %v1656_v35 = vpack.c.bf16 %v1547_v17, %v1546_v46  ;;  %v2449_v57 = vmul.f32 %v7432_v53, %v1547_v17  ;;  %v5184_v6 = vpop.f32.mrb[40].mxu0  ;;  %v6346_v20 = vpop.f32.mrb[32].mxu1 }
 0x15c   : > { %v2839_v44 = vadd.f32 %v2838_v41, %v2712_v22  ;;  %v2576_v49 = vadd.f32 %v2575_v10, %v2448_v61  ;;  %1724 = vst [vmem:[%s6053_s11 + $0x98] sm:$0xff] %v1657_v38  ;;  %v1168_v26 = vadd.f32 %v5184_v6, %v5999_v54  ;;  %v1159_v37 = vpop.f32.mrb[41].mxu0  ;;  %v6337_v12 = vmax.f32 %v1288_v56, 0.0  ;;  %7433 = vst [vmem:[#allocation9_spill] sm:$0xff] %v6346_v20  ;;  %v6349_v10 = vpop.f32.mrb[33].mxu1 }
 0x15d   : > { %1723 = vst [vmem:[%s6053_s11 + $0x90] sm:$0xff] %v1656_v35  ;;  %v2714_v24 = vmul.f32 %v2449_v57, %v1547_v17  ;;  %v1160_v63 = vadd.f32 %v5999_v54, %v1159_v37  ;;  %v5185_v31 = vpop.f32.mrb[42].mxu0  ;;  %v6342_v2 = vmul.f32 %v4361_v45, %v6305_v42  ;;  %v1972_v46 = vadd.s32 %v5670_v9, %v6113_v1  ;;  %v6352_v45 = vpop.f32.mrb[34].mxu1 }
 0x15e   : > { %v2840_v22 = vadd.f32 %v2839_v44, %v2713_v50  ;;  %v2577_v38 = vadd.f32 %v2576_v49, %v2449_v57  ;;  %v1552_v61 = vmax.f32 %v1168_v26, 0.0  ;;  %v1171_v6 = vadd.f32 %v5185_v31, %v5999_v54  ;;  %v1162_v56 = vpop.f32.mrb[43].mxu0  ;;  %7434 = vst [vmem:[#allocation10_spill] sm:$0xff] %v6349_v10  ;;  %7435 = vst [vmem:[#allocation11_spill] sm:$0xff] %v6352_v45  ;;  %v6354_v20 = vpop.f32.mrb[35].mxu1  ;;  %v7437_v44 = vld [vmem:[#allocation13_spill] sm:$0xff] }
 0x15f   : > { %v2715_v17 = vmul.f32 %v2450_v18, %v1548_v29  ;;  %v2716_v41 = vmul.f32 %v2451_v4, %v1549_v36  ;;  %v1550_v35 = vmax.f32 %v1160_v63, 0.0  ;;  %v1163_v53 = vadd.f32 %v5999_v54, %v1162_v56  ;;  %7436 = vst [vmem:[#allocation12_spill] sm:$0xff] %v6354_v20  ;;  %v7438_v50 = vld [vmem:[#allocation14_spill] sm:$0xff] }
 0x160   : > { %v2578_v37 = vadd.f32 %v2577_v38, %v2450_v18  ;;  %v2841_v13 = vadd.f32 %v2840_v22, %v2714_v24  ;;  %v1553_v1 = vmax.f32 %v1171_v6, 0.0  ;;  %vm2100_vm10 = vcmp.lt.s32.totalorder %v1972_v46, 2048  ;;  %v7440_v22 = vld [vmem:[#allocation16_spill] sm:$0xff] }
 0x161   : > { %v2454_v57 = vmul.f32 %v7437_v44, %v1552_v61  ;;  %v2452_v49 = vmul.f32 %v7438_v50, %v1550_v35  ;;  %v1551_v26 = vmax.f32 %v1163_v53, 0.0  ;;  %v1299_v29 = vadd.f32 %v6157_v52, %v5999_v54  ;;  %v7441_v50 = vld [vmem:[#allocation15_spill] sm:$0xff] }
 0x162   : > { %v2579_v36 = vadd.f32 %v2578_v37, %v2451_v4  ;;  %v2842_v63 = vadd.f32 %v2841_v13, %v2715_v17  ;;  %v1659_v31 = vpack.c.bf16 %v1553_v1, %v1552_v61  ;;  %v6362_v18 = vmul.f32 %v6342_v2, %v6305_v42 }
 0x163   : > { %v2717_v24 = vmul.f32 %v2452_v49, %v1550_v35  ;;  %v1658_v46 = vpack.c.bf16 %v1551_v26, %v1550_v35  ;;  %v2453_v38 = vmul.f32 %v7440_v22, %v1551_v26  ;;  %v5188_v6 = vpop.f32.mrb[44].mxu0  ;;  %v4359_v56 = vsel %vm2100_vm10, 1.0, %v7396_v8  ;;  %v6373_v22 = vpop.f32.mrb[36].mxu1 }
 0x164   : > { %7439 = vst [vmem:[#allocation13_spill] sm:$0xff] %v6362_v18  ;;  %v2843_v44 = vadd.f32 %v2842_v63, %v2716_v41  ;;  %v2580_v53 = vadd.f32 %v2579_v36, %v2452_v49  ;;  %1726 = vst [vmem:[%s6053_s11 + $0xa8] sm:$0xff] %v1659_v31  ;;  %v2455_v52 = vmul.f32 %v7441_v50, %v1553_v1  ;;  %v1175_v13 = vpop.f32.mrb[45].mxu0  ;;  %v6371_v35 = vmax.f32 %v1299_v29, 0.0  ;;  %v6379_v63 = vpop.f32.mrb[37].mxu1 }
 0x165   : > { %v1184_v4 = vadd.f32 %v5188_v6, %v5999_v54  ;;  %v2719_v17 = vmul.f32 %v2454_v57, %v1552_v61  ;;  %1725 = vst [vmem:[%s6053_s11 + $0xa0] sm:$0xff] %v1658_v46  ;;  %v2718_v37 = vmul.f32 %v2453_v38, %v1551_v26  ;;  %v1176_v20 = vadd.f32 %v5999_v54, %v1175_v13  ;;  %v5189_v45 = vpop.f32.mrb[46].mxu0  ;;  %v6384_v46 = vpop.f32.mrb[38].mxu1 }
 0x166   : > { %7442 = vst [vmem:[#allocation14_spill] sm:$0xff] %v6373_v22  ;;  %v2844_v10 = vadd.f32 %v2843_v44, %v2717_v24  ;;  %v2581_v43 = vadd.f32 %v2580_v53, %v2453_v38  ;;  %v1187_v41 = vadd.f32 %v5189_v45, %v5999_v54  ;;  %v1178_v49 = vpop.f32.mrb[47].mxu0  ;;  %v6377_v36 = vmul.f32 %v4359_v56, %v6337_v12  ;;  %v6386_v44 = vpop.f32.mrb[39].mxu1  ;;  %v7446_v53 = vld [vmem:[#allocation18_spill] sm:$0xff] }
 0x167   : > { %7443 = vst [vmem:[#allocation16_spill] sm:$0xff] %v6379_v63  ;;  %v1556_v61 = vmax.f32 %v1184_v4, 0.0  ;;  %v1554_v26 = vmax.f32 %v1176_v20, 0.0  ;;  %v1179_v31 = vadd.f32 %v5999_v54, %v1178_v49  ;;  %v1675_v29 = vpack.c.bf16 %v6371_v35, %v6305_v42  ;;  %7444 = vst [vmem:[#allocation15_spill] sm:$0xff] %v6384_v46 }
 0x168   : > { %v2720_v24 = vmul.f32 %v2455_v52, %v1553_v1  ;;  %v2582_v38 = vadd.f32 %v2581_v43, %v2454_v57  ;;  %v2845_v6 = vadd.f32 %v2844_v10, %v2718_v37  ;;  %v1557_v45 = vmax.f32 %v1187_v41, 0.0  ;;  %7445 = vst [vmem:[#allocation43_spill] sm:$0xff] %v6386_v44  ;;  %v7447_v10 = vld [vmem:[#allocation17_spill] sm:$0xff]  ;;  %v7448_v41 = vld [vmem:[#allocation20_spill] sm:$0xff] }
 0x169   : > { %v2456_v56 = vmul.f32 %v7446_v53, %v1554_v26  ;;  %v1555_v50 = vmax.f32 %v1179_v31, 0.0  ;;  %1742 = vst [vmem:[%s6053_s11 + $0x128] sm:$0xff] %v1675_v29  ;;  %v1845_v20 = vadd.s32 600, %v5665_v7  ;;  %v1291_v4 = vadd.f32 %v5999_v54, %v6159_v47  ;;  %v6403_v54 = vld [vmem:[%s7374_s2] ss:$0 sm:$0xff] }
 0x16a   : > { %v2583_v13 = vadd.f32 %v2582_v38, %v2455_v52  ;;  %v2846_v42 = vadd.f32 %v2845_v6, %v2719_v17  ;;  %v1661_v49 = vpack.c.bf16 %v1557_v45, %v1556_v61  ;;  %v6395_v43 = vmul.f32 %v6377_v36, %v6337_v12  ;;  %v7449_v38 = vld [vmem:[#allocation19_spill] sm:$0xff] }
 0x16b   : > { %v2458_v1 = vmul.f32 %v7447_v10, %v1556_v61  ;;  %v2721_v57 = vmul.f32 %v2456_v56, %v1554_v26  ;;  %v1660_v37 = vpack.c.bf16 %v1555_v50, %v1554_v26  ;;  %v2457_v31 = vmul.f32 %v7448_v41, %v1555_v50  ;;  %v5192_v29 = vpop.f32.mrb[48].mxu0 }
 0x16c   : > { %v2847_v53 = vadd.f32 %v2846_v42, %v2720_v24  ;;  %v2584_v44 = vadd.f32 %v2583_v13, %v2456_v56  ;;  %1728 = vst [vmem:[%s6053_s11 + $0xb8] sm:$0xff] %v1661_v49  ;;  %v1200_v47 = vadd.f32 %v6403_v54, %v5192_v29  ;;  %v1191_v52 = vpop.f32.mrb[49].mxu0  ;;  %v1975_v17 = vadd.s32 %v5670_v9, %v1845_v20  ;;  %v6412_v56 = vpop.f32.mrb[40].mxu1 }
 0x16d   : > { %v2459_v6 = vmul.f32 %v7449_v38, %v1557_v45  ;;  %1727 = vst [vmem:[%s6053_s11 + $0xb0] sm:$0xff] %v1660_v37  ;;  %v2722_v26 = vmul.f32 %v2457_v31, %v1555_v50  ;;  %v1192_v10 = vadd.f32 %v6403_v54, %v1191_v52  ;;  %v5193_v41 = vpop.f32.mrb[50].mxu0  ;;  %v6410_v24 = vmax.f32 %v1291_v4, 0.0  ;;  %7450 = vst [vmem:[#allocation18_spill] sm:$0xff] %v6412_v56  ;;  %v6415_v63 = vpop.f32.mrb[41].mxu1 }
 0x16e   : > { %v2848_v13 = vadd.f32 %v2847_v53, %v2721_v57  ;;  %v2585_v42 = vadd.f32 %v2584_v44, %v2457_v31  ;;  %v1560_v49 = vmax.f32 %v1200_v47, 0.0  ;;  %v1203_v46 = vadd.f32 %v6403_v54, %v5193_v41  ;;  %v1194_v29 = vpop.f32.mrb[51].mxu0  ;;  %7451 = vst [vmem:[#allocation17_spill] sm:$0xff] %v6415_v63  ;;  %v6420_v4 = vpop.f32.mrb[42].mxu1  ;;  %v7454_v47 = vld [vmem:[#allocation22_spill] sm:$0xff] }
 0x16f   : > { %v1558_v20 = vmax.f32 %v1192_v10, 0.0  ;;  %v1195_v37 = vadd.f32 %v6403_v54, %v1194_v29  ;;  %vm2103_vm11 = vcmp.lt.s32.totalorder %v1975_v17, 2048  ;;  %v1674_v50 = vpack.c.bf16 %v6410_v24, %v6337_v12  ;;  %7452 = vst [vmem:[#allocation20_spill] sm:$0xff] %v6420_v4  ;;  %v6422_v31 = vpop.f32.mrb[43].mxu1 }
 0x170   : > { %v2723_v52 = vmul.f32 %v2458_v1, %v1556_v61  ;;  %v2586_v38 = vadd.f32 %v2585_v42, %v2458_v1  ;;  %v2849_v57 = vadd.f32 %v2848_v13, %v2722_v26  ;;  %v1561_v44 = vmax.f32 %v1203_v46, 0.0  ;;  %7453 = vst [vmem:[#allocation19_spill] sm:$0xff] %v6422_v31  ;;  %v7455_v1 = vld [vmem:[#allocation21_spill] sm:$0xff]  ;;  %v7456_v42 = vld [vmem:[#allocation24_spill] sm:$0xff] }
 0x171   : > { %v2724_v53 = vmul.f32 %v2459_v6, %v1557_v45  ;;  %v2460_v41 = vmul.f32 %v7454_v47, %v1558_v20  ;;  %v1559_v63 = vmax.f32 %v1195_v37, 0.0  ;;  %1741 = vst [vmem:[%s6053_s11 + $0x120] sm:$0xff] %v1674_v50  ;;  %v1843_v10 = vadd.s32 584, %v5665_v7  ;;  %v7457_v37 = vld [vmem:[#allocation23_spill] sm:$0xff] }
 0x172   : > { %v2587_v29 = vadd.f32 %v2586_v38, %v2459_v6  ;;  %v2850_v56 = vadd.f32 %v2849_v57, %v2723_v52  ;;  %v1663_v12 = vpack.c.bf16 %v1561_v44, %v1560_v49  ;;  %v4362_v61 = vsel %vm2103_vm11, 1.0, %v7396_v8 }
 0x173   : > { %v2462_v26 = vmul.f32 %v7455_v1, %v1560_v49  ;;  %v2725_v46 = vmul.f32 %v2460_v41, %v1558_v20  ;;  %v1662_v13 = vpack.c.bf16 %v1559_v63, %v1558_v20  ;;  %v2461_v45 = vmul.f32 %v7456_v42, %v1559_v63  ;;  %v5196_v31 = vpop.f32.mrb[52].mxu0  ;;  %v6440_v1 = vpop.f32.mrb[44].mxu1 }
 0x174   : > { %v2851_v4 = vadd.f32 %v2850_v56, %v2724_v53  ;;  %v2588_v47 = vadd.f32 %v2587_v29, %v2460_v41  ;;  %1730 = vst [vmem:[%s6053_s11 + $0xc8] sm:$0xff] %v1663_v12  ;;  %v2463_v50 = vmul.f32 %v7457_v37, %v1561_v44  ;;  %v1216_v22 = vadd.f32 %v6403_v54, %v5196_v31  ;;  %v1207_v6 = vpop.f32.mrb[53].mxu0  ;;  %v6443_v31 = vpop.f32.mrb[45].mxu1 }
 0x175   : > { %1729 = vst [vmem:[%s6053_s11 + $0xc0] sm:$0xff] %v1662_v13  ;;  %v2726_v52 = vmul.f32 %v2461_v45, %v1559_v63  ;;  %v1208_v17 = vadd.f32 %v6403_v54, %v1207_v6  ;;  %v5197_v38 = vpop.f32.mrb[54].mxu0  ;;  %v6437_v57 = vmul.f32 %v4362_v61, %v6371_v35  ;;  %v1973_v20 = vadd.s32 %v5670_v9, %v1843_v10  ;;  %v6446_v37 = vpop.f32.mrb[46].mxu1 }
 0x176   : > { %7459 = vst [vmem:[#allocation21_spill] sm:$0xff] %v6440_v1  ;;  %v2852_v56 = vadd.f32 %v2851_v4, %v2725_v46  ;;  %v2589_v53 = vadd.f32 %v2588_v47, %v2461_v45  ;;  %v1564_v41 = vmax.f32 %v1216_v22, 0.0  ;;  %v1219_v29 = vadd.f32 %v6403_v54, %v5197_v38  ;;  %v1210_v12 = vpop.f32.mrb[55].mxu0  ;;  %7460 = vst [vmem:[#allocation24_spill] sm:$0xff] %v6443_v31  ;;  %v6448_v1 = vpop.f32.mrb[47].mxu1  ;;  %v7463_v4 = vld [vmem:[#allocation25_spill] sm:$0xff] }
 0x177   : > { %7458 = vst [vmem:[#allocation22_spill] sm:$0xff] %v6437_v57  ;;  %v2727_v13 = vmul.f32 %v2462_v26, %v1560_v49  ;;  %v1562_v63 = vmax.f32 %v1208_v17, 0.0  ;;  %v1211_v42 = vadd.f32 %v6403_v54, %v1210_v12  ;;  %vm2101_vm12 = vcmp.lt.s32.totalorder %v1973_v20, 2048  ;;  %7461 = vst [vmem:[#allocation23_spill] sm:$0xff] %v6446_v37  ;;  %v7464_v46 = vld [vmem:[#allocation26_spill] sm:$0xff] }
 0x178   : > { %v2728_v61 = vmul.f32 %v2463_v50, %v1561_v44  ;;  %v2590_v6 = vadd.f32 %v2589_v53, %v2462_v26  ;;  %v2853_v10 = vadd.f32 %v2852_v56, %v2726_v52  ;;  %v1565_v18 = vmax.f32 %v1219_v29, 0.0  ;;  %7462 = vst [vmem:[#allocation44_spill] sm:$0xff] %v6448_v1  ;;  %v7466_v52 = vld [vmem:[#allocation27_spill] sm:$0xff]  ;;  %v7467_v29 = vld [vmem:[#allocation28_spill] sm:$0xff] }
 0x179   : > { %v2466_v22 = vmul.f32 %v7463_v4, %v1564_v41  ;;  %v2464_v45 = vmul.f32 %v7464_v46, %v1562_v63  ;;  %v1563_v47 = vmax.f32 %v1211_v42, 0.0  ;;  %v6454_v49 = vmul.f32 %v6437_v57, %v6371_v35 }
 0x17a   : > { %v2591_v17 = vadd.f32 %v2590_v6, %v2463_v50  ;;  %v2854_v38 = vadd.f32 %v2853_v10, %v2727_v13  ;;  %v1665_v20 = vpack.c.bf16 %v1565_v18, %v1564_v41  ;;  %v4360_v44 = vsel %vm2101_vm12, 1.0, %v7396_v8 }
 0x17b   : > { %7465 = vst [vmem:[#allocation25_spill] sm:$0xff] %v6454_v49  ;;  %v2729_v26 = vmul.f32 %v2464_v45, %v1562_v63  ;;  %v2467_v56 = vmul.f32 %v7466_v52, %v1565_v18  ;;  %v1664_v53 = vpack.c.bf16 %v1563_v47, %v1562_v63  ;;  %v2465_v12 = vmul.f32 %v7467_v29, %v1563_v47  ;;  %v5200_v4 = vpop.f32.mrb[56].mxu0  ;;  %v6468_v52 = vpop.f32.mrb[48].mxu1 }
 0x17c   : > { %v2855_v1 = vadd.f32 %v2854_v38, %v2728_v61  ;;  %v2592_v46 = vadd.f32 %v2591_v17, %v2464_v45  ;;  %1732 = vst [vmem:[%s6053_s11 + $0xd8] sm:$0xff] %v1665_v20  ;;  %v1232_v42 = vadd.f32 %v6403_v54, %v5200_v4  ;;  %v1223_v35 = vpop.f32.mrb[57].mxu0  ;;  %v1312_v50 = vadd.f32 %v6403_v54, %v6182_v51  ;;  %v6471_v29 = vpop.f32.mrb[49].mxu1 }
 0x17d   : > { %v2731_v13 = vmul.f32 %v2466_v22, %v1564_v41  ;;  %1731 = vst [vmem:[%s6053_s11 + $0xd0] sm:$0xff] %v1664_v53  ;;  %v2730_v6 = vmul.f32 %v2465_v12, %v1563_v47  ;;  %v1224_v10 = vadd.f32 %v6403_v54, %v1223_v35  ;;  %v5201_v37 = vpop.f32.mrb[58].mxu0  ;;  %v6466_v63 = vmul.f32 %v4360_v44, %v6410_v24  ;;  %v6475_v4 = vpop.f32.mrb[50].mxu1 }
 0x17e   : > { %7468 = vst [vmem:[#allocation26_spill] sm:$0xff] %v6468_v52  ;;  %v2856_v61 = vadd.f32 %v2855_v1, %v2729_v26  ;;  %v2593_v45 = vadd.f32 %v2592_v46, %v2465_v12  ;;  %v1568_v17 = vmax.f32 %v1232_v42, 0.0  ;;  %v1235_v38 = vadd.f32 %v6403_v54, %v5201_v37  ;;  %v1226_v20 = vpop.f32.mrb[59].mxu0  ;;  %7469 = vst [vmem:[#allocation27_spill] sm:$0xff] %v6471_v29  ;;  %v6479_v1 = vpop.f32.mrb[51].mxu1  ;;  %v7472_v26 = vld [vmem:[#allocation30_spill] sm:$0xff] }
 0x17f   : > { %v2732_v51 = vmul.f32 %v2467_v56, %v1565_v18  ;;  %v1566_v41 = vmax.f32 %v1224_v10, 0.0  ;;  %v1227_v47 = vadd.f32 %v6403_v54, %v1226_v20  ;;  %v1848_v53 = vadd.s32 624, %v5665_v7  ;;  %7470 = vst [vmem:[#allocation28_spill] sm:$0xff] %v6475_v4  ;;  %7471 = vst [vmem:[#allocation45_spill] sm:$0xff] %v6479_v1  ;;  %v7475_v1 = vld [vmem:[#allocation32_spill] sm:$0xff] }
 0x180   : > { %v2594_v44 = vadd.f32 %v2593_v45, %v2466_v22  ;;  %v2857_v35 = vadd.f32 %v2856_v61, %v2730_v6  ;;  %v1569_v31 = vmax.f32 %v1235_v38, 0.0  ;;  %v6477_v52 = vmax.f32 %v1312_v50, 0.0  ;;  %v7473_v22 = vld [vmem:[#allocation29_spill] sm:$0xff]  ;;  %v7474_v45 = vld [vmem:[#allocation31_spill] sm:$0xff] }
 0x181   : > { %v2468_v37 = vmul.f32 %v7472_v26, %v1566_v41  ;;  %v1567_v12 = vmax.f32 %v1227_v47, 0.0  ;;  %v6484_v18 = vmul.f32 %v6466_v63, %v6410_v24  ;;  %v1978_v46 = vadd.s32 %v5670_v9, %v1848_v53 }
 0x182   : > { %v2595_v42 = vadd.f32 %v2594_v44, %v2467_v56  ;;  %v2858_v10 = vadd.f32 %v2857_v35, %v2731_v13  ;;  %v2470_v6 = vmul.f32 %v7473_v22, %v1568_v17  ;;  %v1667_v61 = vpack.c.bf16 %v1569_v31, %v1568_v17  ;;  %v6497_v35 = vpop.f32.mrb[52].mxu1 }
 0x183   : > { %v2733_v50 = vmul.f32 %v2468_v37, %v1566_v41  ;;  %v2471_v38 = vmul.f32 %v7474_v45, %v1569_v31  ;;  %v1666_v20 = vpack.c.bf16 %v1567_v12, %v1566_v41  ;;  %v2469_v4 = vmul.f32 %v7475_v1, %v1567_v12  ;;  %v5204_v26 = vpop.f32.mrb[60].mxu0  ;;  %7476 = vst [vmem:[#allocation30_spill] sm:$0xff] %v6497_v35  ;;  %v6500_v22 = vpop.f32.mrb[53].mxu1 }
 0x184   : > { %v2859_v47 = vadd.f32 %v2858_v10, %v2732_v51  ;;  %v2596_v29 = vadd.f32 %v2595_v42, %v2468_v37  ;;  %1734 = vst [vmem:[%s6053_s11 + $0xe8] sm:$0xff] %v1667_v61  ;;  %v1248_v24 = vadd.f32 %v6403_v54, %v5204_v26  ;;  %v1239_v49 = vpop.f32.mrb[61].mxu0  ;;  %vm2106_vm13 = vcmp.lt.s32.totalorder %v1978_v46, 2048  ;;  %v6503_v45 = vpop.f32.mrb[54].mxu1 }
 0x185   : > { %1733 = vst [vmem:[%s6053_s11 + $0xe0] sm:$0xff] %v1666_v20  ;;  %v2734_v56 = vmul.f32 %v2469_v4, %v1567_v12  ;;  %v1240_v13 = vadd.f32 %v6403_v54, %v1239_v49  ;;  %v5205_v53 = vpop.f32.mrb[62].mxu0  ;;  %v4365_v44 = vsel %vm2106_vm13, 1.0, %v7396_v8  ;;  %v1304_v41 = vadd.f32 %v6403_v54, %v6185_v16  ;;  %7477 = vst [vmem:[#allocation29_spill] sm:$0xff] %v6503_v45  ;;  %v7478_v16 = vld [vmem:[#allocation33_spill] sm:$0xff] }
 0x186   : > { %v2860_v1 = vadd.f32 %v2859_v47, %v2733_v50  ;;  %v2597_v51 = vadd.f32 %v2596_v29, %v2469_v4  ;;  %v1572_v37 = vmax.f32 %v1248_v24, 0.0  ;;  %v1251_v42 = vadd.f32 %v6403_v54, %v5205_v53  ;;  %v1242_v10 = vpop.f32.mrb[63].mxu0  ;;  %v6506_v29 = vpop.f32.mrb[55].mxu1  ;;  %v7480_v4 = vld [vmem:[#allocation34_spill] sm:$0xff] }
 0x187   : > { %v2735_v46 = vmul.f32 %v2470_v6, %v1568_v17  ;;  %v2736_v12 = vmul.f32 %v2471_v38, %v1569_v31  ;;  %v1570_v61 = vmax.f32 %v1240_v13, 0.0  ;;  %v1243_v49 = vadd.f32 %v6403_v54, %v1242_v10  ;;  %7479 = vst [vmem:[#allocation31_spill] sm:$0xff] %v6506_v29 }
 0x188   : > { %v2598_v20 = vadd.f32 %v2597_v51, %v2470_v6  ;;  %v2861_v26 = vadd.f32 %v2860_v1, %v2734_v56  ;;  %v2474_v57 = vmul.f32 %v7478_v16, %v1572_v37  ;;  %v1573_v35 = vmax.f32 %v1251_v42, 0.0  ;;  %v7481_v42 = vld [vmem:[#allocation36_spill] sm:$0xff] }
 0x189   : > { %v2472_v50 = vmul.f32 %v7480_v4, %v1570_v61  ;;  %v1571_v47 = vmax.f32 %v1243_v49, 0.0  ;;  %v6510_v24 = vmul.f32 %v4365_v44, %v6477_v52  ;;  %v1846_v31 = vadd.s32 608, %v5665_v7  ;;  %v7482_v4 = vld [vmem:[#allocation35_spill] sm:$0xff] }
 0x18a   : > { %v2599_v17 = vadd.f32 %v2598_v20, %v2471_v38  ;;  %v2862_v13 = vadd.f32 %v2861_v26, %v2735_v46  ;;  %v1669_v53 = vpack.c.bf16 %v1573_v35, %v1572_v37  ;;  %v1586_v6 = vmax.f32 %v1304_v41, 0.0 }
 0x18b   : > { %v2739_v56 = vmul.f32 %v2474_v57, %v1572_v37  ;;  %v2737_v1 = vmul.f32 %v2472_v50, %v1570_v61  ;;  %v1668_v51 = vpack.c.bf16 %v1571_v47, %v1570_v61  ;;  %v2473_v10 = vmul.f32 %v7481_v42, %v1571_v47  ;;  %v6523_v37 = vpop.f32.mrb[56].mxu1 }
 0x18c   : > { %v2863_v16 = vadd.f32 %v2862_v13, %v2736_v12  ;;  %v2600_v29 = vadd.f32 %v2599_v17, %v2472_v50  ;;  %1736 = vst [vmem:[%s6053_s11 + $0xf8] sm:$0xff] %v1669_v53  ;;  %v1976_v49 = vadd.s32 %v5670_v9, %v1846_v31  ;;  %v1315_v44 = vadd.f32 %v6403_v54, %v6190_v33  ;;  %v6525_v26 = vpop.f32.mrb[57].mxu1 }
 0x18d   : > { %v2475_v45 = vmul.f32 %v7482_v4, %v1573_v35  ;;  %1735 = vst [vmem:[%s6053_s11 + $0xf0] sm:$0xff] %v1668_v51  ;;  %v2738_v38 = vmul.f32 %v2473_v10, %v1571_v47  ;;  %v1849_v46 = vadd.s32 632, %v5665_v7  ;;  %v1307_v41 = vadd.f32 %v6403_v54, %v6192_v62  ;;  %v6532_v17 = vpop.f32.mrb[58].mxu1 }
 0x18e   : > { %v2864_v61 = vadd.f32 %v2863_v16, %v2737_v1  ;;  %v2601_v12 = vadd.f32 %v2600_v29, %v2473_v10  ;;  %vm2104_vm14 = vcmp.lt.s32.totalorder %v1976_v49, 2048  ;;  %v1589_v20 = vmax.f32 %v1315_v44, 0.0  ;;  %v6537_v1 = vpop.f32.mrb[59].mxu1 }
 0x18f   : > { %v4363_v50 = vsel %vm2104_vm14, 1.0, %v7396_v8  ;;  %v1979_v33 = vadd.s32 %v5670_v9, %v1849_v46  ;;  %v6529_v31 = vmax.f32 %v1307_v41, 0.0  ;;  %v1847_v47 = vadd.s32 616, %v5665_v7 }
 0x190   : > { %v2602_v62 = vadd.f32 %v2601_v12, %v2474_v57  ;;  %v2865_v13 = vadd.f32 %v2864_v61, %v2738_v38  ;;  %v6534_v53 = vmul.f32 %v4363_v50, %v1586_v6  ;;  %v1677_v29 = vpack.c.bf16 %v1589_v20, %v6477_v52  ;;  %v6562_v12 = vpop.f32.mrb[60].mxu1  ;;  %v7483_v50 = vld [vmem:[#allocation39_spill] sm:$0xff] }
 0x191   : > { %vm2107_vm15 = vcmp.lt.s32.totalorder %v1979_v33, 2048  ;;  %v1676_v51 = vpack.c.bf16 %v6529_v31, %v1586_v6  ;;  %v1977_v42 = vadd.s32 %v5670_v9, %v1847_v47  ;;  %v1328_v10 = vadd.f32 %v6403_v54, %v6214_v0 }
 0x192   : > { %v2740_v16 = vmul.f32 %v2475_v45, %v1573_v35  ;;  %v2603_v49 = vadd.f32 %v2602_v62, %v2475_v45  ;;  %v2866_v44 = vadd.f32 %v2865_v13, %v2739_v56  ;;  %1744 = vst [vmem:[%s6053_s11 + $0x138] sm:$0xff] %v1677_v29  ;;  %v4366_v57 = vsel %vm2107_vm15, 1.0, %v7396_v8 }
 0x193   : > { %v6547_v4 = vmul.f32 %v6510_v24, %v6477_v52  ;;  %v6550_v38 = vmul.f32 %v6534_v53, %v1586_v6  ;;  %1743 = vst [vmem:[%s6053_s11 + $0x130] sm:$0xff] %v1676_v51  ;;  %vm2105_vm0 = vcmp.lt.s32.totalorder %v1977_v42, 2048  ;;  %v1852_v46 = vadd.s32 656, %v5665_v7 }
 0x194   : > { %v2867_v41 = vadd.f32 %v2866_v44, %v2740_v16  ;;  %v2604_v0 = vadd.f32 %v2603_v49, %v6118_v15  ;;  %v4364_v35 = vsel %vm2105_vm0, 1.0, %v7396_v8  ;;  %v1320_v45 = vadd.f32 %v6403_v54, %v6217_v40  ;;  %v6571_v40 = vpop.f32.mrb[61].mxu1 }
 0x195   : > { %v6558_v56 = vmul.f32 %v4366_v57, %v1589_v20  ;;  %v1592_v61 = vmax.f32 %v1328_v10, 0.0  ;;  %v1982_v52 = vadd.s32 %v5670_v9, %v1852_v46  ;;  %v1850_v6 = vadd.s32 640, %v5665_v7  ;;  %v6575_v42 = vpop.f32.mrb[62].mxu1  ;;  %v7484_v10 = vld [vmem:[#allocation37_spill] sm:$0xff] }
 0x196   : > { %v2868_v33 = vadd.f32 %v2867_v41, %v7483_v50  ;;  %v2605_v47 = vadd.f32 %v2604_v0, %v6178_v23  ;;  %v6567_v15 = vmul.f32 %v4364_v35, %v6529_v31  ;;  %v1331_v62 = vadd.f32 %v6403_v54, %v6226_v32  ;;  %v6580_v57 = vpop.f32.mrb[63].mxu1  ;;  %v7485_v0 = vld [vmem:[#allocation38_spill] sm:$0xff] }
 0x197   : > { %vm2110_vm1 = vcmp.lt.s32.totalorder %v1982_v52, 2048  ;;  %v1590_v13 = vmax.f32 %v1320_v45, 0.0  ;;  %v1980_v29 = vadd.s32 %v5670_v9, %v1850_v6  ;;  %v1853_v51 = vadd.s32 664, %v5665_v7 }
 0x198   : > { %v2606_v16 = vadd.f32 %v2605_v47, %v7484_v10  ;;  %v2869_v23 = vadd.f32 %v2868_v33, %v6200_v48  ;;  %v4369_v49 = vsel %vm2110_vm1, 1.0, %v7396_v8  ;;  %v1593_v44 = vmax.f32 %v1331_v62, 0.0 }
 0x199   : > { %v6582_v32 = vmul.f32 %v4369_v49, %v1592_v61  ;;  %vm2108_vm2 = vcmp.lt.s32.totalorder %v1980_v29, 2048  ;;  %v1983_v46 = vadd.s32 %v5670_v9, %v1853_v51  ;;  %v1323_v41 = vadd.f32 %v6403_v54, %v6228_v34 }
 0x19a   : > { %v2870_v35 = vadd.f32 %v2869_v23, %v7485_v0  ;;  %v2607_v45 = vadd.f32 %v2606_v16, %v6155_v27  ;;  %v4367_v48 = vsel %vm2108_vm2, 1.0, %v7396_v8  ;;  %v1679_v52 = vpack.c.bf16 %v1593_v44, %v1592_v61 }
 0x19b   : > { %v6591_v6 = vmul.f32 %v6558_v56, %v1589_v20  ;;  %v6593_v50 = vmul.f32 %v4367_v48, %v1590_v13  ;;  %vm2111_vm3 = vcmp.lt.s32.totalorder %v1983_v46, 2048  ;;  %v1591_v33 = vmax.f32 %v1323_v41, 0.0 }
 0x19c   : > { %v2608_v47 = vadd.f32 %v2607_v45, %v6234_v14  ;;  %v2871_v62 = vadd.f32 %v2870_v35, %v6168_v58  ;;  %1746 = vst [vmem:[%s6053_s11 + $0x148] sm:$0xff] %v1679_v52  ;;  %v4370_v34 = vsel %vm2111_vm3, 1.0, %v7396_v8  ;;  %v1851_v27 = vadd.s32 648, %v5665_v7 }
 0x19d   : > { %v6602_v29 = vmul.f32 %v6567_v15, %v6529_v31  ;;  %v6605_v20 = vmul.f32 %v6582_v32, %v1592_v61  ;;  %v1678_v51 = vpack.c.bf16 %v1591_v33, %v1590_v13  ;;  %v1344_v10 = vadd.f32 %v6403_v54, %v6250_v21 }
 0x19e   : > { %v2872_v14 = vadd.f32 %v2871_v62, %v6248_v59  ;;  %v2609_v58 = vadd.f32 %v2608_v47, %v6302_v3  ;;  %v1981_v16 = vadd.s32 %v5670_v9, %v1851_v27  ;;  %v1856_v23 = vadd.s32 688, %v5665_v7 }
 0x19f   : > { %v6614_v49 = vmul.f32 %v6593_v50, %v1590_v13  ;;  %v6616_v31 = vmul.f32 %v4370_v34, %v1593_v44  ;;  %1745 = vst [vmem:[%s6053_s11 + $0x140] sm:$0xff] %v1678_v51  ;;  %v1596_v61 = vmax.f32 %v1344_v10, 0.0  ;;  %v1854_v46 = vadd.s32 672, %v5665_v7 }
 0x1a0   : > { %v2610_v41 = vadd.f32 %v2609_v58, %v6205_v30  ;;  %v2873_v21 = vadd.f32 %v2872_v14, %v6322_v39  ;;  %vm2109_vm4 = vcmp.lt.s32.totalorder %v1981_v16, 2048  ;;  %v1986_v59 = vadd.s32 %v5670_v9, %v1856_v23 }
 0x1a1   : > { %v4368_v3 = vsel %vm2109_vm4, 1.0, %v7396_v8  ;;  %v1336_v0 = vadd.f32 %v6403_v54, %v6254_v11  ;;  %v1984_v13 = vadd.s32 %v5670_v9, %v1854_v46  ;;  %v1347_v35 = vadd.f32 %v6403_v54, %v6259_v5 }
 0x1a2   : > { %v2874_v45 = vadd.f32 %v2873_v21, %v6222_v55  ;;  %v2611_v48 = vadd.f32 %v2610_v41, %v6267_v19  ;;  %v6631_v30 = vmul.f32 %v4368_v3, %v1591_v33  ;;  %vm2114_vm5 = vcmp.lt.s32.totalorder %v1986_v59, 2048  ;;  %v7486_v59 = vld [vmem:[#allocation13_spill] sm:$0xff] }
 0x1a3   : > { %v4373_v39 = vsel %vm2114_vm5, 1.0, %v7396_v8  ;;  %vm2112_vm6 = vcmp.lt.s32.totalorder %v1984_v13, 2048  ;;  %v6634_v52 = vmax.f32 %v1347_v35, 0.0  ;;  %v1857_v11 = vadd.s32 696, %v5665_v7 }
 0x1a4   : > { %v2612_v47 = vadd.f32 %v2611_v48, %v6377_v36  ;;  %v2875_v62 = vadd.f32 %v2874_v45, %v6299_v28  ;;  %v6640_v5 = vmul.f32 %v6616_v31, %v1593_v44  ;;  %v6642_v55 = vmul.f32 %v4373_v39, %v1596_v61  ;;  %v7489_v45 = vld [vmem:[#allocation41_spill] sm:$0xff] }
 0x1a5   : > { %v1594_v19 = vmax.f32 %v1336_v0, 0.0  ;;  %v1681_v34 = vpack.c.bf16 %v6634_v52, %v1596_v61  ;;  %v1987_v27 = vadd.s32 %v5670_v9, %v1857_v11  ;;  %v1339_v51 = vadd.f32 %v6403_v54, %v6262_v60  ;;  %v7490_v11 = vld [vmem:[#allocation25_spill] sm:$0xff] }
 0x1a6   : > { %v2876_v10 = vadd.f32 %v2875_v62, %v6395_v43  ;;  %v2613_v14 = vadd.f32 %v2612_v47, %v6466_v63  ;;  %v6651_v36 = vmul.f32 %v6631_v30, %v1591_v33  ;;  %v4371_v28 = vsel %vm2112_vm6, 1.0, %v7396_v8 }
 0x1a7   : > { %1748 = vst [vmem:[%s6053_s11 + $0x158] sm:$0xff] %v1681_v34  ;;  %vm2115_vm7 = vcmp.lt.s32.totalorder %v1987_v27, 2048  ;;  %v1595_v44 = vmax.f32 %v1339_v51, 0.0  ;;  %v1855_v58 = vadd.s32 680, %v5665_v7  ;;  %v1360_v16 = vadd.f32 %v6403_v54, %v6281_v25  ;;  %v7487_v25 = vld [vmem:[#allocation22_spill] sm:$0xff] }
 0x1a8   : > { %v2614_v60 = vadd.f32 %v2613_v14, %v6342_v2  ;;  %v2877_v43 = vadd.f32 %v2876_v10, %v6484_v18  ;;  %v6661_v63 = vmul.f32 %v6642_v55, %v1596_v61  ;;  %v4374_v33 = vsel %vm2115_vm7, 1.0, %v7396_v8  ;;  %v7488_v18 = vld [vmem:[#allocation40_spill] sm:$0xff] }
 0x1a9   : > { %v6664_v23 = vmul.f32 %v4371_v28, %v1594_v19  ;;  %v6667_v46 = vmul.f32 %v4374_v33, %v6634_v52  ;;  %v1680_v41 = vpack.c.bf16 %v1595_v44, %v1594_v19  ;;  %v1985_v21 = vadd.s32 %v5670_v9, %v1855_v58 }
 0x1aa   : > { %v2878_v3 = vadd.f32 %v2877_v43, %v7486_v59  ;;  %v2615_v0 = vadd.f32 %v2614_v60, %v7487_v25  ;;  %v1860_v2 = vadd.s32 720, %v5665_v7  ;;  %v1352_v61 = vadd.f32 %v6403_v54, %v7488_v18 }
 0x1ab   : > { %1747 = vst [vmem:[%s6053_s11 + $0x150] sm:$0xff] %v1680_v41  ;;  %vm2113_vm8 = vcmp.lt.s32.totalorder %v1985_v21, 2048  ;;  %v1600_v13 = vmax.f32 %v1360_v16, 0.0  ;;  %v1858_v35 = vadd.s32 704, %v5665_v7  ;;  %v1363_v48 = vadd.f32 %v6403_v54, %v7489_v45 }
 0x1ac   : > { %v2616_v39 = vadd.f32 %v2615_v0, %v6534_v53  ;;  %v2879_v47 = vadd.f32 %v2878_v3, %v7490_v11  ;;  %v4372_v62 = vsel %vm2113_vm8, 1.0, %v7396_v8  ;;  %v1990_v34 = vadd.s32 %v5670_v9, %v1860_v2  ;;  %v7491_v3 = vld [vmem:[#allocation5_spill] sm:$0xff] }
 0x1ad   : > { %v6683_v27 = vmul.f32 %v4372_v62, %v1595_v44  ;;  %v1598_v51 = vmax.f32 %v1352_v61, 0.0  ;;  %v1988_v10 = vadd.s32 %v5670_v9, %v1858_v35  ;;  %v6686_v14 = vmax.f32 %v1363_v48, 0.0  ;;  %v7492_v35 = vld [vmem:[#allocation6_spill] sm:$0xff] }
 0x1ae   : > { %v2880_v28 = vadd.f32 %v2879_v47, %v6550_v38  ;;  %v2617_v58 = vadd.f32 %v2616_v39, %v6567_v15  ;;  %vm2118_vm9 = vcmp.lt.s32.totalorder %v1990_v34, 2048  ;;  %v1861_v53 = vadd.s32 728, %v5665_v7  ;;  %v7493_v34 = vld [vmem:[#allocation8_spill] sm:$0xff] }
 0x1af   : > { %v2761_v16 = vmul.f32 %v6664_v23, %v1594_v19  ;;  %v4377_v60 = vsel %vm2118_vm9, 1.0, %v7396_v8  ;;  %vm2116_vm10 = vcmp.lt.s32.totalorder %v1988_v10, 2048  ;;  %v1683_v43 = vpack.c.bf16 %v6686_v14, %v1600_v13 }
 0x1b0   : > { %v2618_v33 = vadd.f32 %v2617_v58, %v6510_v24  ;;  %v2881_v41 = vadd.f32 %v2880_v28, %v6602_v29  ;;  %v6696_v21 = vmul.f32 %v4377_v60, %v1600_v13  ;;  %v4375_v38 = vsel %vm2116_vm10, 1.0, %v7396_v8 }
 0x1b1   : > { %v6699_v59 = vmul.f32 %v4375_v38, %v1598_v51  ;;  %1750 = vst [vmem:[%s6053_s11 + $0x168] sm:$0xff] %v1683_v43  ;;  %v1991_v15 = vadd.s32 %v5670_v9, %v1861_v53  ;;  %v1355_v19 = vadd.f32 %v6403_v54, %v7491_v3  ;;  %v1859_v25 = vadd.s32 712, %v5665_v7 }
 0x1b2   : > { %v2882_v0 = vadd.f32 %v2881_v41, %v6547_v4  ;;  %v2619_v24 = vadd.f32 %v2618_v33, %v6558_v56  ;;  %v6710_v29 = vmul.f32 %v6667_v46, %v6634_v52  ;;  %v2762_v2 = vmul.f32 %v6683_v27, %v1595_v44 }
 0x1b3   : > { %vm2119_vm11 = vcmp.lt.s32.totalorder %v1991_v15, 2048  ;;  %v1599_v18 = vmax.f32 %v1355_v19, 0.0  ;;  %v1989_v61 = vadd.s32 %v5670_v9, %v1859_v25  ;;  %v1376_v45 = vadd.f32 %v6403_v54, %v7492_v35  ;;  %v7495_v25 = vld [vmem:[#allocation42_spill] sm:$0xff] }
 0x1b4   : > { %v2620_v48 = vadd.f32 %v2619_v24, %v6593_v50  ;;  %v2883_v4 = vadd.f32 %v2882_v0, %v6591_v6  ;;  %v6719_v56 = vmul.f32 %v6696_v21, %v1600_v13  ;;  %v4378_v52 = vsel %vm2119_vm11, 1.0, %v7396_v8 }
 0x1b5   : > { %v6723_v39 = vmul.f32 %v6699_v59, %v1598_v51  ;;  %v1682_v44 = vpack.c.bf16 %v1599_v18, %v1598_v51  ;;  %vm2117_vm12 = vcmp.lt.s32.totalorder %v1989_v61, 2048  ;;  %v1864_v11 = vadd.s32 752, %v5665_v7 }
 0x1b6   : > { %v2884_v47 = vadd.f32 %v2883_v4, %v6614_v49  ;;  %v2621_v62 = vadd.f32 %v2620_v48, %v6631_v30  ;;  %v4376_v50 = vsel %vm2117_vm12, 1.0, %v7396_v8  ;;  %v1368_v6 = vadd.f32 %v6403_v54, %v7493_v34  ;;  %v7494_v30 = vld [vmem:[#allocation7_spill] sm:$0xff] }
 0x1b7   : > { %v6732_v13 = vmul.f32 %v4378_v52, %v6686_v14  ;;  %1749 = vst [vmem:[%s6053_s11 + $0x160] sm:$0xff] %v1682_v44  ;;  %v1604_v10 = vmax.f32 %v1376_v45, 0.0  ;;  %v1994_v28 = vadd.s32 %v5670_v9, %v1864_v11  ;;  %v1862_v51 = vadd.s32 736, %v5665_v7 }
 0x1b8   : > { %v2622_v58 = vadd.f32 %v2621_v62, %v6582_v32  ;;  %v2885_v49 = vadd.f32 %v2884_v47, %v6651_v36  ;;  %v2501_v53 = vmul.f32 %v4376_v50, %v1599_v18  ;;  %v1379_v60 = vadd.f32 %v6403_v54, %v7494_v30  ;;  %v7496_v62 = vld [vmem:[#allocation9_spill] sm:$0xff] }
 0x1b9   : > { %vm2122_vm13 = vcmp.lt.s32.totalorder %v1994_v28, 2048  ;;  %v1602_v43 = vmax.f32 %v1368_v6, 0.0  ;;  %v1992_v33 = vadd.s32 %v5670_v9, %v1862_v51  ;;  %v1865_v41 = vadd.s32 760, %v5665_v7 }
 0x1ba   : > { %v2886_v38 = vadd.f32 %v2885_v49, %v6605_v20  ;;  %v2623_v15 = vadd.f32 %v2622_v58, %v6616_v31  ;;  %v4381_v3 = vsel %vm2122_vm13, 1.0, %v7396_v8  ;;  %v1605_v32 = vmax.f32 %v1379_v60, 0.0 }
 0x1bb   : > { %v6746_v19 = vmul.f32 %v4381_v3, %v1604_v10  ;;  %vm2120_vm14 = vcmp.lt.s32.totalorder %v1992_v33, 2048  ;;  %v1995_v36 = vadd.s32 %v5670_v9, %v1865_v41  ;;  %v1371_v0 = vadd.f32 %v6403_v54, %v7495_v25 }
 0x1bc   : > { %v2624_v24 = vadd.f32 %v2623_v15, %v6664_v23  ;;  %v2887_v61 = vadd.f32 %v2886_v38, %v6640_v5  ;;  %v4379_v20 = vsel %vm2120_vm14, 1.0, %v7396_v8  ;;  %v1685_v35 = vpack.c.bf16 %v1605_v32, %v1604_v10 }
 0x1bd   : > { %v6756_v31 = vmul.f32 %v6732_v13, %v6686_v14  ;;  %v2504_v45 = vmul.f32 %v4379_v20, %v1602_v43  ;;  %vm2123_vm15 = vcmp.lt.s32.totalorder %v1995_v36, 2048  ;;  %v1603_v48 = vmax.f32 %v1371_v0, 0.0  ;;  %v7499_v20 = vld [vmem:[#allocation12_spill] sm:$0xff] }
 0x1be   : > { %v2888_v4 = vadd.f32 %v2887_v61, %v2761_v16  ;;  %v2625_v52 = vadd.f32 %v2624_v24, %v6683_v27  ;;  %1752 = vst [vmem:[%s6053_s11 + $0x178] sm:$0xff] %v1685_v35  ;;  %v4382_v44 = vsel %vm2123_vm15, 1.0, %v7396_v8  ;;  %v1863_v23 = vadd.s32 744, %v5665_v7 }
 0x1bf   : > { %v2766_v5 = vmul.f32 %v2501_v53, %v1599_v18  ;;  %v6763_v11 = vmul.f32 %v6746_v19, %v1604_v10  ;;  %v1684_v47 = vpack.c.bf16 %v1603_v48, %v1602_v43  ;;  %v1392_v14 = vadd.f32 %v6403_v54, %v7496_v62 }
 0x1c0   : > { %v2626_v50 = vadd.f32 %v2625_v52, %v6642_v55  ;;  %v2889_v34 = vadd.f32 %v2888_v4, %v2762_v2  ;;  %v1993_v16 = vadd.s32 %v5670_v9, %v1863_v23  ;;  %v1868_v27 = vadd.s32 784, %v5665_v7  ;;  %v7497_v2 = vld [vmem:[#allocation10_spill] sm:$0xff] }
 0x1c1   : > { %v2769_v6 = vmul.f32 %v2504_v45, %v1602_v43  ;;  %v6770_v28 = vmul.f32 %v4382_v44, %v1605_v32  ;;  %1751 = vst [vmem:[%s6053_s11 + $0x170] sm:$0xff] %v1684_v47  ;;  %v1608_v51 = vmax.f32 %v1392_v14, 0.0  ;;  %v1866_v18 = vadd.s32 768, %v5665_v7  ;;  %v7498_v43 = vld [vmem:[#allocation11_spill] sm:$0xff] }
 0x1c2   : > { %v2890_v10 = vadd.f32 %v2889_v34, %v6661_v63  ;;  %v2627_v58 = vadd.f32 %v2626_v50, %v6667_v46  ;;  %vm2121_vm0 = vcmp.lt.s32.totalorder %v1993_v16, 2048  ;;  %v1998_v49 = vadd.s32 %v5670_v9, %v1868_v27 }
 0x1c3   : > { %v4380_v55 = vsel %vm2121_vm0, 1.0, %v7396_v8  ;;  %v1384_v30 = vadd.f32 %v6403_v54, %v7497_v2  ;;  %v1996_v60 = vadd.s32 %v5670_v9, %v1866_v18  ;;  %v1395_v33 = vadd.f32 %v6403_v54, %v7498_v43 }
 0x1c4   : > { %v2628_v41 = vadd.f32 %v2627_v58, %v6699_v59  ;;  %v2891_v38 = vadd.f32 %v2890_v10, %v6710_v29  ;;  %v2505_v63 = vmul.f32 %v4380_v55, %v1603_v48  ;;  %vm2126_vm1 = vcmp.lt.s32.totalorder %v1998_v49, 2048  ;;  %v7501_v58 = vld [vmem:[#allocation16_spill] sm:$0xff]  ;;  %v7502_v49 = vld [vmem:[#allocation15_spill] sm:$0xff] }
 0x1c5   : > { %v4385_v46 = vsel %vm2126_vm1, 1.0, %v7396_v8  ;;  %vm2124_vm2 = vcmp.lt.s32.totalorder %v1996_v60, 2048  ;;  %v1609_v15 = vmax.f32 %v1395_v33, 0.0  ;;  %v1869_v3 = vadd.s32 792, %v5665_v7 }
 0x1c6   : > { %v2892_v36 = vadd.f32 %v2891_v38, %v6723_v39  ;;  %v2629_v25 = vadd.f32 %v2628_v41, %v2501_v53  ;;  %v2772_v0 = vmul.f32 %v6770_v28, %v1605_v32  ;;  %v6789_v24 = vmul.f32 %v4385_v46, %v1608_v51  ;;  %v7500_v32 = vld [vmem:[#allocation14_spill] sm:$0xff] }
 0x1c7   : > { %v1606_v61 = vmax.f32 %v1384_v30, 0.0  ;;  %v1687_v59 = vpack.c.bf16 %v1609_v15, %v1608_v51  ;;  %v1999_v29 = vadd.s32 %v5670_v9, %v1869_v3  ;;  %v1387_v35 = vadd.f32 %v6403_v54, %v7499_v20 }
 0x1c8   : > { %v2630_v4 = vadd.f32 %v2629_v25, %v6696_v21  ;;  %v2893_v52 = vadd.f32 %v2892_v36, %v2766_v5  ;;  %v2770_v44 = vmul.f32 %v2505_v63, %v1603_v48  ;;  %v4383_v23 = vsel %vm2124_vm2, 1.0, %v7396_v8 }
 0x1c9   : > { %1754 = vst [vmem:[%s6053_s11 + $0x188] sm:$0xff] %v1687_v59  ;;  %vm2127_vm3 = vcmp.lt.s32.totalorder %v1999_v29, 2048  ;;  %v1607_v39 = vmax.f32 %v1387_v35, 0.0  ;;  %v1867_v53 = vadd.s32 776, %v5665_v7  ;;  %v1408_v47 = vadd.f32 %v6403_v54, %v7500_v32 }
 0x1ca   : > { %v2894_v62 = vadd.f32 %v2893_v52, %v6719_v56  ;;  %v2631_v14 = vadd.f32 %v2630_v4, %v6732_v13  ;;  %v6803_v50 = vmul.f32 %v6789_v24, %v1608_v51  ;;  %v4386_v21 = vsel %vm2127_vm3, 1.0, %v7396_v8  ;;  %v7503_v4 = vld [vmem:[#allocation43_spill] sm:$0xff] }
 0x1cb   : > { %v2508_v48 = vmul.f32 %v4383_v23, %v1606_v61  ;;  %v6806_v5 = vmul.f32 %v4386_v21, %v1609_v15  ;;  %v1686_v34 = vpack.c.bf16 %v1607_v39, %v1606_v61  ;;  %v1997_v16 = vadd.s32 %v5670_v9, %v1867_v53  ;;  %v7504_v53 = vld [vmem:[#allocation18_spill] sm:$0xff] }
 0x1cc   : > { %v2632_v27 = vadd.f32 %v2631_v14, %v2504_v45  ;;  %v2895_v18 = vadd.f32 %v2894_v62, %v6756_v31  ;;  %v1872_v10 = vadd.s32 816, %v5665_v7  ;;  %v1400_v56 = vadd.f32 %v6403_v54, %v7501_v58 }
 0x1cd   : > { %1753 = vst [vmem:[%s6053_s11 + $0x180] sm:$0xff] %v1686_v34  ;;  %vm2125_vm4 = vcmp.lt.s32.totalorder %v1997_v16, 2048  ;;  %v6814_v13 = vmax.f32 %v1408_v47, 0.0  ;;  %v1870_v51 = vadd.s32 800, %v5665_v7  ;;  %v1411_v55 = vadd.f32 %v6403_v54, %v7502_v49 }
 0x1ce   : > { %v2896_v2 = vadd.f32 %v2895_v18, %v2769_v6  ;;  %v2633_v30 = vadd.f32 %v2632_v27, %v2505_v63  ;;  %v4384_v45 = vsel %vm2125_vm4, 1.0, %v7396_v8  ;;  %v2002_v31 = vadd.s32 %v5670_v9, %v1872_v10  ;;  %v7505_v10 = vld [vmem:[#allocation17_spill] sm:$0xff] }
 0x1cf   : > { %v2509_v60 = vmul.f32 %v4384_v45, %v1607_v39  ;;  %v1610_v43 = vmax.f32 %v1400_v56, 0.0  ;;  %v2000_v33 = vadd.s32 %v5670_v9, %v1870_v51  ;;  %v6822_v41 = vmax.f32 %v1411_v55, 0.0 }
 0x1d0   : > { %v2634_v38 = vadd.f32 %v2633_v30, %v6746_v19  ;;  %v2897_v46 = vadd.f32 %v2896_v2, %v2770_v44  ;;  %vm2130_vm5 = vcmp.lt.s32.totalorder %v2002_v31, 2048  ;;  %v1873_v3 = vadd.s32 824, %v5665_v7 }
 0x1d1   : > { %v2773_v36 = vmul.f32 %v2508_v48, %v1606_v61  ;;  %v2776_v6 = vmul.f32 %v6806_v5, %v1609_v15  ;;  %vm2128_vm6 = vcmp.lt.s32.totalorder %v2000_v33, 2048  ;;  %v1689_v63 = vpack.c.bf16 %v6822_v41, %v6814_v13 }
 0x1d2   : > { %v2898_v25 = vadd.f32 %v2897_v46, %v6763_v11  ;;  %v2635_v59 = vadd.f32 %v2634_v38, %v6770_v28  ;;  %v4389_v29 = vsel %vm2130_vm5, 1.0, %v7396_v8  ;;  %v4387_v20 = vsel %vm2128_vm6, 1.0, %v7396_v8 }
 0x1d3   : > { %v2512_v19 = vmul.f32 %v4387_v20, %v1610_v43  ;;  %1756 = vst [vmem:[%s6053_s11 + $0x198] sm:$0xff] %v1689_v63  ;;  %v2003_v35 = vadd.s32 %v5670_v9, %v1873_v3  ;;  %v1403_v61 = vadd.f32 %v6403_v54, %v7503_v4  ;;  %v1871_v15 = vadd.s32 808, %v5665_v7 }
 0x1d4   : > { %v2636_v52 = vadd.f32 %v2635_v59, %v2508_v48  ;;  %v2899_v44 = vadd.f32 %v2898_v25, %v2772_v0  ;;  %v2774_v23 = vmul.f32 %v2509_v60, %v1607_v39  ;;  %v1424_v11 = vadd.f32 %v6403_v54, %v7504_v53 }
 0x1d5   : > { %v2514_v28 = vmul.f32 %v4389_v29, %v6814_v13  ;;  %vm2131_vm7 = vcmp.lt.s32.totalorder %v2003_v35, 2048  ;;  %v1611_v32 = vmax.f32 %v1403_v61, 0.0  ;;  %v2001_v47 = vadd.s32 %v5670_v9, %v1871_v15 }
 0x1d6   : > { %v2900_v62 = vadd.f32 %v2899_v44, %v2773_v36  ;;  %v2637_v14 = vadd.f32 %v2636_v52, %v2509_v60  ;;  %v2777_v21 = vmul.f32 %v2512_v19, %v1610_v43  ;;  %v4390_v34 = vsel %vm2131_vm7, 1.0, %v7396_v8 }
 0x1d7   : > { %v1688_v16 = vpack.c.bf16 %v1611_v32, %v1610_v43  ;;  %vm2129_vm8 = vcmp.lt.s32.totalorder %v2001_v47, 2048  ;;  %v1616_v48 = vmax.f32 %v1424_v11, 0.0  ;;  %v1876_v0 = vadd.s32 848, %v5665_v7 }
 0x1d8   : > { %v2638_v39 = vadd.f32 %v2637_v14, %v6789_v24  ;;  %v2901_v27 = vadd.f32 %v2900_v62, %v2774_v23  ;;  %v4388_v18 = vsel %vm2129_vm8, 1.0, %v7396_v8  ;;  %v1416_v58 = vadd.f32 %v6403_v54, %v7505_v10  ;;  %v7506_v24 = vld [vmem:[#allocation20_spill] sm:$0xff] }
 0x1d9   : > { %v2515_v56 = vmul.f32 %v4390_v34, %v6822_v41  ;;  %1755 = vst [vmem:[%s6053_s11 + $0x190] sm:$0xff] %v1688_v16  ;;  %v2513_v51 = vmul.f32 %v4388_v18, %v1611_v32  ;;  %v2006_v49 = vadd.s32 %v5670_v9, %v1876_v0  ;;  %v1874_v55 = vadd.s32 832, %v5665_v7  ;;  %v7509_v16 = vld [vmem:[#allocation24_spill] sm:$0xff] }
 0x1da   : > { %v2902_v2 = vadd.f32 %v2901_v27, %v6803_v50  ;;  %v2639_v30 = vadd.f32 %v2638_v39, %v6806_v5  ;;  %v1614_v45 = vmax.f32 %v1416_v58, 0.0  ;;  %v1427_v31 = vadd.f32 %v6403_v54, %v7506_v24  ;;  %v6863_v54 = vld [vmem:[%s7374_s2] ss:$0 sm:$0xff]  ;;  %v7507_v5 = vld [vmem:[#allocation19_spill] sm:$0xff] }
 0x1db   : > { %v2778_v60 = vmul.f32 %v2513_v51, %v1611_v32  ;;  %vm2134_vm9 = vcmp.lt.s32.totalorder %v2006_v49, 2048  ;;  %v2004_v43 = vadd.s32 %v5670_v9, %v1874_v55  ;;  %v1877_v33 = vadd.s32 856, %v5665_v7  ;;  %v7511_v24 = vld [vmem:[#allocation44_spill] sm:$0xff] }
 0x1dc   : > { %v2640_v38 = vadd.f32 %v2639_v30, %v2512_v19  ;;  %v2903_v46 = vadd.f32 %v2902_v2, %v2776_v6  ;;  %v4393_v3 = vsel %vm2134_vm9, 1.0, %v7396_v8  ;;  %v1617_v36 = vmax.f32 %v1427_v31, 0.0 }
 0x1dd   : > { %v2518_v63 = vmul.f32 %v4393_v3, %v1616_v48  ;;  %vm2132_vm10 = vcmp.lt.s32.totalorder %v2004_v43, 2048  ;;  %v2007_v50 = vadd.s32 %v5670_v9, %v1877_v33  ;;  %v1419_v25 = vadd.f32 %v6863_v54, %v7507_v5 }
 0x1de   : > { %v2904_v59 = vadd.f32 %v2903_v46, %v2777_v21  ;;  %v2641_v29 = vadd.f32 %v2640_v38, %v2513_v51  ;;  %v4391_v6 = vsel %vm2132_vm10, 1.0, %v7396_v8  ;;  %v1691_v20 = vpack.c.bf16 %v1617_v36, %v1616_v48 }
 0x1df   : > { %v2779_v19 = vmul.f32 %v2514_v28, %v6814_v13  ;;  %v2516_v35 = vmul.f32 %v4391_v6, %v1614_v45  ;;  %vm2135_vm11 = vcmp.lt.s32.totalorder %v2007_v50, 2048  ;;  %v1615_v4 = vmax.f32 %v1419_v25, 0.0 }
 0x1e0   : > { %v2642_v61 = vadd.f32 %v2641_v29, %v2514_v28  ;;  %v2905_v15 = vadd.f32 %v2904_v59, %v2778_v60  ;;  %1758 = vst [vmem:[%s6053_s11 + $0x1a8] sm:$0xff] %v1691_v20  ;;  %v4394_v52 = vsel %vm2135_vm11, 1.0, %v7396_v8  ;;  %v1875_v44 = vadd.s32 840, %v5665_v7  ;;  %v7508_v28 = vld [vmem:[#allocation21_spill] sm:$0xff] }
 0x1e1   : > { %v2780_v23 = vmul.f32 %v2515_v56, %v6822_v41  ;;  %v2783_v53 = vmul.f32 %v2518_v63, %v1616_v48  ;;  %v2781_v11 = vmul.f32 %v2516_v35, %v1614_v45  ;;  %v1690_v32 = vpack.c.bf16 %v1615_v4, %v1614_v45 }
 0x1e2   : > { %v2906_v47 = vadd.f32 %v2905_v15, %v2779_v19  ;;  %v2643_v62 = vadd.f32 %v2642_v61, %v2515_v56  ;;  %v2005_v13 = vadd.s32 %v5670_v9, %v1875_v44  ;;  %v1880_v14 = vadd.s32 880, %v5665_v7  ;;  %v7510_v56 = vld [vmem:[#allocation23_spill] sm:$0xff] }
 0x1e3   : > { %v2519_v21 = vmul.f32 %v4394_v52, %v1617_v36  ;;  %1757 = vst [vmem:[%s6053_s11 + $0x1a0] sm:$0xff] %v1690_v32  ;;  %v1440_v34 = vadd.f32 %v6863_v54, %v7508_v28  ;;  %v1432_v0 = vadd.f32 %v6863_v54, %v7509_v16  ;;  %v1878_v39 = vadd.s32 864, %v5665_v7 }
 0x1e4   : > { %v2644_v41 = vadd.f32 %v2643_v62, %v2516_v35  ;;  %v2907_v48 = vadd.f32 %v2906_v47, %v2780_v23  ;;  %vm2133_vm12 = vcmp.lt.s32.totalorder %v2005_v13, 2048  ;;  %v2010_v27 = vadd.s32 %v5670_v9, %v1880_v14  ;;  %v7512_v35 = vld [vmem:[#allocation26_spill] sm:$0xff] }
 0x1e5   : > { %v4392_v18 = vsel %vm2133_vm12, 1.0, %v7396_v8  ;;  %v1618_v10 = vmax.f32 %v1432_v0, 0.0  ;;  %v2008_v58 = vadd.s32 %v5670_v9, %v1878_v39  ;;  %v1443_v51 = vadd.f32 %v6863_v54, %v7510_v56  ;;  %v7514_v39 = vld [vmem:[#allocation28_spill] sm:$0xff] }
 0x1e6   : > { %v2908_v49 = vadd.f32 %v2907_v48, %v2781_v11  ;;  %v2517_v55 = vmul.f32 %v4392_v18, %v1615_v4  ;;  %vm2138_vm13 = vcmp.lt.s32.totalorder %v2010_v27, 2048  ;;  %v1881_v2 = vadd.s32 888, %v5665_v7  ;;  %v7515_v27 = vld [vmem:[#allocation45_spill] sm:$0xff] }
 0x1e7   : > { %v1620_v30 = vmax.f32 %v1440_v34, 0.0  ;;  %vm2136_vm14 = vcmp.lt.s32.totalorder %v2008_v58, 2048  ;;  %v1621_v45 = vmax.f32 %v1443_v51, 0.0  ;;  %v1435_v31 = vadd.f32 %v6863_v54, %v7511_v24 }
 0x1e8   : > { %v2645_v60 = vadd.f32 %v2644_v41, %v2517_v55  ;;  %v2782_v43 = vmul.f32 %v2517_v55, %v1615_v4  ;;  %v4397_v33 = vsel %vm2138_vm13, 1.0, %v7396_v8  ;;  %v4395_v38 = vsel %vm2136_vm14, 1.0, %v7396_v8 }
 0x1e9   : > { %v2520_v46 = vmul.f32 %v4395_v38, %v1618_v10  ;;  %v1693_v3 = vpack.c.bf16 %v1621_v45, %v1620_v30  ;;  %v2011_v50 = vadd.s32 %v5670_v9, %v1881_v2  ;;  %v1619_v5 = vmax.f32 %v1435_v31, 0.0 }
 0x1ea   : > { %v2784_v25 = vmul.f32 %v2519_v21, %v1617_v36  ;;  %v2646_v59 = vadd.f32 %v2645_v60, %v2518_v63  ;;  %v2909_v29 = vadd.f32 %v2908_v49, %v2782_v43  ;;  %v1879_v6 = vadd.s32 872, %v5665_v7  ;;  %v7513_v63 = vld [vmem:[#allocation27_spill] sm:$0xff] }
 0x1eb   : > { %v2522_v20 = vmul.f32 %v4397_v33, %v1620_v30  ;;  %1760 = vst [vmem:[%s6053_s11 + $0x1b8] sm:$0xff] %v1693_v3  ;;  %vm2139_vm15 = vcmp.lt.s32.totalorder %v2011_v50, 2048  ;;  %v1692_v19 = vpack.c.bf16 %v1619_v5, %v1618_v10  ;;  %v1456_v4 = vadd.f32 %v6863_v54, %v7512_v35 }
 0x1ec   : > { %v2910_v61 = vadd.f32 %v2909_v29, %v2783_v53  ;;  %v2647_v15 = vadd.f32 %v2646_v59, %v2519_v21  ;;  %v4398_v52 = vsel %vm2139_vm15, 1.0, %v7396_v8  ;;  %v2009_v44 = vadd.s32 %v5670_v9, %v1879_v6  ;;  %v7516_v6 = vld [vmem:[#allocation30_spill] sm:$0xff] }
 0x1ed   : > { %v2785_v23 = vmul.f32 %v2520_v46, %v1618_v10  ;;  %v2523_v11 = vmul.f32 %v4398_v52, %v1621_v45  ;;  %1759 = vst [vmem:[%s6053_s11 + $0x1b0] sm:$0xff] %v1692_v19  ;;  %v1884_v36 = vadd.s32 912, %v5665_v7  ;;  %v1448_v32 = vadd.f32 %v6863_v54, %v7513_v63  ;;  %v7517_v63 = vld [vmem:[#allocation29_spill] sm:$0xff] }
 0x1ee   : > { %v2648_v47 = vadd.f32 %v2647_v15, %v2520_v46  ;;  %v2911_v62 = vadd.f32 %v2910_v61, %v2784_v25  ;;  %vm2137_vm0 = vcmp.lt.s32.totalorder %v2009_v44, 2048  ;;  %v1882_v13 = vadd.s32 896, %v5665_v7 }
 0x1ef   : > { %v4396_v53 = vsel %vm2137_vm0, 1.0, %v7396_v8  ;;  %v1624_v14 = vmax.f32 %v1456_v4, 0.0  ;;  %v2014_v21 = vadd.s32 %v5670_v9, %v1884_v36  ;;  %v1622_v28 = vmax.f32 %v1448_v32, 0.0 }
 0x1f0   : > { %v2912_v34 = vadd.f32 %v2911_v62, %v2785_v23  ;;  %v2521_v16 = vmul.f32 %v4396_v53, %v1619_v5  ;;  %v2012_v0 = vadd.s32 %v5670_v9, %v1882_v13  ;;  %v1459_v41 = vadd.f32 %v6863_v54, %v7514_v39 }
 0x1f1   : > { %vm2142_vm1 = vcmp.lt.s32.totalorder %v2014_v21, 2048  ;;  %v1885_v48 = vadd.s32 920, %v5665_v7  ;;  %v1451_v18 = vadd.f32 %v6863_v54, %v7515_v27  ;;  %v1883_v10 = vadd.s32 904, %v5665_v7 }
 0x1f2   : > { %v2649_v58 = vadd.f32 %v2648_v47, %v2521_v16  ;;  %v2786_v56 = vmul.f32 %v2521_v16, %v1619_v5  ;;  %v4401_v51 = vsel %vm2142_vm1, 1.0, %v7396_v8  ;;  %vm2140_vm2 = vcmp.lt.s32.totalorder %v2012_v0, 2048 }
 0x1f3   : > { %v2787_v49 = vmul.f32 %v2522_v20, %v1620_v30  ;;  %v4399_v55 = vsel %vm2140_vm2, 1.0, %v7396_v8  ;;  %v1625_v2 = vmax.f32 %v1459_v41, 0.0  ;;  %v2015_v24 = vadd.s32 %v5670_v9, %v1885_v48 }
 0x1f4   : > { %v2650_v31 = vadd.f32 %v2649_v58, %v2522_v20  ;;  %v2913_v60 = vadd.f32 %v2912_v34, %v2786_v56  ;;  %v2526_v43 = vmul.f32 %v4401_v51, %v1624_v14  ;;  %v2524_v33 = vmul.f32 %v4399_v55, %v1622_v28  ;;  %v7518_v34 = vld [vmem:[#allocation31_spill] sm:$0xff] }
 0x1f5   : > { %v1695_v38 = vpack.c.bf16 %v1625_v2, %v1624_v14  ;;  %vm2143_vm3 = vcmp.lt.s32.totalorder %v2015_v24, 2048  ;;  %v1623_v46 = vmax.f32 %v1451_v18, 0.0  ;;  %v2013_v3 = vadd.s32 %v5670_v9, %v1883_v10 }
 0x1f6   : > { %v2788_v50 = vmul.f32 %v2523_v11, %v1621_v45  ;;  %v2914_v5 = vadd.f32 %v2913_v60, %v2787_v49  ;;  %v2651_v25 = vadd.f32 %v2650_v31, %v2523_v11  ;;  %v4402_v30 = vsel %vm2143_vm3, 1.0, %v7396_v8 }
 0x1f7   : > { %v2789_v59 = vmul.f32 %v2524_v33, %v1622_v28  ;;  %1762 = vst [vmem:[%s6053_s11 + $0x1c8] sm:$0xff] %v1695_v38  ;;  %v1694_v29 = vpack.c.bf16 %v1623_v46, %v1622_v28  ;;  %vm2141_vm4 = vcmp.lt.s32.totalorder %v2013_v3, 2048  ;;  %v1472_v20 = vadd.f32 %v6863_v54, %v7516_v6 }
 0x1f8   : > { %v2652_v19 = vadd.f32 %v2651_v25, %v2524_v33  ;;  %v2915_v35 = vadd.f32 %v2914_v5, %v2788_v50  ;;  %v4400_v4 = vsel %vm2141_vm4, 1.0, %v7396_v8  ;;  %v1888_v61 = vadd.s32 944, %v5665_v7 }
 0x1f9   : > { %v2791_v15 = vmul.f32 %v2526_v43, %v1624_v14  ;;  %v2527_v52 = vmul.f32 %v4402_v30, %v1625_v2  ;;  %1761 = vst [vmem:[%s6053_s11 + $0x1c0] sm:$0xff] %v1694_v29  ;;  %v2525_v45 = vmul.f32 %v4400_v4, %v1623_v46  ;;  %v1464_v44 = vadd.f32 %v6863_v54, %v6500_v22 }
 0x1fa   : > { %v2916_v23 = vadd.f32 %v2915_v35, %v2789_v59  ;;  %v2018_v11 = vadd.s32 %v5670_v9, %v1888_v61  ;;  %v1886_v36 = vadd.s32 928, %v5665_v7  ;;  %v1475_v32 = vadd.f32 %v6863_v54, %v7517_v63 }
 0x1fb   : > { %v2653_v47 = vadd.f32 %v2652_v19, %v2525_v45  ;;  %v2790_v62 = vmul.f32 %v2525_v45, %v1623_v46  ;;  %v1628_v13 = vmax.f32 %v1472_v20, 0.0  ;;  %v1889_v53 = vadd.s32 952, %v5665_v7 }
 0x1fc   : > { %v1626_v14 = vmax.f32 %v1464_v44, 0.0  ;;  %v2016_v21 = vadd.s32 %v5670_v9, %v1886_v36  ;;  %v1629_v28 = vmax.f32 %v1475_v32, 0.0  ;;  %v1467_v22 = vadd.f32 %v6863_v54, %v7518_v34 }
 0x1fd   : > { %v2654_v16 = vadd.f32 %v2653_v47, %v2526_v43  ;;  %v2917_v0 = vadd.f32 %v2916_v23, %v2790_v62  ;;  %vm2146_vm5 = vcmp.lt.s32.totalorder %v2018_v11, 2048  ;;  %v2019_v39 = vadd.s32 %v5670_v9, %v1889_v53 }
 0x1fe   : > { %vm2144_vm6 = vcmp.lt.s32.totalorder %v2016_v21, 2048  ;;  %v1697_v41 = vpack.c.bf16 %v1629_v28, %v1628_v13  ;;  %v1627_v48 = vmax.f32 %v1467_v22, 0.0  ;;  %v2792_v27 = vmul.f32 %v2527_v52, %v1625_v2 }
 0x1ff   : > { %v2918_v18 = vadd.f32 %v2917_v0, %v2791_v15  ;;  %v4403_v10 = vsel %vm2144_vm6, 1.0, %v7396_v8  ;;  %v2655_v58 = vadd.f32 %v2654_v16, %v2527_v52  ;;  %v4405_v56 = vsel %vm2146_vm5, 1.0, %v7396_v8 }
 0x200   : > { %v2528_v51 = vmul.f32 %v4403_v10, %v1626_v14  ;;  %1764 = vst [vmem:[%s6053_s11 + $0x1d8] sm:$0xff] %v1697_v41  ;;  %vm2147_vm7 = vcmp.lt.s32.totalorder %v2019_v39, 2048  ;;  %v1696_v49 = vpack.c.bf16 %v1627_v48, %v1626_v14  ;;  %v1887_v24 = vadd.s32 936, %v5665_v7 }
 0x201   : > { %v2919_v55 = vadd.f32 %v2918_v18, %v2792_v27  ;;  %v1488_v31 = vadd.f32 %v6863_v54, %v6523_v37  ;;  %v1892_v2 = vadd.s32 976, %v5665_v7  ;;  %v1480_v33 = vadd.f32 %v6863_v54, %v6525_v26 }
 0x202   : > { %v2656_v60 = vadd.f32 %v2655_v58, %v2528_v51  ;;  %v2793_v43 = vmul.f32 %v2528_v51, %v1626_v14  ;;  %1763 = vst [vmem:[%s6053_s11 + $0x1d0] sm:$0xff] %v1696_v49  ;;  %v2530_v38 = vmul.f32 %v4405_v56, %v1628_v13  ;;  %v4406_v46 = vsel %vm2147_vm7, 1.0, %v7396_v8 }
 0x203   : > { %v2017_v3 = vadd.s32 %v5670_v9, %v1887_v24  ;;  %v1890_v50 = vadd.s32 960, %v5665_v7  ;;  %v1632_v25 = vmax.f32 %v1488_v31, 0.0  ;;  %v2022_v30 = vadd.s32 %v5670_v9, %v1892_v2 }
 0x204   : > { %v2920_v5 = vadd.f32 %v2919_v55, %v2793_v43  ;;  %v1491_v37 = vadd.f32 %v6863_v54, %v6532_v17  ;;  %v1893_v29 = vadd.s32 984, %v5665_v7  ;;  %v1483_v26 = vadd.f32 %v6863_v54, %v6537_v1 }
 0x205   : > { %vm2145_vm8 = vcmp.lt.s32.totalorder %v2017_v3, 2048  ;;  %v2020_v59 = vadd.s32 %v5670_v9, %v1890_v50  ;;  %v1630_v20 = vmax.f32 %v1480_v33, 0.0  ;;  %v1891_v35 = vadd.s32 968, %v5665_v7 }
 0x206   : > { %v4404_v6 = vsel %vm2145_vm8, 1.0, %v7396_v8  ;;  %v1633_v19 = vmax.f32 %v1491_v37, 0.0  ;;  %vm2150_vm9 = vcmp.lt.s32.totalorder %v2022_v30, 2048  ;;  %v2023_v17 = vadd.s32 %v5670_v9, %v1893_v29 }
 0x207   : > { %v2529_v4 = vmul.f32 %v4404_v6, %v1627_v48  ;;  %vm2148_vm10 = vcmp.lt.s32.totalorder %v2020_v59, 2048  ;;  %v2531_v61 = vmul.f32 %v4406_v46, %v1629_v28  ;;  %v1631_v45 = vmax.f32 %v1483_v26, 0.0 }
 0x208   : > { %v4407_v15 = vsel %vm2148_vm10, 1.0, %v7396_v8  ;;  %v1699_v52 = vpack.c.bf16 %v1633_v19, %v1632_v25  ;;  %vm2151_vm11 = vcmp.lt.s32.totalorder %v2023_v17, 2048  ;;  %v4409_v23 = vsel %vm2150_vm9, 1.0, %v7396_v8 }
 0x209   : > { %v2657_v44 = vadd.f32 %v2656_v60, %v2529_v4  ;;  %v2794_v1 = vmul.f32 %v2529_v4, %v1627_v48  ;;  %v2532_v11 = vmul.f32 %v4407_v15, %v1630_v20  ;;  %v1698_v36 = vpack.c.bf16 %v1631_v45, %v1630_v20 }
 0x20a   : > { %1766 = vst [vmem:[%s6053_s11 + $0x1e8] sm:$0xff] %v1699_v52  ;;  %v2021_v63 = vadd.s32 %v5670_v9, %v1891_v35  ;;  %v2795_v32 = vmul.f32 %v2530_v38, %v1628_v13  ;;  %v4410_v53 = vsel %vm2151_vm11, 1.0, %v7396_v8  ;;  %v2796_v14 = vmul.f32 %v2531_v61, %v1629_v28 }
 0x20b   : > { %v2658_v47 = vadd.f32 %v2657_v44, %v2530_v38  ;;  %v2921_v62 = vadd.f32 %v2920_v5, %v2794_v1  ;;  %1765 = vst [vmem:[%s6053_s11 + $0x1e0] sm:$0xff] %v1698_v36  ;;  %v1896_v21 = vadd.s32 1008, %v5665_v7  ;;  %v1496_v34 = vadd.f32 %v6863_v54, %v6571_v40 }
 0x20c   : > { %vm2149_vm12 = vcmp.lt.s32.totalorder %v2021_v63, 2048  ;;  %v2534_v16 = vmul.f32 %v4409_v23, %v1632_v25  ;;  %v2797_v41 = vmul.f32 %v2532_v11, %v1630_v20  ;;  %v2535_v48 = vmul.f32 %v4410_v53, %v1633_v19 }
 0x20d   : > { %v2922_v22 = vadd.f32 %v2921_v62, %v2795_v32  ;;  %v2659_v0 = vadd.f32 %v2658_v47, %v2531_v61  ;;  %v4408_v39 = vsel %vm2149_vm12, 1.0, %v7396_v8  ;;  %v1504_v27 = vadd.f32 %v6863_v54, %v6562_v12 }
 0x20e   : > { %v2533_v13 = vmul.f32 %v4408_v39, %v1631_v45  ;;  %v1894_v10 = vadd.s32 992, %v5665_v7  ;;  %v1507_v58 = vadd.f32 %v6863_v54, %v6575_v42  ;;  %v2026_v40 = vadd.s32 %v5670_v9, %v1896_v21  ;;  %v2676_v39 = vld [vmem:[#allocation3 + $0x1] sm:$0x1] }
 0x20f   : > { %v2660_v18 = vadd.f32 %v2659_v0, %v2532_v11  ;;  %v2923_v28 = vadd.f32 %v2922_v22, %v2796_v14  ;;  %v1634_v56 = vmax.f32 %v1496_v34, 0.0  ;;  %v1897_v51 = vadd.s32 1016, %v5665_v7  ;;  %v2540_v22 = vld [vmem:[#allocation3] sm:$0x1] }
 0x210   : > { %v1499_v49 = vadd.f32 %v6863_v54, %v6580_v57  ;;  %v2798_v31 = vmul.f32 %v2533_v13, %v1631_v45  ;;  %v2024_v12 = vadd.s32 %v5670_v9, %v1894_v10  ;;  %v2799_v60 = vmul.f32 %v2534_v16, %v1632_v25 }
 0x211   : > { %v2924_v55 = vadd.f32 %v2923_v28, %v2797_v41  ;;  %v2661_v24 = vadd.f32 %v2660_v18, %v2533_v13  ;;  %v1636_v43 = vmax.f32 %v1504_v27, 0.0  ;;  %v1637_v2 = vmax.f32 %v1507_v58, 0.0 }
 0x212   : > { %v2027_v33 = vadd.s32 %v5670_v9, %v1897_v51  ;;  %vm2152_vm13 = vcmp.lt.s32.totalorder %v2024_v12, 2048  ;;  %v1895_v46 = vadd.s32 1000, %v5665_v7  ;;  %vm2154_vm14 = vcmp.lt.s32.totalorder %v2026_v40, 2048 }
 0x213   : > { %v2662_v42 = vadd.f32 %v2661_v24, %v2534_v16  ;;  %v2925_v38 = vadd.f32 %v2924_v55, %v2798_v31  ;;  %v4411_v57 = vsel %vm2152_vm13, 1.0, %v7396_v8  ;;  %v1701_v54 = vpack.c.bf16 %v1637_v2, %v1636_v43 }
 0x214   : > { %v1635_v3 = vmax.f32 %v1499_v49, 0.0  ;;  %v2800_v50 = vmul.f32 %v2535_v48, %v1633_v19  ;;  %v2536_v30 = vmul.f32 %v4411_v57, %v1634_v56  ;;  %vm2155_vm15 = vcmp.lt.s32.totalorder %v2027_v33, 2048 }
 0x215   : > { %v2926_v5 = vadd.f32 %v2925_v38, %v2799_v60  ;;  %v2663_v25 = vadd.f32 %v2662_v42, %v2535_v48  ;;  %1768 = vst [vmem:[%s6053_s11 + $0x1f8] sm:$0xff] %v1701_v54  ;;  %v2025_v59 = vadd.s32 %v5670_v9, %v1895_v46  ;;  %v4413_v29 = vsel %vm2154_vm14, 1.0, %v7396_v8 }
 0x216   : > { %v1700_v37 = vpack.c.bf16 %v1635_v3, %v1634_v56  ;;  %v2801_v6 = vmul.f32 %v2536_v30, %v1634_v56  ;;  %v4414_v35 = vsel %vm2155_vm15, 1.0, %v7396_v8  ;;  %v2538_v4 = vmul.f32 %v4413_v29, %v1636_v43 }
 0x217   : > { %v2664_v26 = vadd.f32 %v2663_v25, %v2536_v30  ;;  %v2927_v7 = vadd.f32 %v2926_v5, %v2800_v50  ;;  %vm2153_vm0 = vcmp.lt.s32.totalorder %v2025_v59, 2048  ;;  %v2539_v61 = vmul.f32 %v4414_v35, %v1637_v2 }
 0x218   : > { %1767 = vst [vmem:[%s6053_s11 + $0x1f0] sm:$0xff] %v1700_v37  ;;  %v4412_v19 = vsel %vm2153_vm0, 1.0, %v7396_v8  ;;  %v2803_v45 = vmul.f32 %v2538_v4, %v1636_v43 }
 0x219   : > { %v2928_v20 = vadd.f32 %v2927_v7, %v2801_v6  ;;  %v2537_v17 = vmul.f32 %v4412_v19, %v1635_v3  ;;  %v2804_v1 = vmul.f32 %v2539_v61, %v1637_v2 }
 0x21b   : > { %v2665_v15 = vadd.f32 %v2664_v26, %v2537_v17  ;;  %v2802_v52 = vmul.f32 %v2537_v17, %v1635_v3 }
 0x21d   : > { %v2666_v44 = vadd.f32 %v2665_v15, %v2538_v4  ;;  %v2929_v9 = vadd.f32 %v2928_v20, %v2802_v52 }
 0x21f   : > { %v2667_v23 = vadd.f32 %v2666_v44, %v2539_v61  ;;  %v2930_v11 = vadd.f32 %v2929_v9, %v2803_v45 }
 0x221   : > { %v2668_v36 = vrot.slane %v2667_v23, 4  ;;  %v2931_v63 = vadd.f32 %v2930_v11, %v2804_v1 }
 0x223   : > { %v2669_v32 = vadd.f32 %v2668_v36, %v2667_v23  ;;  %v2932_v47 = vrot.slane %v2931_v63, 4 }
 0x225   : > { %v2670_v62 = vrot.slane %v2669_v32, 2  ;;  %v2933_v53 = vadd.f32 %v2932_v47, %v2931_v63 }
 0x227   : > { %v2671_v14 = vadd.f32 %v2670_v62, %v2669_v32  ;;  %v2934_v21 = vrot.slane %v2933_v53, 2 }
 0x229   : > { %v2672_v8 = vrot.slane %v2671_v14, 1  ;;  %v2935_v34 = vadd.f32 %v2934_v21, %v2933_v53 }
 0x22b   : > { %v2673_v16 = vadd.f32 %v2672_v8, %v2671_v14  ;;  %v2936_v0 = vrot.slane %v2935_v34, 1 }
 0x22d   : > { %v2674_v41 = vadd.f32 %v2673_v16, %v2540_v22  ;;  %v2937_v48 = vadd.f32 %v2936_v0, %v2935_v34 }
 0x22f   : > { %2675 = vst [vmem:[#allocation3] sm:$0x1] %v2674_v41  ;;  %v2938_v13 = vadd.f32 %v2937_v48, %v2676_v39 }
 0x231   : > { %2939 = vst [vmem:[#allocation3 + $0x1] sm:$0x1] %v2938_v13 }
 0x232 PF: > { %p2940_p11 = scmp.eq.s32.totalorder %s5423_s19, 1 }
 0x234   : > { %p2941_p12 = pnand %p2940_p11, %p268_p6 }
 0x235   : > { %v2952_v49 = vld [vmem:[%s7375_s3] sm:$0x1] (!%p2941_p12) }
 0x236   : > { %2944 = sbr.rel (%p2941_p12) target bundleno = 595 (0x253), region = 52  ;;  %v2945_v27 = vld [vmem:[#allocation3] sm:$0x1] (!%p2941_p12) }
 0x237   : > { %v2946_v28 = vmul.f32 (!%p2941_p12), 0.00048828125, %v2945_v27  ;;  %v2957_v31 = vld [vmem:[%s7376_s4] sm:$0x1] (!%p2941_p12) }
 0x238   : > { %v2947_v18 = vld [vmem:[#allocation3 + $0x1] sm:$0x1] (!%p2941_p12) }
 0x239   : > { %v2948_v10 = vmul.f32 (!%p2941_p12), 0.00048828125, %v2947_v18  ;;  %v2949_v58 = vmul.f32 (!%p2941_p12), %v2946_v28, %v2946_v28 }
 0x23b   : > { %v2950_v40 = vsub.f32 (!%p2941_p12), %v2948_v10, %v2949_v58 }
 0x23d   : > { %v2951_v56 = vmax.f32 %v2950_v40, 0.0 }
 0x23f   : > { %v2953_v51 = vadd.f32 1e-05, %v2951_v56 }
 0x241   : > { %5393 = vrsqrt.f32 %v2953_v51 }
 0x24b   : > { %v5394_v55 = vpop.eup %5393 }
 0x24c   : > { %v2955_v24 = vmul.f32 %v5394_v55, %v2952_v49 }
 0x24e   : > { %2956 = vst [vmem:[#allocation4] sm:$0x1] %v2955_v24  ;;  %v2958_v12 = vmul.f32 %v2955_v24, %v2946_v28 }
 0x250   : > { %v2959_v60 = vsub.f32 %v2957_v31, %v2958_v12 }
 0x252   : > { %2960 = vst [vmem:[#allocation4 + $0x1] sm:$0x1] %v2959_v60 }
 0x253 PF: > { %p4415_p13 = scmp.ne.s32.totalorder %s5423_s19, 1 }
 0x254   : > { %s4551_s27 = sshll.u32 (!%p4415_p13), %s5419_s18, 9 }
 0x255   : > { %2963 = sbr.rel (%p4415_p13) target bundleno = 716 (0x2cc), region = 56  ;;  %v6997_v43 = vld [vmem:[#allocation4] ss:$0 sm:$0xff] (!%p4415_p13)  ;;  %s6999_s28 = scalar_lea.vmem (!%p4415_p13), [#allocation2], %s4551_s27 }
 0x256   : > { %v2967_v2 = vld [vmem:[%s6999_s28] sm:$0xff] (!%p4415_p13)  ;;  %v2968_v33 = vld [vmem:[%s6999_s28 + $0x8] sm:$0xff] (!%p4415_p13)  ;;  %v2969_v42 = vld [vmem:[%s6999_s28 + $0x10] sm:$0xff] (!%p4415_p13) }
 0x257   : > { %v3031_v38 = vunpack.c.l.bf16 (!%p4415_p13), %v2967_v2  ;;  %v3032_v46 = vunpack.c.h.bf16 (!%p4415_p13), %v2967_v2  ;;  %v3033_v57 = vunpack.c.l.bf16 (!%p4415_p13), %v2968_v33  ;;  %v3034_v54 = vunpack.c.h.bf16 (!%p4415_p13), %v2968_v33  ;;  %v2970_v3 = vld [vmem:[%s6999_s28 + $0x18] sm:$0xff] (!%p4415_p13)  ;;  %v2971_v4 = vld [vmem:[%s6999_s28 + $0x20] sm:$0xff] (!%p4415_p13)  ;;  %v2972_v45 = vld [vmem:[%s6999_s28 + $0x28] sm:$0xff] (!%p4415_p13) }
 0x258   : > { %v3035_v5 = vunpack.c.l.bf16 (!%p4415_p13), %v2969_v42  ;;  %v3036_v30 = vunpack.c.h.bf16 (!%p4415_p13), %v2969_v42  ;;  %v3037_v25 = vunpack.c.l.bf16 (!%p4415_p13), %v2970_v3  ;;  %v3038_v37 = vunpack.c.h.bf16 (!%p4415_p13), %v2970_v3  ;;  %v2973_v11 = vld [vmem:[%s6999_s28 + $0x30] sm:$0xff] (!%p4415_p13)  ;;  %v2974_v62 = vld [vmem:[%s6999_s28 + $0x38] sm:$0xff] (!%p4415_p13)  ;;  %v2975_v27 = vld [vmem:[%s6999_s28 + $0x40] sm:$0xff] (!%p4415_p13) }
 0x259   : > { %v7005_v50 = vld [vmem:[#allocation4 + $0x1] ss:$0 sm:$0xff] (!%p4415_p13)  ;;  %v3164_v59 = vmul.f32 (!%p4415_p13), %v6997_v43, %v3031_v38  ;;  %v3165_v29 = vmul.f32 (!%p4415_p13), %v6997_v43, %v3032_v46  ;;  %v3166_v26 = vmul.f32 (!%p4415_p13), %v6997_v43, %v3033_v57  ;;  %v3167_v6 = vmul.f32 (!%p4415_p13), %v6997_v43, %v3034_v54  ;;  %v2976_v55 = vld [vmem:[%s6999_s28 + $0x48] sm:$0xff] (!%p4415_p13)  ;;  %v2977_v2 = vld [vmem:[%s6999_s28 + $0x50] sm:$0xff] (!%p4415_p13) }
 0x25a   : > { %v3168_v7 = vmul.f32 (!%p4415_p13), %v6997_v43, %v3035_v5  ;;  %v3169_v20 = vmul.f32 (!%p4415_p13), %v6997_v43, %v3036_v30  ;;  %v3170_v35 = vmul.f32 (!%p4415_p13), %v6997_v43, %v3037_v25  ;;  %v3171_v19 = vmul.f32 (!%p4415_p13), %v6997_v43, %v3038_v37  ;;  %v2978_v57 = vld [vmem:[%s6999_s28 + $0x58] sm:$0xff] (!%p4415_p13) }
 0x25b   : > { %v3297_v17 = vadd.f32 (!%p4415_p13), %v7005_v50, %v3164_v59  ;;  %v3298_v61 = vadd.f32 (!%p4415_p13), %v7005_v50, %v3165_v29  ;;  %v3299_v15 = vadd.f32 (!%p4415_p13), %v7005_v50, %v3166_v26  ;;  %v3300_v52 = vadd.f32 (!%p4415_p13), %v7005_v50, %v3167_v6  ;;  %v2979_v26 = vld [vmem:[%s6999_s28 + $0x60] sm:$0xff] (!%p4415_p13) }
 0x25c   : > { %v3301_v44 = vadd.f32 %v7005_v50, %v3168_v7  ;;  %v3302_v9 = vadd.f32 %v7005_v50, %v3169_v20  ;;  %v3303_v1 = vadd.f32 %v7005_v50, %v3170_v35  ;;  %v3304_v23 = vadd.f32 %v7005_v50, %v3171_v19 }
 0x25d   : > { %v4683_v36 = vpack.c.bf16 %v3298_v61, %v3297_v17  ;;  %v4688_v63 = vpack.c.bf16 %v3300_v52, %v3299_v15  ;;  %v3039_v32 = vunpack.c.l.bf16 %v2971_v4  ;;  %v3040_v47 = vunpack.c.h.bf16 %v2971_v4 }
 0x25e   : > { %v4693_v53 = vpack.c.bf16 %v3302_v9, %v3301_v44  ;;  %v4698_v14 = vpack.c.bf16 %v3304_v23, %v3303_v1  ;;  %v3041_v21 = vunpack.c.l.bf16 %v2972_v45  ;;  %v3042_v8 = vunpack.c.h.bf16 %v2972_v45  ;;  %v2980_v9 = vld [vmem:[%s6999_s28 + $0x68] sm:$0xff] }
 0x25f   : > { %4684 = vst [vmem:[%s5515_s10] sm:$0xff] %v4683_v36   ;;  %5000 = vst [vmem:[%s5515_s10 + $0x8] sm:$0xff] %v4688_v63   ;;  %v3172_v34 = vmul.f32 %v6997_v43, %v3039_v32  ;;  %v3173_v22 = vmul.f32 %v6997_v43, %v3040_v47  ;;  %v3043_v16 = vunpack.c.l.bf16 %v2973_v11  ;;  %v3044_v0 = vunpack.c.h.bf16 %v2973_v11  ;;  %v2981_v63 = vld [vmem:[%s6999_s28 + $0x70] sm:$0xff] }
 0x260   : > { %5001 = vst [vmem:[%s5515_s10 + $0x10] sm:$0xff] %v4693_v53   ;;  %5002 = vst [vmem:[%s5515_s10 + $0x18] sm:$0xff] %v4698_v14   ;;  %v3174_v39 = vmul.f32 %v6997_v43, %v3041_v21  ;;  %v3175_v41 = vmul.f32 %v6997_v43, %v3042_v8  ;;  %v3045_v48 = vunpack.c.l.bf16 %v2974_v62  ;;  %v3046_v13 = vunpack.c.h.bf16 %v2974_v62  ;;  %v2982_v14 = vld [vmem:[%s6999_s28 + $0x78] sm:$0xff] }
 0x261   : > { %v3305_v18 = vadd.f32 %v7005_v50, %v3172_v34  ;;  %v3306_v28 = vadd.f32 %v7005_v50, %v3173_v22  ;;  %v3176_v10 = vmul.f32 %v6997_v43, %v3043_v16  ;;  %v3177_v58 = vmul.f32 %v6997_v43, %v3044_v0 }
 0x262   : > { %v3307_v40 = vadd.f32 %v7005_v50, %v3174_v39  ;;  %v3308_v56 = vadd.f32 %v7005_v50, %v3175_v41  ;;  %v3178_v51 = vmul.f32 %v6997_v43, %v3045_v48  ;;  %v3179_v49 = vmul.f32 %v6997_v43, %v3046_v13  ;;  %v2983_v48 = vld [vmem:[%s6999_s28 + $0x80] sm:$0xff] }
 0x263   : > { %v4703_v24 = vpack.c.bf16 %v3306_v28, %v3305_v18  ;;  %v3309_v31 = vadd.f32 %v7005_v50, %v3176_v10  ;;  %v3310_v12 = vadd.f32 %v7005_v50, %v3177_v58  ;;  %v3047_v60 = vunpack.c.l.bf16 %v2975_v27 }
 0x264   : > { %v4708_v33 = vpack.c.bf16 %v3308_v56, %v3307_v40  ;;  %v3311_v42 = vadd.f32 %v7005_v50, %v3178_v51  ;;  %v3312_v38 = vadd.f32 %v7005_v50, %v3179_v49  ;;  %v3048_v46 = vunpack.c.h.bf16 %v2975_v27 }
 0x265   : > { %5003 = vst [vmem:[%s5515_s10 + $0x20] sm:$0xff] %v4703_v24   ;;  %v4713_v54 = vpack.c.bf16 %v3310_v12, %v3309_v31  ;;  %v3180_v3 = vmul.f32 %v6997_v43, %v3047_v60  ;;  %v3049_v5 = vunpack.c.l.bf16 %v2976_v55  ;;  %v3050_v30 = vunpack.c.h.bf16 %v2976_v55  ;;  %v2984_v31 = vld [vmem:[%s6999_s28 + $0x88] sm:$0xff] }
 0x266   : > { %5004 = vst [vmem:[%s5515_s10 + $0x28] sm:$0xff] %v4708_v33   ;;  %v4718_v25 = vpack.c.bf16 %v3312_v38, %v3311_v42  ;;  %v3181_v37 = vmul.f32 %v6997_v43, %v3048_v46  ;;  %v3051_v59 = vunpack.c.l.bf16 %v2977_v2  ;;  %v3052_v29 = vunpack.c.h.bf16 %v2977_v2  ;;  %v2985_v42 = vld [vmem:[%s6999_s28 + $0x90] sm:$0xff] }
 0x267   : > { %5005 = vst [vmem:[%s5515_s10 + $0x30] sm:$0xff] %v4713_v54   ;;  %v3313_v6 = vadd.f32 %v7005_v50, %v3180_v3  ;;  %v3182_v7 = vmul.f32 %v6997_v43, %v3049_v5  ;;  %v3183_v20 = vmul.f32 %v6997_v43, %v3050_v30  ;;  %v3053_v35 = vunpack.c.l.bf16 %v2978_v57  ;;  %v2986_v3 = vld [vmem:[%s6999_s28 + $0x98] sm:$0xff] }
 0x268   : > { %5006 = vst [vmem:[%s5515_s10 + $0x38] sm:$0xff] %v4718_v25   ;;  %v3314_v19 = vadd.f32 %v7005_v50, %v3181_v37  ;;  %v3184_v4 = vmul.f32 %v6997_v43, %v3051_v59  ;;  %v3185_v17 = vmul.f32 %v6997_v43, %v3052_v29  ;;  %v3054_v61 = vunpack.c.h.bf16 %v2978_v57 }
 0x269   : > { %v3315_v15 = vadd.f32 %v7005_v50, %v3182_v7  ;;  %v3316_v52 = vadd.f32 %v7005_v50, %v3183_v20  ;;  %v3186_v45 = vmul.f32 %v6997_v43, %v3053_v35  ;;  %v3055_v44 = vunpack.c.l.bf16 %v2979_v26  ;;  %v2987_v7 = vld [vmem:[%s6999_s28 + $0xa0] sm:$0xff] }
 0x26a   : > { %v4723_v1 = vpack.c.bf16 %v3314_v19, %v3313_v6  ;;  %v3317_v23 = vadd.f32 %v7005_v50, %v3184_v4  ;;  %v3318_v11 = vadd.f32 %v7005_v50, %v3185_v17  ;;  %v3187_v36 = vmul.f32 %v6997_v43, %v3054_v61 }
 0x26b   : > { %v4728_v32 = vpack.c.bf16 %v3316_v52, %v3315_v15  ;;  %v3319_v47 = vadd.f32 %v7005_v50, %v3186_v45  ;;  %v3056_v62 = vunpack.c.h.bf16 %v2979_v26  ;;  %v3188_v53 = vmul.f32 %v6997_v43, %v3055_v44 }
 0x26c   : > { %5007 = vst [vmem:[%s5515_s10 + $0x40] sm:$0xff] %v4723_v1   ;;  %v4733_v21 = vpack.c.bf16 %v3318_v11, %v3317_v23  ;;  %v3320_v8 = vadd.f32 %v7005_v50, %v3187_v36  ;;  %v3057_v34 = vunpack.c.l.bf16 %v2980_v9  ;;  %v3058_v22 = vunpack.c.h.bf16 %v2980_v9  ;;  %v2988_v23 = vld [vmem:[%s6999_s28 + $0xa8] sm:$0xff] }
 0x26d   : > { %5008 = vst [vmem:[%s5515_s10 + $0x48] sm:$0xff] %v4728_v32   ;;  %v3189_v16 = vmul.f32 %v6997_v43, %v3056_v62  ;;  %v3321_v0 = vadd.f32 %v7005_v50, %v3188_v53  ;;  %v3059_v39 = vunpack.c.l.bf16 %v2981_v63  ;;  %v3060_v41 = vunpack.c.h.bf16 %v2981_v63 }
 0x26e   : > { %5009 = vst [vmem:[%s5515_s10 + $0x50] sm:$0xff] %v4733_v21   ;;  %v4738_v13 = vpack.c.bf16 %v3320_v8, %v3319_v47  ;;  %v3190_v27 = vmul.f32 %v6997_v43, %v3057_v34  ;;  %v3191_v18 = vmul.f32 %v6997_v43, %v3058_v22  ;;  %v3061_v28 = vunpack.c.l.bf16 %v2982_v14  ;;  %v2989_v47 = vld [vmem:[%s6999_s28 + $0xb0] sm:$0xff]  ;;  %v2990_v8 = vld [vmem:[%s6999_s28 + $0xb8] sm:$0xff] }
 0x26f   : > { %v3322_v10 = vadd.f32 %v7005_v50, %v3189_v16  ;;  %v3192_v58 = vmul.f32 %v6997_v43, %v3059_v39  ;;  %v3193_v40 = vmul.f32 %v6997_v43, %v3060_v41  ;;  %v3062_v56 = vunpack.c.h.bf16 %v2982_v14 }
 0x270   : > { %5010 = vst [vmem:[%s5515_s10 + $0x58] sm:$0xff] %v4738_v13   ;;  %v3323_v51 = vadd.f32 %v7005_v50, %v3190_v27  ;;  %v3324_v49 = vadd.f32 %v7005_v50, %v3191_v18  ;;  %v3194_v55 = vmul.f32 %v6997_v43, %v3061_v28  ;;  %v3063_v24 = vunpack.c.l.bf16 %v2983_v48  ;;  %v2991_v27 = vld [vmem:[%s6999_s28 + $0xc0] sm:$0xff] }
 0x271   : > { %v4743_v12 = vpack.c.bf16 %v3322_v10, %v3321_v0  ;;  %v3325_v60 = vadd.f32 %v7005_v50, %v3192_v58  ;;  %v3326_v2 = vadd.f32 %v7005_v50, %v3193_v40  ;;  %v3195_v33 = vmul.f32 %v6997_v43, %v3062_v56 }
 0x272   : > { %v4748_v38 = vpack.c.bf16 %v3324_v49, %v3323_v51  ;;  %v3327_v46 = vadd.f32 %v7005_v50, %v3194_v55  ;;  %v3064_v57 = vunpack.c.h.bf16 %v2983_v48  ;;  %v3196_v54 = vmul.f32 %v6997_v43, %v3063_v24 }
 0x273   : > { %5011 = vst [vmem:[%s5515_s10 + $0x60] sm:$0xff] %v4743_v12   ;;  %v4753_v5 = vpack.c.bf16 %v3326_v2, %v3325_v60  ;;  %v3328_v30 = vadd.f32 %v7005_v50, %v3195_v33  ;;  %v3065_v25 = vunpack.c.l.bf16 %v2984_v31  ;;  %v3066_v37 = vunpack.c.h.bf16 %v2984_v31  ;;  %v2992_v60 = vld [vmem:[%s6999_s28 + $0xc8] sm:$0xff] }
 0x274   : > { %5012 = vst [vmem:[%s5515_s10 + $0x68] sm:$0xff] %v4748_v38   ;;  %v3197_v59 = vmul.f32 %v6997_v43, %v3064_v57  ;;  %v3329_v29 = vadd.f32 %v7005_v50, %v3196_v54  ;;  %v3067_v26 = vunpack.c.l.bf16 %v2985_v42  ;;  %v3068_v6 = vunpack.c.h.bf16 %v2985_v42 }
 0x275   : > { %5013 = vst [vmem:[%s5515_s10 + $0x70] sm:$0xff] %v4753_v5   ;;  %v4758_v20 = vpack.c.bf16 %v3328_v30, %v3327_v46  ;;  %v3198_v35 = vmul.f32 %v6997_v43, %v3065_v25  ;;  %v3199_v19 = vmul.f32 %v6997_v43, %v3066_v37  ;;  %v3069_v4 = vunpack.c.l.bf16 %v2986_v3  ;;  %v2993_v46 = vld [vmem:[%s6999_s28 + $0xd0] sm:$0xff]  ;;  %v2994_v30 = vld [vmem:[%s6999_s28 + $0xd8] sm:$0xff] }
 0x276   : > { %v3330_v17 = vadd.f32 %v7005_v50, %v3197_v59  ;;  %v3200_v61 = vmul.f32 %v6997_v43, %v3067_v26  ;;  %v3201_v15 = vmul.f32 %v6997_v43, %v3068_v6  ;;  %v3070_v52 = vunpack.c.h.bf16 %v2986_v3 }
 0x277   : > { %5014 = vst [vmem:[%s5515_s10 + $0x78] sm:$0xff] %v4758_v20   ;;  %v3331_v45 = vadd.f32 %v7005_v50, %v3198_v35  ;;  %v3332_v44 = vadd.f32 %v7005_v50, %v3199_v19  ;;  %v3202_v9 = vmul.f32 %v6997_v43, %v3069_v4  ;;  %v3071_v1 = vunpack.c.l.bf16 %v2987_v7  ;;  %v2995_v35 = vld [vmem:[%s6999_s28 + $0xe0] sm:$0xff] }
 0x278   : > { %v4763_v11 = vpack.c.bf16 %v3330_v17, %v3329_v29  ;;  %v3333_v36 = vadd.f32 %v7005_v50, %v3200_v61  ;;  %v3334_v63 = vadd.f32 %v7005_v50, %v3201_v15  ;;  %v3203_v32 = vmul.f32 %v6997_v43, %v3070_v52 }
 0x279   : > { %v4768_v62 = vpack.c.bf16 %v3332_v44, %v3331_v45  ;;  %v3335_v53 = vadd.f32 %v7005_v50, %v3202_v9  ;;  %v3072_v14 = vunpack.c.h.bf16 %v2987_v7  ;;  %v3204_v21 = vmul.f32 %v6997_v43, %v3071_v1 }
 0x27a   : > { %5015 = vst [vmem:[%s5515_s10 + $0x80] sm:$0xff] %v4763_v11   ;;  %v4773_v34 = vpack.c.bf16 %v3334_v63, %v3333_v36  ;;  %v3336_v22 = vadd.f32 %v7005_v50, %v3203_v32  ;;  %v3073_v16 = vunpack.c.l.bf16 %v2988_v23  ;;  %v3074_v0 = vunpack.c.h.bf16 %v2988_v23  ;;  %v2996_v36 = vld [vmem:[%s6999_s28 + $0xe8] sm:$0xff] }
 0x27b   : > { %5016 = vst [vmem:[%s5515_s10 + $0x88] sm:$0xff] %v4768_v62   ;;  %v3205_v39 = vmul.f32 %v6997_v43, %v3072_v14  ;;  %v3337_v41 = vadd.f32 %v7005_v50, %v3204_v21  ;;  %v3075_v48 = vunpack.c.l.bf16 %v2989_v47  ;;  %v3076_v13 = vunpack.c.h.bf16 %v2989_v47 }
 0x27c   : > { %5017 = vst [vmem:[%s5515_s10 + $0x90] sm:$0xff] %v4773_v34   ;;  %v4778_v18 = vpack.c.bf16 %v3336_v22, %v3335_v53  ;;  %v3206_v28 = vmul.f32 %v6997_v43, %v3073_v16  ;;  %v3207_v10 = vmul.f32 %v6997_v43, %v3074_v0  ;;  %v3077_v58 = vunpack.c.l.bf16 %v2990_v8  ;;  %v2997_v53 = vld [vmem:[%s6999_s28 + $0xf0] sm:$0xff]  ;;  %v2998_v22 = vld [vmem:[%s6999_s28 + $0xf8] sm:$0xff] }
 0x27d   : > { %v3338_v40 = vadd.f32 %v7005_v50, %v3205_v39  ;;  %v3208_v56 = vmul.f32 %v6997_v43, %v3075_v48  ;;  %v3209_v51 = vmul.f32 %v6997_v43, %v3076_v13  ;;  %v3078_v49 = vunpack.c.h.bf16 %v2990_v8 }
 0x27e   : > { %5018 = vst [vmem:[%s5515_s10 + $0x98] sm:$0xff] %v4778_v18   ;;  %v3339_v55 = vadd.f32 %v7005_v50, %v3206_v28  ;;  %v3340_v24 = vadd.f32 %v7005_v50, %v3207_v10  ;;  %v3210_v31 = vmul.f32 %v6997_v43, %v3077_v58  ;;  %v3079_v12 = vunpack.c.l.bf16 %v2991_v27  ;;  %v2999_v28 = vld [vmem:[%s6999_s28 + $0x100] sm:$0xff] }
 0x27f   : > { %v4783_v2 = vpack.c.bf16 %v3338_v40, %v3337_v41  ;;  %v3341_v33 = vadd.f32 %v7005_v50, %v3208_v56  ;;  %v3342_v42 = vadd.f32 %v7005_v50, %v3209_v51  ;;  %v3211_v38 = vmul.f32 %v6997_v43, %v3078_v49 }
 0x280   : > { %v4788_v57 = vpack.c.bf16 %v3340_v24, %v3339_v55  ;;  %v3343_v54 = vadd.f32 %v7005_v50, %v3210_v31  ;;  %v3080_v3 = vunpack.c.h.bf16 %v2991_v27  ;;  %v3212_v5 = vmul.f32 %v6997_v43, %v3079_v12 }
 0x281   : > { %5019 = vst [vmem:[%s5515_s10 + $0xa0] sm:$0xff] %v4783_v2   ;;  %v4793_v25 = vpack.c.bf16 %v3342_v42, %v3341_v33  ;;  %v3344_v37 = vadd.f32 %v7005_v50, %v3211_v38  ;;  %v3081_v59 = vunpack.c.l.bf16 %v2992_v60  ;;  %v3082_v29 = vunpack.c.h.bf16 %v2992_v60  ;;  %v3000_v33 = vld [vmem:[%s6999_s28 + $0x108] sm:$0xff] }
 0x282   : > { %5020 = vst [vmem:[%s5515_s10 + $0xa8] sm:$0xff] %v4788_v57   ;;  %v3213_v26 = vmul.f32 %v6997_v43, %v3080_v3  ;;  %v3345_v6 = vadd.f32 %v7005_v50, %v3212_v5  ;;  %v3083_v7 = vunpack.c.l.bf16 %v2993_v46  ;;  %v3084_v20 = vunpack.c.h.bf16 %v2993_v46 }
 0x283   : > { %5021 = vst [vmem:[%s5515_s10 + $0xb0] sm:$0xff] %v4793_v25   ;;  %v4798_v19 = vpack.c.bf16 %v3344_v37, %v3343_v54  ;;  %v3214_v4 = vmul.f32 %v6997_v43, %v3081_v59  ;;  %v3215_v17 = vmul.f32 %v6997_v43, %v3082_v29  ;;  %v3085_v61 = vunpack.c.l.bf16 %v2994_v30  ;;  %v3001_v54 = vld [vmem:[%s6999_s28 + $0x110] sm:$0xff]  ;;  %v3002_v37 = vld [vmem:[%s6999_s28 + $0x118] sm:$0xff] }
 0x284   : > { %v3346_v15 = vadd.f32 %v7005_v50, %v3213_v26  ;;  %v3216_v52 = vmul.f32 %v6997_v43, %v3083_v7  ;;  %v3217_v45 = vmul.f32 %v6997_v43, %v3084_v20  ;;  %v3086_v44 = vunpack.c.h.bf16 %v2994_v30 }
 0x285   : > { %5022 = vst [vmem:[%s5515_s10 + $0xb8] sm:$0xff] %v4798_v19   ;;  %v3347_v9 = vadd.f32 %v7005_v50, %v3214_v4  ;;  %v3348_v1 = vadd.f32 %v7005_v50, %v3215_v17  ;;  %v3218_v23 = vmul.f32 %v6997_v43, %v3085_v61  ;;  %v3087_v11 = vunpack.c.l.bf16 %v2995_v35  ;;  %v3003_v4 = vld [vmem:[%s6999_s28 + $0x120] sm:$0xff] }
 0x286   : > { %v4803_v63 = vpack.c.bf16 %v3346_v15, %v3345_v6  ;;  %v3349_v32 = vadd.f32 %v7005_v50, %v3216_v52  ;;  %v3350_v47 = vadd.f32 %v7005_v50, %v3217_v45  ;;  %v3219_v62 = vmul.f32 %v6997_v43, %v3086_v44 }
 0x287   : > { %v4808_v14 = vpack.c.bf16 %v3348_v1, %v3347_v9  ;;  %v3351_v21 = vadd.f32 %v7005_v50, %v3218_v23  ;;  %v3088_v8 = vunpack.c.h.bf16 %v2995_v35  ;;  %v3220_v34 = vmul.f32 %v6997_v43, %v3087_v11 }
 0x288   : > { %5023 = vst [vmem:[%s5515_s10 + $0xc0] sm:$0xff] %v4803_v63   ;;  %v4813_v16 = vpack.c.bf16 %v3350_v47, %v3349_v32  ;;  %v3352_v0 = vadd.f32 %v7005_v50, %v3219_v62  ;;  %v3089_v39 = vunpack.c.l.bf16 %v2996_v36  ;;  %v3090_v41 = vunpack.c.h.bf16 %v2996_v36  ;;  %v3004_v32 = vld [vmem:[%s6999_s28 + $0x128] sm:$0xff] }
 0x289   : > { %5024 = vst [vmem:[%s5515_s10 + $0xc8] sm:$0xff] %v4808_v14   ;;  %v3221_v48 = vmul.f32 %v6997_v43, %v3088_v8  ;;  %v3353_v13 = vadd.f32 %v7005_v50, %v3220_v34  ;;  %v3091_v27 = vunpack.c.l.bf16 %v2997_v53  ;;  %v3092_v18 = vunpack.c.h.bf16 %v2997_v53 }
 0x28a   : > { %5025 = vst [vmem:[%s5515_s10 + $0xd0] sm:$0xff] %v4813_v16   ;;  %v4818_v10 = vpack.c.bf16 %v3352_v0, %v3351_v21  ;;  %v3222_v58 = vmul.f32 %v6997_v43, %v3089_v39  ;;  %v3223_v40 = vmul.f32 %v6997_v43, %v3090_v41  ;;  %v3093_v56 = vunpack.c.l.bf16 %v2998_v22  ;;  %v3005_v21 = vld [vmem:[%s6999_s28 + $0x130] sm:$0xff]  ;;  %v3006_v0 = vld [vmem:[%s6999_s28 + $0x138] sm:$0xff] }
 0x28b   : > { %v3354_v51 = vadd.f32 %v7005_v50, %v3221_v48  ;;  %v3224_v49 = vmul.f32 %v6997_v43, %v3091_v27  ;;  %v3225_v55 = vmul.f32 %v6997_v43, %v3092_v18  ;;  %v3094_v24 = vunpack.c.h.bf16 %v2998_v22 }
 0x28c   : > { %5026 = vst [vmem:[%s5515_s10 + $0xd8] sm:$0xff] %v4818_v10   ;;  %v3355_v31 = vadd.f32 %v7005_v50, %v3222_v58  ;;  %v3356_v12 = vadd.f32 %v7005_v50, %v3223_v40  ;;  %v3226_v60 = vmul.f32 %v6997_v43, %v3093_v56  ;;  %v3095_v2 = vunpack.c.l.bf16 %v2999_v28  ;;  %v3007_v58 = vld [vmem:[%s6999_s28 + $0x140] sm:$0xff] }
 0x28d   : > { %v4823_v42 = vpack.c.bf16 %v3354_v51, %v3353_v13  ;;  %v3357_v38 = vadd.f32 %v7005_v50, %v3224_v49  ;;  %v3358_v46 = vadd.f32 %v7005_v50, %v3225_v55  ;;  %v3227_v57 = vmul.f32 %v6997_v43, %v3094_v24 }
 0x28e   : > { %v4828_v3 = vpack.c.bf16 %v3356_v12, %v3355_v31  ;;  %v3359_v5 = vadd.f32 %v7005_v50, %v3226_v60  ;;  %v3096_v30 = vunpack.c.h.bf16 %v2999_v28  ;;  %v3228_v25 = vmul.f32 %v6997_v43, %v3095_v2 }
 0x28f   : > { %5027 = vst [vmem:[%s5515_s10 + $0xe0] sm:$0xff] %v4823_v42   ;;  %v4833_v59 = vpack.c.bf16 %v3358_v46, %v3357_v38  ;;  %v3360_v29 = vadd.f32 %v7005_v50, %v3227_v57  ;;  %v3097_v26 = vunpack.c.l.bf16 %v3000_v33  ;;  %v3098_v6 = vunpack.c.h.bf16 %v3000_v33  ;;  %v3008_v38 = vld [vmem:[%s6999_s28 + $0x148] sm:$0xff] }
 0x290   : > { %5028 = vst [vmem:[%s5515_s10 + $0xe8] sm:$0xff] %v4828_v3   ;;  %v3229_v7 = vmul.f32 %v6997_v43, %v3096_v30  ;;  %v3361_v20 = vadd.f32 %v7005_v50, %v3228_v25  ;;  %v3099_v35 = vunpack.c.l.bf16 %v3001_v54  ;;  %v3100_v19 = vunpack.c.h.bf16 %v3001_v54 }
 0x291   : > { %5029 = vst [vmem:[%s5515_s10 + $0xf0] sm:$0xff] %v4833_v59   ;;  %v4838_v17 = vpack.c.bf16 %v3360_v29, %v3359_v5  ;;  %v3230_v61 = vmul.f32 %v6997_v43, %v3097_v26  ;;  %v3231_v15 = vmul.f32 %v6997_v43, %v3098_v6  ;;  %v3101_v52 = vunpack.c.l.bf16 %v3002_v37  ;;  %v3009_v5 = vld [vmem:[%s6999_s28 + $0x150] sm:$0xff]  ;;  %v3010_v29 = vld [vmem:[%s6999_s28 + $0x158] sm:$0xff] }
 0x292   : > { %v3362_v45 = vadd.f32 %v7005_v50, %v3229_v7  ;;  %v3232_v44 = vmul.f32 %v6997_v43, %v3099_v35  ;;  %v3233_v9 = vmul.f32 %v6997_v43, %v3100_v19  ;;  %v3102_v1 = vunpack.c.h.bf16 %v3002_v37 }
 0x293   : > { %5030 = vst [vmem:[%s5515_s10 + $0xf8] sm:$0xff] %v4838_v17   ;;  %v3363_v23 = vadd.f32 %v7005_v50, %v3230_v61  ;;  %v3364_v11 = vadd.f32 %v7005_v50, %v3231_v15  ;;  %v3234_v36 = vmul.f32 %v6997_v43, %v3101_v52  ;;  %v3103_v63 = vunpack.c.l.bf16 %v3003_v4  ;;  %v3011_v61 = vld [vmem:[%s6999_s28 + $0x160] sm:$0xff] }
 0x294   : > { %v4843_v47 = vpack.c.bf16 %v3362_v45, %v3361_v20  ;;  %v3365_v62 = vadd.f32 %v7005_v50, %v3232_v44  ;;  %v3366_v53 = vadd.f32 %v7005_v50, %v3233_v9  ;;  %v3235_v14 = vmul.f32 %v6997_v43, %v3102_v1 }
 0x295   : > { %v4848_v8 = vpack.c.bf16 %v3364_v11, %v3363_v23  ;;  %v3367_v34 = vadd.f32 %v7005_v50, %v3234_v36  ;;  %v3104_v22 = vunpack.c.h.bf16 %v3003_v4  ;;  %v3236_v16 = vmul.f32 %v6997_v43, %v3103_v63 }
 0x296   : > { %5031 = vst [vmem:[%s5515_s10 + $0x100] sm:$0xff] %v4843_v47   ;;  %v4853_v39 = vpack.c.bf16 %v3366_v53, %v3365_v62  ;;  %v3368_v41 = vadd.f32 %v7005_v50, %v3235_v14  ;;  %v3105_v48 = vunpack.c.l.bf16 %v3004_v32  ;;  %v3106_v13 = vunpack.c.h.bf16 %v3004_v32  ;;  %v3012_v62 = vld [vmem:[%s6999_s28 + $0x168] sm:$0xff] }
 0x297   : > { %5032 = vst [vmem:[%s5515_s10 + $0x108] sm:$0xff] %v4848_v8   ;;  %v3237_v27 = vmul.f32 %v6997_v43, %v3104_v22  ;;  %v3369_v18 = vadd.f32 %v7005_v50, %v3236_v16  ;;  %v3107_v28 = vunpack.c.l.bf16 %v3005_v21  ;;  %v3108_v10 = vunpack.c.h.bf16 %v3005_v21 }
 0x298   : > { %5033 = vst [vmem:[%s5515_s10 + $0x110] sm:$0xff] %v4853_v39   ;;  %v4858_v40 = vpack.c.bf16 %v3368_v41, %v3367_v34  ;;  %v3238_v56 = vmul.f32 %v6997_v43, %v3105_v48  ;;  %v3239_v51 = vmul.f32 %v6997_v43, %v3106_v13  ;;  %v3109_v49 = vunpack.c.l.bf16 %v3006_v0  ;;  %v3013_v34 = vld [vmem:[%s6999_s28 + $0x170] sm:$0xff]  ;;  %v3014_v41 = vld [vmem:[%s6999_s28 + $0x178] sm:$0xff] }
 0x299   : > { %v3370_v55 = vadd.f32 %v7005_v50, %v3237_v27  ;;  %v3240_v24 = vmul.f32 %v6997_v43, %v3107_v28  ;;  %v3241_v31 = vmul.f32 %v6997_v43, %v3108_v10  ;;  %v3110_v12 = vunpack.c.h.bf16 %v3006_v0 }
 0x29a   : > { %5034 = vst [vmem:[%s5515_s10 + $0x118] sm:$0xff] %v4858_v40   ;;  %v3371_v60 = vadd.f32 %v7005_v50, %v3238_v56  ;;  %v3372_v2 = vadd.f32 %v7005_v50, %v3239_v51  ;;  %v3242_v33 = vmul.f32 %v6997_v43, %v3109_v49  ;;  %v3111_v42 = vunpack.c.l.bf16 %v3007_v58  ;;  %v3015_v56 = vld [vmem:[%s6999_s28 + $0x180] sm:$0xff] }
 0x29b   : > { %v4863_v46 = vpack.c.bf16 %v3370_v55, %v3369_v18  ;;  %v3373_v57 = vadd.f32 %v7005_v50, %v3240_v24  ;;  %v3374_v54 = vadd.f32 %v7005_v50, %v3241_v31  ;;  %v3243_v3 = vmul.f32 %v6997_v43, %v3110_v12 }
 0x29c   : > { %v4868_v30 = vpack.c.bf16 %v3372_v2, %v3371_v60  ;;  %v3375_v25 = vadd.f32 %v7005_v50, %v3242_v33  ;;  %v3112_v37 = vunpack.c.h.bf16 %v3007_v58  ;;  %v3244_v59 = vmul.f32 %v6997_v43, %v3111_v42 }
 0x29d   : > { %5035 = vst [vmem:[%s5515_s10 + $0x120] sm:$0xff] %v4863_v46   ;;  %v4873_v26 = vpack.c.bf16 %v3374_v54, %v3373_v57  ;;  %v3376_v6 = vadd.f32 %v7005_v50, %v3243_v3  ;;  %v3113_v7 = vunpack.c.l.bf16 %v3008_v38  ;;  %v3114_v20 = vunpack.c.h.bf16 %v3008_v38  ;;  %v3016_v57 = vld [vmem:[%s6999_s28 + $0x188] sm:$0xff] }
 0x29e   : > { %5036 = vst [vmem:[%s5515_s10 + $0x128] sm:$0xff] %v4868_v30   ;;  %v3245_v35 = vmul.f32 %v6997_v43, %v3112_v37  ;;  %v3377_v19 = vadd.f32 %v7005_v50, %v3244_v59  ;;  %v3115_v4 = vunpack.c.l.bf16 %v3009_v5  ;;  %v3116_v17 = vunpack.c.h.bf16 %v3009_v5 }
 0x29f   : > { %5037 = vst [vmem:[%s5515_s10 + $0x130] sm:$0xff] %v4873_v26   ;;  %v4878_v15 = vpack.c.bf16 %v3376_v6, %v3375_v25  ;;  %v3246_v52 = vmul.f32 %v6997_v43, %v3113_v7  ;;  %v3247_v45 = vmul.f32 %v6997_v43, %v3114_v20  ;;  %v3117_v44 = vunpack.c.l.bf16 %v3010_v29  ;;  %v3017_v25 = vld [vmem:[%s6999_s28 + $0x190] sm:$0xff]  ;;  %v3018_v6 = vld [vmem:[%s6999_s28 + $0x198] sm:$0xff] }
 0x2a0   : > { %v3378_v9 = vadd.f32 %v7005_v50, %v3245_v35  ;;  %v3248_v1 = vmul.f32 %v6997_v43, %v3115_v4  ;;  %v3249_v23 = vmul.f32 %v6997_v43, %v3116_v17  ;;  %v3118_v11 = vunpack.c.h.bf16 %v3010_v29 }
 0x2a1   : > { %5038 = vst [vmem:[%s5515_s10 + $0x138] sm:$0xff] %v4878_v15   ;;  %v3379_v36 = vadd.f32 %v7005_v50, %v3246_v52  ;;  %v3380_v63 = vadd.f32 %v7005_v50, %v3247_v45  ;;  %v3250_v32 = vmul.f32 %v6997_v43, %v3117_v44  ;;  %v3119_v47 = vunpack.c.l.bf16 %v3011_v61  ;;  %v3019_v52 = vld [vmem:[%s6999_s28 + $0x1a0] sm:$0xff] }
 0x2a2   : > { %v4883_v53 = vpack.c.bf16 %v3378_v9, %v3377_v19  ;;  %v3381_v14 = vadd.f32 %v7005_v50, %v3248_v1  ;;  %v3382_v21 = vadd.f32 %v7005_v50, %v3249_v23  ;;  %v3251_v8 = vmul.f32 %v6997_v43, %v3118_v11 }
 0x2a3   : > { %v4888_v22 = vpack.c.bf16 %v3380_v63, %v3379_v36  ;;  %v3383_v16 = vadd.f32 %v7005_v50, %v3250_v32  ;;  %v3120_v0 = vunpack.c.h.bf16 %v3011_v61  ;;  %v3252_v39 = vmul.f32 %v6997_v43, %v3119_v47 }
 0x2a4   : > { %5039 = vst [vmem:[%s5515_s10 + $0x140] sm:$0xff] %v4883_v53   ;;  %v4893_v48 = vpack.c.bf16 %v3382_v21, %v3381_v14  ;;  %v3384_v13 = vadd.f32 %v7005_v50, %v3251_v8  ;;  %v3121_v27 = vunpack.c.l.bf16 %v3012_v62  ;;  %v3122_v18 = vunpack.c.h.bf16 %v3012_v62  ;;  %v3020_v14 = vld [vmem:[%s6999_s28 + $0x1a8] sm:$0xff] }
 0x2a5   : > { %5040 = vst [vmem:[%s5515_s10 + $0x148] sm:$0xff] %v4888_v22   ;;  %v3253_v28 = vmul.f32 %v6997_v43, %v3120_v0  ;;  %v3385_v10 = vadd.f32 %v7005_v50, %v3252_v39  ;;  %v3123_v58 = vunpack.c.l.bf16 %v3013_v34  ;;  %v3124_v40 = vunpack.c.h.bf16 %v3013_v34 }
 0x2a6   : > { %5041 = vst [vmem:[%s5515_s10 + $0x150] sm:$0xff] %v4893_v48   ;;  %v4898_v51 = vpack.c.bf16 %v3384_v13, %v3383_v16  ;;  %v3254_v49 = vmul.f32 %v6997_v43, %v3121_v27  ;;  %v3255_v55 = vmul.f32 %v6997_v43, %v3122_v18  ;;  %v3125_v24 = vunpack.c.l.bf16 %v3014_v41  ;;  %v3021_v16 = vld [vmem:[%s6999_s28 + $0x1b0] sm:$0xff]  ;;  %v3022_v13 = vld [vmem:[%s6999_s28 + $0x1b8] sm:$0xff] }
 0x2a7   : > { %v3386_v31 = vadd.f32 %v7005_v50, %v3253_v28  ;;  %v3256_v12 = vmul.f32 %v6997_v43, %v3123_v58  ;;  %v3257_v60 = vmul.f32 %v6997_v43, %v3124_v40  ;;  %v3126_v2 = vunpack.c.h.bf16 %v3014_v41 }
 0x2a8   : > { %5042 = vst [vmem:[%s5515_s10 + $0x158] sm:$0xff] %v4898_v51   ;;  %v3387_v33 = vadd.f32 %v7005_v50, %v3254_v49  ;;  %v3388_v42 = vadd.f32 %v7005_v50, %v3255_v55  ;;  %v3258_v38 = vmul.f32 %v6997_v43, %v3125_v24  ;;  %v3127_v46 = vunpack.c.l.bf16 %v3015_v56  ;;  %v3023_v49 = vld [vmem:[%s6999_s28 + $0x1c0] sm:$0xff] }
 0x2a9   : > { %v4903_v54 = vpack.c.bf16 %v3386_v31, %v3385_v10  ;;  %v3389_v3 = vadd.f32 %v7005_v50, %v3256_v12  ;;  %v3390_v5 = vadd.f32 %v7005_v50, %v3257_v60  ;;  %v3259_v30 = vmul.f32 %v6997_v43, %v3126_v2 }
 0x2aa   : > { %v4908_v37 = vpack.c.bf16 %v3388_v42, %v3387_v33  ;;  %v3391_v59 = vadd.f32 %v7005_v50, %v3258_v38  ;;  %v3128_v29 = vunpack.c.h.bf16 %v3015_v56  ;;  %v3260_v26 = vmul.f32 %v6997_v43, %v3127_v46 }
 0x2ab   : > { %5043 = vst [vmem:[%s5515_s10 + $0x160] sm:$0xff] %v4903_v54   ;;  %v4913_v7 = vpack.c.bf16 %v3390_v5, %v3389_v3  ;;  %v3392_v20 = vadd.f32 %v7005_v50, %v3259_v30  ;;  %v3129_v35 = vunpack.c.l.bf16 %v3016_v57  ;;  %v3130_v19 = vunpack.c.h.bf16 %v3016_v57  ;;  %v3024_v3 = vld [vmem:[%s6999_s28 + $0x1c8] sm:$0xff] }
 0x2ac   : > { %5044 = vst [vmem:[%s5515_s10 + $0x168] sm:$0xff] %v4908_v37   ;;  %v3261_v4 = vmul.f32 %v6997_v43, %v3128_v29  ;;  %v3393_v17 = vadd.f32 %v7005_v50, %v3260_v26  ;;  %v3131_v61 = vunpack.c.l.bf16 %v3017_v25  ;;  %v3132_v15 = vunpack.c.h.bf16 %v3017_v25 }
 0x2ad   : > { %5045 = vst [vmem:[%s5515_s10 + $0x170] sm:$0xff] %v4913_v7   ;;  %v4918_v45 = vpack.c.bf16 %v3392_v20, %v3391_v59  ;;  %v3262_v44 = vmul.f32 %v6997_v43, %v3129_v35  ;;  %v3263_v9 = vmul.f32 %v6997_v43, %v3130_v19  ;;  %v3133_v1 = vunpack.c.l.bf16 %v3018_v6  ;;  %v3025_v59 = vld [vmem:[%s6999_s28 + $0x1d0] sm:$0xff]  ;;  %v3026_v20 = vld [vmem:[%s6999_s28 + $0x1d8] sm:$0xff] }
 0x2ae   : > { %v3394_v23 = vadd.f32 %v7005_v50, %v3261_v4  ;;  %v3264_v11 = vmul.f32 %v6997_v43, %v3131_v61  ;;  %v3265_v36 = vmul.f32 %v6997_v43, %v3132_v15  ;;  %v3134_v63 = vunpack.c.h.bf16 %v3018_v6  ;;  %v5395_v61 = vld [vmem:[#allocation4] ss:$0 sm:$0xff] }
 0x2af   : > { %5046 = vst [vmem:[%s5515_s10 + $0x178] sm:$0xff] %v4918_v45   ;;  %v3395_v32 = vadd.f32 %v7005_v50, %v3262_v44  ;;  %v3396_v47 = vadd.f32 %v7005_v50, %v3263_v9  ;;  %v3266_v62 = vmul.f32 %v6997_v43, %v3133_v1  ;;  %v3135_v53 = vunpack.c.l.bf16 %v3019_v52  ;;  %v3027_v9 = vld [vmem:[%s6999_s28 + $0x1e0] sm:$0xff] }
 0x2b0   : > { %v4923_v21 = vpack.c.bf16 %v3394_v23, %v3393_v17  ;;  %v3397_v8 = vadd.f32 %v7005_v50, %v3264_v11  ;;  %v3398_v34 = vadd.f32 %v7005_v50, %v3265_v36  ;;  %v3267_v22 = vmul.f32 %v6997_v43, %v3134_v63  ;;  %v5396_v36 = vld [vmem:[#allocation4 + $0x1] ss:$0 sm:$0xff] }
 0x2b1   : > { %v4928_v0 = vpack.c.bf16 %v3396_v47, %v3395_v32  ;;  %v3399_v39 = vadd.f32 %v7005_v50, %v3266_v62  ;;  %v3136_v41 = vunpack.c.h.bf16 %v3019_v52  ;;  %v3268_v48 = vmul.f32 %v6997_v43, %v3135_v53 }
 0x2b2   : > { %5047 = vst [vmem:[%s5515_s10 + $0x180] sm:$0xff] %v4923_v21   ;;  %v4933_v27 = vpack.c.bf16 %v3398_v34, %v3397_v8  ;;  %v3400_v18 = vadd.f32 %v7005_v50, %v3267_v22  ;;  %v3137_v28 = vunpack.c.l.bf16 %v3020_v14  ;;  %v3138_v10 = vunpack.c.h.bf16 %v3020_v14  ;;  %v3028_v8 = vld [vmem:[%s6999_s28 + $0x1e8] sm:$0xff] }
 0x2b3   : > { %5048 = vst [vmem:[%s5515_s10 + $0x188] sm:$0xff] %v4928_v0   ;;  %v3269_v58 = vmul.f32 %v6997_v43, %v3136_v41  ;;  %v3401_v40 = vadd.f32 %v7005_v50, %v3268_v48  ;;  %v3139_v56 = vunpack.c.l.bf16 %v3021_v16  ;;  %v3140_v51 = vunpack.c.h.bf16 %v3021_v16 }
 0x2b4   : > { %5049 = vst [vmem:[%s5515_s10 + $0x190] sm:$0xff] %v4933_v27   ;;  %v4938_v55 = vpack.c.bf16 %v3400_v18, %v3399_v39  ;;  %v3270_v24 = vmul.f32 %v6997_v43, %v3137_v28  ;;  %v3271_v31 = vmul.f32 %v6997_v43, %v3138_v10  ;;  %v3141_v12 = vunpack.c.l.bf16 %v3022_v13  ;;  %v3029_v39 = vld [vmem:[%s6999_s28 + $0x1f0] sm:$0xff]  ;;  %v3030_v18 = vld [vmem:[%s6999_s28 + $0x1f8] sm:$0xff] }
 0x2b5   : > { %v3402_v60 = vadd.f32 %v7005_v50, %v3269_v58  ;;  %v3272_v2 = vmul.f32 %v6997_v43, %v3139_v56  ;;  %v3273_v33 = vmul.f32 %v6997_v43, %v3140_v51  ;;  %v3142_v42 = vunpack.c.h.bf16 %v3022_v13 }
 0x2b6   : > { %5050 = vst [vmem:[%s5515_s10 + $0x198] sm:$0xff] %v4938_v55   ;;  %v3403_v38 = vadd.f32 %v7005_v50, %v3270_v24  ;;  %v3404_v46 = vadd.f32 %v7005_v50, %v3271_v31  ;;  %v3274_v57 = vmul.f32 %v6997_v43, %v3141_v12  ;;  %v3143_v54 = vunpack.c.l.bf16 %v3023_v49 }
 0x2b7   : > { %v4943_v5 = vpack.c.bf16 %v3402_v60, %v3401_v40  ;;  %v3405_v30 = vadd.f32 %v7005_v50, %v3272_v2  ;;  %v3406_v25 = vadd.f32 %v7005_v50, %v3273_v33  ;;  %v3275_v37 = vmul.f32 %v6997_v43, %v3142_v42 }
 0x2b8   : > { %v4948_v29 = vpack.c.bf16 %v3404_v46, %v3403_v38  ;;  %v3407_v26 = vadd.f32 %v7005_v50, %v3274_v57  ;;  %v3144_v6 = vunpack.c.h.bf16 %v3023_v49  ;;  %v3276_v7 = vmul.f32 %v6997_v43, %v3143_v54 }
 0x2b9   : > { %5051 = vst [vmem:[%s5515_s10 + $0x1a0] sm:$0xff] %v4943_v5   ;;  %v4953_v35 = vpack.c.bf16 %v3406_v25, %v3405_v30  ;;  %v3408_v19 = vadd.f32 %v7005_v50, %v3275_v37  ;;  %v3145_v4 = vunpack.c.l.bf16 %v3024_v3  ;;  %v3146_v17 = vunpack.c.h.bf16 %v3024_v3 }
 0x2ba   : > { %5052 = vst [vmem:[%s5515_s10 + $0x1a8] sm:$0xff] %v4948_v29   ;;  %v3277_v15 = vmul.f32 %v5395_v61, %v3144_v6  ;;  %v3409_v52 = vadd.f32 %v7005_v50, %v3276_v7  ;;  %v3147_v45 = vunpack.c.l.bf16 %v3025_v59  ;;  %v3148_v44 = vunpack.c.h.bf16 %v3025_v59 }
 0x2bb   : > { %5053 = vst [vmem:[%s5515_s10 + $0x1b0] sm:$0xff] %v4953_v35   ;;  %v4958_v1 = vpack.c.bf16 %v3408_v19, %v3407_v26  ;;  %v3278_v43 = vmul.f32 %v5395_v61, %v3145_v4  ;;  %v3279_v23 = vmul.f32 %v5395_v61, %v3146_v17  ;;  %v3149_v11 = vunpack.c.l.bf16 %v3026_v20 }
 0x2bc   : > { %v3410_v63 = vadd.f32 %v5396_v36, %v3277_v15  ;;  %v3280_v32 = vmul.f32 %v5395_v61, %v3147_v45  ;;  %v3281_v47 = vmul.f32 %v5395_v61, %v3148_v44  ;;  %v3150_v62 = vunpack.c.h.bf16 %v3026_v20 }
 0x2bd   : > { %5054 = vst [vmem:[%s5515_s10 + $0x1b8] sm:$0xff] %v4958_v1   ;;  %v3411_v53 = vadd.f32 %v5396_v36, %v3278_v43  ;;  %v3412_v50 = vadd.f32 %v5396_v36, %v3279_v23  ;;  %v3282_v14 = vmul.f32 %v5395_v61, %v3149_v11  ;;  %v3151_v21 = vunpack.c.l.bf16 %v3027_v9 }
 0x2be   : > { %v4963_v34 = vpack.c.bf16 %v3410_v63, %v3409_v52  ;;  %v3413_v22 = vadd.f32 %v5396_v36, %v3280_v32  ;;  %v3414_v16 = vadd.f32 %v5396_v36, %v3281_v47  ;;  %v3283_v0 = vmul.f32 %v5395_v61, %v3150_v62 }
 0x2bf   : > { %v4968_v41 = vpack.c.bf16 %v3412_v50, %v3411_v53  ;;  %v3415_v48 = vadd.f32 %v5396_v36, %v3282_v14  ;;  %v3152_v13 = vunpack.c.h.bf16 %v3027_v9  ;;  %v3284_v27 = vmul.f32 %v5395_v61, %v3151_v21 }
 0x2c0   : > { %5055 = vst [vmem:[%s5515_s10 + $0x1c0] sm:$0xff] %v4963_v34   ;;  %v4973_v28 = vpack.c.bf16 %v3414_v16, %v3413_v22  ;;  %v3416_v10 = vadd.f32 %v5396_v36, %v3283_v0  ;;  %v3153_v58 = vunpack.c.l.bf16 %v3028_v8  ;;  %v3154_v40 = vunpack.c.h.bf16 %v3028_v8 }
 0x2c1   : > { %5056 = vst [vmem:[%s5515_s10 + $0x1c8] sm:$0xff] %v4968_v41   ;;  %v3285_v56 = vmul.f32 %v5395_v61, %v3152_v13  ;;  %v3417_v51 = vadd.f32 %v5396_v36, %v3284_v27  ;;  %v3155_v49 = vunpack.c.l.bf16 %v3029_v39  ;;  %v3156_v55 = vunpack.c.h.bf16 %v3029_v39 }
 0x2c2   : > { %5057 = vst [vmem:[%s5515_s10 + $0x1d0] sm:$0xff] %v4973_v28   ;;  %v4978_v24 = vpack.c.bf16 %v3416_v10, %v3415_v48  ;;  %v3286_v31 = vmul.f32 %v5395_v61, %v3153_v58  ;;  %v3287_v12 = vmul.f32 %v5395_v61, %v3154_v40  ;;  %v3157_v60 = vunpack.c.l.bf16 %v3030_v18 }
 0x2c3   : > { %v3418_v2 = vadd.f32 %v5396_v36, %v3285_v56  ;;  %v3288_v33 = vmul.f32 %v5395_v61, %v3155_v49  ;;  %v3289_v42 = vmul.f32 %v5395_v61, %v3156_v55  ;;  %v3158_v38 = vunpack.c.h.bf16 %v3030_v18 }
 0x2c4   : > { %5058 = vst [vmem:[%s5515_s10 + $0x1d8] sm:$0xff] %v4978_v24   ;;  %v3419_v46 = vadd.f32 %v5396_v36, %v3286_v31  ;;  %v3420_v57 = vadd.f32 %v5396_v36, %v3287_v12  ;;  %v3290_v54 = vmul.f32 %v5395_v61, %v3157_v60 }
 0x2c5   : > { %v4983_v3 = vpack.c.bf16 %v3418_v2, %v3417_v51  ;;  %v3421_v5 = vadd.f32 %v5396_v36, %v3288_v33  ;;  %v3422_v30 = vadd.f32 %v5396_v36, %v3289_v42  ;;  %v3291_v25 = vmul.f32 %v5395_v61, %v3158_v38 }
 0x2c6   : > { %v4988_v37 = vpack.c.bf16 %v3420_v57, %v3419_v46  ;;  %v3423_v59 = vadd.f32 %v5396_v36, %v3290_v54 }
 0x2c7   : > { %5059 = vst [vmem:[%s5515_s10 + $0x1e0] sm:$0xff] %v4983_v3   ;;  %v4993_v29 = vpack.c.bf16 %v3422_v30, %v3421_v5  ;;  %v3424_v26 = vadd.f32 %v5396_v36, %v3291_v25 }
 0x2c8   : > { %5060 = vst [vmem:[%s5515_s10 + $0x1e8] sm:$0xff] %v4988_v37  }
 0x2c9   : > { %5061 = vst [vmem:[%s5515_s10 + $0x1f0] sm:$0xff] %v4993_v29   ;;  %v4998_v6 = vpack.c.bf16 %v3424_v26, %v3423_v59 }
 0x2cb   : > { %5062 = vst [vmem:[%s5515_s10 + $0x1f8] sm:$0xff] %v4998_v6  }
 0x2cc PF: > { %s15_s22 = sadd.s32 1, %s5435_s22   ;;  %s7519_s18 = smov %s5427_s20 }
 0x2cd   : > { %p12_p0 = scmp.ge.s32.totalorder %s15_s22, 6   ;;  %s7520_s19 = smov %s5431_s21 }
 0x2ce   : > { %s7521_s20 = smov %s7524_s23  ;;  %s7522_s21 = smov %s7528_s24 }
 0x2cf   :  { %14 = sbr.rel (!%p12_p0) target bundleno = 3 (0x3), region = 88 }

// kernel: evaluate.7
= control target key start
LH: loop header
LB: loop body
LE: loop exit
PB: predicated region body
PF: predicated region fallthrough
CT: control target
= control target key end

     0   :  { %s3119_s18 = smov 0   ;;  %s3121_s19 = smov 0   ;;  %s3898_s0 = inlined_call_operand.vmem [shape: bf16[512,144], index: 0, kind: input, shape index: {}]   ;;  %s3899_s1 = inlined_call_operand.vmem [shape: bf16[144,128], index: 1, kind: input, shape index: {}]   ;;  %s3900_s2 = inlined_call_operand.vmem [shape: f32[1,128], index: 2, kind: input, shape index: {}]   ;;  %s3901_s3 = inlined_call_operand.vmem [shape: f32[1,128], index: 3, kind: input, shape index: {}]   ;;  %s3902_s4 = inlined_call_operand.vmem [shape: f32[1,128], index: 4, kind: input, shape index: {}]   ;;  %s3903_s5 = inlined_call_operand.vmem [shape: bf16[512,128], index: 5, kind: output, shape index: {}]  }
   0x1   :  { %s3123_s20 = smov 0  }
   0x2 LB: > { %s27_s21 = sadd.s32 1, %s3081_s19  ;;  %p2474_p0 = scmp.ge.s32.totalorder %s3085_s20, 1  ;;  %s3085_s20 = sphi %s3123_s20, %s15_s20   ;;  %s3081_s19 = sphi %s3121_s19, %s3905_s19   ;;  %s3077_s18 = sphi %s3119_s18, %s3904_s18  }
   0x3   : > { %p29_p1 = scmp.ge.s32.totalorder %s27_s21, 2  ;;  %p211_p2 = scmp.lt.s32.totalorder %s3085_s20, 3 }
   0x5   : > { %s3907_s21 = smov (%p29_p1, %s27_s21), 0  ;;  %p212_p3 = pnand %p2474_p0, %p211_p2 }
   0x6   : > { %p263_p4 = scmp.eq.s32.totalorder (!%p212_p3), %s3077_s18, 0 }
   0x7   : > { %215 = sbr.rel (%p212_p3) target bundleno = 576 (0x240), region = 40 }
   0xe   : > { %268 = sbr.rel (!%p263_p4) target bundleno = 21 (0x15), region = 44  ;;  %v3087_v0 = vmov (%p263_p4), 0.0  }
   0xf   : > { %269 = vst [vmem:[#allocation3] sm:$0x3] (%p263_p4), %v3087_v0 }
  0x15 PF: > { %p2476_p5 = scmp.ne.s32.totalorder %s3077_s18, 0 }
  0x16   : > { %v2956_v1 = vld [vmem:[%s3899_s1] sm:$0xff] (!%p2476_p5)   ;;  %v3088_v2 = vmov (!%p2476_p5), 0   ;;  %v2957_v3 = vld [vmem:[%s3899_s1 + $0x8] sm:$0xff] (!%p2476_p5)   ;;  %v2958_v4 = vld [vmem:[%s3899_s1 + $0x10] sm:$0xff] (!%p2476_p5)   ;;  %vm704_vm0 = vcmask (!%p2476_p5), 130048  }
  0x17   : > { %272 = sbr.rel (%p2476_p5) target bundleno = 480 (0x1e0), region = 48  ;;  %801 = vmatprep.subr.bf16.mxu0 (!%p2476_p5), %v3088_v2  ;;  %2912 = vmatprep.subr.bf16.mxu1 (!%p2476_p5), %v3088_v2  ;;  %v2959_v5 = vld [vmem:[%s3899_s1 + $0x18] sm:$0xff] (!%p2476_p5)   ;;  %v2967_v6 = vld [vmem:[%s3898_s0 + $0x4] ss:$8 sps:$4 sm:$0xff] (!%p2476_p5)   ;;  %v2962_v10 = vld [vmem:[%s3899_s1 + $0x30] sm:$0xff] (!%p2476_p5)  }
  0x18   : > { %802 = vmatpush1.bf16.msra.mxu0 (!%p2476_p5), %v2956_v1  ;;  %2921 = vmatpush1.bf16.msra.mxu1 (!%p2476_p5), %v2956_v1  ;;  %v2960_v7 = vld [vmem:[%s3899_s1 + $0x20] sm:$0xff] (!%p2476_p5)   ;;  %v2961_v8 = vld [vmem:[%s3899_s1 + $0x28] sm:$0xff] (!%p2476_p5)   ;;  %v2963_v11 = vld [vmem:[%s3899_s1 + $0x38] sm:$0xff] (!%p2476_p5)  }
  0x19   : > { %803 = vmatprep.subr.bf16.mxu0 (!%p2476_p5), %v3088_v2  ;;  %2913 = vmatprep.subr.bf16.mxu1 (!%p2476_p5), %v3088_v2  ;;  %v2991_v9 = vld [vmem:[%s3898_s0 + $0x104] ss:$8 sps:$4 sm:$0xff] (!%p2476_p5)   ;;  %v2965_v13 = vld [vmem:[%s3898_s0] ss:$8 sps:$4 sm:$0xff] (!%p2476_p5)   ;;  %v2968_v14 = vld [vmem:[%s3898_s0 + $0x14] ss:$8 sps:$4 sm:$0xff] (!%p2476_p5)  }
  0x1a   : > { %2551 = vmatprep.mubr.msk.bf16.mxu0 (!%p2476_p5), %vm704_vm0, %v2967_v6  ;;  %2567 = vmatprep.mubr.msk.bf16.mxu1 (!%p2476_p5), %vm704_vm0, %v2991_v9  ;;  %v2964_v12 = vld [vmem:[%s3899_s1 + $0x40] sm:$0xff] (!%p2476_p5)   ;;  %v2995_v16 = vld [vmem:[%s3898_s0 + $0x114] ss:$8 sps:$4 sm:$0xff] (!%p2476_p5)   ;;  %v2970_v17 = vld [vmem:[%s3898_s0 + $0x10] ss:$8 sps:$4 sm:$0xff] (!%p2476_p5)  }
  0x1b   : > { %v2989_v15 = vld [vmem:[%s3898_s0 + $0x100] ss:$8 sps:$4 sm:$0xff] (!%p2476_p5)   ;;  %v2971_v18 = vld [vmem:[%s3898_s0 + $0x24] ss:$8 sps:$4 sm:$0xff] (!%p2476_p5)   ;;  %v2997_v19 = vld [vmem:[%s3898_s0 + $0x110] ss:$8 sps:$4 sm:$0xff] (!%p2476_p5)  }
  0x1c   : > { %804 = vmatpush1.bf16.msra.mxu0 (!%p2476_p5), %v2957_v3  ;;  %2922 = vmatpush1.bf16.msra.mxu1 (!%p2476_p5), %v2957_v3  ;;  %v3001_v20 = vld [vmem:[%s3898_s0 + $0x124] ss:$8 sps:$4 sm:$0xff] (!%p2476_p5)   ;;  %v2973_v21 = vld [vmem:[%s3898_s0 + $0x20] ss:$8 sps:$4 sm:$0xff] (!%p2476_p5)   ;;  %v2974_v22 = vld [vmem:[%s3898_s0 + $0x34] ss:$8 sps:$4 sm:$0xff] (!%p2476_p5)  }
  0x1d   : > { %805 = vmatprep.subr.bf16.mxu0 (!%p2476_p5), %v3088_v2  ;;  %2914 = vmatprep.subr.bf16.mxu1 (!%p2476_p5), %v3088_v2  ;;  %v3003_v23 = vld [vmem:[%s3898_s0 + $0x120] ss:$8 sps:$4 sm:$0xff] (!%p2476_p5)   ;;  %v3007_v24 = vld [vmem:[%s3898_s0 + $0x134] ss:$8 sps:$4 sm:$0xff] (!%p2476_p5)   ;;  %v2976_v25 = vld [vmem:[%s3898_s0 + $0x30] ss:$8 sps:$4 sm:$0xff] (!%p2476_p5)  }
  0x1e   : > { %v3009_v26 = vld [vmem:[%s3898_s0 + $0x130] ss:$8 sps:$4 sm:$0xff]   ;;  %v2977_v27 = vld [vmem:[%s3898_s0 + $0x44] ss:$8 sps:$4 sm:$0xff]   ;;  %v2979_v29 = vld [vmem:[%s3898_s0 + $0x40] ss:$8 sps:$4 sm:$0xff]  }
  0x1f   : > { %v3013_v28 = vld [vmem:[%s3898_s0 + $0x144] ss:$8 sps:$4 sm:$0xff]   ;;  %v3015_v30 = vld [vmem:[%s3898_s0 + $0x140] ss:$8 sps:$4 sm:$0xff]   ;;  %v2980_v31 = vld [vmem:[%s3898_s0 + $0x54] ss:$8 sps:$4 sm:$0xff]  }
  0x20   : > { %806 = vmatpush1.bf16.msra.mxu0 %v2958_v4  ;;  %2923 = vmatpush1.bf16.msra.mxu1 %v2958_v4  ;;  %v3019_v32 = vld [vmem:[%s3898_s0 + $0x154] ss:$8 sps:$4 sm:$0xff]   ;;  %v2982_v33 = vld [vmem:[%s3898_s0 + $0x50] ss:$8 sps:$4 sm:$0xff]   ;;  %v2983_v35 = vld [vmem:[%s3898_s0 + $0x64] ss:$8 sps:$4 sm:$0xff]  }
  0x21   : > { %807 = vmatprep.subr.bf16.mxu0 %v3088_v2  ;;  %2915 = vmatprep.subr.bf16.mxu1 %v3088_v2  ;;  %v3021_v34 = vld [vmem:[%s3898_s0 + $0x150] ss:$8 sps:$4 sm:$0xff]   ;;  %v3025_v36 = vld [vmem:[%s3898_s0 + $0x164] ss:$8 sps:$4 sm:$0xff]   ;;  %v2985_v37 = vld [vmem:[%s3898_s0 + $0x60] ss:$8 sps:$4 sm:$0xff]  }
  0x22   : > { %v3027_v38 = vld [vmem:[%s3898_s0 + $0x160] ss:$8 sps:$4 sm:$0xff]   ;;  %v2986_v39 = vld [vmem:[%s3898_s0 + $0x74] ss:$8 sps:$4 sm:$0xff]   ;;  %v2988_v41 = vld [vmem:[%s3898_s0 + $0x70] ss:$8 sps:$4 sm:$0xff]  }
  0x23   : > { %v3031_v40 = vld [vmem:[%s3898_s0 + $0x174] ss:$8 sps:$4 sm:$0xff]   ;;  %v3033_v42 = vld [vmem:[%s3898_s0 + $0x170] ss:$8 sps:$4 sm:$0xff]   ;;  %v2992_v43 = vld [vmem:[%s3898_s0 + $0x84] ss:$8 sps:$4 sm:$0xff]  }
  0x24   : > { %808 = vmatpush1.bf16.msra.mxu0 %v2959_v5  ;;  %2924 = vmatpush1.bf16.msra.mxu1 %v2959_v5  ;;  %v3037_v44 = vld [vmem:[%s3898_s0 + $0x184] ss:$8 sps:$4 sm:$0xff]   ;;  %v2994_v45 = vld [vmem:[%s3898_s0 + $0x80] ss:$8 sps:$4 sm:$0xff]   ;;  %v2998_v47 = vld [vmem:[%s3898_s0 + $0x94] ss:$8 sps:$4 sm:$0xff]  }
  0x25   : > { %809 = vmatprep.subr.bf16.mxu0 %v3088_v2  ;;  %2916 = vmatprep.subr.bf16.mxu1 %v3088_v2  ;;  %v3039_v46 = vld [vmem:[%s3898_s0 + $0x180] ss:$8 sps:$4 sm:$0xff]   ;;  %v3040_v48 = vld [vmem:[%s3898_s0 + $0x194] ss:$8 sps:$4 sm:$0xff]   ;;  %v3000_v49 = vld [vmem:[%s3898_s0 + $0x90] ss:$8 sps:$4 sm:$0xff]  }
  0x26   : > { %v3042_v50 = vld [vmem:[%s3898_s0 + $0x190] ss:$8 sps:$4 sm:$0xff]   ;;  %v3004_v51 = vld [vmem:[%s3898_s0 + $0xa4] ss:$8 sps:$4 sm:$0xff]   ;;  %v3006_v53 = vld [vmem:[%s3898_s0 + $0xa0] ss:$8 sps:$4 sm:$0xff]  }
  0x27   : > { %v3043_v52 = vld [vmem:[%s3898_s0 + $0x1a4] ss:$8 sps:$4 sm:$0xff]   ;;  %v3045_v54 = vld [vmem:[%s3898_s0 + $0x1a0] ss:$8 sps:$4 sm:$0xff]   ;;  %v3010_v55 = vld [vmem:[%s3898_s0 + $0xb4] ss:$8 sps:$4 sm:$0xff]  }
  0x28   : > { %810 = vmatpush1.bf16.msra.mxu0 %v2960_v7  ;;  %2925 = vmatpush1.bf16.msra.mxu1 %v2960_v7  ;;  %v3046_v56 = vld [vmem:[%s3898_s0 + $0x1b4] ss:$8 sps:$4 sm:$0xff]   ;;  %v3012_v57 = vld [vmem:[%s3898_s0 + $0xb0] ss:$8 sps:$4 sm:$0xff]   ;;  %v3016_v59 = vld [vmem:[%s3898_s0 + $0xc4] ss:$8 sps:$4 sm:$0xff]  }
  0x29   : > { %811 = vmatprep.subr.bf16.mxu0 %v3088_v2  ;;  %2917 = vmatprep.subr.bf16.mxu1 %v3088_v2  ;;  %v3048_v58 = vld [vmem:[%s3898_s0 + $0x1b0] ss:$8 sps:$4 sm:$0xff]   ;;  %v3049_v60 = vld [vmem:[%s3898_s0 + $0x1c4] ss:$8 sps:$4 sm:$0xff]   ;;  %v3018_v61 = vld [vmem:[%s3898_s0 + $0xc0] ss:$8 sps:$4 sm:$0xff]  }
  0x2a   : > { %v3051_v62 = vld [vmem:[%s3898_s0 + $0x1c0] ss:$8 sps:$4 sm:$0xff]   ;;  %v3022_v63 = vld [vmem:[%s3898_s0 + $0xd4] ss:$8 sps:$4 sm:$0xff]   ;;  %v3024_v1 = vld [vmem:[%s3898_s0 + $0xd0] ss:$8 sps:$4 sm:$0xff]  }
  0x2b   : > { %v3052_v0 = vld [vmem:[%s3898_s0 + $0x1d4] ss:$8 sps:$4 sm:$0xff]   ;;  %v3028_v3 = vld [vmem:[%s3898_s0 + $0xe4] ss:$8 sps:$4 sm:$0xff]   ;;  %v3030_v5 = vld [vmem:[%s3898_s0 + $0xe0] ss:$8 sps:$4 sm:$0xff]  }
  0x2c   : > { %812 = vmatpush1.bf16.msra.mxu0 %v2961_v8  ;;  %2926 = vmatpush1.bf16.msra.mxu1 %v2961_v8  ;;  %v3055_v4 = vld [vmem:[%s3898_s0 + $0x1e4] ss:$8 sps:$4 sm:$0xff]   ;;  %v3057_v6 = vld [vmem:[%s3898_s0 + $0x1e0] ss:$8 sps:$4 sm:$0xff]   ;;  %v3034_v7 = vld [vmem:[%s3898_s0 + $0xf4] ss:$8 sps:$4 sm:$0xff]  }
  0x2d   : > { %813 = vmatprep.subr.bf16.mxu0 %v3088_v2  ;;  %2918 = vmatprep.subr.bf16.mxu1 %v3088_v2  ;;  %v3058_v8 = vld [vmem:[%s3898_s0 + $0x1f4] ss:$8 sps:$4 sm:$0xff]   ;;  %v3036_v9 = vld [vmem:[%s3898_s0 + $0xf0] ss:$8 sps:$4 sm:$0xff]  }
  0x30   : > { %814 = vmatpush1.bf16.msra.mxu0 %v2962_v10  ;;  %2927 = vmatpush1.bf16.msra.mxu1 %v2962_v10  ;;  %v3060_v10 = vld [vmem:[%s3898_s0 + $0x1f0] ss:$8 sps:$4 sm:$0xff]  }
  0x31   : > { %815 = vmatprep.subr.bf16.mxu0 %v3088_v2  ;;  %2919 = vmatprep.subr.bf16.mxu1 %v3088_v2 }
  0x34   : > { %816 = vmatpush1.bf16.msra.mxu0 %v2963_v11  ;;  %2928 = vmatpush1.bf16.msra.mxu1 %v2963_v11  ;;  %v3395_v11 = vld [vmem:[%s3900_s2] ss:$0 sm:$0xff] }
  0x35   : > { %817 = vmatprep.subr.bf16.mxu0 %v3088_v2  ;;  %2920 = vmatprep.subr.bf16.mxu1 %v3088_v2  ;;  %v3054_v2 = vld [vmem:[%s3898_s0 + $0x1d0] ss:$8 sps:$4 sm:$0xff]  }
  0x38   : > { %818 = vmatpush1.bf16.msra.mxu0 %v2964_v12  ;;  %2929 = vmatpush1.bf16.msra.mxu1 %v2964_v12 }
  0x3b   : > { %834 = vmatmul.mubr.bf16.vlgmr.msra.gmra.mrb[0].mxu0 %v2965_v13  ;;  %962 = vmatmul.mubr.bf16.vlgmr.msra.gmra.mrb[0].mxu1 %v2989_v15 }
  0x3c   : > { %2552 = vmatprep.mubr.msk.bf16.mxu0 %vm704_vm0, %v2968_v14  ;;  %2568 = vmatprep.mubr.msk.bf16.mxu1 %vm704_vm0, %v2995_v16 }
  0x43   : > { %842 = vmatmul.mubr.bf16.gmra.mrb[4].mxu0 %v2970_v17  ;;  %970 = vmatmul.mubr.bf16.gmra.mrb[4].mxu1 %v2997_v19 }
  0x44   : > { %2553 = vmatprep.mubr.msk.bf16.mxu0 %vm704_vm0, %v2971_v18  ;;  %2569 = vmatprep.mubr.msk.bf16.mxu1 %vm704_vm0, %v3001_v20 }
  0x4b   : > { %850 = vmatmul.mubr.bf16.gmra.mrb[8].mxu0 %v2973_v21  ;;  %978 = vmatmul.mubr.bf16.gmra.mrb[8].mxu1 %v3003_v23 }
  0x4c   : > { %2554 = vmatprep.mubr.msk.bf16.mxu0 %vm704_vm0, %v2974_v22  ;;  %2570 = vmatprep.mubr.msk.bf16.mxu1 %vm704_vm0, %v3007_v24 }
  0x53   : > { %858 = vmatmul.mubr.bf16.gmra.mrb[12].mxu0 %v2976_v25  ;;  %986 = vmatmul.mubr.bf16.gmra.mrb[12].mxu1 %v3009_v26 }
  0x54   : > { %2555 = vmatprep.mubr.msk.bf16.mxu0 %vm704_vm0, %v2977_v27  ;;  %2571 = vmatprep.mubr.msk.bf16.mxu1 %vm704_vm0, %v3013_v28 }
  0x5b   : > { %866 = vmatmul.mubr.bf16.gmra.mrb[16].mxu0 %v2979_v29  ;;  %994 = vmatmul.mubr.bf16.gmra.mrb[16].mxu1 %v3015_v30 }
  0x5c   : > { %2556 = vmatprep.mubr.msk.bf16.mxu0 %vm704_vm0, %v2980_v31  ;;  %2572 = vmatprep.mubr.msk.bf16.mxu1 %vm704_vm0, %v3019_v32 }
  0x63   : > { %874 = vmatmul.mubr.bf16.gmra.mrb[20].mxu0 %v2982_v33  ;;  %1002 = vmatmul.mubr.bf16.gmra.mrb[20].mxu1 %v3021_v34 }
  0x64   : > { %2557 = vmatprep.mubr.msk.bf16.mxu0 %vm704_vm0, %v2983_v35  ;;  %2573 = vmatprep.mubr.msk.bf16.mxu1 %vm704_vm0, %v3025_v36 }
  0x6b   : > { %882 = vmatmul.mubr.bf16.gmra.mrb[24].mxu0 %v2985_v37  ;;  %1010 = vmatmul.mubr.bf16.gmra.mrb[24].mxu1 %v3027_v38 }
  0x6c   : > { %2558 = vmatprep.mubr.msk.bf16.mxu0 %vm704_vm0, %v2986_v39  ;;  %2574 = vmatprep.mubr.msk.bf16.mxu1 %vm704_vm0, %v3031_v40 }
  0x73   : > { %890 = vmatmul.mubr.bf16.gmra.mrb[28].mxu0 %v2988_v41  ;;  %1018 = vmatmul.mubr.bf16.gmra.mrb[28].mxu1 %v3033_v42 }
  0x74   : > { %2559 = vmatprep.mubr.msk.bf16.mxu0 %vm704_vm0, %v2992_v43  ;;  %2575 = vmatprep.mubr.msk.bf16.mxu1 %vm704_vm0, %v3037_v44 }
  0x7b   : > { %898 = vmatmul.mubr.bf16.gmra.mrb[32].mxu0 %v2994_v45  ;;  %1026 = vmatmul.mubr.bf16.gmra.mrb[32].mxu1 %v3039_v46 }
  0x7c   : > { %2560 = vmatprep.mubr.msk.bf16.mxu0 %vm704_vm0, %v2998_v47  ;;  %2576 = vmatprep.mubr.msk.bf16.mxu1 %vm704_vm0, %v3040_v48 }
  0x83   : > { %906 = vmatmul.mubr.bf16.gmra.mrb[36].mxu0 %v3000_v49  ;;  %1034 = vmatmul.mubr.bf16.gmra.mrb[36].mxu1 %v3042_v50 }
  0x84   : > { %2561 = vmatprep.mubr.msk.bf16.mxu0 %vm704_vm0, %v3004_v51  ;;  %2577 = vmatprep.mubr.msk.bf16.mxu1 %vm704_vm0, %v3043_v52 }
  0x8b   : > { %914 = vmatmul.mubr.bf16.gmra.mrb[40].mxu0 %v3006_v53  ;;  %1042 = vmatmul.mubr.bf16.gmra.mrb[40].mxu1 %v3045_v54 }
  0x8c   : > { %2562 = vmatprep.mubr.msk.bf16.mxu0 %vm704_vm0, %v3010_v55  ;;  %2578 = vmatprep.mubr.msk.bf16.mxu1 %vm704_vm0, %v3046_v56 }
  0x93   : > { %922 = vmatmul.mubr.bf16.gmra.mrb[44].mxu0 %v3012_v57  ;;  %1050 = vmatmul.mubr.bf16.gmra.mrb[44].mxu1 %v3048_v58 }
  0x94   : > { %2563 = vmatprep.mubr.msk.bf16.mxu0 %vm704_vm0, %v3016_v59  ;;  %2579 = vmatprep.mubr.msk.bf16.mxu1 %vm704_vm0, %v3049_v60 }
  0x9b   : > { %930 = vmatmul.mubr.bf16.gmra.mrb[48].mxu0 %v3018_v61  ;;  %1058 = vmatmul.mubr.bf16.gmra.mrb[48].mxu1 %v3051_v62 }
  0x9c   : > { %2564 = vmatprep.mubr.msk.bf16.mxu0 %vm704_vm0, %v3022_v63  ;;  %2580 = vmatprep.mubr.msk.bf16.mxu1 %vm704_vm0, %v3052_v0 }
  0xa3   : > { %938 = vmatmul.mubr.bf16.gmra.mrb[52].mxu0 %v3024_v1  ;;  %1066 = vmatmul.mubr.bf16.gmra.mrb[52].mxu1 %v3054_v2 }
  0xa4   : > { %2565 = vmatprep.mubr.msk.bf16.mxu0 %vm704_vm0, %v3028_v3  ;;  %2581 = vmatprep.mubr.msk.bf16.mxu1 %vm704_vm0, %v3055_v4 }
  0xab   : > { %946 = vmatmul.mubr.bf16.gmra.mrb[56].mxu0 %v3030_v5  ;;  %1074 = vmatmul.mubr.bf16.gmra.mrb[56].mxu1 %v3057_v6 }
  0xac   : > { %2566 = vmatprep.mubr.msk.bf16.mxu0 %vm704_vm0, %v3034_v7  ;;  %2582 = vmatprep.mubr.msk.bf16.mxu1 %vm704_vm0, %v3058_v8 }
  0xb3   : > { %954 = vmatmul.mubr.bf16.gmra.mrb[60].mxu0 %v3036_v9  ;;  %1082 = vmatmul.mubr.bf16.gmra.mrb[60].mxu1 %v3060_v10 }
 0x10e   : > { %v835_v12 = vpop.f32.mrb[0].mxu0  ;;  %v963_v13 = vpop.f32.mrb[0].mxu1 }
 0x10f   : > { %v836_v14 = vadd.f32 %v3395_v11, %v835_v12  ;;  %v837_v15 = vpop.f32.mrb[1].mxu0  ;;  %v964_v16 = vadd.f32 %v3395_v11, %v963_v13  ;;  %v965_v17 = vpop.f32.mrb[1].mxu1 }
 0x110   : > { %v838_v18 = vpop.f32.mrb[2].mxu0  ;;  %v966_v19 = vpop.f32.mrb[2].mxu1 }
 0x111   : > { %v1090_v20 = vmax.f32 %v836_v14, 0.0  ;;  %v839_v21 = vadd.f32 %v3395_v11, %v838_v18  ;;  %v840_v22 = vpop.f32.mrb[3].mxu0  ;;  %v3400_v23 = vmax.f32 %v964_v16, 0.0  ;;  %v967_v24 = vadd.f32 %v3395_v11, %v966_v19  ;;  %v968_v25 = vpop.f32.mrb[3].mxu1 }
 0x113   : > { %v1091_v26 = vmax.f32 %v839_v21, 0.0  ;;  %v3403_v27 = vmax.f32 %v967_v24, 0.0  ;;  %v1681_v28 = vmul.f32 %v1090_v20, %v1090_v20 }
 0x115   : > { %v1154_v29 = vpack.c.bf16 %v1091_v26, %v1090_v20  ;;  %v1609_v30 = vadd.f32 %v1091_v26, %v1090_v20  ;;  %v1682_v31 = vmul.f32 %v1091_v26, %v1091_v26  ;;  %v1170_v32 = vpack.c.bf16 %v3403_v27, %v3400_v23 }
 0x116   : > { %v843_v33 = vpop.f32.mrb[4].mxu0  ;;  %v971_v34 = vpop.f32.mrb[4].mxu1 }
 0x117   : > { %1189 = vst [vmem:[#allocation2] sm:$0xff] %v1154_v29  ;;  %v1745_v35 = vadd.f32 %v1682_v31, %v1681_v28  ;;  %v844_v36 = vadd.f32 %v3395_v11, %v843_v33  ;;  %v845_v37 = vpop.f32.mrb[5].mxu0  ;;  %1205 = vst [vmem:[#allocation2 + $0x80] sm:$0xff] %v1170_v32  ;;  %v972_v38 = vadd.f32 %v3395_v11, %v971_v34  ;;  %v973_v39 = vpop.f32.mrb[5].mxu1 }
 0x118   : > { %v846_v40 = vpop.f32.mrb[6].mxu0  ;;  %v974_v41 = vpop.f32.mrb[6].mxu1 }
 0x119   : > { %v1092_v42 = vmax.f32 %v844_v36, 0.0  ;;  %v847_v43 = vadd.f32 %v3395_v11, %v846_v40  ;;  %v848_v44 = vpop.f32.mrb[7].mxu0  ;;  %v975_v45 = vadd.f32 %v3395_v11, %v974_v41  ;;  %v976_v46 = vpop.f32.mrb[7].mxu1  ;;  %v3411_v47 = vmax.f32 %v972_v38, 0.0 }
 0x11b   : > { %v1610_v48 = vadd.f32 %v1609_v30, %v1092_v42  ;;  %v1683_v49 = vmul.f32 %v1092_v42, %v1092_v42  ;;  %v1093_v50 = vmax.f32 %v847_v43, 0.0  ;;  %v3413_v51 = vmax.f32 %v975_v45, 0.0 }
 0x11d   : > { %v1746_v52 = vadd.f32 %v1745_v35, %v1683_v49  ;;  %v1155_v53 = vpack.c.bf16 %v1093_v50, %v1092_v42  ;;  %v1611_v54 = vadd.f32 %v1610_v48, %v1093_v50  ;;  %v1684_v55 = vmul.f32 %v1093_v50, %v1093_v50 }
 0x11e   : > { %v851_v56 = vpop.f32.mrb[8].mxu0  ;;  %v1171_v57 = vpack.c.bf16 %v3413_v51, %v3411_v47  ;;  %v979_v58 = vpop.f32.mrb[8].mxu1 }
 0x11f   : > { %1190 = vst [vmem:[#allocation2 + $0x8] sm:$0xff] %v1155_v53  ;;  %v1747_v59 = vadd.f32 %v1746_v52, %v1684_v55  ;;  %v852_v60 = vadd.f32 %v3395_v11, %v851_v56  ;;  %v853_v61 = vpop.f32.mrb[9].mxu0  ;;  %v980_v62 = vadd.f32 %v3395_v11, %v979_v58  ;;  %v981_v63 = vpop.f32.mrb[9].mxu1 }
 0x120   : > { %v854_v0 = vpop.f32.mrb[10].mxu0  ;;  %1206 = vst [vmem:[#allocation2 + $0x88] sm:$0xff] %v1171_v57  ;;  %v982_v1 = vpop.f32.mrb[10].mxu1 }
 0x121   : > { %v1094_v2 = vmax.f32 %v852_v60, 0.0  ;;  %v855_v3 = vadd.f32 %v3395_v11, %v854_v0  ;;  %v856_v4 = vpop.f32.mrb[11].mxu0  ;;  %v983_v5 = vadd.f32 %v3395_v11, %v982_v1  ;;  %v984_v6 = vpop.f32.mrb[11].mxu1  ;;  %v3421_v7 = vmax.f32 %v980_v62, 0.0 }
 0x123   : > { %v1612_v8 = vadd.f32 %v1611_v54, %v1094_v2  ;;  %v1685_v9 = vmul.f32 %v1094_v2, %v1094_v2  ;;  %v1095_v10 = vmax.f32 %v855_v3, 0.0  ;;  %v3423_v12 = vmax.f32 %v983_v5, 0.0 }
 0x125   : > { %v1748_v13 = vadd.f32 %v1747_v59, %v1685_v9  ;;  %v1156_v14 = vpack.c.bf16 %v1095_v10, %v1094_v2  ;;  %v1613_v15 = vadd.f32 %v1612_v8, %v1095_v10  ;;  %v1686_v16 = vmul.f32 %v1095_v10, %v1095_v10 }
 0x126   : > { %v859_v17 = vpop.f32.mrb[12].mxu0  ;;  %v1172_v18 = vpack.c.bf16 %v3423_v12, %v3421_v7  ;;  %v987_v19 = vpop.f32.mrb[12].mxu1 }
 0x127   : > { %1191 = vst [vmem:[#allocation2 + $0x10] sm:$0xff] %v1156_v14  ;;  %v1749_v20 = vadd.f32 %v1748_v13, %v1686_v16  ;;  %v860_v21 = vadd.f32 %v3395_v11, %v859_v17  ;;  %v861_v22 = vpop.f32.mrb[13].mxu0  ;;  %v988_v24 = vadd.f32 %v3395_v11, %v987_v19  ;;  %v989_v25 = vpop.f32.mrb[13].mxu1 }
 0x128   : > { %v862_v26 = vpop.f32.mrb[14].mxu0  ;;  %1207 = vst [vmem:[#allocation2 + $0x90] sm:$0xff] %v1172_v18  ;;  %v990_v28 = vpop.f32.mrb[14].mxu1 }
 0x129   : > { %v1096_v29 = vmax.f32 %v860_v21, 0.0  ;;  %v863_v30 = vadd.f32 %v3395_v11, %v862_v26  ;;  %v864_v31 = vpop.f32.mrb[15].mxu0  ;;  %v991_v32 = vadd.f32 %v3395_v11, %v990_v28  ;;  %v992_v33 = vpop.f32.mrb[15].mxu1  ;;  %v3431_v34 = vmax.f32 %v988_v24, 0.0 }
 0x12b   : > { %v1614_v35 = vadd.f32 %v1613_v15, %v1096_v29  ;;  %v1687_v36 = vmul.f32 %v1096_v29, %v1096_v29  ;;  %v1097_v37 = vmax.f32 %v863_v30, 0.0  ;;  %v3433_v38 = vmax.f32 %v991_v32, 0.0 }
 0x12d   : > { %v1750_v39 = vadd.f32 %v1749_v20, %v1687_v36  ;;  %v1157_v40 = vpack.c.bf16 %v1097_v37, %v1096_v29  ;;  %v1615_v41 = vadd.f32 %v1614_v35, %v1097_v37  ;;  %v1688_v42 = vmul.f32 %v1097_v37, %v1097_v37 }
 0x12e   : > { %v867_v43 = vpop.f32.mrb[16].mxu0  ;;  %v1173_v44 = vpack.c.bf16 %v3433_v38, %v3431_v34  ;;  %v995_v45 = vpop.f32.mrb[16].mxu1 }
 0x12f   : > { %1192 = vst [vmem:[#allocation2 + $0x18] sm:$0xff] %v1157_v40  ;;  %v1751_v46 = vadd.f32 %v1750_v39, %v1688_v42  ;;  %v868_v48 = vadd.f32 %v3395_v11, %v867_v43  ;;  %v869_v49 = vpop.f32.mrb[17].mxu0  ;;  %v996_v50 = vadd.f32 %v3395_v11, %v995_v45  ;;  %v997_v52 = vpop.f32.mrb[17].mxu1 }
 0x130   : > { %v870_v53 = vpop.f32.mrb[18].mxu0  ;;  %1208 = vst [vmem:[#allocation2 + $0x98] sm:$0xff] %v1173_v44  ;;  %v998_v54 = vpop.f32.mrb[18].mxu1 }
 0x131   : > { %v1098_v55 = vmax.f32 %v868_v48, 0.0  ;;  %v871_v56 = vadd.f32 %v3395_v11, %v870_v53  ;;  %v872_v57 = vpop.f32.mrb[19].mxu0  ;;  %v999_v58 = vadd.f32 %v3395_v11, %v998_v54  ;;  %v1000_v59 = vpop.f32.mrb[19].mxu1  ;;  %v3441_v60 = vmax.f32 %v996_v50, 0.0 }
 0x133   : > { %v1616_v61 = vadd.f32 %v1615_v41, %v1098_v55  ;;  %v1689_v62 = vmul.f32 %v1098_v55, %v1098_v55  ;;  %v1099_v63 = vmax.f32 %v871_v56, 0.0  ;;  %v3443_v0 = vmax.f32 %v999_v58, 0.0 }
 0x135   : > { %v1752_v1 = vadd.f32 %v1751_v46, %v1689_v62  ;;  %v1158_v2 = vpack.c.bf16 %v1099_v63, %v1098_v55  ;;  %v1617_v3 = vadd.f32 %v1616_v61, %v1099_v63  ;;  %v1690_v4 = vmul.f32 %v1099_v63, %v1099_v63 }
 0x136   : > { %v875_v5 = vpop.f32.mrb[20].mxu0  ;;  %v1174_v6 = vpack.c.bf16 %v3443_v0, %v3441_v60  ;;  %v1003_v8 = vpop.f32.mrb[20].mxu1 }
 0x137   : > { %1193 = vst [vmem:[#allocation2 + $0x20] sm:$0xff] %v1158_v2  ;;  %v1753_v9 = vadd.f32 %v1752_v1, %v1690_v4  ;;  %v876_v10 = vadd.f32 %v3395_v11, %v875_v5  ;;  %v877_v13 = vpop.f32.mrb[21].mxu0  ;;  %v1004_v14 = vadd.f32 %v3395_v11, %v1003_v8  ;;  %v1005_v15 = vpop.f32.mrb[21].mxu1 }
 0x138   : > { %v878_v16 = vpop.f32.mrb[22].mxu0  ;;  %1209 = vst [vmem:[#allocation2 + $0xa0] sm:$0xff] %v1174_v6  ;;  %v1006_v17 = vpop.f32.mrb[22].mxu1 }
 0x139   : > { %v1100_v18 = vmax.f32 %v876_v10, 0.0  ;;  %v879_v19 = vadd.f32 %v3395_v11, %v878_v16  ;;  %v880_v20 = vpop.f32.mrb[23].mxu0  ;;  %v1007_v21 = vadd.f32 %v3395_v11, %v1006_v17  ;;  %v1008_v22 = vpop.f32.mrb[23].mxu1  ;;  %v3451_v24 = vmax.f32 %v1004_v14, 0.0 }
 0x13b   : > { %v1618_v25 = vadd.f32 %v1617_v3, %v1100_v18  ;;  %v1691_v26 = vmul.f32 %v1100_v18, %v1100_v18  ;;  %v1101_v28 = vmax.f32 %v879_v19, 0.0  ;;  %v3453_v29 = vmax.f32 %v1007_v21, 0.0 }
 0x13d   : > { %v1754_v30 = vadd.f32 %v1753_v9, %v1691_v26  ;;  %v1159_v31 = vpack.c.bf16 %v1101_v28, %v1100_v18  ;;  %v1619_v32 = vadd.f32 %v1618_v25, %v1101_v28  ;;  %v1692_v33 = vmul.f32 %v1101_v28, %v1101_v28 }
 0x13e   : > { %v883_v35 = vpop.f32.mrb[24].mxu0  ;;  %v1175_v36 = vpack.c.bf16 %v3453_v29, %v3451_v24  ;;  %v1011_v37 = vpop.f32.mrb[24].mxu1 }
 0x13f   : > { %1194 = vst [vmem:[#allocation2 + $0x28] sm:$0xff] %v1159_v31  ;;  %v1755_v39 = vadd.f32 %v1754_v30, %v1692_v33  ;;  %v884_v40 = vadd.f32 %v3395_v11, %v883_v35  ;;  %v885_v41 = vpop.f32.mrb[25].mxu0  ;;  %v1012_v42 = vadd.f32 %v3395_v11, %v1011_v37  ;;  %v1013_v43 = vpop.f32.mrb[25].mxu1 }
 0x140   : > { %v886_v44 = vpop.f32.mrb[26].mxu0  ;;  %1210 = vst [vmem:[#allocation2 + $0xa8] sm:$0xff] %v1175_v36  ;;  %v1014_v45 = vpop.f32.mrb[26].mxu1 }
 0x141   : > { %v1102_v46 = vmax.f32 %v884_v40, 0.0  ;;  %v887_v48 = vadd.f32 %v3395_v11, %v886_v44  ;;  %v888_v49 = vpop.f32.mrb[27].mxu0  ;;  %v1015_v50 = vadd.f32 %v3395_v11, %v1014_v45  ;;  %v1016_v52 = vpop.f32.mrb[27].mxu1  ;;  %v3461_v53 = vmax.f32 %v1012_v42, 0.0 }
 0x143   : > { %v1620_v54 = vadd.f32 %v1619_v32, %v1102_v46  ;;  %v1693_v55 = vmul.f32 %v1102_v46, %v1102_v46  ;;  %v1103_v56 = vmax.f32 %v887_v48, 0.0  ;;  %v3463_v57 = vmax.f32 %v1015_v50, 0.0 }
 0x145   : > { %v1756_v58 = vadd.f32 %v1755_v39, %v1693_v55  ;;  %v1160_v59 = vpack.c.bf16 %v1103_v56, %v1102_v46  ;;  %v1621_v61 = vadd.f32 %v1620_v54, %v1103_v56  ;;  %v1694_v62 = vmul.f32 %v1103_v56, %v1103_v56 }
 0x146   : > { %v891_v63 = vpop.f32.mrb[28].mxu0  ;;  %v1176_v1 = vpack.c.bf16 %v3463_v57, %v3461_v53  ;;  %v1019_v2 = vpop.f32.mrb[28].mxu1 }
 0x147   : > { %1195 = vst [vmem:[#allocation2 + $0x30] sm:$0xff] %v1160_v59  ;;  %v1757_v3 = vadd.f32 %v1756_v58, %v1694_v62  ;;  %v892_v4 = vadd.f32 %v3395_v11, %v891_v63  ;;  %v893_v5 = vpop.f32.mrb[29].mxu0  ;;  %v1020_v6 = vadd.f32 %v3395_v11, %v1019_v2  ;;  %v1021_v8 = vpop.f32.mrb[29].mxu1 }
 0x148   : > { %v894_v9 = vpop.f32.mrb[30].mxu0  ;;  %1211 = vst [vmem:[#allocation2 + $0xb0] sm:$0xff] %v1176_v1  ;;  %v1022_v10 = vpop.f32.mrb[30].mxu1 }
 0x149   : > { %v1104_v13 = vmax.f32 %v892_v4, 0.0  ;;  %v895_v14 = vadd.f32 %v3395_v11, %v894_v9  ;;  %v896_v15 = vpop.f32.mrb[31].mxu0  ;;  %v1023_v16 = vadd.f32 %v3395_v11, %v1022_v10  ;;  %v1024_v17 = vpop.f32.mrb[31].mxu1  ;;  %v3471_v18 = vmax.f32 %v1020_v6, 0.0 }
 0x14b   : > { %v1622_v19 = vadd.f32 %v1621_v61, %v1104_v13  ;;  %v1695_v20 = vmul.f32 %v1104_v13, %v1104_v13  ;;  %v1105_v21 = vmax.f32 %v895_v14, 0.0  ;;  %v3473_v22 = vmax.f32 %v1023_v16, 0.0 }
 0x14d   : > { %v1758_v25 = vadd.f32 %v1757_v3, %v1695_v20  ;;  %v1161_v26 = vpack.c.bf16 %v1105_v21, %v1104_v13  ;;  %v1623_v28 = vadd.f32 %v1622_v19, %v1105_v21  ;;  %v1696_v30 = vmul.f32 %v1105_v21, %v1105_v21 }
 0x14e   : > { %v899_v31 = vpop.f32.mrb[32].mxu0  ;;  %v1177_v32 = vpack.c.bf16 %v3473_v22, %v3471_v18  ;;  %v1027_v33 = vpop.f32.mrb[32].mxu1 }
 0x14f   : > { %1196 = vst [vmem:[#allocation2 + $0x38] sm:$0xff] %v1161_v26  ;;  %v1759_v35 = vadd.f32 %v1758_v25, %v1696_v30  ;;  %v900_v36 = vadd.f32 %v3395_v11, %v899_v31  ;;  %v901_v37 = vpop.f32.mrb[33].mxu0  ;;  %v1028_v39 = vadd.f32 %v3395_v11, %v1027_v33  ;;  %v1029_v40 = vpop.f32.mrb[33].mxu1 }
 0x150   : > { %v902_v41 = vpop.f32.mrb[34].mxu0  ;;  %1212 = vst [vmem:[#allocation2 + $0xb8] sm:$0xff] %v1177_v32  ;;  %v1030_v42 = vpop.f32.mrb[34].mxu1 }
 0x151   : > { %v1106_v43 = vmax.f32 %v900_v36, 0.0  ;;  %v903_v44 = vadd.f32 %v3395_v11, %v902_v41  ;;  %v904_v45 = vpop.f32.mrb[35].mxu0  ;;  %v1031_v46 = vadd.f32 %v3395_v11, %v1030_v42  ;;  %v1032_v48 = vpop.f32.mrb[35].mxu1  ;;  %v3481_v49 = vmax.f32 %v1028_v39, 0.0 }
 0x153   : > { %v1624_v50 = vadd.f32 %v1623_v28, %v1106_v43  ;;  %v1697_v52 = vmul.f32 %v1106_v43, %v1106_v43  ;;  %v1107_v54 = vmax.f32 %v903_v44, 0.0  ;;  %v3483_v55 = vmax.f32 %v1031_v46, 0.0 }
 0x155   : > { %v1760_v56 = vadd.f32 %v1759_v35, %v1697_v52  ;;  %v1162_v58 = vpack.c.bf16 %v1107_v54, %v1106_v43  ;;  %v1625_v59 = vadd.f32 %v1624_v50, %v1107_v54  ;;  %v1698_v61 = vmul.f32 %v1107_v54, %v1107_v54 }
 0x156   : > { %v907_v62 = vpop.f32.mrb[36].mxu0  ;;  %v1178_v63 = vpack.c.bf16 %v3483_v55, %v3481_v49  ;;  %v1035_v1 = vpop.f32.mrb[36].mxu1 }
 0x157   : > { %1197 = vst [vmem:[#allocation2 + $0x40] sm:$0xff] %v1162_v58  ;;  %v1761_v2 = vadd.f32 %v1760_v56, %v1698_v61  ;;  %v908_v3 = vadd.f32 %v3395_v11, %v907_v62  ;;  %v909_v4 = vpop.f32.mrb[37].mxu0  ;;  %v1036_v5 = vadd.f32 %v3395_v11, %v1035_v1  ;;  %v1037_v6 = vpop.f32.mrb[37].mxu1 }
 0x158   : > { %v910_v8 = vpop.f32.mrb[38].mxu0  ;;  %1213 = vst [vmem:[#allocation2 + $0xc0] sm:$0xff] %v1178_v63  ;;  %v1038_v9 = vpop.f32.mrb[38].mxu1 }
 0x159   : > { %v1108_v10 = vmax.f32 %v908_v3, 0.0  ;;  %v911_v13 = vadd.f32 %v3395_v11, %v910_v8  ;;  %v912_v14 = vpop.f32.mrb[39].mxu0  ;;  %v1039_v15 = vadd.f32 %v3395_v11, %v1038_v9  ;;  %v1040_v16 = vpop.f32.mrb[39].mxu1  ;;  %v3491_v17 = vmax.f32 %v1036_v5, 0.0 }
 0x15b   : > { %v1626_v19 = vadd.f32 %v1625_v59, %v1108_v10  ;;  %v1699_v20 = vmul.f32 %v1108_v10, %v1108_v10  ;;  %v1109_v21 = vmax.f32 %v911_v13, 0.0  ;;  %v3493_v25 = vmax.f32 %v1039_v15, 0.0 }
 0x15d   : > { %v1762_v26 = vadd.f32 %v1761_v2, %v1699_v20  ;;  %v1163_v28 = vpack.c.bf16 %v1109_v21, %v1108_v10  ;;  %v1627_v30 = vadd.f32 %v1626_v19, %v1109_v21  ;;  %v1700_v31 = vmul.f32 %v1109_v21, %v1109_v21 }
 0x15e   : > { %v915_v32 = vpop.f32.mrb[40].mxu0  ;;  %v1179_v33 = vpack.c.bf16 %v3493_v25, %v3491_v17  ;;  %v1043_v35 = vpop.f32.mrb[40].mxu1 }
 0x15f   : > { %1198 = vst [vmem:[#allocation2 + $0x48] sm:$0xff] %v1163_v28  ;;  %v1763_v36 = vadd.f32 %v1762_v26, %v1700_v31  ;;  %v916_v37 = vadd.f32 %v3395_v11, %v915_v32  ;;  %v917_v39 = vpop.f32.mrb[41].mxu0  ;;  %v1044_v40 = vadd.f32 %v3395_v11, %v1043_v35  ;;  %v1045_v41 = vpop.f32.mrb[41].mxu1 }
 0x160   : > { %v918_v42 = vpop.f32.mrb[42].mxu0  ;;  %1214 = vst [vmem:[#allocation2 + $0xc8] sm:$0xff] %v1179_v33  ;;  %v1046_v43 = vpop.f32.mrb[42].mxu1 }
 0x161   : > { %v1110_v44 = vmax.f32 %v916_v37, 0.0  ;;  %v919_v45 = vadd.f32 %v3395_v11, %v918_v42  ;;  %v920_v46 = vpop.f32.mrb[43].mxu0  ;;  %v1047_v48 = vadd.f32 %v3395_v11, %v1046_v43  ;;  %v1048_v50 = vpop.f32.mrb[43].mxu1  ;;  %v3501_v52 = vmax.f32 %v1044_v40, 0.0 }
 0x163   : > { %v1628_v54 = vadd.f32 %v1627_v30, %v1110_v44  ;;  %v1701_v56 = vmul.f32 %v1110_v44, %v1110_v44  ;;  %v1111_v58 = vmax.f32 %v919_v45, 0.0  ;;  %v3503_v59 = vmax.f32 %v1047_v48, 0.0 }
 0x165   : > { %v1764_v61 = vadd.f32 %v1763_v36, %v1701_v56  ;;  %v1164_v62 = vpack.c.bf16 %v1111_v58, %v1110_v44  ;;  %v1629_v63 = vadd.f32 %v1628_v54, %v1111_v58  ;;  %v1702_v1 = vmul.f32 %v1111_v58, %v1111_v58 }
 0x166   : > { %v923_v2 = vpop.f32.mrb[44].mxu0  ;;  %v1180_v3 = vpack.c.bf16 %v3503_v59, %v3501_v52  ;;  %v1051_v4 = vpop.f32.mrb[44].mxu1 }
 0x167   : > { %1199 = vst [vmem:[#allocation2 + $0x50] sm:$0xff] %v1164_v62  ;;  %v1765_v5 = vadd.f32 %v1764_v61, %v1702_v1  ;;  %v924_v6 = vadd.f32 %v3395_v11, %v923_v2  ;;  %v925_v8 = vpop.f32.mrb[45].mxu0  ;;  %v1052_v9 = vadd.f32 %v3395_v11, %v1051_v4  ;;  %v1053_v10 = vpop.f32.mrb[45].mxu1 }
 0x168   : > { %v926_v13 = vpop.f32.mrb[46].mxu0  ;;  %1215 = vst [vmem:[#allocation2 + $0xd0] sm:$0xff] %v1180_v3  ;;  %v1054_v14 = vpop.f32.mrb[46].mxu1 }
 0x169   : > { %v1112_v15 = vmax.f32 %v924_v6, 0.0  ;;  %v927_v16 = vadd.f32 %v3395_v11, %v926_v13  ;;  %v928_v19 = vpop.f32.mrb[47].mxu0  ;;  %v1055_v20 = vadd.f32 %v3395_v11, %v1054_v14  ;;  %v1056_v21 = vpop.f32.mrb[47].mxu1  ;;  %v3511_v26 = vmax.f32 %v1052_v9, 0.0 }
 0x16b   : > { %v1630_v28 = vadd.f32 %v1629_v63, %v1112_v15  ;;  %v1703_v30 = vmul.f32 %v1112_v15, %v1112_v15  ;;  %v1113_v31 = vmax.f32 %v927_v16, 0.0  ;;  %v3513_v32 = vmax.f32 %v1055_v20, 0.0 }
 0x16d   : > { %v1766_v33 = vadd.f32 %v1765_v5, %v1703_v30  ;;  %v1165_v35 = vpack.c.bf16 %v1113_v31, %v1112_v15  ;;  %v1631_v36 = vadd.f32 %v1630_v28, %v1113_v31  ;;  %v1704_v37 = vmul.f32 %v1113_v31, %v1113_v31 }
 0x16e   : > { %v931_v39 = vpop.f32.mrb[48].mxu0  ;;  %v1181_v40 = vpack.c.bf16 %v3513_v32, %v3511_v26  ;;  %v1059_v41 = vpop.f32.mrb[48].mxu1 }
 0x16f   : > { %1200 = vst [vmem:[#allocation2 + $0x58] sm:$0xff] %v1165_v35  ;;  %v1767_v42 = vadd.f32 %v1766_v33, %v1704_v37  ;;  %v932_v43 = vadd.f32 %v3395_v11, %v931_v39  ;;  %v933_v44 = vpop.f32.mrb[49].mxu0  ;;  %v1060_v45 = vadd.f32 %v3395_v11, %v1059_v41  ;;  %v1061_v46 = vpop.f32.mrb[49].mxu1 }
 0x170   : > { %v934_v48 = vpop.f32.mrb[50].mxu0  ;;  %1216 = vst [vmem:[#allocation2 + $0xd8] sm:$0xff] %v1181_v40  ;;  %v1062_v50 = vpop.f32.mrb[50].mxu1 }
 0x171   : > { %v1114_v54 = vmax.f32 %v932_v43, 0.0  ;;  %v935_v56 = vadd.f32 %v3395_v11, %v934_v48  ;;  %v936_v58 = vpop.f32.mrb[51].mxu0  ;;  %v1063_v61 = vadd.f32 %v3395_v11, %v1062_v50  ;;  %v1064_v62 = vpop.f32.mrb[51].mxu1  ;;  %v3521_v63 = vmax.f32 %v1060_v45, 0.0 }
 0x173   : > { %v1632_v1 = vadd.f32 %v1631_v36, %v1114_v54  ;;  %v1705_v2 = vmul.f32 %v1114_v54, %v1114_v54  ;;  %v1115_v3 = vmax.f32 %v935_v56, 0.0  ;;  %v3523_v4 = vmax.f32 %v1063_v61, 0.0 }
 0x175   : > { %v1768_v5 = vadd.f32 %v1767_v42, %v1705_v2  ;;  %v1166_v6 = vpack.c.bf16 %v1115_v3, %v1114_v54  ;;  %v1633_v8 = vadd.f32 %v1632_v1, %v1115_v3  ;;  %v1706_v9 = vmul.f32 %v1115_v3, %v1115_v3 }
 0x176   : > { %v939_v10 = vpop.f32.mrb[52].mxu0  ;;  %v1182_v13 = vpack.c.bf16 %v3523_v4, %v3521_v63  ;;  %v1067_v14 = vpop.f32.mrb[52].mxu1 }
 0x177   : > { %1201 = vst [vmem:[#allocation2 + $0x60] sm:$0xff] %v1166_v6  ;;  %v1769_v15 = vadd.f32 %v1768_v5, %v1706_v9  ;;  %v940_v16 = vadd.f32 %v3395_v11, %v939_v10  ;;  %v941_v19 = vpop.f32.mrb[53].mxu0  ;;  %v1068_v20 = vadd.f32 %v3395_v11, %v1067_v14  ;;  %v1069_v21 = vpop.f32.mrb[53].mxu1 }
 0x178   : > { %v942_v28 = vpop.f32.mrb[54].mxu0  ;;  %1217 = vst [vmem:[#allocation2 + $0xe0] sm:$0xff] %v1182_v13  ;;  %v1070_v30 = vpop.f32.mrb[54].mxu1 }
 0x179   : > { %v1116_v31 = vmax.f32 %v940_v16, 0.0  ;;  %v943_v33 = vadd.f32 %v3395_v11, %v942_v28  ;;  %v944_v35 = vpop.f32.mrb[55].mxu0  ;;  %v1071_v36 = vadd.f32 %v3395_v11, %v1070_v30  ;;  %v1072_v37 = vpop.f32.mrb[55].mxu1  ;;  %v3531_v39 = vmax.f32 %v1068_v20, 0.0 }
 0x17b   : > { %v1634_v40 = vadd.f32 %v1633_v8, %v1116_v31  ;;  %v1707_v41 = vmul.f32 %v1116_v31, %v1116_v31  ;;  %v1117_v42 = vmax.f32 %v943_v33, 0.0  ;;  %v3533_v43 = vmax.f32 %v1071_v36, 0.0 }
 0x17d   : > { %v1770_v44 = vadd.f32 %v1769_v15, %v1707_v41  ;;  %v1167_v45 = vpack.c.bf16 %v1117_v42, %v1116_v31  ;;  %v1635_v46 = vadd.f32 %v1634_v40, %v1117_v42  ;;  %v1708_v48 = vmul.f32 %v1117_v42, %v1117_v42 }
 0x17e   : > { %v947_v50 = vpop.f32.mrb[56].mxu0  ;;  %v1183_v54 = vpack.c.bf16 %v3533_v43, %v3531_v39  ;;  %v1075_v56 = vpop.f32.mrb[56].mxu1 }
 0x17f   : > { %1202 = vst [vmem:[#allocation2 + $0x68] sm:$0xff] %v1167_v45  ;;  %v1771_v58 = vadd.f32 %v1770_v44, %v1708_v48  ;;  %v948_v61 = vadd.f32 %v3395_v11, %v947_v50  ;;  %v949_v62 = vpop.f32.mrb[57].mxu0  ;;  %v1076_v1 = vadd.f32 %v3395_v11, %v1075_v56  ;;  %v1077_v2 = vpop.f32.mrb[57].mxu1 }
 0x180   : > { %v950_v3 = vpop.f32.mrb[58].mxu0  ;;  %1218 = vst [vmem:[#allocation2 + $0xe8] sm:$0xff] %v1183_v54  ;;  %v1078_v5 = vpop.f32.mrb[58].mxu1 }
 0x181   : > { %v1118_v6 = vmax.f32 %v948_v61, 0.0  ;;  %v951_v8 = vadd.f32 %v3395_v11, %v950_v3  ;;  %v952_v9 = vpop.f32.mrb[59].mxu0  ;;  %v1079_v10 = vadd.f32 %v3395_v11, %v1078_v5  ;;  %v1080_v13 = vpop.f32.mrb[59].mxu1  ;;  %v3541_v14 = vmax.f32 %v1076_v1, 0.0 }
 0x182   : > { %v1713_v13 = vmul.f32 %v3400_v23, %v3400_v23 }
 0x183   : > { %v1636_v15 = vadd.f32 %v1635_v46, %v1118_v6  ;;  %v1709_v16 = vmul.f32 %v1118_v6, %v1118_v6  ;;  %v1119_v19 = vmax.f32 %v951_v8, 0.0  ;;  %v3543_v20 = vmax.f32 %v1079_v10, 0.0 }
 0x185   : > { %v1772_v21 = vadd.f32 %v1771_v58, %v1709_v16  ;;  %v1168_v28 = vpack.c.bf16 %v1119_v19, %v1118_v6  ;;  %v1637_v30 = vadd.f32 %v1636_v15, %v1119_v19  ;;  %v1710_v31 = vmul.f32 %v1119_v19, %v1119_v19 }
 0x186   : > { %v955_v33 = vpop.f32.mrb[60].mxu0  ;;  %v1184_v35 = vpack.c.bf16 %v3543_v20, %v3541_v14  ;;  %v1083_v36 = vpop.f32.mrb[60].mxu1  ;;  %v1714_v16 = vmul.f32 %v3403_v27, %v3403_v27 }
 0x187   : > { %1203 = vst [vmem:[#allocation2 + $0x70] sm:$0xff] %v1168_v28  ;;  %v1773_v37 = vadd.f32 %v1772_v21, %v1710_v31  ;;  %v956_v40 = vadd.f32 %v3395_v11, %v955_v33  ;;  %v957_v41 = vpop.f32.mrb[61].mxu0  ;;  %v1084_v42 = vadd.f32 %v3395_v11, %v1083_v36  ;;  %v1085_v44 = vpop.f32.mrb[61].mxu1  ;;  %v1715_v28 = vmul.f32 %v3411_v47, %v3411_v47 }
 0x188   : > { %v958_v45 = vpop.f32.mrb[62].mxu0  ;;  %1219 = vst [vmem:[#allocation2 + $0xf0] sm:$0xff] %v1184_v35  ;;  %v1086_v46 = vpop.f32.mrb[62].mxu1  ;;  %v1716_v33 = vmul.f32 %v3413_v51, %v3413_v51  ;;  %v1717_v36 = vmul.f32 %v3421_v7, %v3421_v7 }
 0x189   : > { %v1120_v48 = vmax.f32 %v956_v40, 0.0  ;;  %v959_v50 = vadd.f32 %v3395_v11, %v958_v45  ;;  %v960_v54 = vpop.f32.mrb[63].mxu0  ;;  %v1087_v56 = vadd.f32 %v3395_v11, %v1086_v46  ;;  %v1088_v58 = vpop.f32.mrb[63].mxu1  ;;  %v3551_v61 = vmax.f32 %v1084_v42, 0.0 }
 0x18b   : > { %v1638_v62 = vadd.f32 %v1637_v30, %v1120_v48  ;;  %v1711_v1 = vmul.f32 %v1120_v48, %v1120_v48  ;;  %v1121_v2 = vmax.f32 %v959_v50, 0.0  ;;  %v3553_v3 = vmax.f32 %v1087_v56, 0.0 }
 0x18d   : > { %v1774_v5 = vadd.f32 %v1773_v37, %v1711_v1  ;;  %v1169_v6 = vpack.c.bf16 %v1121_v2, %v1120_v48  ;;  %v1639_v8 = vadd.f32 %v1638_v62, %v1121_v2  ;;  %v1712_v9 = vmul.f32 %v1121_v2, %v1121_v2 }
 0x18e   : > { %v1185_v10 = vpack.c.bf16 %v3553_v3, %v3551_v61 }
 0x18f   : > { %1204 = vst [vmem:[#allocation2 + $0x78] sm:$0xff] %v1169_v6  ;;  %v1640_v11 = vadd.f32 %v1639_v8, %v3400_v23  ;;  %v1775_v15 = vadd.f32 %v1774_v5, %v1712_v9 }
 0x190   : > { %1220 = vst [vmem:[#allocation2 + $0xf8] sm:$0xff] %v1185_v10 }
 0x191   : > { %v1641_v19 = vadd.f32 %v1640_v11, %v3403_v27  ;;  %v1776_v21 = vadd.f32 %v1775_v15, %v1713_v13  ;;  %v1718_v27 = vmul.f32 %v3423_v12, %v3423_v12 }
 0x193   : > { %v1642_v30 = vadd.f32 %v1641_v19, %v3411_v47  ;;  %v1777_v31 = vadd.f32 %v1776_v21, %v1714_v16  ;;  %v1719_v47 = vmul.f32 %v3431_v34, %v3431_v34  ;;  %v1729_v19 = vmul.f32 %v3481_v49, %v3481_v49 }
 0x195   : > { %v1643_v35 = vadd.f32 %v1642_v30, %v3413_v51  ;;  %v1778_v23 = vadd.f32 %v1777_v31, %v1715_v28  ;;  %v1720_v51 = vmul.f32 %v3433_v38, %v3433_v38  ;;  %v1730_v30 = vmul.f32 %v3483_v55, %v3483_v55 }
 0x197   : > { %v1644_v37 = vadd.f32 %v1643_v35, %v3421_v7  ;;  %v1779_v40 = vadd.f32 %v1778_v23, %v1716_v33  ;;  %v1721_v7 = vmul.f32 %v3441_v60, %v3441_v60  ;;  %v1731_v33 = vmul.f32 %v3491_v17, %v3491_v17 }
 0x198   : > { %v1732_v23 = vmul.f32 %v3493_v25, %v3493_v25 }
 0x199   : > { %v1645_v41 = vadd.f32 %v1644_v37, %v3423_v12  ;;  %v1780_v42 = vadd.f32 %v1779_v40, %v1717_v36  ;;  %v1722_v12 = vmul.f32 %v3443_v0, %v3443_v0  ;;  %v1733_v37 = vmul.f32 %v3501_v52, %v3501_v52 }
 0x19b   : > { %v1646_v44 = vadd.f32 %v1645_v41, %v3431_v34  ;;  %v1781_v45 = vadd.f32 %v1780_v42, %v1718_v27  ;;  %v1723_v34 = vmul.f32 %v3451_v24, %v3451_v24  ;;  %v1734_v27 = vmul.f32 %v3503_v59, %v3503_v59 }
 0x19c   : > { %v1735_v42 = vmul.f32 %v3511_v26, %v3511_v26 }
 0x19d   : > { %v1647_v46 = vadd.f32 %v1646_v44, %v3433_v38  ;;  %v1782_v48 = vadd.f32 %v1781_v45, %v1719_v47  ;;  %v1724_v38 = vmul.f32 %v3453_v29, %v3453_v29  ;;  %v1736_v44 = vmul.f32 %v3513_v32, %v3513_v32 }
 0x19f   : > { %v1783_v50 = vadd.f32 %v1782_v48, %v1720_v51  ;;  %v1648_v54 = vadd.f32 %v1647_v46, %v3441_v60  ;;  %v1725_v60 = vmul.f32 %v3461_v53, %v3461_v53  ;;  %v1737_v51 = vmul.f32 %v3521_v63, %v3521_v63 }
 0x1a0   : > { %v1738_v48 = vmul.f32 %v3523_v4, %v3523_v4 }
 0x1a1   : > { %v1649_v56 = vadd.f32 %v1648_v54, %v3443_v0  ;;  %v1784_v58 = vadd.f32 %v1783_v50, %v1721_v7  ;;  %v1726_v0 = vmul.f32 %v3463_v57, %v3463_v57  ;;  %v1739_v50 = vmul.f32 %v3531_v39, %v3531_v39 }
 0x1a3   : > { %v1650_v62 = vadd.f32 %v1649_v56, %v3451_v24  ;;  %v1785_v1 = vadd.f32 %v1784_v58, %v1722_v12  ;;  %v1727_v24 = vmul.f32 %v3471_v18, %v3471_v18  ;;  %v1740_v12 = vmul.f32 %v3533_v43, %v3533_v43 }
 0x1a4   : > { %v1741_v58 = vmul.f32 %v3541_v14, %v3541_v14 }
 0x1a5   : > { %v1651_v2 = vadd.f32 %v1650_v62, %v3453_v29  ;;  %v1786_v5 = vadd.f32 %v1785_v1, %v1723_v34  ;;  %v1728_v29 = vmul.f32 %v3473_v22, %v3473_v22  ;;  %v1742_v62 = vmul.f32 %v3543_v20, %v3543_v20 }
 0x1a7   : > { %v1652_v6 = vadd.f32 %v1651_v2, %v3461_v53  ;;  %v1787_v8 = vadd.f32 %v1786_v5, %v1724_v38  ;;  %v1744_v5 = vmul.f32 %v3553_v3, %v3553_v3 }
 0x1a9   : > { %v1653_v9 = vadd.f32 %v1652_v6, %v3463_v57  ;;  %v1788_v10 = vadd.f32 %v1787_v8, %v1725_v60 }
 0x1ab   : > { %v1654_v13 = vadd.f32 %v1653_v9, %v3471_v18  ;;  %v1789_v11 = vadd.f32 %v1788_v10, %v1726_v0 }
 0x1ad   : > { %v1655_v15 = vadd.f32 %v1654_v13, %v3473_v22  ;;  %v1790_v16 = vadd.f32 %v1789_v11, %v1727_v24  ;;  %v1608_v11 = vld [vmem:[#allocation3] sm:$0x1] }
 0x1af   : > { %v1656_v53 = vadd.f32 %v1655_v15, %v3481_v49  ;;  %v1791_v21 = vadd.f32 %v1790_v16, %v1728_v29 }
 0x1b1   : > { %v1792_v57 = vadd.f32 %v1791_v21, %v1729_v19  ;;  %v1657_v28 = vadd.f32 %v1656_v53, %v3483_v55 }
 0x1b3   : > { %v1793_v18 = vadd.f32 %v1792_v57, %v1730_v30  ;;  %v1658_v31 = vadd.f32 %v1657_v28, %v3491_v17 }
 0x1b5   : > { %v1794_v22 = vadd.f32 %v1793_v18, %v1731_v33  ;;  %v1659_v35 = vadd.f32 %v1658_v31, %v3493_v25 }
 0x1b7   : > { %v1795_v49 = vadd.f32 %v1794_v22, %v1732_v23  ;;  %v1660_v36 = vadd.f32 %v1659_v35, %v3501_v52 }
 0x1b9   : > { %v1796_v40 = vadd.f32 %v1795_v49, %v1733_v37  ;;  %v1661_v55 = vadd.f32 %v1660_v36, %v3503_v59 }
 0x1bb   : > { %v1797_v41 = vadd.f32 %v1796_v40, %v1734_v27  ;;  %v1662_v17 = vadd.f32 %v1661_v55, %v3511_v26 }
 0x1bd   : > { %v1798_v47 = vadd.f32 %v1797_v41, %v1735_v42  ;;  %v1663_v25 = vadd.f32 %v1662_v17, %v3513_v32 }
 0x1bf   : > { %v1799_v45 = vadd.f32 %v1798_v47, %v1736_v44  ;;  %v1664_v52 = vadd.f32 %v1663_v25, %v3521_v63 }
 0x1c1   : > { %v1800_v46 = vadd.f32 %v1799_v45, %v1737_v51  ;;  %v1665_v59 = vadd.f32 %v1664_v52, %v3523_v4 }
 0x1c3   : > { %v1801_v7 = vadd.f32 %v1800_v46, %v1738_v48  ;;  %v1666_v26 = vadd.f32 %v1665_v59, %v3531_v39  ;;  %v1743_v39 = vmul.f32 %v3551_v61, %v3551_v61 }
 0x1c5   : > { %v1802_v54 = vadd.f32 %v1801_v7, %v1739_v50  ;;  %v1667_v32 = vadd.f32 %v1666_v26, %v3533_v43 }
 0x1c7   : > { %v1803_v56 = vadd.f32 %v1802_v54, %v1740_v12  ;;  %v1668_v63 = vadd.f32 %v1667_v32, %v3541_v14 }
 0x1c9   : > { %v1804_v34 = vadd.f32 %v1803_v56, %v1741_v58  ;;  %v1669_v4 = vadd.f32 %v1668_v63, %v3543_v20 }
 0x1cb   : > { %v1805_v1 = vadd.f32 %v1804_v34, %v1742_v62  ;;  %v1670_v38 = vadd.f32 %v1669_v4, %v3551_v61  ;;  %v1680_v61 = vld [vmem:[#allocation3 + $0x1] sm:$0x1] }
 0x1cd   : > { %v1806_v2 = vadd.f32 %v1805_v1, %v1743_v39  ;;  %v1671_v43 = vadd.f32 %v1670_v38, %v3553_v3 }
 0x1cf   : > { %v1672_v60 = vrot.slane %v1671_v43, 4  ;;  %v1807_v14 = vadd.f32 %v1806_v2, %v1744_v5 }
 0x1d1   : > { %v1673_v6 = vadd.f32 %v1672_v60, %v1671_v43  ;;  %v1808_v8 = vrot.slane %v1807_v14, 4 }
 0x1d3   : > { %v1674_v0 = vrot.slane %v1673_v6, 2  ;;  %v1809_v9 = vadd.f32 %v1808_v8, %v1807_v14 }
 0x1d5   : > { %v1675_v10 = vadd.f32 %v1674_v0, %v1673_v6  ;;  %v1810_v20 = vrot.slane %v1809_v9, 2 }
 0x1d7   : > { %v1676_v24 = vrot.slane %v1675_v10, 1  ;;  %v1811_v13 = vadd.f32 %v1810_v20, %v1809_v9 }
 0x1d9   : > { %v1677_v29 = vadd.f32 %v1676_v24, %v1675_v10  ;;  %v1812_v15 = vrot.slane %v1811_v13, 1 }
 0x1db   : > { %v1678_v16 = vadd.f32 %v1677_v29, %v1608_v11  ;;  %v1813_v53 = vadd.f32 %v1812_v15, %v1811_v13 }
 0x1dd   : > { %1679 = vst [vmem:[#allocation3] sm:$0x1] %v1678_v16  ;;  %v1814_v19 = vadd.f32 %v1813_v53, %v1680_v61 }
 0x1df   : > { %1815 = vst [vmem:[#allocation3 + $0x1] sm:$0x1] %v1814_v19 }
 0x1e0 PF: > { %p1816_p6 = scmp.eq.s32.totalorder %s3077_s18, 1 }
 0x1e1   : > { %v1828_v22 = vld [vmem:[%s3901_s3] sm:$0x1] (%p1816_p6) }
 0x1e2   : > { %1820 = sbr.rel (!%p1816_p6) target bundleno = 513 (0x201), region = 52  ;;  %v1833_v49 = vld [vmem:[%s3902_s4] sm:$0x1] (%p1816_p6) }
 0x1e4   : > { %v1821_v3 = vld [vmem:[#allocation3] sm:$0x1] (%p1816_p6) }
 0x1e5   : > { %v1822_v57 = vmul.f32 (%p1816_p6), 0.001953125, %v1821_v3 }
 0x1e6   : > { %v1823_v21 = vld [vmem:[#allocation3 + $0x1] sm:$0x1] (%p1816_p6) }
 0x1e7   : > { %v1824_v28 = vmul.f32 (%p1816_p6), 0.001953125, %v1823_v21  ;;  %v1825_v30 = vmul.f32 (%p1816_p6), %v1822_v57, %v1822_v57 }
 0x1e9   : > { %v1826_v18 = vsub.f32 %v1824_v28, %v1825_v30 }
 0x1eb   : > { %v1827_v31 = vmax.f32 %v1826_v18, 0.0 }
 0x1ed   : > { %v1829_v33 = vadd.f32 1e-05, %v1827_v31 }
 0x1ef   : > { %3061 = vrsqrt.f32 %v1829_v33 }
 0x1f9   : > { %v3062_v35 = vpop.eup %3061 }
 0x1fa   : > { %v1831_v23 = vmul.f32 %v3062_v35, %v1828_v22 }
 0x1fc   : > { %1832 = vst [vmem:[#allocation4] sm:$0x1] %v1831_v23  ;;  %v1834_v36 = vmul.f32 %v1831_v23, %v1822_v57 }
 0x1fe   : > { %v1835_v37 = vsub.f32 %v1833_v49, %v1834_v36 }
 0x200   : > { %1836 = vst [vmem:[#allocation4 + $0x1] sm:$0x1] %v1835_v37 }
 0x201 PF: > { %p2584_p7 = scmp.ne.s32.totalorder %s3077_s18, 1 }
 0x202   : > { %v1843_v40 = vld [vmem:[#allocation2] sm:$0xff] (!%p2584_p7)  ;;  %v1844_v17 = vld [vmem:[#allocation2 + $0x8] sm:$0xff] (!%p2584_p7)  ;;  %v1845_v42 = vld [vmem:[#allocation2 + $0x10] sm:$0xff] (!%p2584_p7) }
 0x203   : > { %1839 = sbr.rel (%p2584_p7) target bundleno = 576 (0x240), region = 56  ;;  %v3661_v55 = vld [vmem:[#allocation4] ss:$0 sm:$0xff] (!%p2584_p7)  ;;  %v1875_v27 = vunpack.c.l.bf16 (!%p2584_p7), %v1843_v40  ;;  %v1876_v41 = vunpack.c.h.bf16 (!%p2584_p7), %v1843_v40  ;;  %v1846_v47 = vld [vmem:[#allocation2 + $0x18] sm:$0xff] (!%p2584_p7)  ;;  %v1877_v44 = vunpack.c.l.bf16 (!%p2584_p7), %v1844_v17  ;;  %v1878_v45 = vunpack.c.h.bf16 (!%p2584_p7), %v1844_v17  ;;  %v1848_v4 = vld [vmem:[#allocation2 + $0x28] sm:$0xff] (!%p2584_p7) }
 0x204   : > { %v1879_v52 = vunpack.c.l.bf16 (!%p2584_p7), %v1845_v42  ;;  %v1880_v51 = vunpack.c.h.bf16 (!%p2584_p7), %v1845_v42  ;;  %v1881_v48 = vunpack.c.l.bf16 (!%p2584_p7), %v1846_v47  ;;  %v1882_v7 = vunpack.c.h.bf16 (!%p2584_p7), %v1846_v47  ;;  %v1847_v12 = vld [vmem:[#allocation2 + $0x20] sm:$0xff] (!%p2584_p7)  ;;  %v1849_v2 = vld [vmem:[#allocation2 + $0x30] sm:$0xff] (!%p2584_p7)  ;;  %v1850_v6 = vld [vmem:[#allocation2 + $0x38] sm:$0xff] (!%p2584_p7) }
 0x205   : > { %v1944_v46 = vmul.f32 (!%p2584_p7), %v3661_v55, %v1875_v27  ;;  %v1945_v59 = vmul.f32 (!%p2584_p7), %v3661_v55, %v1876_v41  ;;  %v1946_v26 = vmul.f32 (!%p2584_p7), %v3661_v55, %v1877_v44  ;;  %v1947_v50 = vmul.f32 (!%p2584_p7), %v3661_v55, %v1878_v45  ;;  %v1851_v53 = vld [vmem:[#allocation2 + $0x40] sm:$0xff] (!%p2584_p7)  ;;  %v1852_v33 = vld [vmem:[#allocation2 + $0x48] sm:$0xff] (!%p2584_p7)  ;;  %v1853_v36 = vld [vmem:[#allocation2 + $0x50] sm:$0xff] (!%p2584_p7) }
 0x206   : > { %v1948_v54 = vmul.f32 (!%p2584_p7), %v3661_v55, %v1879_v52  ;;  %v1949_v32 = vmul.f32 (!%p2584_p7), %v3661_v55, %v1880_v51  ;;  %v1950_v58 = vmul.f32 (!%p2584_p7), %v3661_v55, %v1881_v48  ;;  %v1951_v34 = vmul.f32 (!%p2584_p7), %v3661_v55, %v1882_v7  ;;  %v1854_v45 = vld [vmem:[#allocation2 + $0x58] sm:$0xff] (!%p2584_p7)  ;;  %v1855_v48 = vld [vmem:[#allocation2 + $0x60] sm:$0xff] (!%p2584_p7) }
 0x207   : > { %v3663_v25 = vld [vmem:[#allocation4 + $0x1] ss:$0 sm:$0xff] (!%p2584_p7)  ;;  %v1883_v14 = vunpack.c.l.bf16 (!%p2584_p7), %v1847_v12  ;;  %v1884_v9 = vunpack.c.h.bf16 (!%p2584_p7), %v1847_v12  ;;  %v1885_v10 = vunpack.c.l.bf16 (!%p2584_p7), %v1848_v4  ;;  %v1886_v13 = vunpack.c.h.bf16 (!%p2584_p7), %v1848_v4 }
 0x208   : > { %v2013_v56 = vadd.f32 (!%p2584_p7), %v3663_v25, %v1944_v46  ;;  %v2014_v63 = vadd.f32 (!%p2584_p7), %v3663_v25, %v1945_v59  ;;  %v2015_v62 = vadd.f32 (!%p2584_p7), %v3663_v25, %v1946_v26  ;;  %v2016_v39 = vadd.f32 (!%p2584_p7), %v3663_v25, %v1947_v50 }
 0x209   : > { %v2017_v1 = vadd.f32 (!%p2584_p7), %v3663_v25, %v1948_v54  ;;  %v2018_v38 = vadd.f32 (!%p2584_p7), %v3663_v25, %v1949_v32  ;;  %v2019_v5 = vadd.f32 (!%p2584_p7), %v3663_v25, %v1950_v58  ;;  %v2020_v60 = vadd.f32 (!%p2584_p7), %v3663_v25, %v1951_v34 }
 0x20a   : > { %v2724_v43 = vpack.c.bf16 %v2014_v63, %v2013_v56  ;;  %v2729_v8 = vpack.c.bf16 %v2016_v39, %v2015_v62  ;;  %v1952_v24 = vmul.f32 %v3661_v55, %v1883_v14  ;;  %v1887_v11 = vunpack.c.l.bf16 %v1849_v2  ;;  %v1856_v39 = vld [vmem:[#allocation2 + $0x68] sm:$0xff] }
 0x20b   : > { %v2734_v0 = vpack.c.bf16 %v2018_v38, %v2017_v1  ;;  %v2739_v20 = vpack.c.bf16 %v2020_v60, %v2019_v5  ;;  %v1953_v29 = vmul.f32 %v3661_v55, %v1884_v9  ;;  %v1954_v15 = vmul.f32 %v3661_v55, %v1885_v10 }
 0x20c   : > { %2725 = vst [vmem:[%s3903_s5] sm:$0xff] %v2724_v43   ;;  %2881 = vst [vmem:[%s3903_s5 + $0x8] sm:$0xff] %v2729_v8   ;;  %v1888_v61 = vunpack.c.h.bf16 %v1849_v2  ;;  %v1889_v16 = vunpack.c.l.bf16 %v1850_v6  ;;  %v2021_v19 = vadd.f32 %v3663_v25, %v1952_v24  ;;  %v1955_v3 = vmul.f32 %v3661_v55, %v1886_v13  ;;  %v1857_v8 = vld [vmem:[#allocation2 + $0x70] sm:$0xff]  ;;  %v1858_v24 = vld [vmem:[#allocation2 + $0x78] sm:$0xff] }
 0x20d   : > { %2882 = vst [vmem:[%s3903_s5 + $0x10] sm:$0xff] %v2734_v0   ;;  %2883 = vst [vmem:[%s3903_s5 + $0x18] sm:$0xff] %v2739_v20   ;;  %v1956_v21 = vmul.f32 %v3661_v55, %v1887_v11  ;;  %v1890_v57 = vunpack.c.h.bf16 %v1850_v6  ;;  %v2022_v28 = vadd.f32 %v3663_v25, %v1953_v29  ;;  %v2023_v30 = vadd.f32 %v3663_v25, %v1954_v15 }
 0x20e   : > { %v1957_v18 = vmul.f32 %v3661_v55, %v1888_v61  ;;  %v1958_v31 = vmul.f32 %v3661_v55, %v1889_v16  ;;  %v2024_v22 = vadd.f32 %v3663_v25, %v1955_v3  ;;  %v1891_v49 = vunpack.c.l.bf16 %v1851_v53  ;;  %v1859_v3 = vld [vmem:[#allocation2 + $0x80] sm:$0xff] }
 0x20f   : > { %v2025_v35 = vadd.f32 %v3663_v25, %v1956_v21  ;;  %v1959_v23 = vmul.f32 %v3661_v55, %v1890_v57  ;;  %v2744_v37 = vpack.c.bf16 %v2022_v28, %v2021_v19  ;;  %v1892_v41 = vunpack.c.h.bf16 %v1851_v53 }
 0x210   : > { %v2026_v40 = vadd.f32 %v3663_v25, %v1957_v18  ;;  %v2027_v27 = vadd.f32 %v3663_v25, %v1958_v31  ;;  %v2749_v17 = vpack.c.bf16 %v2024_v22, %v2023_v30  ;;  %v1960_v47 = vmul.f32 %v3661_v55, %v1891_v49 }
 0x211   : > { %v2028_v42 = vadd.f32 %v3663_v25, %v1959_v23  ;;  %v1893_v44 = vunpack.c.l.bf16 %v1852_v33  ;;  %2884 = vst [vmem:[%s3903_s5 + $0x20] sm:$0xff] %v2744_v37   ;;  %v1961_v51 = vmul.f32 %v3661_v55, %v1892_v41  ;;  %v1894_v46 = vunpack.c.h.bf16 %v1852_v33 }
 0x212   : > { %v2754_v52 = vpack.c.bf16 %v2026_v40, %v2025_v35  ;;  %v1895_v59 = vunpack.c.l.bf16 %v1853_v36  ;;  %2885 = vst [vmem:[%s3903_s5 + $0x28] sm:$0xff] %v2749_v17   ;;  %v2029_v26 = vadd.f32 %v3663_v25, %v1960_v47  ;;  %v1896_v54 = vunpack.c.h.bf16 %v1853_v36  ;;  %v1860_v35 = vld [vmem:[#allocation2 + $0x88] sm:$0xff]  ;;  %v1861_v40 = vld [vmem:[#allocation2 + $0x90] sm:$0xff] }
 0x213   : > { %v2759_v7 = vpack.c.bf16 %v2028_v42, %v2027_v27  ;;  %v1962_v50 = vmul.f32 %v3661_v55, %v1893_v44  ;;  %v2030_v32 = vadd.f32 %v3663_v25, %v1961_v51  ;;  %v1963_v12 = vmul.f32 %v3661_v55, %v1894_v46  ;;  %v1862_v51 = vld [vmem:[#allocation2 + $0x98] sm:$0xff] }
 0x214   : > { %2886 = vst [vmem:[%s3903_s5 + $0x30] sm:$0xff] %v2754_v52   ;;  %v1964_v56 = vmul.f32 %v3661_v55, %v1895_v59  ;;  %v1897_v63 = vunpack.c.l.bf16 %v1854_v45  ;;  %v1965_v34 = vmul.f32 %v3661_v55, %v1896_v54  ;;  %v1898_v4 = vunpack.c.h.bf16 %v1854_v45 }
 0x215   : > { %2887 = vst [vmem:[%s3903_s5 + $0x38] sm:$0xff] %v2759_v7   ;;  %v2031_v58 = vadd.f32 %v3663_v25, %v1962_v50  ;;  %v1899_v62 = vunpack.c.l.bf16 %v1855_v48  ;;  %v2764_v1 = vpack.c.bf16 %v2030_v32, %v2029_v26  ;;  %v2032_v38 = vadd.f32 %v3663_v25, %v1963_v12  ;;  %v1863_v26 = vld [vmem:[#allocation2 + $0xa0] sm:$0xff] }
 0x216   : > { %v2033_v2 = vadd.f32 %v3663_v25, %v1964_v56  ;;  %v1966_v43 = vmul.f32 %v3661_v55, %v1897_v63  ;;  %v2034_v5 = vadd.f32 %v3663_v25, %v1965_v34  ;;  %v1967_v60 = vmul.f32 %v3661_v55, %v1898_v4 }
 0x217   : > { %v1900_v14 = vunpack.c.h.bf16 %v1855_v48  ;;  %v1968_v6 = vmul.f32 %v3661_v55, %v1899_v62  ;;  %2888 = vst [vmem:[%s3903_s5 + $0x40] sm:$0xff] %v2764_v1   ;;  %v2769_v0 = vpack.c.bf16 %v2032_v38, %v2031_v58  ;;  %v1901_v10 = vunpack.c.l.bf16 %v1856_v39  ;;  %v1864_v38 = vld [vmem:[#allocation2 + $0xa8] sm:$0xff] }
 0x218   : > { %v2035_v9 = vadd.f32 %v3663_v25, %v1966_v43  ;;  %v1902_v20 = vunpack.c.h.bf16 %v1856_v39  ;;  %v2774_v13 = vpack.c.bf16 %v2034_v5, %v2033_v2  ;;  %v2036_v11 = vadd.f32 %v3663_v25, %v1967_v60 }
 0x219   : > { %v1969_v29 = vmul.f32 %v3661_v55, %v1900_v14  ;;  %v2037_v15 = vadd.f32 %v3663_v25, %v1968_v6  ;;  %2889 = vst [vmem:[%s3903_s5 + $0x48] sm:$0xff] %v2769_v0   ;;  %v1970_v61 = vmul.f32 %v3661_v55, %v1901_v10  ;;  %v1903_v53 = vunpack.c.l.bf16 %v1857_v8 }
 0x21a   : > { %v1971_v16 = vmul.f32 %v3661_v55, %v1902_v20  ;;  %v1904_v19 = vunpack.c.h.bf16 %v1857_v8  ;;  %2890 = vst [vmem:[%s3903_s5 + $0x50] sm:$0xff] %v2774_v13   ;;  %v2779_v21 = vpack.c.bf16 %v2036_v11, %v2035_v9  ;;  %v1905_v28 = vunpack.c.l.bf16 %v1858_v24  ;;  %v1865_v9 = vld [vmem:[#allocation2 + $0xb0] sm:$0xff]  ;;  %v1866_v11 = vld [vmem:[#allocation2 + $0xb8] sm:$0xff] }
 0x21b   : > { %v2038_v57 = vadd.f32 %v3663_v25, %v1969_v29  ;;  %v1906_v30 = vunpack.c.h.bf16 %v1858_v24  ;;  %v2039_v18 = vadd.f32 %v3663_v25, %v1970_v61  ;;  %v1972_v33 = vmul.f32 %v3661_v55, %v1903_v53 }
 0x21c   : > { %v2040_v31 = vadd.f32 %v3663_v25, %v1971_v16  ;;  %v1973_v22 = vmul.f32 %v3661_v55, %v1904_v19  ;;  %2891 = vst [vmem:[%s3903_s5 + $0x58] sm:$0xff] %v2779_v21   ;;  %v1974_v49 = vmul.f32 %v3661_v55, %v1905_v28  ;;  %v1907_v37 = vunpack.c.l.bf16 %v1859_v3 }
 0x21d   : > { %v2784_v23 = vpack.c.bf16 %v2038_v57, %v2037_v15  ;;  %v1975_v36 = vmul.f32 %v3661_v55, %v1906_v30  ;;  %v2041_v41 = vadd.f32 %v3663_v25, %v1972_v33  ;;  %v1908_v42 = vunpack.c.h.bf16 %v1859_v3  ;;  %v1867_v57 = vld [vmem:[#allocation2 + $0xc0] sm:$0xff] }
 0x21e   : > { %v2789_v27 = vpack.c.bf16 %v2040_v31, %v2039_v18  ;;  %v2042_v17 = vadd.f32 %v3663_v25, %v1973_v22  ;;  %v2043_v47 = vadd.f32 %v3663_v25, %v1974_v49  ;;  %v1976_v45 = vmul.f32 %v3661_v55, %v1907_v37  ;;  %v1868_v49 = vld [vmem:[#allocation2 + $0xc8] sm:$0xff] }
 0x21f   : > { %2892 = vst [vmem:[%s3903_s5 + $0x60] sm:$0xff] %v2784_v23   ;;  %v2044_v44 = vadd.f32 %v3663_v25, %v1975_v36  ;;  %v1909_v52 = vunpack.c.l.bf16 %v1860_v35  ;;  %v1977_v59 = vmul.f32 %v3661_v55, %v1908_v42  ;;  %v1910_v48 = vunpack.c.h.bf16 %v1860_v35 }
 0x220   : > { %2893 = vst [vmem:[%s3903_s5 + $0x68] sm:$0xff] %v2789_v27   ;;  %v2794_v46 = vpack.c.bf16 %v2042_v17, %v2041_v41  ;;  %v1911_v7 = vunpack.c.l.bf16 %v1861_v40  ;;  %v2045_v54 = vadd.f32 %v3663_v25, %v1976_v45  ;;  %v1912_v12 = vunpack.c.h.bf16 %v1861_v40  ;;  %v1869_v41 = vld [vmem:[#allocation2 + $0xd0] sm:$0xff] }
 0x221   : > { %v2799_v50 = vpack.c.bf16 %v2044_v44, %v2043_v47  ;;  %v1978_v32 = vmul.f32 %v3661_v55, %v1909_v52  ;;  %v2046_v56 = vadd.f32 %v3663_v25, %v1977_v59  ;;  %v1979_v63 = vmul.f32 %v3661_v55, %v1910_v48  ;;  %v1870_v59 = vld [vmem:[#allocation2 + $0xd8] sm:$0xff] }
 0x222   : > { %2894 = vst [vmem:[%s3903_s5 + $0x70] sm:$0xff] %v2794_v46   ;;  %v1980_v58 = vmul.f32 %v3661_v55, %v1911_v7  ;;  %v1913_v34 = vunpack.c.l.bf16 %v1862_v51  ;;  %v1981_v62 = vmul.f32 %v3661_v55, %v1912_v12  ;;  %v1914_v39 = vunpack.c.h.bf16 %v1862_v51 }
 0x223   : > { %2895 = vst [vmem:[%s3903_s5 + $0x78] sm:$0xff] %v2799_v50   ;;  %v2047_v4 = vadd.f32 %v3663_v25, %v1978_v32  ;;  %v1915_v1 = vunpack.c.l.bf16 %v1863_v26  ;;  %v2804_v2 = vpack.c.bf16 %v2046_v56, %v2045_v54  ;;  %v2048_v43 = vadd.f32 %v3663_v25, %v1979_v63  ;;  %v1871_v54 = vld [vmem:[#allocation2 + $0xe0] sm:$0xff] }
 0x224   : > { %v2049_v5 = vadd.f32 %v3663_v25, %v1980_v58  ;;  %v1982_v60 = vmul.f32 %v3661_v55, %v1913_v34  ;;  %v2050_v14 = vadd.f32 %v3663_v25, %v1981_v62  ;;  %v1983_v6 = vmul.f32 %v3661_v55, %v1914_v39 }
 0x225   : > { %v1916_v8 = vunpack.c.h.bf16 %v1863_v26  ;;  %v1984_v0 = vmul.f32 %v3661_v55, %v1915_v1  ;;  %2896 = vst [vmem:[%s3903_s5 + $0x80] sm:$0xff] %v2804_v2   ;;  %v2809_v10 = vpack.c.bf16 %v2048_v43, %v2047_v4  ;;  %v1917_v24 = vunpack.c.l.bf16 %v1864_v38  ;;  %v1872_v43 = vld [vmem:[#allocation2 + $0xe8] sm:$0xff] }
 0x226   : > { %v2051_v20 = vadd.f32 %v3663_v25, %v1982_v60  ;;  %v1918_v13 = vunpack.c.h.bf16 %v1864_v38  ;;  %v2814_v29 = vpack.c.bf16 %v2050_v14, %v2049_v5  ;;  %v2052_v15 = vadd.f32 %v3663_v25, %v1983_v6 }
 0x227   : > { %v1985_v61 = vmul.f32 %v3661_v55, %v1916_v8  ;;  %v2053_v16 = vadd.f32 %v3663_v25, %v1984_v0  ;;  %2897 = vst [vmem:[%s3903_s5 + $0x88] sm:$0xff] %v2809_v10   ;;  %v1986_v53 = vmul.f32 %v3661_v55, %v1917_v24  ;;  %v1919_v3 = vunpack.c.l.bf16 %v1865_v9 }
 0x228   : > { %v1987_v19 = vmul.f32 %v3661_v55, %v1918_v13  ;;  %v1920_v21 = vunpack.c.h.bf16 %v1865_v9  ;;  %2898 = vst [vmem:[%s3903_s5 + $0x90] sm:$0xff] %v2814_v29   ;;  %v2819_v28 = vpack.c.bf16 %v2052_v15, %v2051_v20  ;;  %v1921_v18 = vunpack.c.l.bf16 %v1866_v11  ;;  %v1873_v20 = vld [vmem:[#allocation2 + $0xf0] sm:$0xff]  ;;  %v1874_v15 = vld [vmem:[#allocation2 + $0xf8] sm:$0xff] }
 0x229   : > { %v2054_v30 = vadd.f32 %v3663_v25, %v1985_v61  ;;  %v1922_v31 = vunpack.c.h.bf16 %v1866_v11  ;;  %v2055_v33 = vadd.f32 %v3663_v25, %v1986_v53  ;;  %v1988_v35 = vmul.f32 %v3661_v55, %v1919_v3 }
 0x22a   : > { %v2056_v22 = vadd.f32 %v3663_v25, %v1987_v19  ;;  %v1989_v23 = vmul.f32 %v3661_v55, %v1920_v21  ;;  %2899 = vst [vmem:[%s3903_s5 + $0x98] sm:$0xff] %v2819_v28   ;;  %v1990_v37 = vmul.f32 %v3661_v55, %v1921_v18  ;;  %v1923_v27 = vunpack.c.l.bf16 %v1867_v57 }
 0x22b   : > { %v2824_v36 = vpack.c.bf16 %v2054_v30, %v2053_v16  ;;  %v1991_v40 = vmul.f32 %v3661_v55, %v1922_v31  ;;  %v2057_v42 = vadd.f32 %v3663_v25, %v1988_v35  ;;  %v1924_v44 = vunpack.c.h.bf16 %v1867_v57 }
 0x22c   : > { %v2829_v17 = vpack.c.bf16 %v2056_v22, %v2055_v33  ;;  %v2058_v47 = vadd.f32 %v3663_v25, %v1989_v23  ;;  %v2059_v45 = vadd.f32 %v3663_v25, %v1990_v37  ;;  %v1992_v51 = vmul.f32 %v3661_v55, %v1923_v27 }
 0x22d   : > { %2900 = vst [vmem:[%s3903_s5 + $0xa0] sm:$0xff] %v2824_v36   ;;  %v2060_v52 = vadd.f32 %v3663_v25, %v1991_v40  ;;  %v1925_v46 = vunpack.c.l.bf16 %v1868_v49  ;;  %v1993_v7 = vmul.f32 %v3661_v55, %v1924_v44  ;;  %v1926_v26 = vunpack.c.h.bf16 %v1868_v49 }
 0x22e   : > { %2901 = vst [vmem:[%s3903_s5 + $0xa8] sm:$0xff] %v2829_v17   ;;  %v2834_v48 = vpack.c.bf16 %v2058_v47, %v2057_v42  ;;  %v1927_v50 = vunpack.c.l.bf16 %v1869_v41  ;;  %v2061_v12 = vadd.f32 %v3663_v25, %v1992_v51  ;;  %v1928_v63 = vunpack.c.h.bf16 %v1869_v41 }
 0x22f   : > { %v2839_v32 = vpack.c.bf16 %v2060_v52, %v2059_v45  ;;  %v1994_v56 = vmul.f32 %v3661_v55, %v1925_v46  ;;  %v2062_v58 = vadd.f32 %v3663_v25, %v1993_v7  ;;  %v1995_v34 = vmul.f32 %v3661_v55, %v1926_v26 }
 0x230   : > { %2902 = vst [vmem:[%s3903_s5 + $0xb0] sm:$0xff] %v2834_v48   ;;  %v1996_v4 = vmul.f32 %v3661_v55, %v1927_v50  ;;  %v1929_v62 = vunpack.c.l.bf16 %v1870_v59  ;;  %v1997_v1 = vmul.f32 %v3661_v55, %v1928_v63  ;;  %v1930_v38 = vunpack.c.h.bf16 %v1870_v59 }
 0x231   : > { %2903 = vst [vmem:[%s3903_s5 + $0xb8] sm:$0xff] %v2839_v32   ;;  %v2063_v39 = vadd.f32 %v3663_v25, %v1994_v56  ;;  %v1931_v2 = vunpack.c.l.bf16 %v1871_v54  ;;  %v2844_v5 = vpack.c.bf16 %v2062_v58, %v2061_v12  ;;  %v2064_v60 = vadd.f32 %v3663_v25, %v1995_v34 }
 0x232   : > { %v2065_v14 = vadd.f32 %v3663_v25, %v1996_v4  ;;  %v1998_v6 = vmul.f32 %v3661_v55, %v1929_v62  ;;  %v2066_v8 = vadd.f32 %v3663_v25, %v1997_v1  ;;  %v1999_v0 = vmul.f32 %v3661_v55, %v1930_v38 }
 0x233   : > { %v1932_v9 = vunpack.c.h.bf16 %v1871_v54  ;;  %v2000_v10 = vmul.f32 %v3661_v55, %v1931_v2  ;;  %2904 = vst [vmem:[%s3903_s5 + $0xc0] sm:$0xff] %v2844_v5   ;;  %v2849_v24 = vpack.c.bf16 %v2064_v60, %v2063_v39  ;;  %v1933_v11 = vunpack.c.l.bf16 %v1872_v43 }
 0x234   : > { %v2067_v13 = vadd.f32 %v3663_v25, %v1998_v6  ;;  %v1934_v29 = vunpack.c.h.bf16 %v1872_v43  ;;  %v2854_v61 = vpack.c.bf16 %v2066_v8, %v2065_v14  ;;  %v2068_v16 = vadd.f32 %v3663_v25, %v1999_v0 }
 0x235   : > { %v2001_v53 = vmul.f32 %v3661_v55, %v1932_v9  ;;  %v2069_v19 = vadd.f32 %v3663_v25, %v2000_v10  ;;  %2905 = vst [vmem:[%s3903_s5 + $0xc8] sm:$0xff] %v2849_v24   ;;  %v2002_v3 = vmul.f32 %v3661_v55, %v1933_v11  ;;  %v1935_v57 = vunpack.c.l.bf16 %v1873_v20 }
 0x236   : > { %v2003_v21 = vmul.f32 %v3661_v55, %v1934_v29  ;;  %v1936_v28 = vunpack.c.h.bf16 %v1873_v20  ;;  %2906 = vst [vmem:[%s3903_s5 + $0xd0] sm:$0xff] %v2854_v61   ;;  %v2859_v30 = vpack.c.bf16 %v2068_v16, %v2067_v13  ;;  %v1937_v31 = vunpack.c.l.bf16 %v1874_v15 }
 0x237   : > { %v2070_v18 = vadd.f32 %v3663_v25, %v2001_v53  ;;  %v1938_v33 = vunpack.c.h.bf16 %v1874_v15  ;;  %v2071_v22 = vadd.f32 %v3663_v25, %v2002_v3  ;;  %v2004_v23 = vmul.f32 %v3661_v55, %v1935_v57 }
 0x238   : > { %v2072_v35 = vadd.f32 %v3663_v25, %v2003_v21  ;;  %v2005_v49 = vmul.f32 %v3661_v55, %v1936_v28  ;;  %2907 = vst [vmem:[%s3903_s5 + $0xd8] sm:$0xff] %v2859_v30   ;;  %v2006_v37 = vmul.f32 %v3661_v55, %v1937_v31 }
 0x239   : > { %v2864_v36 = vpack.c.bf16 %v2070_v18, %v2069_v19  ;;  %v2007_v40 = vmul.f32 %v3661_v55, %v1938_v33  ;;  %v2073_v41 = vadd.f32 %v3663_v25, %v2004_v23 }
 0x23a   : > { %v2869_v27 = vpack.c.bf16 %v2072_v35, %v2071_v22  ;;  %v2074_v17 = vadd.f32 %v3663_v25, %v2005_v49  ;;  %v2075_v42 = vadd.f32 %v3663_v25, %v2006_v37 }
 0x23b   : > { %2908 = vst [vmem:[%s3903_s5 + $0xe0] sm:$0xff] %v2864_v36   ;;  %v2076_v47 = vadd.f32 %v3663_v25, %v2007_v40 }
 0x23c   : > { %2909 = vst [vmem:[%s3903_s5 + $0xe8] sm:$0xff] %v2869_v27   ;;  %v2874_v44 = vpack.c.bf16 %v2074_v17, %v2073_v41 }
 0x23d   : > { %v2879_v45 = vpack.c.bf16 %v2076_v47, %v2075_v42 }
 0x23e   : > { %2910 = vst [vmem:[%s3903_s5 + $0xf0] sm:$0xff] %v2874_v44  }
 0x23f   : > { %2911 = vst [vmem:[%s3903_s5 + $0xf8] sm:$0xff] %v2879_v45  }
 0x240 PF: > { %s15_s20 = sadd.s32 1, %s3085_s20   ;;  %s3904_s18 = smov %s3081_s19 }
 0x241   : > { %p12_p8 = scmp.ge.s32.totalorder %s15_s20, 4   ;;  %s3905_s19 = smov %s3907_s21 }
 0x243   :  { %14 = sbr.rel (!%p12_p8) target bundleno = 2 (0x2), region = 88 }

// kernel: evaluate.8
= control target key start
LH: loop header
LB: loop body
LE: loop exit
PB: predicated region body
PF: predicated region fallthrough
CT: control target
= control target key end

     0   :  { %s1628_s18 = smov 0   ;;  %s1630_s19 = smov 0   ;;  %s1858_s0 = inlined_call_operand.vmem [shape: bf16[128,288], index: 0, kind: input, shape index: {}]   ;;  %s1859_s1 = inlined_call_operand.vmem [shape: bf16[288,128], index: 1, kind: input, shape index: {}]   ;;  %s1860_s2 = inlined_call_operand.vmem [shape: f32[1,128], index: 2, kind: input, shape index: {}]   ;;  %s1861_s3 = inlined_call_operand.vmem [shape: f32[1,128], index: 3, kind: input, shape index: {}]   ;;  %s1862_s4 = inlined_call_operand.vmem [shape: f32[1,128], index: 4, kind: input, shape index: {}]   ;;  %s1863_s5 = inlined_call_operand.vmem [shape: bf16[128,128], index: 5, kind: output, shape index: {}]  }
   0x1   :  { %s1632_s20 = smov 0  }
   0x2 LB: > { %s27_s21 = sadd.s32 1, %s1591_s19  ;;  %p1243_p0 = scmp.ge.s32.totalorder %s1595_s20, 1  ;;  %s1595_s20 = sphi %s1632_s20, %s15_s20   ;;  %s1591_s19 = sphi %s1630_s19, %s1865_s19   ;;  %s1587_s18 = sphi %s1628_s18, %s1864_s18  }
   0x3   : > { %p29_p1 = scmp.ge.s32.totalorder %s27_s21, 2  ;;  %p211_p2 = scmp.lt.s32.totalorder %s1595_s20, 3 }
   0x5   : > { %s1867_s21 = smov (%p29_p1, %s27_s21), 0  ;;  %p212_p3 = pnand %p1243_p0, %p211_p2 }
   0x6   : > { %p263_p4 = scmp.eq.s32.totalorder (!%p212_p3), %s1587_s18, 0 }
   0x7   : > { %215 = sbr.rel (%p212_p3) target bundleno = 400 (0x190), region = 40 }
   0xe   : > { %268 = sbr.rel (!%p263_p4) target bundleno = 21 (0x15), region = 44  ;;  %v1597_v0 = vmov (%p263_p4), 0.0  }
   0xf   : > { %269 = vst [vmem:[#allocation3] sm:$0x3] (%p263_p4), %v1597_v0 }
  0x15 PF: > { %p1245_p5 = scmp.ne.s32.totalorder %s1587_s18, 0 }
  0x16   : > { %v1521_v1 = vld [vmem:[%s1859_s1 + $0x40] sm:$0xff] (!%p1245_p5)   ;;  %v1523_v3 = vld [vmem:[%s1859_s1 + $0x48] sm:$0xff] (!%p1245_p5)   ;;  %v1525_v5 = vld [vmem:[%s1859_s1 + $0x50] sm:$0xff] (!%p1245_p5)   ;;  %vm576_vm0 = vcmask (!%p1245_p5), 261120  }
  0x17   : > { %272 = sbr.rel (%p1245_p5) target bundleno = 346 (0x15a), region = 48  ;;  %v1522_v2 = vld [vmem:[%s1859_s1] sm:$0xff] (!%p1245_p5)   ;;  %1386 = vmatprep.subr.bf16.mxu0 (!%p1245_p5), %v1521_v1  ;;  %1480 = vmatprep.subr.bf16.mxu1 (!%p1245_p5), %v1521_v1  ;;  %v1524_v4 = vld [vmem:[%s1859_s1 + $0x8] sm:$0xff] (!%p1245_p5)   ;;  %v1526_v6 = vld [vmem:[%s1859_s1 + $0x10] sm:$0xff] (!%p1245_p5)  }
  0x18   : > { %1387 = vmatpush3.bf16.msra.mxu0 (!%p1245_p5), %v1522_v2  ;;  %1488 = vmatpush3.bf16.msra.mxu1 (!%p1245_p5), %v1522_v2  ;;  %v1527_v7 = vld [vmem:[%s1859_s1 + $0x58] sm:$0xff] (!%p1245_p5)   ;;  %v1529_v9 = vld [vmem:[%s1859_s1 + $0x60] sm:$0xff] (!%p1245_p5)   ;;  %v1531_v11 = vld [vmem:[%s1859_s1 + $0x68] sm:$0xff] (!%p1245_p5)  }
  0x19   : > { %1388 = vmatprep.subr.bf16.mxu0 (!%p1245_p5), %v1523_v3  ;;  %1481 = vmatprep.subr.bf16.mxu1 (!%p1245_p5), %v1523_v3  ;;  %v1528_v8 = vld [vmem:[%s1859_s1 + $0x18] sm:$0xff] (!%p1245_p5)   ;;  %v1530_v10 = vld [vmem:[%s1859_s1 + $0x20] sm:$0xff] (!%p1245_p5)   ;;  %v1532_v14 = vld [vmem:[%s1859_s1 + $0x28] sm:$0xff] (!%p1245_p5)  }
  0x1a   : > { %v1539_v12 = vld [vmem:[%s1858_s0 + $0x4] ss:$12 sps:$4 sm:$0xff] (!%p1245_p5)   ;;  %v1542_v13 = vld [vmem:[%s1858_s0 + $0x94] ss:$12 sps:$4 sm:$0xff] (!%p1245_p5)   ;;  %v1535_v17 = vld [vmem:[%s1859_s1 + $0x78] sm:$0xff] (!%p1245_p5)  }
  0x1b   : > { %v1533_v15 = vld [vmem:[%s1859_s1 + $0x70] sm:$0xff] (!%p1245_p5)   ;;  %633 = vmatprep.mubr.bf16.mxu0 (!%p1245_p5), %v1539_v12  ;;  %681 = vmatprep.mubr.bf16.mxu1 (!%p1245_p5), %v1542_v13  ;;  %v1536_v18 = vld [vmem:[%s1859_s1 + $0x38] sm:$0xff] (!%p1245_p5)   ;;  %v1537_v19 = vld [vmem:[%s1858_s0] ss:$12 sps:$4 sm:$0xff] (!%p1245_p5)  }
  0x1c   : > { %1389 = vmatpush3.bf16.msra.mxu0 (!%p1245_p5), %v1524_v4  ;;  %1489 = vmatpush3.bf16.msra.mxu1 (!%p1245_p5), %v1524_v4  ;;  %v1534_v16 = vld [vmem:[%s1859_s1 + $0x30] sm:$0xff] (!%p1245_p5)   ;;  %v1547_v20 = vld [vmem:[%s1859_s1 + $0x80] sm:$0xff] (!%p1245_p5)   ;;  %v1543_v22 = vld [vmem:[%s1858_s0 + $0x1c] ss:$12 sps:$4 sm:$0xff] (!%p1245_p5)  }
  0x1d   : > { %1390 = vmatprep.subr.bf16.mxu0 (!%p1245_p5), %v1525_v5  ;;  %1482 = vmatprep.subr.bf16.mxu1 (!%p1245_p5), %v1525_v5  ;;  %v1540_v21 = vld [vmem:[%s1858_s0 + $0x90] ss:$12 sps:$4 sm:$0xff] (!%p1245_p5)   ;;  %v1545_v23 = vld [vmem:[%s1858_s0 + $0xac] ss:$12 sps:$4 sm:$0xff] (!%p1245_p5)   ;;  %v1549_v26 = vld [vmem:[%s1858_s0 + $0xa8] ss:$12 sps:$4 sm:$0xff] (!%p1245_p5)  }
  0x1e   : > { %v1550_v24 = vld [vmem:[%s1859_s1 + $0x88] sm:$0xff]   ;;  %v1548_v25 = vld [vmem:[%s1858_s0 + $0x18] ss:$12 sps:$4 sm:$0xff]   ;;  %v1551_v27 = vld [vmem:[%s1858_s0 + $0x34] ss:$12 sps:$4 sm:$0xff]  }
  0x1f   : > { %v1553_v28 = vld [vmem:[%s1858_s0 + $0x8] ss:$12 sps:$4 sm:$0xff]   ;;  %v1554_v29 = vld [vmem:[%s1858_s0 + $0x30] ss:$12 sps:$4 sm:$0xff]   ;;  %v1555_v30 = vld [vmem:[%s1858_s0 + $0x20] ss:$12 sps:$4 sm:$0xff]  }
  0x20   : > { %1391 = vmatpush3.bf16.msra.mxu0 %v1526_v6  ;;  %1490 = vmatpush3.bf16.msra.mxu1 %v1526_v6  ;;  %v1556_v31 = vld [vmem:[%s1858_s0 + $0x4c] ss:$12 sps:$4 sm:$0xff]   ;;  %v1559_v33 = vld [vmem:[%s1858_s0 + $0x48] ss:$12 sps:$4 sm:$0xff]   ;;  %v1560_v34 = vld [vmem:[%s1858_s0 + $0x50] ss:$12 sps:$4 sm:$0xff]  }
  0x21   : > { %1392 = vmatprep.subr.bf16.mxu0 %v1527_v7  ;;  %1483 = vmatprep.subr.bf16.mxu1 %v1527_v7  ;;  %v1558_v32 = vld [vmem:[%s1858_s0 + $0x38] ss:$12 sps:$4 sm:$0xff]   ;;  %v1563_v36 = vld [vmem:[%s1858_s0 + $0x68] ss:$12 sps:$4 sm:$0xff]   ;;  %v1564_v37 = vld [vmem:[%s1858_s0 + $0x60] ss:$12 sps:$4 sm:$0xff]  }
  0x22   : > { %v1561_v35 = vld [vmem:[%s1858_s0 + $0x64] ss:$12 sps:$4 sm:$0xff]   ;;  %v1565_v38 = vld [vmem:[%s1858_s0 + $0x80] ss:$12 sps:$4 sm:$0xff]   ;;  %v1566_v39 = vld [vmem:[%s1858_s0 + $0x7c] ss:$12 sps:$4 sm:$0xff]  }
  0x23   : > { %v1568_v40 = vld [vmem:[%s1858_s0 + $0x98] ss:$12 sps:$4 sm:$0xff]   ;;  %v1570_v42 = vld [vmem:[%s1858_s0 + $0xb0] ss:$12 sps:$4 sm:$0xff]   ;;  %v1795_v3 = vld [vmem:[%s1860_s2] ss:$0 sm:$0xff] }
  0x24   : > { %1393 = vmatpush3.bf16.msra.mxu0 %v1528_v8  ;;  %1491 = vmatpush3.bf16.msra.mxu1 %v1528_v8  ;;  %v1569_v41 = vld [vmem:[%s1858_s0 + $0x78] ss:$12 sps:$4 sm:$0xff]  }
  0x25   : > { %1394 = vmatprep.subr.bf16.mxu0 %v1529_v9  ;;  %1484 = vmatprep.subr.bf16.mxu1 %v1529_v9 }
  0x28   : > { %1395 = vmatpush3.bf16.msra.mxu0 %v1530_v10  ;;  %1492 = vmatpush3.bf16.msra.mxu1 %v1530_v10 }
  0x29   : > { %1396 = vmatprep.subr.bf16.mxu0 %v1531_v11  ;;  %1485 = vmatprep.subr.bf16.mxu1 %v1531_v11 }
  0x2c   : > { %1397 = vmatpush3.bf16.msra.mxu0 %v1532_v14  ;;  %1493 = vmatpush3.bf16.msra.mxu1 %v1532_v14 }
  0x2d   : > { %1398 = vmatprep.subr.bf16.mxu0 %v1533_v15  ;;  %1486 = vmatprep.subr.bf16.mxu1 %v1533_v15 }
  0x30   : > { %1399 = vmatpush3.bf16.msra.mxu0 %v1534_v16  ;;  %1494 = vmatpush3.bf16.msra.mxu1 %v1534_v16 }
  0x31   : > { %1400 = vmatprep.subr.bf16.mxu0 %v1535_v17  ;;  %1487 = vmatprep.subr.bf16.mxu1 %v1535_v17 }
  0x34   : > { %1401 = vmatpush3.bf16.msra.mxu0 %v1536_v18  ;;  %1495 = vmatpush3.bf16.msra.mxu1 %v1536_v18 }
  0x35   : > { %1460 = vmatprep.subr.bf16.mxu1 %v1547_v20 }
  0x37   : > { %634 = vmatmul.mubr.bf16.vlgmr.msra.gmra.mrb[0].mxu0 %v1537_v19  ;;  %682 = vmatmul.mubr.bf16.vlgmr.msra.gmra.mrb[0].mxu1 %v1540_v21 }
  0x38   : > { %641 = vmatprep.mubr.bf16.mxu0 %v1543_v22  ;;  %689 = vmatprep.mubr.bf16.mxu1 %v1545_v23 }
  0x39   : > { %1461 = vmatpush3.bf16.msra.mxu1 %v1547_v20 }
  0x3a   : > { %1462 = vmatprep.subr.bf16.mxu1 %v1550_v24 }
  0x3d   : > { %1463 = vmatpush3.bf16.msra.mxu1 %v1550_v24 }
  0x3f   : > { %642 = vmatmul.mubr.bf16.gmra.mrb[4].mxu0 %v1548_v25  ;;  %690 = vmatmul.mubr.bf16.gmra.mrb[4].mxu1 %v1549_v26 }
  0x40   : > { %649 = vmatprep.mubr.bf16.mxu0 %v1551_v27  ;;  %1464 = vmatprep.mubr.msk.bf16.mxu1 %vm576_vm0, %v1553_v28 }
  0x47   : > { %650 = vmatmul.mubr.bf16.gmra.mrb[8].mxu0 %v1554_v29  ;;  %1465 = vmatmul.mubr.msk.bf16.vlgmr.msra.gmra.mrb[8].mxu1 %vm576_vm0, %v1555_v30 }
  0x48   : > { %657 = vmatprep.mubr.bf16.mxu0 %v1556_v31  ;;  %1468 = vmatprep.mubr.msk.bf16.mxu1 %vm576_vm0, %v1558_v32 }
  0x4f   : > { %658 = vmatmul.mubr.bf16.gmra.mrb[12].mxu0 %v1559_v33  ;;  %1469 = vmatmul.mubr.msk.bf16.gmra.mrb[12].mxu1 %vm576_vm0, %v1560_v34 }
  0x50   : > { %665 = vmatprep.mubr.bf16.mxu0 %v1561_v35  ;;  %1472 = vmatprep.mubr.msk.bf16.mxu1 %vm576_vm0, %v1563_v36 }
  0x57   : > { %666 = vmatmul.mubr.bf16.gmra.mrb[16].mxu0 %v1564_v37  ;;  %1473 = vmatmul.mubr.msk.bf16.gmra.mrb[16].mxu1 %vm576_vm0, %v1565_v38 }
  0x58   : > { %673 = vmatprep.mubr.bf16.mxu0 %v1566_v39  ;;  %1476 = vmatprep.mubr.msk.bf16.mxu1 %vm576_vm0, %v1568_v40 }
  0x5f   : > { %674 = vmatmul.mubr.bf16.gmra.mrb[20].mxu0 %v1569_v41  ;;  %1477 = vmatmul.mubr.msk.bf16.gmra.mrb[20].mxu1 %vm576_vm0, %v1570_v42 }
 0x10a   : > { %v1402_v43 = vpop.f32.mrb[0].mxu0  ;;  %v1438_v44 = vpop.f32.mrb[0].mxu1 }
 0x10b   : > { %v1403_v45 = vpop.f32.mrb[1].mxu0  ;;  %v1439_v46 = vpop.f32.mrb[1].mxu1 }
 0x10c   : > { %v1404_v47 = vadd.f32 %v1403_v45, %v1402_v43  ;;  %v1405_v48 = vpop.f32.mrb[2].mxu0  ;;  %v1784_v49 = vadd.f32 %v1439_v46, %v1438_v44  ;;  %v1441_v50 = vpop.f32.mrb[2].mxu1 }
 0x10d   : > { %v1406_v51 = vpop.f32.mrb[3].mxu0  ;;  %v1442_v52 = vpop.f32.mrb[3].mxu1 }
 0x10e   : > { %v1407_v53 = vadd.f32 %v1406_v51, %v1405_v48  ;;  %v1786_v54 = vadd.f32 %v1442_v52, %v1441_v50  ;;  %v636_v7 = vadd.f32 %v1404_v47, %v1795_v3 }
 0x110   : > { %v639_v16 = vadd.f32 %v1407_v53, %v1795_v3 }
 0x112   : > { %v1408_v55 = vpop.f32.mrb[4].mxu0  ;;  %v1444_v56 = vpop.f32.mrb[4].mxu1 }
 0x113   : > { %v1409_v57 = vpop.f32.mrb[5].mxu0  ;;  %v1445_v58 = vpop.f32.mrb[5].mxu1 }
 0x114   : > { %v1410_v59 = vadd.f32 %v1409_v57, %v1408_v55  ;;  %v1411_v60 = vpop.f32.mrb[6].mxu0  ;;  %v1788_v61 = vadd.f32 %v1445_v58, %v1444_v56  ;;  %v1447_v62 = vpop.f32.mrb[6].mxu1 }
 0x115   : > { %v1412_v63 = vpop.f32.mrb[7].mxu0  ;;  %v1448_v0 = vpop.f32.mrb[7].mxu1 }
 0x116   : > { %v1413_v1 = vadd.f32 %v1412_v63, %v1411_v60  ;;  %v1790_v2 = vadd.f32 %v1448_v0, %v1447_v62  ;;  %v644_v4 = vadd.f32 %v1410_v59, %v1795_v3 }
 0x118   : > { %v647_v11 = vadd.f32 %v1413_v1, %v1795_v3 }
 0x11a   : > { %v1414_v5 = vpop.f32.mrb[8].mxu0  ;;  %v1466_v6 = vpop.f32.mrb[8].mxu1 }
 0x11b   : > { %v741_v8 = vadd.f32 %v1466_v6, %v644_v4  ;;  %v1415_v9 = vpop.f32.mrb[9].mxu0  ;;  %v732_v10 = vpop.f32.mrb[9].mxu1 }
 0x11c   : > { %v1416_v12 = vadd.f32 %v1415_v9, %v1414_v5  ;;  %v733_v13 = vadd.f32 %v732_v10, %v636_v7  ;;  %v1417_v14 = vpop.f32.mrb[10].mxu0  ;;  %v1467_v15 = vpop.f32.mrb[10].mxu1 }
 0x11d   : > { %v744_v17 = vadd.f32 %v1467_v15, %v647_v11  ;;  %v1418_v18 = vpop.f32.mrb[11].mxu0  ;;  %v735_v19 = vpop.f32.mrb[11].mxu1  ;;  %v797_v23 = vmax.f32 %v741_v8, 0.0 }
 0x11e   : > { %v795_v20 = vmax.f32 %v733_v13, 0.0  ;;  %v1419_v21 = vadd.f32 %v1418_v18, %v1417_v14  ;;  %v736_v22 = vadd.f32 %v735_v19, %v639_v16  ;;  %v652_v27 = vadd.f32 %v1416_v12, %v1795_v3 }
 0x11f   : > { %v798_v24 = vmax.f32 %v744_v17, 0.0  ;;  %v956_v34 = vmul.f32 %v797_v23, %v797_v23 }
 0x120   : > { %v796_v25 = vmax.f32 %v736_v22, 0.0  ;;  %v954_v28 = vmul.f32 %v795_v20, %v795_v20  ;;  %v655_v45 = vadd.f32 %v1419_v21, %v1795_v3 }
 0x121   : > { %v812_v26 = vpack.c.bf16 %v798_v24, %v797_v23  ;;  %v957_v43 = vmul.f32 %v798_v24, %v798_v24 }
 0x122   : > { %v811_v29 = vpack.c.bf16 %v796_v25, %v795_v20  ;;  %v930_v30 = vadd.f32 %v796_v25, %v795_v20  ;;  %v955_v31 = vmul.f32 %v796_v25, %v796_v25  ;;  %v1420_v32 = vpop.f32.mrb[12].mxu0  ;;  %v1470_v33 = vpop.f32.mrb[12].mxu1 }
 0x123   : > { %823 = vst [vmem:[#allocation2 + $0x8] sm:$0xff] %v812_v26  ;;  %v1421_v35 = vpop.f32.mrb[13].mxu0  ;;  %v748_v36 = vpop.f32.mrb[13].mxu1 }
 0x124   : > { %822 = vst [vmem:[#allocation2] sm:$0xff] %v811_v29  ;;  %v931_v37 = vadd.f32 %v930_v30, %v797_v23  ;;  %v970_v38 = vadd.f32 %v955_v31, %v954_v28  ;;  %v1422_v39 = vadd.f32 %v1421_v35, %v1420_v32  ;;  %v749_v40 = vadd.f32 %v748_v36, %v652_v27  ;;  %v1423_v41 = vpop.f32.mrb[14].mxu0  ;;  %v1471_v42 = vpop.f32.mrb[14].mxu1 }
 0x125   : > { %v1424_v44 = vpop.f32.mrb[15].mxu0  ;;  %v751_v46 = vpop.f32.mrb[15].mxu1  ;;  %v692_v28 = vadd.f32 %v1788_v61, %v1795_v3  ;;  %v684_v35 = vadd.f32 %v1784_v49, %v1795_v3 }
 0x126   : > { %v971_v47 = vadd.f32 %v970_v38, %v956_v34  ;;  %v660_v48 = vadd.f32 %v1422_v39, %v1795_v3  ;;  %v799_v50 = vmax.f32 %v749_v40, 0.0  ;;  %v932_v51 = vadd.f32 %v931_v37, %v798_v24 }
 0x127   : > { %v1425_v52 = vadd.f32 %v1424_v44, %v1423_v41  ;;  %v752_v53 = vadd.f32 %v751_v46, %v655_v45  ;;  %v695_v37 = vadd.f32 %v1790_v2, %v1795_v3  ;;  %v687_v46 = vadd.f32 %v1786_v54, %v1795_v3 }
 0x128   : > { %v757_v55 = vadd.f32 %v1470_v33, %v660_v48  ;;  %v933_v56 = vadd.f32 %v932_v51, %v799_v50  ;;  %v958_v57 = vmul.f32 %v799_v50, %v799_v50  ;;  %v972_v58 = vadd.f32 %v971_v47, %v957_v43 }
 0x129   : > { %v663_v59 = vadd.f32 %v1425_v52, %v1795_v3  ;;  %v800_v60 = vmax.f32 %v752_v53, 0.0 }
 0x12a   : > { %v801_v62 = vmax.f32 %v757_v55, 0.0  ;;  %v973_v63 = vadd.f32 %v972_v58, %v958_v57  ;;  %v1426_v0 = vpop.f32.mrb[16].mxu0  ;;  %v1474_v1 = vpop.f32.mrb[16].mxu1 }
 0x12b   : > { %v760_v4 = vadd.f32 %v1471_v42, %v663_v59  ;;  %v813_v5 = vpack.c.bf16 %v800_v60, %v799_v50  ;;  %v934_v6 = vadd.f32 %v933_v56, %v800_v60  ;;  %v959_v7 = vmul.f32 %v800_v60, %v800_v60  ;;  %v1427_v8 = vpop.f32.mrb[17].mxu0  ;;  %v764_v9 = vpop.f32.mrb[17].mxu1 }
 0x12c   : > { %v960_v10 = vmul.f32 %v801_v62, %v801_v62  ;;  %v1428_v11 = vadd.f32 %v1427_v8, %v1426_v0  ;;  %v1429_v12 = vpop.f32.mrb[18].mxu0  ;;  %v1475_v13 = vpop.f32.mrb[18].mxu1 }
 0x12d   : > { %v802_v14 = vmax.f32 %v760_v4, 0.0  ;;  %824 = vst [vmem:[#allocation2 + $0x10] sm:$0xff] %v813_v5  ;;  %v935_v15 = vadd.f32 %v934_v6, %v801_v62  ;;  %v974_v16 = vadd.f32 %v973_v63, %v959_v7  ;;  %v1430_v17 = vpop.f32.mrb[19].mxu0  ;;  %v767_v18 = vpop.f32.mrb[19].mxu1 }
 0x12e   : > { %v1431_v19 = vadd.f32 %v1430_v17, %v1429_v12  ;;  %v668_v20 = vadd.f32 %v1428_v11, %v1795_v3 }
 0x12f   : > { %v814_v21 = vpack.c.bf16 %v802_v14, %v801_v62  ;;  %v961_v22 = vmul.f32 %v802_v14, %v802_v14  ;;  %v975_v23 = vadd.f32 %v974_v16, %v960_v10  ;;  %v936_v24 = vadd.f32 %v935_v15, %v802_v14 }
 0x130   : > { %v765_v25 = vadd.f32 %v764_v9, %v668_v20  ;;  %v671_v26 = vadd.f32 %v1431_v19, %v1795_v3 }
 0x131   : > { %825 = vst [vmem:[#allocation2 + $0x18] sm:$0xff] %v814_v21  ;;  %v976_v27 = vadd.f32 %v975_v23, %v961_v22 }
 0x132   : > { %v803_v29 = vmax.f32 %v765_v25, 0.0  ;;  %v768_v30 = vadd.f32 %v767_v18, %v671_v26  ;;  %v1432_v31 = vpop.f32.mrb[20].mxu0  ;;  %v1478_v32 = vpop.f32.mrb[20].mxu1 }
 0x133   : > { %v789_v33 = vadd.f32 %v1478_v32, %v692_v28  ;;  %v1433_v34 = vpop.f32.mrb[21].mxu0  ;;  %v780_v36 = vpop.f32.mrb[21].mxu1  ;;  %v929_v32 = vld [vmem:[#allocation3] sm:$0x1] }
 0x134   : > { %v937_v38 = vadd.f32 %v936_v24, %v803_v29  ;;  %v962_v39 = vmul.f32 %v803_v29, %v803_v29  ;;  %v804_v40 = vmax.f32 %v768_v30, 0.0  ;;  %v1434_v41 = vadd.f32 %v1433_v34, %v1432_v31  ;;  %v1435_v42 = vpop.f32.mrb[22].mxu0  ;;  %v1479_v43 = vpop.f32.mrb[22].mxu1 }
 0x135   : > { %v781_v61 = vadd.f32 %v780_v36, %v684_v35  ;;  %v792_v44 = vadd.f32 %v1479_v43, %v695_v37  ;;  %v1436_v45 = vpop.f32.mrb[23].mxu0  ;;  %v783_v47 = vpop.f32.mrb[23].mxu1  ;;  %v809_v52 = vmax.f32 %v789_v33, 0.0  ;;  %v953_v35 = vld [vmem:[#allocation3 + $0x1] sm:$0x1] }
 0x136   : > { %v977_v48 = vadd.f32 %v976_v27, %v962_v39  ;;  %v815_v50 = vpack.c.bf16 %v804_v40, %v803_v29  ;;  %v938_v49 = vadd.f32 %v937_v38, %v804_v40  ;;  %v963_v51 = vmul.f32 %v804_v40, %v804_v40 }
 0x137   : > { %v676_v2 = vadd.f32 %v1434_v41, %v1795_v3  ;;  %v810_v53 = vmax.f32 %v792_v44, 0.0  ;;  %v1437_v56 = vadd.f32 %v1436_v45, %v1435_v42  ;;  %v784_v57 = vadd.f32 %v783_v47, %v687_v46 }
 0x138   : > { %826 = vst [vmem:[#allocation2 + $0x20] sm:$0xff] %v815_v50  ;;  %v978_v55 = vadd.f32 %v977_v48, %v963_v51  ;;  %v807_v60 = vmax.f32 %v781_v61, 0.0  ;;  %v968_v17 = vmul.f32 %v809_v52, %v809_v52 }
 0x139   : > { %v773_v58 = vadd.f32 %v1474_v1, %v676_v2  ;;  %v818_v59 = vpack.c.bf16 %v810_v53, %v809_v52  ;;  %v679_v62 = vadd.f32 %v1437_v56, %v1795_v3  ;;  %v808_v63 = vmax.f32 %v784_v57, 0.0 }
 0x13a   : > { %v966_v12 = vmul.f32 %v807_v60, %v807_v60 }
 0x13b   : > { %v805_v54 = vmax.f32 %v773_v58, 0.0  ;;  %829 = vst [vmem:[#allocation2 + $0x38] sm:$0xff] %v818_v59  ;;  %v776_v0 = vadd.f32 %v1475_v13, %v679_v62  ;;  %v817_v4 = vpack.c.bf16 %v808_v63, %v807_v60  ;;  %v967_v16 = vmul.f32 %v808_v63, %v808_v63 }
 0x13c   : > { %v969_v13 = vmul.f32 %v810_v53, %v810_v53 }
 0x13d   : > { %v939_v5 = vadd.f32 %v938_v49, %v805_v54  ;;  %v964_v6 = vmul.f32 %v805_v54, %v805_v54  ;;  %v806_v7 = vmax.f32 %v776_v0, 0.0  ;;  %828 = vst [vmem:[#allocation2 + $0x30] sm:$0xff] %v817_v4 }
 0x13f   : > { %v979_v8 = vadd.f32 %v978_v55, %v964_v6  ;;  %v816_v9 = vpack.c.bf16 %v806_v7, %v805_v54  ;;  %v965_v10 = vmul.f32 %v806_v7, %v806_v7  ;;  %v940_v11 = vadd.f32 %v939_v5, %v806_v7 }
 0x141   : > { %827 = vst [vmem:[#allocation2 + $0x28] sm:$0xff] %v816_v9  ;;  %v941_v1 = vadd.f32 %v940_v11, %v807_v60  ;;  %v980_v14 = vadd.f32 %v979_v8, %v965_v10 }
 0x143   : > { %v942_v15 = vadd.f32 %v941_v1, %v808_v63  ;;  %v981_v3 = vadd.f32 %v980_v14, %v966_v12 }
 0x145   : > { %v943_v18 = vadd.f32 %v942_v15, %v809_v52  ;;  %v982_v19 = vadd.f32 %v981_v3, %v967_v16 }
 0x147   : > { %v944_v20 = vadd.f32 %v943_v18, %v810_v53  ;;  %v983_v21 = vadd.f32 %v982_v19, %v968_v17 }
 0x149   : > { %v945_v22 = vrot.slane %v944_v20, 4  ;;  %v984_v23 = vadd.f32 %v983_v21, %v969_v13 }
 0x14b   : > { %v946_v24 = vadd.f32 %v945_v22, %v944_v20  ;;  %v985_v25 = vrot.slane %v984_v23, 4 }
 0x14d   : > { %v947_v26 = vrot.slane %v946_v24, 2  ;;  %v986_v27 = vadd.f32 %v985_v25, %v984_v23 }
 0x14f   : > { %v948_v28 = vadd.f32 %v947_v26, %v946_v24  ;;  %v987_v29 = vrot.slane %v986_v27, 2 }
 0x151   : > { %v949_v30 = vrot.slane %v948_v28, 1  ;;  %v988_v31 = vadd.f32 %v987_v29, %v986_v27 }
 0x153   : > { %v950_v33 = vadd.f32 %v949_v30, %v948_v28  ;;  %v989_v34 = vrot.slane %v988_v31, 1 }
 0x155   : > { %v951_v36 = vadd.f32 %v950_v33, %v929_v32  ;;  %v990_v37 = vadd.f32 %v989_v34, %v988_v31 }
 0x157   : > { %952 = vst [vmem:[#allocation3] sm:$0x1] %v951_v36  ;;  %v991_v38 = vadd.f32 %v990_v37, %v953_v35 }
 0x159   : > { %992 = vst [vmem:[#allocation3 + $0x1] sm:$0x1] %v991_v38 }
 0x15a PF: > { %p993_p6 = scmp.eq.s32.totalorder %s1587_s18, 1 }
 0x15b   : > { %v1005_v46 = vld [vmem:[%s1861_s3] sm:$0x1] (%p993_p6) }
 0x15c   : > { %997 = sbr.rel (!%p993_p6) target bundleno = 379 (0x17b), region = 52  ;;  %v1010_v50 = vld [vmem:[%s1862_s4] sm:$0x1] (%p993_p6) }
 0x15e   : > { %v998_v39 = vld [vmem:[#allocation3] sm:$0x1] (%p993_p6) }
 0x15f   : > { %v999_v41 = vmul.f32 (%p993_p6), 0.0078125, %v998_v39 }
 0x160   : > { %v1000_v40 = vld [vmem:[#allocation3 + $0x1] sm:$0x1] (%p993_p6) }
 0x161   : > { %v1001_v42 = vmul.f32 (%p993_p6), 0.0078125, %v1000_v40  ;;  %v1002_v43 = vmul.f32 (%p993_p6), %v999_v41, %v999_v41 }
 0x163   : > { %v1003_v61 = vsub.f32 %v1001_v42, %v1002_v43 }
 0x165   : > { %v1004_v44 = vmax.f32 %v1003_v61, 0.0 }
 0x167   : > { %v1006_v45 = vadd.f32 1e-05, %v1004_v44 }
 0x169   : > { %1571 = vrsqrt.f32 %v1006_v45 }
 0x173   : > { %v1572_v47 = vpop.eup %1571 }
 0x174   : > { %v1008_v48 = vmul.f32 %v1572_v47, %v1005_v46 }
 0x176   : > { %1009 = vst [vmem:[#allocation4] sm:$0x1] %v1008_v48  ;;  %v1011_v49 = vmul.f32 %v1008_v48, %v999_v41 }
 0x178   : > { %v1012_v51 = vsub.f32 %v1010_v50, %v1011_v49 }
 0x17a   : > { %1013 = vst [vmem:[#allocation4 + $0x1] sm:$0x1] %v1012_v51 }
 0x17b PF: > { %p1298_p7 = scmp.ne.s32.totalorder %s1587_s18, 1 }
 0x17c   : > { %v1020_v52 = vld [vmem:[#allocation2] sm:$0xff] (!%p1298_p7)  ;;  %v1021_v56 = vld [vmem:[#allocation2 + $0x8] sm:$0xff] (!%p1298_p7)  ;;  %v1022_v57 = vld [vmem:[#allocation2 + $0x10] sm:$0xff] (!%p1298_p7) }
 0x17d   : > { %1016 = sbr.rel (%p1298_p7) target bundleno = 400 (0x190), region = 56  ;;  %v1299_v2 = vld [vmem:[#allocation4] ss:$0 sm:$0xff] (!%p1298_p7)  ;;  %v1028_v53 = vunpack.c.l.bf16 (!%p1298_p7), %v1020_v52  ;;  %v1029_v55 = vunpack.c.h.bf16 (!%p1298_p7), %v1020_v52  ;;  %v1023_v58 = vld [vmem:[#allocation2 + $0x18] sm:$0xff] (!%p1298_p7)  ;;  %v1030_v60 = vunpack.c.l.bf16 (!%p1298_p7), %v1021_v56  ;;  %v1031_v62 = vunpack.c.h.bf16 (!%p1298_p7), %v1021_v56  ;;  %v1025_v16 = vld [vmem:[#allocation2 + $0x28] sm:$0xff] (!%p1298_p7) }
 0x17e   : > { %v1032_v63 = vunpack.c.l.bf16 (!%p1298_p7), %v1022_v57  ;;  %v1033_v54 = vunpack.c.h.bf16 (!%p1298_p7), %v1022_v57  ;;  %v1034_v5 = vunpack.c.l.bf16 (!%p1298_p7), %v1023_v58  ;;  %v1035_v6 = vunpack.c.h.bf16 (!%p1298_p7), %v1023_v58  ;;  %v1024_v11 = vld [vmem:[#allocation2 + $0x20] sm:$0xff] (!%p1298_p7)  ;;  %v1026_v13 = vld [vmem:[#allocation2 + $0x30] sm:$0xff] (!%p1298_p7)  ;;  %v1027_v24 = vld [vmem:[#allocation2 + $0x38] sm:$0xff] (!%p1298_p7) }
 0x17f   : > { %v1049_v0 = vmul.f32 (!%p1298_p7), %v1299_v2, %v1028_v53  ;;  %v1050_v4 = vmul.f32 (!%p1298_p7), %v1299_v2, %v1029_v55  ;;  %v1051_v7 = vmul.f32 (!%p1298_p7), %v1299_v2, %v1030_v60  ;;  %v1052_v8 = vmul.f32 (!%p1298_p7), %v1299_v2, %v1031_v62 }
 0x180   : > { %v1053_v9 = vmul.f32 (!%p1298_p7), %v1299_v2, %v1032_v63  ;;  %v1054_v10 = vmul.f32 (!%p1298_p7), %v1299_v2, %v1033_v54  ;;  %v1055_v14 = vmul.f32 (!%p1298_p7), %v1299_v2, %v1034_v5  ;;  %v1056_v15 = vmul.f32 (!%p1298_p7), %v1299_v2, %v1035_v6 }
 0x181   : > { %v1300_v59 = vld [vmem:[#allocation4 + $0x1] ss:$0 sm:$0xff] (!%p1298_p7)  ;;  %v1036_v23 = vunpack.c.l.bf16 (!%p1298_p7), %v1024_v11  ;;  %v1037_v27 = vunpack.c.h.bf16 (!%p1298_p7), %v1024_v11  ;;  %v1038_v28 = vunpack.c.l.bf16 (!%p1298_p7), %v1025_v16  ;;  %v1039_v31 = vunpack.c.h.bf16 (!%p1298_p7), %v1025_v16 }
 0x182   : > { %v1070_v12 = vadd.f32 (!%p1298_p7), %v1300_v59, %v1049_v0  ;;  %v1071_v1 = vadd.f32 (!%p1298_p7), %v1300_v59, %v1050_v4  ;;  %v1072_v3 = vadd.f32 (!%p1298_p7), %v1300_v59, %v1051_v7  ;;  %v1073_v17 = vadd.f32 (!%p1298_p7), %v1300_v59, %v1052_v8 }
 0x183   : > { %v1074_v18 = vadd.f32 (!%p1298_p7), %v1300_v59, %v1053_v9  ;;  %v1075_v19 = vadd.f32 (!%p1298_p7), %v1300_v59, %v1054_v10  ;;  %v1076_v21 = vadd.f32 (!%p1298_p7), %v1300_v59, %v1055_v14  ;;  %v1077_v22 = vadd.f32 (!%p1298_p7), %v1300_v59, %v1056_v15 }
 0x184   : > { %v1342_v20 = vpack.c.bf16 %v1071_v1, %v1070_v12  ;;  %v1347_v25 = vpack.c.bf16 %v1073_v17, %v1072_v3  ;;  %v1057_v30 = vmul.f32 %v1299_v2, %v1036_v23  ;;  %v1040_v32 = vunpack.c.l.bf16 %v1026_v13 }
 0x185   : > { %v1352_v26 = vpack.c.bf16 %v1075_v19, %v1074_v18  ;;  %v1357_v29 = vpack.c.bf16 %v1077_v22, %v1076_v21  ;;  %v1058_v33 = vmul.f32 %v1299_v2, %v1037_v27  ;;  %v1059_v34 = vmul.f32 %v1299_v2, %v1038_v28 }
 0x186   : > { %1343 = vst [vmem:[%s1863_s5] sm:$0xff] %v1342_v20   ;;  %1379 = vst [vmem:[%s1863_s5 + $0x8] sm:$0xff] %v1347_v25   ;;  %v1041_v35 = vunpack.c.h.bf16 %v1026_v13  ;;  %v1042_v36 = vunpack.c.l.bf16 %v1027_v24  ;;  %v1078_v37 = vadd.f32 %v1300_v59, %v1057_v30  ;;  %v1060_v38 = vmul.f32 %v1299_v2, %v1039_v31 }
 0x187   : > { %1380 = vst [vmem:[%s1863_s5 + $0x10] sm:$0xff] %v1352_v26   ;;  %1381 = vst [vmem:[%s1863_s5 + $0x18] sm:$0xff] %v1357_v29   ;;  %v1061_v39 = vmul.f32 %v1299_v2, %v1040_v32  ;;  %v1043_v40 = vunpack.c.h.bf16 %v1027_v24  ;;  %v1079_v41 = vadd.f32 %v1300_v59, %v1058_v33  ;;  %v1080_v42 = vadd.f32 %v1300_v59, %v1059_v34 }
 0x188   : > { %v1062_v43 = vmul.f32 %v1299_v2, %v1041_v35  ;;  %v1063_v61 = vmul.f32 %v1299_v2, %v1042_v36  ;;  %v1081_v44 = vadd.f32 %v1300_v59, %v1060_v38 }
 0x189   : > { %v1082_v45 = vadd.f32 %v1300_v59, %v1061_v39  ;;  %v1064_v46 = vmul.f32 %v1299_v2, %v1043_v40  ;;  %v1362_v47 = vpack.c.bf16 %v1079_v41, %v1078_v37 }
 0x18a   : > { %v1083_v48 = vadd.f32 %v1300_v59, %v1062_v43  ;;  %v1084_v50 = vadd.f32 %v1300_v59, %v1063_v61  ;;  %v1367_v49 = vpack.c.bf16 %v1081_v44, %v1080_v42 }
 0x18b   : > { %v1085_v51 = vadd.f32 %v1300_v59, %v1064_v46  ;;  %1382 = vst [vmem:[%s1863_s5 + $0x20] sm:$0xff] %v1362_v47  }
 0x18c   : > { %v1372_v52 = vpack.c.bf16 %v1083_v48, %v1082_v45  ;;  %1383 = vst [vmem:[%s1863_s5 + $0x28] sm:$0xff] %v1367_v49  }
 0x18d   : > { %v1377_v53 = vpack.c.bf16 %v1085_v51, %v1084_v50 }
 0x18e   : > { %1384 = vst [vmem:[%s1863_s5 + $0x30] sm:$0xff] %v1372_v52  }
 0x18f   : > { %1385 = vst [vmem:[%s1863_s5 + $0x38] sm:$0xff] %v1377_v53  }
 0x190 PF: > { %s15_s20 = sadd.s32 1, %s1595_s20   ;;  %s1864_s18 = smov %s1591_s19 }
 0x191   : > { %p12_p8 = scmp.ge.s32.totalorder %s15_s20, 4   ;;  %s1865_s19 = smov %s1867_s21 }
 0x193   :  { %14 = sbr.rel (!%p12_p8) target bundleno = 2 (0x2), region = 88 }

// kernel: evaluate.9
= control target key start
LH: loop header
LB: loop body
LE: loop exit
PB: predicated region body
PF: predicated region fallthrough
CT: control target
= control target key end

     0   :  { %s1285_s18 = smov 0   ;;  %s1287_s19 = smov 0   ;;  %s1471_s0 = inlined_call_operand.vmem [shape: bf16[32,576], index: 0, kind: input, shape index: {}]   ;;  %s1472_s1 = inlined_call_operand.vmem [shape: bf16[576,128], index: 1, kind: input, shape index: {}]   ;;  %s1473_s2 = inlined_call_operand.vmem [shape: f32[1,128], index: 2, kind: input, shape index: {}]   ;;  %s1474_s3 = inlined_call_operand.vmem [shape: f32[1,128], index: 3, kind: input, shape index: {}]   ;;  %s1475_s4 = inlined_call_operand.vmem [shape: f32[1,128], index: 4, kind: input, shape index: {}]   ;;  %s1476_s5 = inlined_call_operand.vmem [shape: bf16[32,128], index: 5, kind: output, shape index: {}]  }
   0x1   :  { %s1289_s20 = smov 0  }
   0x2 LB: > { %s27_s21 = sadd.s32 1, %s1248_s19  ;;  %p998_p0 = scmp.ge.s32.totalorder %s1252_s20, 1  ;;  %s1252_s20 = sphi %s1289_s20, %s15_s20   ;;  %s1248_s19 = sphi %s1287_s19, %s1478_s19   ;;  %s1244_s18 = sphi %s1285_s18, %s1477_s18  }
   0x3   : > { %p29_p1 = scmp.ge.s32.totalorder %s27_s21, 2  ;;  %p211_p2 = scmp.lt.s32.totalorder %s1252_s20, 3 }
   0x5   : > { %s1480_s21 = smov (%p29_p1, %s27_s21), 0  ;;  %p212_p3 = pnand %p998_p0, %p211_p2 }
   0x6   : > { %p263_p4 = scmp.eq.s32.totalorder (!%p212_p3), %s1244_s18, 0 }
   0x7   : > { %215 = sbr.rel (%p212_p3) target bundleno = 358 (0x166), region = 40 }
   0xe   : > { %268 = sbr.rel (!%p263_p4) target bundleno = 21 (0x15), region = 44  ;;  %v1254_v0 = vmov (%p263_p4), 0.0  }
   0xf   : > { %269 = vst [vmem:[#allocation3] sm:$0x3] (%p263_p4), %v1254_v0 }
  0x15 PF: > { %p1000_p5 = scmp.ne.s32.totalorder %s1244_s18, 0 }
  0x16   : > { %v1178_v1 = vld [vmem:[%s1472_s1 + $0x40] sm:$0xff] (!%p1000_p5)   ;;  %v1182_v5 = vld [vmem:[%s1472_s1 + $0x48] sm:$0xff] (!%p1000_p5)   ;;  %v1186_v9 = vld [vmem:[%s1472_s1 + $0x50] sm:$0xff] (!%p1000_p5)   ;;  %vm630_vm0 = vcmask (!%p1000_p5), 523264  }
  0x17   : > { %272 = sbr.rel (%p1000_p5) target bundleno = 313 (0x139), region = 48  ;;  %v1179_v2 = vld [vmem:[%s1472_s1] sm:$0xff] (!%p1000_p5)   ;;  %1079 = vmatprep.subr.bf16.mxu0 (!%p1000_p5), %v1178_v1  ;;  %v1183_v6 = vld [vmem:[%s1472_s1 + $0x8] sm:$0xff] (!%p1000_p5)   ;;  %v1187_v10 = vld [vmem:[%s1472_s1 + $0x10] sm:$0xff] (!%p1000_p5)  }
  0x18   : > { %v1180_v3 = vld [vmem:[%s1472_s1 + $0xc0] sm:$0xff] (!%p1000_p5)   ;;  %1080 = vmatpush3.bf16.msra.mxu0 (!%p1000_p5), %v1179_v2  ;;  %v1184_v7 = vld [vmem:[%s1472_s1 + $0xc8] sm:$0xff] (!%p1000_p5)   ;;  %v1188_v11 = vld [vmem:[%s1472_s1 + $0xd0] sm:$0xff] (!%p1000_p5)  }
  0x19   : > { %v1181_v4 = vld [vmem:[%s1472_s1 + $0x80] sm:$0xff] (!%p1000_p5)   ;;  %1107 = vmatprep.subr.bf16.mxu1 (!%p1000_p5), %v1180_v3  ;;  %1081 = vmatprep.subr.bf16.mxu0 (!%p1000_p5), %v1182_v5  ;;  %v1185_v8 = vld [vmem:[%s1472_s1 + $0x88] sm:$0xff] (!%p1000_p5)   ;;  %v1189_v12 = vld [vmem:[%s1472_s1 + $0x90] sm:$0xff] (!%p1000_p5)  }
  0x1a   : > { %1108 = vmatpush3.bf16.msra.mxu1 (!%p1000_p5), %v1181_v4  ;;  %v1190_v13 = vld [vmem:[%s1472_s1 + $0x58] sm:$0xff] (!%p1000_p5)   ;;  %v1194_v17 = vld [vmem:[%s1472_s1 + $0x60] sm:$0xff] (!%p1000_p5)   ;;  %v1198_v21 = vld [vmem:[%s1472_s1 + $0x68] sm:$0xff] (!%p1000_p5)  }
  0x1b   : > { %1109 = vmatprep.subr.bf16.mxu1 (!%p1000_p5), %v1184_v7  ;;  %v1191_v14 = vld [vmem:[%s1472_s1 + $0x18] sm:$0xff] (!%p1000_p5)   ;;  %v1195_v18 = vld [vmem:[%s1472_s1 + $0x20] sm:$0xff] (!%p1000_p5)   ;;  %v1199_v22 = vld [vmem:[%s1472_s1 + $0x28] sm:$0xff] (!%p1000_p5)  }
  0x1c   : > { %1082 = vmatpush3.bf16.msra.mxu0 (!%p1000_p5), %v1183_v6  ;;  %v1192_v15 = vld [vmem:[%s1472_s1 + $0xd8] sm:$0xff] (!%p1000_p5)   ;;  %v1196_v19 = vld [vmem:[%s1472_s1 + $0xe0] sm:$0xff] (!%p1000_p5)   ;;  %v1200_v23 = vld [vmem:[%s1472_s1 + $0xe8] sm:$0xff] (!%p1000_p5)  }
  0x1d   : > { %1083 = vmatprep.subr.bf16.mxu0 (!%p1000_p5), %v1186_v9  ;;  %v1193_v16 = vld [vmem:[%s1472_s1 + $0x98] sm:$0xff] (!%p1000_p5)   ;;  %v1197_v20 = vld [vmem:[%s1472_s1 + $0xa0] sm:$0xff] (!%p1000_p5)   ;;  %v1201_v24 = vld [vmem:[%s1472_s1 + $0xa8] sm:$0xff] (!%p1000_p5)  }
  0x1e   : > { %1110 = vmatpush3.bf16.msra.mxu1 %v1185_v8  ;;  %v1202_v25 = vld [vmem:[%s1472_s1 + $0x70] sm:$0xff]   ;;  %v1206_v29 = vld [vmem:[%s1472_s1 + $0x78] sm:$0xff]   ;;  %v1213_v35 = vld [vmem:[%s1472_s1 + $0x100] sm:$0xff]  }
  0x1f   : > { %1111 = vmatprep.subr.bf16.mxu1 %v1188_v11  ;;  %v1203_v26 = vld [vmem:[%s1472_s1 + $0x30] sm:$0xff]   ;;  %v1207_v30 = vld [vmem:[%s1472_s1 + $0x38] sm:$0xff]   ;;  %v1216_v37 = vld [vmem:[%s1471_s0 + $0xc] ss:$20 sps:$4 sm:$0xff]  }
  0x20   : > { %1084 = vmatpush3.bf16.msra.mxu0 %v1187_v10  ;;  %v1204_v27 = vld [vmem:[%s1472_s1 + $0xf0] sm:$0xff]   ;;  %v1208_v31 = vld [vmem:[%s1472_s1 + $0xf8] sm:$0xff]   ;;  %v1217_v38 = vld [vmem:[%s1472_s1 + $0x108] sm:$0xff]   ;;  %718 = vmatprep.mubr.bf16.mxu1 %v1216_v37 }
  0x21   : > { %1085 = vmatprep.subr.bf16.mxu0 %v1190_v13  ;;  %v1205_v28 = vld [vmem:[%s1472_s1 + $0xb0] sm:$0xff]   ;;  %v1211_v33 = vld [vmem:[%s1471_s0 + $0x4] ss:$20 sps:$4 sm:$0xff]   ;;  %v1214_v36 = vld [vmem:[%s1471_s0 + $0x8] ss:$20 sps:$4 sm:$0xff]  }
  0x22   : > { %1112 = vmatpush3.bf16.msra.mxu1 %v1189_v12  ;;  %v1209_v32 = vld [vmem:[%s1471_s0] ss:$20 sps:$4 sm:$0xff]   ;;  %v1212_v34 = vld [vmem:[%s1472_s1 + $0xb8] sm:$0xff]   ;;  %669 = vmatprep.mubr.bf16.mxu0 %v1211_v33  ;;  %v1224_v43 = vld [vmem:[%s1471_s0 + $0x30] ss:$20 sps:$4 sm:$0xff]  }
  0x23   : > { %1113 = vmatprep.subr.bf16.mxu1 %v1192_v15  ;;  %v1218_v39 = vld [vmem:[%s1471_s0 + $0x2c] ss:$20 sps:$4 sm:$0xff]   ;;  %v1220_v40 = vld [vmem:[%s1471_s0 + $0x28] ss:$20 sps:$4 sm:$0xff]   ;;  %v1221_v41 = vld [vmem:[%s1472_s1 + $0x110] sm:$0xff]  }
  0x24   : > { %1086 = vmatpush3.bf16.msra.mxu0 %v1191_v14  ;;  %v1222_v42 = vld [vmem:[%s1471_s0 + $0x34] ss:$20 sps:$4 sm:$0xff]   ;;  %v1225_v44 = vld [vmem:[%s1472_s1 + $0x118] sm:$0xff]   ;;  %v1226_v45 = vld [vmem:[%s1471_s0 + $0x10] ss:$20 sps:$4 sm:$0xff]  }
  0x25   : > { %1087 = vmatprep.subr.bf16.mxu0 %v1194_v17  ;;  %v1227_v46 = vld [vmem:[%s1471_s0 + $0x38] ss:$20 sps:$4 sm:$0xff]   ;;  %v1001_v48 = vld [vmem:[%s1473_s2] ss:$0 sm:$0xff] }
  0x26   : > { %1114 = vmatpush3.bf16.msra.mxu1 %v1193_v16 }
  0x27   : > { %1115 = vmatprep.subr.bf16.mxu1 %v1196_v19 }
  0x28   : > { %1088 = vmatpush3.bf16.msra.mxu0 %v1195_v18 }
  0x29   : > { %1089 = vmatprep.subr.bf16.mxu0 %v1198_v21 }
  0x2a   : > { %1116 = vmatpush3.bf16.msra.mxu1 %v1197_v20 }
  0x2b   : > { %1117 = vmatprep.subr.bf16.mxu1 %v1200_v23 }
  0x2c   : > { %1090 = vmatpush3.bf16.msra.mxu0 %v1199_v22 }
  0x2d   : > { %1091 = vmatprep.subr.bf16.mxu0 %v1202_v25 }
  0x2e   : > { %1118 = vmatpush3.bf16.msra.mxu1 %v1201_v24 }
  0x2f   : > { %1119 = vmatprep.subr.bf16.mxu1 %v1204_v27 }
  0x30   : > { %1092 = vmatpush3.bf16.msra.mxu0 %v1203_v26 }
  0x31   : > { %1093 = vmatprep.subr.bf16.mxu0 %v1206_v29 }
  0x32   : > { %1120 = vmatpush3.bf16.msra.mxu1 %v1205_v28 }
  0x33   : > { %1121 = vmatprep.subr.bf16.mxu1 %v1208_v31 }
  0x34   : > { %1094 = vmatpush3.bf16.msra.mxu0 %v1207_v30 }
  0x35   : > { %1141 = vmatprep.subr.bf16.mxu0 %v1213_v35 }
  0x36   : > { %1122 = vmatpush3.bf16.msra.mxu1 %v1212_v34 }
  0x37   : > { %670 = vmatmul.mubr.bf16.vlgmr.msra.gmra.mrb[0].mxu0 %v1209_v32 }
  0x38   : > { %1142 = vmatpush3.bf16.msra.mxu0 %v1213_v35  ;;  %677 = vmatprep.mubr.bf16.mxu0 %v1218_v39 }
  0x39   : > { %719 = vmatmul.mubr.bf16.vlgmr.msra.gmra.mrb[0].mxu1 %v1214_v36  ;;  %1143 = vmatprep.subr.bf16.mxu0 %v1217_v38 }
  0x3a   : > { %726 = vmatprep.mubr.bf16.mxu1 %v1222_v42 }
  0x3c   : > { %1144 = vmatpush3.bf16.msra.mxu0 %v1217_v38 }
  0x3d   : > { %1145 = vmatprep.subr.bf16.mxu0 %v1221_v41 }
  0x3f   : > { %678 = vmatmul.mubr.bf16.gmra.mrb[4].mxu0 %v1220_v40 }
  0x40   : > { %1149 = vmatprep.mubr.msk.bf16.mxu0 %vm630_vm0, %v1226_v45  ;;  %1146 = vmatpush3.bf16.msra.mxu0 %v1221_v41 }
  0x41   : > { %727 = vmatmul.mubr.bf16.gmra.mrb[4].mxu1 %v1224_v43  ;;  %1147 = vmatprep.subr.bf16.mxu0 %v1225_v44 }
  0x44   : > { %1148 = vmatpush3.bf16.msra.mxu0 %v1225_v44 }
  0x47   : > { %1150 = vmatmul.mubr.msk.bf16.vlgmr.msra.gmra.mrb[8].mxu0 %vm630_vm0, %v1227_v46 }
 0x10a   : > { %v1095_v47 = vpop.f32.mrb[0].mxu0 }
 0x10b   : > { %v1096_v49 = vpop.f32.mrb[1].mxu0 }
 0x10c   : > { %v1097_v50 = vadd.f32 %v1096_v49, %v1095_v47  ;;  %v1098_v51 = vpop.f32.mrb[2].mxu0  ;;  %v1123_v52 = vpop.f32.mrb[0].mxu1  ;;  %v822_v49 = vld [vmem:[#allocation3] sm:$0x1] }
 0x10d   : > { %v1099_v53 = vpop.f32.mrb[3].mxu0  ;;  %v1124_v56 = vpop.f32.mrb[1].mxu1 }
 0x10e   : > { %v672_v54 = vadd.f32 %v1097_v50, %v1001_v48  ;;  %v1100_v55 = vadd.f32 %v1099_v53, %v1098_v51  ;;  %v1125_v57 = vadd.f32 %v1124_v56, %v1123_v52  ;;  %v1126_v58 = vpop.f32.mrb[2].mxu1  ;;  %v834_v52 = vld [vmem:[#allocation3 + $0x1] sm:$0x1] }
 0x10f   : > { %v1127_v60 = vpop.f32.mrb[3].mxu1 }
 0x110   : > { %v675_v59 = vadd.f32 %v1100_v55, %v1001_v48  ;;  %v1128_v61 = vadd.f32 %v1127_v60, %v1126_v58  ;;  %v721_v62 = vadd.f32 %v1125_v57, %v672_v54 }
 0x112   : > { %v1101_v63 = vpop.f32.mrb[4].mxu0  ;;  %v724_v1 = vadd.f32 %v1128_v61, %v675_v59 }
 0x113   : > { %v1102_v0 = vpop.f32.mrb[5].mxu0 }
 0x114   : > { %v1103_v2 = vadd.f32 %v1102_v0, %v1101_v63  ;;  %v1104_v3 = vpop.f32.mrb[6].mxu0  ;;  %v1129_v4 = vpop.f32.mrb[4].mxu1 }
 0x115   : > { %v1105_v5 = vpop.f32.mrb[7].mxu0  ;;  %v1130_v8 = vpop.f32.mrb[5].mxu1 }
 0x116   : > { %v680_v6 = vadd.f32 %v1103_v2, %v1001_v48  ;;  %v1106_v7 = vadd.f32 %v1105_v5, %v1104_v3  ;;  %v1131_v9 = vadd.f32 %v1130_v8, %v1129_v4  ;;  %v1132_v10 = vpop.f32.mrb[6].mxu1 }
 0x117   : > { %v1133_v12 = vpop.f32.mrb[7].mxu1 }
 0x118   : > { %v683_v11 = vadd.f32 %v1106_v7, %v1001_v48  ;;  %v1134_v13 = vadd.f32 %v1133_v12, %v1132_v10  ;;  %v729_v14 = vadd.f32 %v1131_v9, %v680_v6 }
 0x11a   : > { %v1151_v15 = vpop.f32.mrb[8].mxu0  ;;  %v732_v16 = vadd.f32 %v1134_v13, %v683_v11 }
 0x11b   : > { %v778_v17 = vadd.f32 %v1151_v15, %v729_v14  ;;  %v769_v18 = vpop.f32.mrb[9].mxu0 }
 0x11c   : > { %v770_v19 = vadd.f32 %v769_v18, %v721_v62  ;;  %v1152_v20 = vpop.f32.mrb[10].mxu0 }
 0x11d   : > { %v781_v21 = vadd.f32 %v1152_v20, %v732_v16  ;;  %v772_v22 = vpop.f32.mrb[11].mxu0  ;;  %v786_v25 = vmax.f32 %v778_v17, 0.0 }
 0x11e   : > { %v784_v23 = vmax.f32 %v770_v19, 0.0  ;;  %v773_v24 = vadd.f32 %v772_v22, %v724_v1 }
 0x11f   : > { %v787_v26 = vmax.f32 %v781_v21, 0.0  ;;  %v837_v33 = vmul.f32 %v786_v25, %v786_v25 }
 0x120   : > { %v785_v27 = vmax.f32 %v773_v24, 0.0  ;;  %v835_v29 = vmul.f32 %v784_v23, %v784_v23 }
 0x121   : > { %v789_v28 = vpack.c.bf16 %v787_v26, %v786_v25  ;;  %v838_v36 = vmul.f32 %v787_v26, %v787_v26 }
 0x122   : > { %v788_v30 = vpack.c.bf16 %v785_v27, %v784_v23  ;;  %v823_v31 = vadd.f32 %v785_v27, %v784_v23  ;;  %v836_v32 = vmul.f32 %v785_v27, %v785_v27 }
 0x123   : > { %794 = vst [vmem:[#allocation2 + $0x8] sm:$0xff] %v789_v28 }
 0x124   : > { %793 = vst [vmem:[#allocation2] sm:$0xff] %v788_v30  ;;  %v824_v34 = vadd.f32 %v823_v31, %v786_v25  ;;  %v839_v35 = vadd.f32 %v836_v32, %v835_v29 }
 0x126   : > { %v825_v37 = vadd.f32 %v824_v34, %v787_v26  ;;  %v840_v38 = vadd.f32 %v839_v35, %v837_v33 }
 0x128   : > { %v826_v39 = vrot.slane %v825_v37, 4  ;;  %v841_v40 = vadd.f32 %v840_v38, %v838_v36 }
 0x12a   : > { %v827_v41 = vadd.f32 %v826_v39, %v825_v37  ;;  %v842_v42 = vrot.slane %v841_v40, 4 }
 0x12c   : > { %v828_v43 = vrot.slane %v827_v41, 2  ;;  %v843_v44 = vadd.f32 %v842_v42, %v841_v40 }
 0x12e   : > { %v829_v45 = vadd.f32 %v828_v43, %v827_v41  ;;  %v844_v46 = vrot.slane %v843_v44, 2 }
 0x130   : > { %v830_v47 = vrot.slane %v829_v45, 1  ;;  %v845_v48 = vadd.f32 %v844_v46, %v843_v44 }
 0x132   : > { %v831_v50 = vadd.f32 %v830_v47, %v829_v45  ;;  %v846_v51 = vrot.slane %v845_v48, 1 }
 0x134   : > { %v832_v53 = vadd.f32 %v831_v50, %v822_v49  ;;  %v847_v54 = vadd.f32 %v846_v51, %v845_v48 }
 0x136   : > { %833 = vst [vmem:[#allocation3] sm:$0x1] %v832_v53  ;;  %v848_v55 = vadd.f32 %v847_v54, %v834_v52 }
 0x138   : > { %849 = vst [vmem:[#allocation3 + $0x1] sm:$0x1] %v848_v55 }
 0x139 PF: > { %p850_p6 = scmp.eq.s32.totalorder %s1244_s18, 1 }
 0x13a   : > { %v862_v0 = vld [vmem:[%s1474_s3] sm:$0x1] (%p850_p6) }
 0x13b   : > { %854 = sbr.rel (!%p850_p6) target bundleno = 346 (0x15a), region = 52  ;;  %v867_v3 = vld [vmem:[%s1475_s4] sm:$0x1] (%p850_p6) }
 0x13d   : > { %v855_v56 = vld [vmem:[#allocation3] sm:$0x1] (%p850_p6) }
 0x13e   : > { %v856_v58 = vmul.f32 (%p850_p6), 0.03125, %v855_v56 }
 0x13f   : > { %v857_v57 = vld [vmem:[#allocation3 + $0x1] sm:$0x1] (%p850_p6) }
 0x140   : > { %v858_v59 = vmul.f32 (%p850_p6), 0.03125, %v857_v57  ;;  %v859_v60 = vmul.f32 (%p850_p6), %v856_v58, %v856_v58 }
 0x142   : > { %v860_v61 = vsub.f32 %v858_v59, %v859_v60 }
 0x144   : > { %v861_v62 = vmax.f32 %v860_v61, 0.0 }
 0x146   : > { %v863_v63 = vadd.f32 1e-05, %v861_v62 }
 0x148   : > { %1228 = vrsqrt.f32 %v863_v63 }
 0x152   : > { %v1229_v1 = vpop.eup %1228 }
 0x153   : > { %v865_v2 = vmul.f32 %v1229_v1, %v862_v0 }
 0x155   : > { %866 = vst [vmem:[#allocation4] sm:$0x1] %v865_v2  ;;  %v868_v4 = vmul.f32 %v865_v2, %v856_v58 }
 0x157   : > { %v869_v5 = vsub.f32 %v867_v3, %v868_v4 }
 0x159   : > { %870 = vst [vmem:[#allocation4 + $0x1] sm:$0x1] %v869_v5 }
 0x15a PF: > { %p1051_p7 = scmp.ne.s32.totalorder %s1244_s18, 1 }
 0x15b   : > { %v877_v6 = vld [vmem:[#allocation2] sm:$0xff] (!%p1051_p7)  ;;  %v878_v10 = vld [vmem:[#allocation2 + $0x8] sm:$0xff] (!%p1051_p7) }
 0x15c   : > { %873 = sbr.rel (%p1051_p7) target bundleno = 358 (0x166), region = 56  ;;  %v1052_v7 = vld [vmem:[#allocation4] ss:$0 sm:$0xff] (!%p1051_p7)  ;;  %v879_v8 = vunpack.c.l.bf16 (!%p1051_p7), %v877_v6  ;;  %v880_v9 = vunpack.c.h.bf16 (!%p1051_p7), %v877_v6  ;;  %v881_v12 = vunpack.c.l.bf16 (!%p1051_p7), %v878_v10  ;;  %v882_v13 = vunpack.c.h.bf16 (!%p1051_p7), %v878_v10 }
 0x15e   : > { %v888_v14 = vmul.f32 (!%p1051_p7), %v1052_v7, %v879_v8  ;;  %v889_v15 = vmul.f32 (!%p1051_p7), %v1052_v7, %v880_v9  ;;  %v890_v16 = vmul.f32 (!%p1051_p7), %v1052_v7, %v881_v12  ;;  %v891_v17 = vmul.f32 (!%p1051_p7), %v1052_v7, %v882_v13 }
 0x160   : > { %v1053_v11 = vld [vmem:[#allocation4 + $0x1] ss:$0 sm:$0xff] (!%p1051_p7) }
 0x161   : > { %v897_v18 = vadd.f32 (!%p1051_p7), %v1053_v11, %v888_v14  ;;  %v898_v19 = vadd.f32 (!%p1051_p7), %v1053_v11, %v889_v15  ;;  %v899_v20 = vadd.f32 (!%p1051_p7), %v1053_v11, %v890_v16  ;;  %v900_v21 = vadd.f32 (!%p1051_p7), %v1053_v11, %v891_v17 }
 0x163   : > { %v1071_v22 = vpack.c.bf16 %v898_v19, %v897_v18  ;;  %v1076_v23 = vpack.c.bf16 %v900_v21, %v899_v20 }
 0x165   : > { %1072 = vst [vmem:[%s1476_s5] sm:$0xff] %v1071_v22   ;;  %1078 = vst [vmem:[%s1476_s5 + $0x8] sm:$0xff] %v1076_v23  }
 0x166 PF: > { %s15_s20 = sadd.s32 1, %s1252_s20   ;;  %s1477_s18 = smov %s1248_s19 }
 0x167   : > { %p12_p8 = scmp.ge.s32.totalorder %s15_s20, 4   ;;  %s1478_s19 = smov %s1480_s21 }
 0x169   :  { %14 = sbr.rel (!%p12_p8) target bundleno = 2 (0x2), region = 88 }

// kernel: evaluate.10
= control target key start
LH: loop header
LB: loop body
LE: loop exit
PB: predicated region body
PF: predicated region fallthrough
CT: control target
= control target key end

     0   :  { %s1613_s18 = smov 0   ;;  %s1615_s19 = smov 0   ;;  %s1889_s0 = inlined_call_operand.vmem [shape: bf16[8,1152], index: 0, kind: input, shape index: {}]   ;;  %s1890_s1 = inlined_call_operand.vmem [shape: bf16[1152,128], index: 1, kind: input, shape index: {}]   ;;  %s1891_s2 = inlined_call_operand.vmem [shape: f32[1,128], index: 2, kind: input, shape index: {}]   ;;  %s1892_s3 = inlined_call_operand.vmem [shape: f32[1,128], index: 3, kind: input, shape index: {}]   ;;  %s1893_s4 = inlined_call_operand.vmem [shape: f32[1,128], index: 4, kind: input, shape index: {}]   ;;  %s1894_s5 = inlined_call_operand.vmem [shape: bf16[8,128], index: 5, kind: output, shape index: {}]  }
   0x1   :  { %s1617_s20 = smov 0  }
   0x2 LB: > { %s27_s21 = sadd.s32 1, %s1574_s19  ;;  %p1234_p0 = scmp.ge.s32.totalorder %s1578_s20, 1  ;;  %s1578_s20 = sphi %s1617_s20, %s15_s20   ;;  %s1574_s19 = sphi %s1615_s19, %s1896_s19   ;;  %s1570_s18 = sphi %s1613_s18, %s1895_s18  }
   0x3   : > { %p29_p1 = scmp.ge.s32.totalorder %s27_s21, 2  ;;  %p209_p2 = scmp.lt.s32.totalorder %s1578_s20, 3 }
   0x5   : > { %s1898_s21 = smov (%p29_p1, %s27_s21), 0  ;;  %p210_p3 = pnand %p1234_p0, %p209_p2 }
   0x6   : > { %p255_p4 = scmp.eq.s32.totalorder (!%p210_p3), %s1570_s18, 0 }
   0x7   : > { %213 = sbr.rel (%p210_p3) target bundleno = 397 (0x18d), region = 40 }
   0xe   : > { %260 = sbr.rel (!%p255_p4) target bundleno = 21 (0x15), region = 44  ;;  %v1580_v0 = vmov (%p255_p4), 0.0  }
   0xf   : > { %261 = vst [vmem:[#allocation3] sm:$0x3] (%p255_p4), %v1580_v0 }
  0x15 PF: > { %p1236_p5 = scmp.ne.s32.totalorder %s1570_s18, 0 }
  0x16   : > { %v1473_v1 = vld [vmem:[%s1890_s1 + $0x40] sm:$0xff] (!%p1236_p5)   ;;  %v1477_v5 = vld [vmem:[%s1890_s1 + $0x48] sm:$0xff] (!%p1236_p5)   ;;  %v1481_v9 = vld [vmem:[%s1890_s1 + $0x50] sm:$0xff] (!%p1236_p5)   ;;  %vm1582_vm0 = vmmov (!%p1236_p5), 0  }
  0x17   : > { %264 = sbr.rel (%p1236_p5) target bundleno = 352 (0x160), region = 48  ;;  %v1474_v2 = vld [vmem:[%s1890_s1] sm:$0xff] (!%p1236_p5)   ;;  %1329 = vmatprep.subr.bf16.mxu0 (!%p1236_p5), %v1473_v1  ;;  %v1478_v6 = vld [vmem:[%s1890_s1 + $0x8] sm:$0xff] (!%p1236_p5)   ;;  %v1482_v10 = vld [vmem:[%s1890_s1 + $0x10] sm:$0xff] (!%p1236_p5)  }
  0x18   : > { %v1475_v3 = vld [vmem:[%s1890_s1 + $0xc0] sm:$0xff] (!%p1236_p5)   ;;  %1330 = vmatpush3.bf16.msra.mxu0 (!%p1236_p5), %v1474_v2  ;;  %v1479_v7 = vld [vmem:[%s1890_s1 + $0xc8] sm:$0xff] (!%p1236_p5)   ;;  %v1483_v11 = vld [vmem:[%s1890_s1 + $0xd0] sm:$0xff] (!%p1236_p5)  }
  0x19   : > { %v1476_v4 = vld [vmem:[%s1890_s1 + $0x80] sm:$0xff] (!%p1236_p5)   ;;  %1351 = vmatprep.subr.bf16.mxu1 (!%p1236_p5), %v1475_v3  ;;  %1331 = vmatprep.subr.bf16.mxu0 (!%p1236_p5), %v1477_v5  ;;  %v1480_v8 = vld [vmem:[%s1890_s1 + $0x88] sm:$0xff] (!%p1236_p5)   ;;  %v1484_v12 = vld [vmem:[%s1890_s1 + $0x90] sm:$0xff] (!%p1236_p5)  }
  0x1a   : > { %1352 = vmatpush3.bf16.msra.mxu1 (!%p1236_p5), %v1476_v4  ;;  %v1485_v13 = vld [vmem:[%s1890_s1 + $0x58] sm:$0xff] (!%p1236_p5)   ;;  %v1489_v17 = vld [vmem:[%s1890_s1 + $0x60] sm:$0xff] (!%p1236_p5)   ;;  %v1493_v21 = vld [vmem:[%s1890_s1 + $0x68] sm:$0xff] (!%p1236_p5)  }
  0x1b   : > { %1353 = vmatprep.subr.bf16.mxu1 (!%p1236_p5), %v1479_v7  ;;  %v1486_v14 = vld [vmem:[%s1890_s1 + $0x18] sm:$0xff] (!%p1236_p5)   ;;  %v1490_v18 = vld [vmem:[%s1890_s1 + $0x20] sm:$0xff] (!%p1236_p5)   ;;  %v1494_v22 = vld [vmem:[%s1890_s1 + $0x28] sm:$0xff] (!%p1236_p5)  }
  0x1c   : > { %1332 = vmatpush3.bf16.msra.mxu0 (!%p1236_p5), %v1478_v6  ;;  %v1487_v15 = vld [vmem:[%s1890_s1 + $0xd8] sm:$0xff] (!%p1236_p5)   ;;  %v1491_v19 = vld [vmem:[%s1890_s1 + $0xe0] sm:$0xff] (!%p1236_p5)   ;;  %v1495_v23 = vld [vmem:[%s1890_s1 + $0xe8] sm:$0xff] (!%p1236_p5)  }
  0x1d   : > { %1333 = vmatprep.subr.bf16.mxu0 (!%p1236_p5), %v1481_v9  ;;  %v1488_v16 = vld [vmem:[%s1890_s1 + $0x98] sm:$0xff] (!%p1236_p5)   ;;  %v1492_v20 = vld [vmem:[%s1890_s1 + $0xa0] sm:$0xff] (!%p1236_p5)   ;;  %v1496_v24 = vld [vmem:[%s1890_s1 + $0xa8] sm:$0xff] (!%p1236_p5)  }
  0x1e   : > { %1354 = vmatpush3.bf16.msra.mxu1 %v1480_v8  ;;  %v1497_v25 = vld [vmem:[%s1890_s1 + $0x70] sm:$0xff]   ;;  %v1501_v29 = vld [vmem:[%s1890_s1 + $0x78] sm:$0xff]   ;;  %v265_v32 = vld [vmem:[%s1889_s0] sm:$0xff] }
  0x1f   : > { %1355 = vmatprep.subr.bf16.mxu1 %v1483_v11  ;;  %v1498_v26 = vld [vmem:[%s1890_s1 + $0x30] sm:$0xff]   ;;  %v1502_v30 = vld [vmem:[%s1890_s1 + $0x38] sm:$0xff]   ;;  %v1238_v33 = vcombine.low %v265_v32, %v265_v32  ;;  %v1239_v34 = vcombine.high %v265_v32, %v265_v32  ;;  %v1507_v36 = vld [vmem:[%s1890_s1 + $0x140] sm:$0xff]  }
  0x20   : > { %1334 = vmatpush3.bf16.msra.mxu0 %v1482_v10  ;;  %v1499_v27 = vld [vmem:[%s1890_s1 + $0xf0] sm:$0xff]   ;;  %v1503_v31 = vld [vmem:[%s1890_s1 + $0xf8] sm:$0xff]   ;;  %v266_v37 = vld [vmem:[%s1889_s0 + $0x8] sm:$0xff]  ;;  %v1581_v10 = vmov 0.0  }
  0x21   : > { %1335 = vmatprep.subr.bf16.mxu0 %v1485_v13  ;;  %v1500_v28 = vld [vmem:[%s1890_s1 + $0xb0] sm:$0xff]   ;;  %v1506_v35 = vld [vmem:[%s1890_s1 + $0xb8] sm:$0xff]   ;;  %917 = vmatprep.mubr.bf16.mxu0 %v1239_v34  ;;  %v1240_v38 = vcombine.low %v266_v37, %v266_v37  ;;  %v1241_v39 = vcombine.high %v266_v37, %v266_v37  ;;  %v1510_v40 = vld [vmem:[%s1890_s1 + $0x100] sm:$0xff]  }
  0x22   : > { %1356 = vmatpush3.bf16.msra.mxu1 %v1484_v12  ;;  %v1511_v41 = vld [vmem:[%s1890_s1 + $0x1c0] sm:$0xff]   ;;  %v1513_v43 = vld [vmem:[%s1890_s1 + $0x148] sm:$0xff]   ;;  %v1517_v47 = vld [vmem:[%s1890_s1 + $0x150] sm:$0xff]  }
  0x23   : > { %1357 = vmatprep.subr.bf16.mxu1 %v1487_v15  ;;  %957 = vmatprep.mubr.bf16.mxu1 %v1241_v39  ;;  %v1512_v42 = vld [vmem:[%s1890_s1 + $0x180] sm:$0xff]   ;;  %v1514_v44 = vld [vmem:[%s1890_s1 + $0x108] sm:$0xff]   ;;  %v1518_v48 = vld [vmem:[%s1890_s1 + $0x110] sm:$0xff]  }
  0x24   : > { %1336 = vmatpush3.bf16.msra.mxu0 %v1486_v14  ;;  %v1515_v45 = vld [vmem:[%s1890_s1 + $0x1c8] sm:$0xff]   ;;  %v1519_v49 = vld [vmem:[%s1890_s1 + $0x1d0] sm:$0xff]   ;;  %v1521_v51 = vld [vmem:[%s1890_s1 + $0x158] sm:$0xff]  }
  0x25   : > { %1337 = vmatprep.subr.bf16.mxu0 %v1489_v17  ;;  %v1516_v46 = vld [vmem:[%s1890_s1 + $0x188] sm:$0xff]   ;;  %v1520_v50 = vld [vmem:[%s1890_s1 + $0x190] sm:$0xff]   ;;  %v1522_v52 = vld [vmem:[%s1890_s1 + $0x118] sm:$0xff]  }
  0x26   : > { %1358 = vmatpush3.bf16.msra.mxu1 %v1488_v16  ;;  %v1523_v53 = vld [vmem:[%s1890_s1 + $0x1d8] sm:$0xff]   ;;  %v1525_v55 = vld [vmem:[%s1890_s1 + $0x160] sm:$0xff]   ;;  %v1529_v59 = vld [vmem:[%s1890_s1 + $0x168] sm:$0xff]  }
  0x27   : > { %1359 = vmatprep.subr.bf16.mxu1 %v1491_v19  ;;  %v1524_v54 = vld [vmem:[%s1890_s1 + $0x198] sm:$0xff]   ;;  %v1526_v56 = vld [vmem:[%s1890_s1 + $0x120] sm:$0xff]   ;;  %v1530_v60 = vld [vmem:[%s1890_s1 + $0x128] sm:$0xff]  }
  0x28   : > { %1338 = vmatpush3.bf16.msra.mxu0 %v1490_v18  ;;  %v1527_v57 = vld [vmem:[%s1890_s1 + $0x1e0] sm:$0xff]   ;;  %v1531_v61 = vld [vmem:[%s1890_s1 + $0x1e8] sm:$0xff]   ;;  %v1533_v63 = vld [vmem:[%s1890_s1 + $0x170] sm:$0xff]  }
  0x29   : > { %1339 = vmatprep.subr.bf16.mxu0 %v1493_v21  ;;  %v1528_v58 = vld [vmem:[%s1890_s1 + $0x1a0] sm:$0xff]   ;;  %v1532_v62 = vld [vmem:[%s1890_s1 + $0x1a8] sm:$0xff]   ;;  %v1534_v0 = vld [vmem:[%s1890_s1 + $0x130] sm:$0xff]  }
  0x2a   : > { %1360 = vmatpush3.bf16.msra.mxu1 %v1492_v20  ;;  %v1535_v1 = vld [vmem:[%s1890_s1 + $0x1f0] sm:$0xff]   ;;  %v1537_v3 = vld [vmem:[%s1890_s1 + $0x178] sm:$0xff]   ;;  %v1545_v14 = vld [vmem:[%s1890_s1 + $0x200] sm:$0xff]  }
  0x2b   : > { %1361 = vmatprep.subr.bf16.mxu1 %v1495_v23  ;;  %v1536_v2 = vld [vmem:[%s1890_s1 + $0x1b0] sm:$0xff]   ;;  %v1538_v4 = vld [vmem:[%s1890_s1 + $0x138] sm:$0xff]   ;;  %v1546_v15 = vld [vmem:[%s1890_s1 + $0x208] sm:$0xff]  }
  0x2c   : > { %1340 = vmatpush3.bf16.msra.mxu0 %v1494_v22  ;;  %v1539_v5 = vld [vmem:[%s1890_s1 + $0x1f8] sm:$0xff]   ;;  %v267_v6 = vld [vmem:[%s1889_s0 + $0x10] sm:$0xff]  ;;  %v1549_v18 = vld [vmem:[%s1890_s1 + $0x220] sm:$0xff]  }
  0x2d   : > { %1341 = vmatprep.subr.bf16.mxu0 %v1497_v25  ;;  %v1242_v7 = vcombine.low %v267_v6, %v267_v6  ;;  %v1243_v8 = vcombine.high %v267_v6, %v267_v6  ;;  %v1542_v9 = vld [vmem:[%s1890_s1 + $0x1b8] sm:$0xff]   ;;  %v1547_v16 = vld [vmem:[%s1890_s1 + $0x210] sm:$0xff]   ;;  %v1550_v19 = vld [vmem:[%s1890_s1 + $0x228] sm:$0xff]  }
  0x2e   : > { %1362 = vmatpush3.bf16.msra.mxu1 %v1496_v24  ;;  %v268_v11 = vld [vmem:[%s1889_s0 + $0x18] sm:$0xff]  ;;  %v1551_v20 = vld [vmem:[%s1890_s1 + $0x230] sm:$0xff]   ;;  %v1553_v22 = vld [vmem:[%s1889_s0 + $0x20] ss:$0 sps:$4 sm:$0xff]  }
  0x2f   : > { %1363 = vmatprep.subr.bf16.mxu1 %v1499_v27  ;;  %v1244_v12 = vcombine.low %v268_v11, %v268_v11  ;;  %v1245_v13 = vcombine.high %v268_v11, %v268_v11  ;;  %v1548_v17 = vld [vmem:[%s1890_s1 + $0x218] sm:$0xff]   ;;  %v1237_v24 = vld [vmem:[%s1891_s2] ss:$0 sm:$0xff] }
  0x30   : > { %1342 = vmatpush3.bf16.msra.mxu0 %v1498_v26  ;;  %v1552_v21 = vld [vmem:[%s1890_s1 + $0x238] sm:$0xff]  }
  0x31   : > { %1343 = vmatprep.subr.bf16.mxu0 %v1501_v29 }
  0x32   : > { %1364 = vmatpush3.bf16.msra.mxu1 %v1500_v28 }
  0x33   : > { %1365 = vmatprep.subr.bf16.mxu1 %v1503_v31 }
  0x34   : > { %1344 = vmatpush3.bf16.msra.mxu0 %v1502_v30 }
  0x35   : > { %1373 = vmatprep.subr.bf16.mxu0 %v1507_v36 }
  0x36   : > { %1366 = vmatpush3.bf16.msra.mxu1 %v1506_v35 }
  0x37   : > { %918 = vmatmul.mubr.bf16.vlgmr.msra.gmra.mrb[0].mxu0 %v1238_v33  ;;  %1395 = vmatprep.subr.bf16.mxu1 %v1511_v41 }
  0x38   : > { %1374 = vmatpush3.bf16.msra.mxu0 %v1510_v40  ;;  %997 = vmatprep.mubr.bf16.mxu0 %v1243_v8 }
  0x39   : > { %958 = vmatmul.mubr.bf16.vlgmr.msra.gmra.mrb[0].mxu1 %v1240_v38  ;;  %1375 = vmatprep.subr.bf16.mxu0 %v1513_v43 }
  0x3a   : > { %1396 = vmatpush3.bf16.msra.mxu1 %v1512_v42  ;;  %1037 = vmatprep.mubr.bf16.mxu1 %v1245_v13 }
  0x3b   : > { %1397 = vmatprep.subr.bf16.mxu1 %v1515_v45 }
  0x3c   : > { %1376 = vmatpush3.bf16.msra.mxu0 %v1514_v44 }
  0x3d   : > { %1377 = vmatprep.subr.bf16.mxu0 %v1517_v47 }
  0x3e   : > { %1398 = vmatpush3.bf16.msra.mxu1 %v1516_v46 }
  0x3f   : > { %1399 = vmatprep.subr.bf16.mxu1 %v1519_v49 }
  0x40   : > { %1378 = vmatpush3.bf16.msra.mxu0 %v1518_v48 }
  0x41   : > { %1379 = vmatprep.subr.bf16.mxu0 %v1521_v51 }
  0x42   : > { %1400 = vmatpush3.bf16.msra.mxu1 %v1520_v50 }
  0x43   : > { %1401 = vmatprep.subr.bf16.mxu1 %v1523_v53 }
  0x44   : > { %1380 = vmatpush3.bf16.msra.mxu0 %v1522_v52 }
  0x45   : > { %1381 = vmatprep.subr.bf16.mxu0 %v1525_v55 }
  0x46   : > { %1402 = vmatpush3.bf16.msra.mxu1 %v1524_v54 }
  0x47   : > { %1403 = vmatprep.subr.bf16.mxu1 %v1527_v57 }
  0x48   : > { %1382 = vmatpush3.bf16.msra.mxu0 %v1526_v56 }
  0x49   : > { %1383 = vmatprep.subr.bf16.mxu0 %v1529_v59 }
  0x4a   : > { %1404 = vmatpush3.bf16.msra.mxu1 %v1528_v58 }
  0x4b   : > { %1405 = vmatprep.subr.bf16.mxu1 %v1531_v61 }
  0x4c   : > { %1384 = vmatpush3.bf16.msra.mxu0 %v1530_v60 }
  0x4d   : > { %1385 = vmatprep.subr.bf16.mxu0 %v1533_v63 }
  0x4e   : > { %1406 = vmatpush3.bf16.msra.mxu1 %v1532_v62 }
  0x4f   : > { %1407 = vmatprep.subr.bf16.mxu1 %v1535_v1  ;;  %v1099_v1 = vld [vmem:[#allocation3] sm:$0x1] }
  0x50   : > { %1386 = vmatpush3.bf16.msra.mxu0 %v1534_v0 }
  0x51   : > { %1387 = vmatprep.subr.bf16.mxu0 %v1537_v3 }
  0x52   : > { %1408 = vmatpush3.bf16.msra.mxu1 %v1536_v2 }
  0x53   : > { %1409 = vmatprep.subr.bf16.mxu1 %v1539_v5 }
  0x54   : > { %1388 = vmatpush3.bf16.msra.mxu0 %v1538_v4  ;;  %v1108_v4 = vld [vmem:[#allocation3 + $0x1] sm:$0x1] }
  0x55   : > { %1426 = vmatprep.subr.bf16.mxu0 %v1581_v10 }
  0x56   : > { %1410 = vmatpush3.bf16.msra.mxu1 %v1542_v9 }
  0x57   : > { %998 = vmatmul.mubr.bf16.vlgmr.msra.gmra.mrb[4].mxu0 %v1242_v7 }
  0x58   : > { %1427 = vmatpush3.bf16.msra.mxu0 %v1545_v14  ;;  %1442 = vmatprep.mubr.msk.bf16.mxu0 %vm1582_vm0, %v1581_v10 }
  0x59   : > { %1038 = vmatmul.mubr.bf16.vlgmr.msra.gmra.mrb[4].mxu1 %v1244_v12  ;;  %1428 = vmatprep.subr.bf16.mxu0 %v1581_v10 }
  0x5c   : > { %1429 = vmatpush3.bf16.msra.mxu0 %v1546_v15 }
  0x5d   : > { %1430 = vmatprep.subr.bf16.mxu0 %v1581_v10 }
  0x60   : > { %1431 = vmatpush3.bf16.msra.mxu0 %v1547_v16 }
  0x61   : > { %1432 = vmatprep.subr.bf16.mxu0 %v1581_v10 }
  0x64   : > { %1433 = vmatpush3.bf16.msra.mxu0 %v1548_v17 }
  0x65   : > { %1434 = vmatprep.subr.bf16.mxu0 %v1581_v10 }
  0x68   : > { %1435 = vmatpush3.bf16.msra.mxu0 %v1549_v18 }
  0x69   : > { %1436 = vmatprep.subr.bf16.mxu0 %v1581_v10 }
  0x6c   : > { %1437 = vmatpush3.bf16.msra.mxu0 %v1550_v19 }
  0x6d   : > { %1438 = vmatprep.subr.bf16.mxu0 %v1581_v10 }
  0x70   : > { %1439 = vmatpush3.bf16.msra.mxu0 %v1551_v20 }
  0x71   : > { %1440 = vmatprep.subr.bf16.mxu0 %v1581_v10 }
  0x74   : > { %1441 = vmatpush3.bf16.msra.mxu0 %v1552_v21 }
  0x77   : > { %1443 = vmatmul.mubr.bf16.vlgmr.msra.gmra.mrb[8].mxu0 %v1553_v22 }
 0x10a   : > { %v1345_v23 = vpop.f32.mrb[0].mxu0 }
 0x10b   : > { %v1346_v25 = vpop.f32.mrb[1].mxu0 }
 0x10c   : > { %v1347_v26 = vadd.f32 %v1346_v25, %v1345_v23  ;;  %v1348_v27 = vpop.f32.mrb[2].mxu0  ;;  %v1367_v28 = vpop.f32.mrb[0].mxu1 }
 0x10d   : > { %v1349_v29 = vpop.f32.mrb[3].mxu0  ;;  %v1368_v30 = vpop.f32.mrb[1].mxu1 }
 0x10e   : > { %v920_v31 = vadd.f32 %v1347_v26, %v1237_v24  ;;  %v1369_v32 = vadd.f32 %v1368_v30, %v1367_v28  ;;  %v1370_v33 = vpop.f32.mrb[2].mxu1 }
 0x10f   : > { %v1371_v34 = vpop.f32.mrb[3].mxu1 }
 0x110   : > { %v960_v35 = vadd.f32 %v1369_v32, %v920_v31 }
 0x12a   : > { %v1389_v36 = vpop.f32.mrb[4].mxu0 }
 0x12b   : > { %v1390_v37 = vpop.f32.mrb[5].mxu0 }
 0x12c   : > { %v1391_v38 = vadd.f32 %v1390_v37, %v1389_v36  ;;  %v1392_v39 = vpop.f32.mrb[6].mxu0  ;;  %v1411_v40 = vpop.f32.mrb[4].mxu1 }
 0x12d   : > { %v1393_v41 = vpop.f32.mrb[7].mxu0  ;;  %v1412_v42 = vpop.f32.mrb[5].mxu1 }
 0x12e   : > { %v1000_v43 = vadd.f32 %v1391_v38, %v960_v35  ;;  %v1413_v44 = vadd.f32 %v1412_v42, %v1411_v40  ;;  %v1414_v45 = vpop.f32.mrb[6].mxu1 }
 0x12f   : > { %v1415_v46 = vpop.f32.mrb[7].mxu1 }
 0x130   : > { %v1040_v47 = vadd.f32 %v1413_v44, %v1000_v43 }
 0x14a   : > { %v1079_v48 = vpop.f32.mrb[8].mxu0 }
 0x14b   : > { %v1080_v49 = vadd.f32 %v1079_v48, %v1040_v47  ;;  %v1444_v50 = vpop.f32.mrb[9].mxu0 }
 0x14c   : > { %v1082_v51 = vpop.f32.mrb[10].mxu0 }
 0x14d   : > { %v1085_v52 = vmax.f32 %v1080_v49, 0.0  ;;  %v1445_v53 = vpop.f32.mrb[11].mxu0 }
 0x14f   : > { %v1086_v54 = vpack.c.bf16 %v1085_v52, %v1085_v52  ;;  %v1100_v55 = vrot.slane %v1085_v52, 4  ;;  %v1109_v56 = vmul.f32 %v1085_v52, %v1085_v52 }
 0x151   : > { %1089 = vst [vmem:[#allocation2] sm:$0xf] %v1086_v54  ;;  %v1101_v57 = vadd.f32 %v1100_v55, %v1085_v52  ;;  %v1110_v58 = vrot.slane %v1109_v56, 4 }
 0x153   : > { %v1102_v59 = vrot.slane %v1101_v57, 2  ;;  %v1111_v60 = vadd.f32 %v1110_v58, %v1109_v56 }
 0x155   : > { %v1103_v61 = vadd.f32 %v1102_v59, %v1101_v57  ;;  %v1112_v62 = vrot.slane %v1111_v60, 2 }
 0x157   : > { %v1104_v63 = vrot.slane %v1103_v61, 1  ;;  %v1113_v0 = vadd.f32 %v1112_v62, %v1111_v60 }
 0x159   : > { %v1105_v2 = vadd.f32 %v1104_v63, %v1103_v61  ;;  %v1114_v3 = vrot.slane %v1113_v0, 1 }
 0x15b   : > { %v1106_v5 = vadd.f32 %v1105_v2, %v1099_v1  ;;  %v1115_v6 = vadd.f32 %v1114_v3, %v1113_v0 }
 0x15d   : > { %1107 = vst [vmem:[#allocation3] sm:$0x1] %v1106_v5  ;;  %v1116_v7 = vadd.f32 %v1115_v6, %v1108_v4 }
 0x15f   : > { %1117 = vst [vmem:[#allocation3 + $0x1] sm:$0x1] %v1116_v7 }
 0x160 PF: > { %p1118_p6 = scmp.eq.s32.totalorder %s1570_s18, 1 }
 0x161   : > { %v1130_v16 = vld [vmem:[%s1892_s3] sm:$0x1] (%p1118_p6) }
 0x162   : > { %1122 = sbr.rel (!%p1118_p6) target bundleno = 385 (0x181), region = 52  ;;  %v1135_v19 = vld [vmem:[%s1893_s4] sm:$0x1] (%p1118_p6) }
 0x164   : > { %v1123_v8 = vld [vmem:[#allocation3] sm:$0x1] (%p1118_p6) }
 0x165   : > { %v1124_v10 = vmul.f32 (%p1118_p6), 0.125, %v1123_v8 }
 0x166   : > { %v1125_v9 = vld [vmem:[#allocation3 + $0x1] sm:$0x1] (%p1118_p6) }
 0x167   : > { %v1126_v11 = vmul.f32 (%p1118_p6), 0.125, %v1125_v9  ;;  %v1127_v12 = vmul.f32 (%p1118_p6), %v1124_v10, %v1124_v10 }
 0x169   : > { %v1128_v13 = vsub.f32 %v1126_v11, %v1127_v12 }
 0x16b   : > { %v1129_v14 = vmax.f32 %v1128_v13, 0.0 }
 0x16d   : > { %v1131_v15 = vadd.f32 1e-05, %v1129_v14 }
 0x16f   : > { %1554 = vrsqrt.f32 %v1131_v15 }
 0x179   : > { %v1555_v17 = vpop.eup %1554 }
 0x17a   : > { %v1133_v18 = vmul.f32 %v1555_v17, %v1130_v16 }
 0x17c   : > { %1134 = vst [vmem:[#allocation4] sm:$0x1] %v1133_v18  ;;  %v1136_v20 = vmul.f32 %v1133_v18, %v1124_v10 }
 0x17e   : > { %v1137_v21 = vsub.f32 %v1135_v19, %v1136_v20 }
 0x180   : > { %1138 = vst [vmem:[#allocation4 + $0x1] sm:$0x1] %v1137_v21 }
 0x181 PF: > { %p1320_p7 = scmp.ne.s32.totalorder %s1570_s18, 1 }
 0x182   : > { %v1144_v22 = vld [vmem:[#allocation2] sm:$0xf] (!%p1320_p7) }
 0x183   : > { %1141 = sbr.rel (%p1320_p7) target bundleno = 397 (0x18d), region = 56  ;;  %v1321_v23 = vld [vmem:[#allocation4] ss:$0 sm:$0xff] (!%p1320_p7)  ;;  %v1145_v24 = vunpack.c.l.bf16 (!%p1320_p7), %v1144_v22 }
 0x185   : > { %v1151_v26 = vmul.f32 (!%p1320_p7), %v1321_v23, %v1145_v24 }
 0x187   : > { %v1322_v25 = vld [vmem:[#allocation4 + $0x1] ss:$0 sm:$0xff] (!%p1320_p7) }
 0x188   : > { %v1157_v27 = vadd.f32 (!%p1320_p7), %v1322_v25, %v1151_v26 }
 0x18a   : > { %v1158_v28 = vpack.c.bf16 %v1157_v27, %v1157_v27 }
 0x18c   : > { %1159 = vst [vmem:[%s1894_s5] sm:$0xf] %v1158_v28 }
 0x18d PF: > { %s15_s20 = sadd.s32 1, %s1578_s20   ;;  %s1895_s18 = smov %s1574_s19 }
 0x18e   : > { %p12_p8 = scmp.ge.s32.totalorder %s15_s20, 4   ;;  %s1896_s19 = smov %s1898_s21 }
 0x190   :  { %14 = sbr.rel (!%p12_p8) target bundleno = 2 (0x2), region = 88 }

// kernel: evaluate.11
= control target key start
LH: loop header
LB: loop body
LE: loop exit
PB: predicated region body
PF: predicated region fallthrough
CT: control target
= control target key end

     0   :  { %s5107_s1 = inlined_call_operand.vmem [shape: bf16[512,1024], index: 1, kind: input, shape index: {}]   ;;  %s5108_s0 = inlined_call_operand.vmem [shape: bf16[8,512], index: 0, kind: input, shape index: {}]   ;;  %s5109_s3 = inlined_call_operand.vmem [shape: bf16[1024,256], index: 3, kind: input, shape index: {}]   ;;  %s5110_s2 = inlined_call_operand.vmem [shape: f32[1,1024], index: 2, kind: input, shape index: {}]   ;;  %s5111_s5 = inlined_call_operand.vmem [shape: bf16[256,128], index: 5, kind: input, shape index: {}]   ;;  %s5112_s4 = inlined_call_operand.vmem [shape: f32[1,256], index: 4, kind: input, shape index: {}]   ;;  %s5113_s6 = inlined_call_operand.vmem [shape: f32[1,128], index: 6, kind: input, shape index: {}]   ;;  %s5114_s7 = inlined_call_operand.vmem [shape: f32[8,128], index: 7, kind: output, shape index: {}]  }
   0x1   :  { %v29_v0 = vld [vmem:[%s5107_s1] sm:$0xff]  ;;  %v31_v31 = vld [vmem:[%s5107_s1 + $0x10] sm:$0xff] }
   0x2   :  { %v33_v1 = vld [vmem:[%s5107_s1 + $0x20] sm:$0xff]  ;;  %v35_v32 = vld [vmem:[%s5107_s1 + $0x30] sm:$0xff] }
   0x3   :  { %v37_v2 = vld [vmem:[%s5107_s1 + $0x40] sm:$0xff]  ;;  %v3103_v3 = vcombine.high %v29_v0, %v33_v1  ;;  %v3102_v4 = vcombine.low %v29_v0, %v33_v1  ;;  %v3107_v33 = vcombine.high %v31_v31, %v35_v32  ;;  %v3106_v34 = vcombine.low %v31_v31, %v35_v32  ;;  %v39_v35 = vld [vmem:[%s5107_s1 + $0x50] sm:$0xff] }
   0x4   :  { %v41_v5 = vld [vmem:[%s5107_s1 + $0x60] sm:$0xff]  ;;  %v43_v36 = vld [vmem:[%s5107_s1 + $0x70] sm:$0xff] }
   0x5   :  { %v3111_v6 = vcombine.high %v37_v2, %v41_v5  ;;  %v45_v7 = vld [vmem:[%s5107_s1 + $0x80] sm:$0xff]  ;;  %1621 = vmatprep.subr.bf16.mxu1 %v3103_v3  ;;  %v3110_v9 = vcombine.low %v37_v2, %v41_v5  ;;  %v3115_v38 = vcombine.high %v39_v35, %v43_v36  ;;  %v47_v39 = vld [vmem:[%s5107_s1 + $0x90] sm:$0xff]  ;;  %1785 = vmatprep.subr.bf16.mxu0 %v3107_v33 }
   0x6   :  { %v49_v8 = vld [vmem:[%s5107_s1 + $0xa0] sm:$0xff]  ;;  %1622 = vmatpush1.bf16.msra.mxu1 %v3102_v4  ;;  %v51_v41 = vld [vmem:[%s5107_s1 + $0xb0] sm:$0xff]  ;;  %1786 = vmatpush1.bf16.msra.mxu0 %v3106_v34  ;;  %v3114_v44 = vcombine.low %v39_v35, %v43_v36 }
   0x7   :  { %1623 = vmatprep.subr.bf16.mxu1 %v3111_v6  ;;  %v3119_v10 = vcombine.high %v45_v7, %v49_v8  ;;  %v53_v11 = vld [vmem:[%s5107_s1 + $0xc0] sm:$0xff]  ;;  %v3118_v13 = vcombine.low %v45_v7, %v49_v8  ;;  %1787 = vmatprep.subr.bf16.mxu0 %v3115_v38  ;;  %v3123_v45 = vcombine.high %v47_v39, %v51_v41  ;;  %v55_v47 = vld [vmem:[%s5107_s1 + $0xd0] sm:$0xff] }
   0x8   :  { %v57_v12 = vld [vmem:[%s5107_s1 + $0xe0] sm:$0xff]  ;;  %v59_v48 = vld [vmem:[%s5107_s1 + $0xf0] sm:$0xff]  ;;  %v3122_v52 = vcombine.low %v47_v39, %v51_v41 }
   0x9   :  { %v3127_v14 = vcombine.high %v53_v11, %v57_v12  ;;  %v61_v15 = vld [vmem:[%s5107_s1 + $0x100] sm:$0xff]  ;;  %v3126_v19 = vcombine.low %v53_v11, %v57_v12  ;;  %v3131_v53 = vcombine.high %v55_v47, %v59_v48  ;;  %v63_v55 = vld [vmem:[%s5107_s1 + $0x110] sm:$0xff]  ;;  %v3130_v60 = vcombine.low %v55_v47, %v59_v48 }
   0xa   :  { %1624 = vmatpush1.bf16.msra.mxu1 %v3110_v9  ;;  %v65_v16 = vld [vmem:[%s5107_s1 + $0x120] sm:$0xff]  ;;  %1788 = vmatpush1.bf16.msra.mxu0 %v3114_v44  ;;  %v67_v56 = vld [vmem:[%s5107_s1 + $0x130] sm:$0xff] }
   0xb   :  { %1625 = vmatprep.subr.bf16.mxu1 %v3119_v10  ;;  %v3850_v17 = vld [vmem:[%s5108_s0] sm:$0xff]  ;;  %v3135_v20 = vcombine.high %v61_v15, %v65_v16  ;;  %v3134_v23 = vcombine.low %v61_v15, %v65_v16  ;;  %1789 = vmatprep.subr.bf16.mxu0 %v3123_v45  ;;  %v3139_v61 = vcombine.high %v63_v55, %v67_v56  ;;  %v71_v63 = vld [vmem:[%s5107_s1 + $0x150] sm:$0xff] }
   0xc   :  { %v3854_v18 = vcombine.high %v3850_v17, %v3850_v17  ;;  %v69_v21 = vld [vmem:[%s5107_s1 + $0x140] sm:$0xff]  ;;  %v75_v0 = vld [vmem:[%s5107_s1 + $0x170] sm:$0xff]  ;;  %v3138_v4 = vcombine.low %v63_v55, %v67_v56  ;;  %v4015_v56 = vcombine.low %v3850_v17, %v3850_v17 }
   0xd   :  { %v73_v22 = vld [vmem:[%s5107_s1 + $0x160] sm:$0xff]  ;;  %v3147_v5 = vcombine.high %v71_v63, %v75_v0  ;;  %v79_v7 = vld [vmem:[%s5107_s1 + $0x190] sm:$0xff]  ;;  %v3146_v12 = vcombine.low %v71_v63, %v75_v0 }
   0xe   :  { %1626 = vmatpush1.bf16.msra.mxu1 %v3118_v13  ;;  %1653 = vmatprep.mubr.bf16.mxu1 %v3854_v18  ;;  %v3143_v24 = vcombine.high %v69_v21, %v73_v22  ;;  %v77_v25 = vld [vmem:[%s5107_s1 + $0x180] sm:$0xff]  ;;  %v3142_v27 = vcombine.low %v69_v21, %v73_v22  ;;  %v83_v8 = vld [vmem:[%s5107_s1 + $0x1b0] sm:$0xff] }
   0xf   :  { %1627 = vmatprep.subr.bf16.mxu1 %v3127_v14  ;;  %1817 = vmatprep.mubr.bf16.mxu0 %v3854_v18  ;;  %v81_v26 = vld [vmem:[%s5107_s1 + $0x1a0] sm:$0xff]  ;;  %v3155_v13 = vcombine.high %v79_v7, %v83_v8  ;;  %v87_v15 = vld [vmem:[%s5107_s1 + $0x1d0] sm:$0xff]  ;;  %v3154_v22 = vcombine.low %v79_v7, %v83_v8 }
  0x10   :  { %v3151_v28 = vcombine.high %v77_v25, %v81_v26  ;;  %v85_v29 = vld [vmem:[%s5107_s1 + $0x1c0] sm:$0xff]  ;;  %v3150_v37 = vcombine.low %v77_v25, %v81_v26  ;;  %1790 = vmatpush1.bf16.msra.mxu0 %v3122_v52  ;;  %v91_v16 = vld [vmem:[%s5107_s1 + $0x1f0] sm:$0xff]  ;;  %v4005_v52 = vld [vmem:[%s5108_s0 + $0x8] sm:$0xff] }
  0x11   :  { %v89_v30 = vld [vmem:[%s5107_s1 + $0x1e0] sm:$0xff]  ;;  %1791 = vmatprep.subr.bf16.mxu0 %v3131_v53  ;;  %v95_v25 = vld [vmem:[%s5107_s1 + $0x210] sm:$0xff] }
  0x12   :  { %1628 = vmatpush1.bf16.msra.mxu1 %v3126_v19  ;;  %v3159_v40 = vcombine.high %v85_v29, %v89_v30  ;;  %v93_v42 = vld [vmem:[%s5107_s1 + $0x200] sm:$0xff]  ;;  %v3158_v46 = vcombine.low %v85_v29, %v89_v30  ;;  %v99_v26 = vld [vmem:[%s5107_s1 + $0x230] sm:$0xff]  ;;  %v3162_v30 = vcombine.low %v87_v15, %v91_v16 }
  0x13   :  { %1629 = vmatprep.subr.bf16.mxu1 %v3135_v20  ;;  %v97_v43 = vld [vmem:[%s5107_s1 + $0x220] sm:$0xff]  ;;  %v3171_v31 = vcombine.high %v95_v25, %v99_v26  ;;  %v103_v33 = vld [vmem:[%s5107_s1 + $0x250] sm:$0xff]  ;;  %v3170_v38 = vcombine.low %v95_v25, %v99_v26 }
  0x14   :  { %v3167_v49 = vcombine.high %v93_v42, %v97_v43  ;;  %v101_v50 = vld [vmem:[%s5107_s1 + $0x240] sm:$0xff]  ;;  %v3166_v54 = vcombine.low %v93_v42, %v97_v43  ;;  %1792 = vmatpush1.bf16.msra.mxu0 %v3130_v60  ;;  %v107_v34 = vld [vmem:[%s5107_s1 + $0x270] sm:$0xff] }
  0x15   :  { %v105_v51 = vld [vmem:[%s5107_s1 + $0x260] sm:$0xff]  ;;  %1793 = vmatprep.subr.bf16.mxu0 %v3139_v61  ;;  %v3179_v39 = vcombine.high %v103_v33, %v107_v34  ;;  %v111_v41 = vld [vmem:[%s5107_s1 + $0x290] sm:$0xff] }
  0x16   :  { %1630 = vmatpush1.bf16.msra.mxu1 %v3134_v23  ;;  %v3175_v57 = vcombine.high %v101_v50, %v105_v51  ;;  %v109_v58 = vld [vmem:[%s5107_s1 + $0x280] sm:$0xff]  ;;  %v3174_v62 = vcombine.low %v101_v50, %v105_v51  ;;  %v3163_v23 = vcombine.high %v87_v15, %v91_v16  ;;  %v115_v42 = vld [vmem:[%s5107_s1 + $0x2b0] sm:$0xff] }
  0x17   :  { %1631 = vmatprep.subr.bf16.mxu1 %v3143_v24  ;;  %v113_v59 = vld [vmem:[%s5107_s1 + $0x2a0] sm:$0xff]  ;;  %v3187_v47 = vcombine.high %v111_v41, %v115_v42  ;;  %v123_v50 = vld [vmem:[%s5107_s1 + $0x2f0] sm:$0xff]  ;;  %v3186_v55 = vcombine.low %v111_v41, %v115_v42 }
  0x18   :  { %v3183_v1 = vcombine.high %v109_v58, %v113_v59  ;;  %v117_v2 = vld [vmem:[%s5107_s1 + $0x2c0] sm:$0xff]  ;;  %v3182_v6 = vcombine.low %v109_v58, %v113_v59  ;;  %1794 = vmatpush1.bf16.msra.mxu0 %v3138_v4  ;;  %v4019_v59 = vcombine.high %v4005_v52, %v4005_v52  ;;  %v127_v60 = vld [vmem:[%s5107_s1 + $0x310] sm:$0xff] }
  0x19   :  { %v121_v3 = vld [vmem:[%s5107_s1 + $0x2e0] sm:$0xff]  ;;  %1795 = vmatprep.subr.bf16.mxu0 %v3147_v5  ;;  %v131_v61 = vld [vmem:[%s5107_s1 + $0x330] sm:$0xff] }
  0x1a   :  { %1632 = vmatpush1.bf16.msra.mxu1 %v3142_v27  ;;  %v3191_v9 = vcombine.high %v117_v2, %v121_v3  ;;  %v125_v10 = vld [vmem:[%s5107_s1 + $0x300] sm:$0xff]  ;;  %v3190_v14 = vcombine.low %v117_v2, %v121_v3  ;;  %v135_v3 = vld [vmem:[%s5107_s1 + $0x350] sm:$0xff]  ;;  %v3202_v8 = vcombine.low %v127_v60, %v131_v61 }
  0x1b   :  { %1633 = vmatprep.subr.bf16.mxu1 %v3151_v28  ;;  %v129_v11 = vld [vmem:[%s5107_s1 + $0x320] sm:$0xff]  ;;  %v139_v4 = vld [vmem:[%s5107_s1 + $0x370] sm:$0xff] }
  0x1c   :  { %v3199_v19 = vcombine.high %v125_v10, %v129_v11  ;;  %v133_v20 = vld [vmem:[%s5107_s1 + $0x340] sm:$0xff]  ;;  %1796 = vmatpush1.bf16.msra.mxu0 %v3146_v12  ;;  %v3198_v24 = vcombine.low %v125_v10, %v129_v11  ;;  %v143_v11 = vld [vmem:[%s5107_s1 + $0x390] sm:$0xff]  ;;  %v3210_v16 = vcombine.low %v135_v3, %v139_v4 }
  0x1d   :  { %v137_v21 = vld [vmem:[%s5107_s1 + $0x360] sm:$0xff]  ;;  %1797 = vmatprep.subr.bf16.mxu0 %v3155_v13  ;;  %v147_v12 = vld [vmem:[%s5107_s1 + $0x3b0] sm:$0xff] }
  0x1e   :  { %1634 = vmatpush1.bf16.msra.mxu1 %v3150_v37  ;;  %v3207_v27 = vcombine.high %v133_v20, %v137_v21  ;;  %v141_v28 = vld [vmem:[%s5107_s1 + $0x380] sm:$0xff]  ;;  %v3206_v32 = vcombine.low %v133_v20, %v137_v21  ;;  %v151_v21 = vld [vmem:[%s5107_s1 + $0x3d0] sm:$0xff]  ;;  %v3218_v26 = vcombine.low %v143_v11, %v147_v12 }
  0x1f   :  { %1635 = vmatprep.subr.bf16.mxu1 %v3159_v40  ;;  %v145_v29 = vld [vmem:[%s5107_s1 + $0x3a0] sm:$0xff] }
  0x20   :  { %1798 = vmatpush1.bf16.msra.mxu0 %v3154_v22  ;;  %v3215_v35 = vcombine.high %v141_v28, %v145_v29  ;;  %v149_v36 = vld [vmem:[%s5107_s1 + $0x3c0] sm:$0xff]  ;;  %v3214_v40 = vcombine.low %v141_v28, %v145_v29  ;;  %v155_v22 = vld [vmem:[%s5107_s1 + $0x3f0] sm:$0xff] }
  0x21   :  { %1799 = vmatprep.subr.bf16.mxu0 %v3163_v23  ;;  %v153_v37 = vld [vmem:[%s5107_s1 + $0x3e0] sm:$0xff]  ;;  %v159_v29 = vld [vmem:[%s5107_s1 + $0x410] sm:$0xff] }
  0x22   :  { %1636 = vmatpush1.bf16.msra.mxu1 %v3158_v46  ;;  %v3223_v43 = vcombine.high %v149_v36, %v153_v37  ;;  %v157_v44 = vld [vmem:[%s5107_s1 + $0x400] sm:$0xff]  ;;  %v3178_v46 = vcombine.low %v103_v33, %v107_v34  ;;  %v3222_v48 = vcombine.low %v149_v36, %v153_v37  ;;  %v3226_v34 = vcombine.low %v151_v21, %v155_v22  ;;  %v167_v37 = vld [vmem:[%s5107_s1 + $0x450] sm:$0xff] }
  0x23   :  { %1637 = vmatprep.subr.bf16.mxu1 %v3167_v49  ;;  %v161_v45 = vld [vmem:[%s5107_s1 + $0x420] sm:$0xff]  ;;  %v119_v49 = vld [vmem:[%s5107_s1 + $0x2d0] sm:$0xff] }
  0x24   :  { %1800 = vmatpush1.bf16.msra.mxu0 %v3162_v30  ;;  %v3231_v51 = vcombine.high %v157_v44, %v161_v45  ;;  %v165_v53 = vld [vmem:[%s5107_s1 + $0x440] sm:$0xff]  ;;  %v3230_v58 = vcombine.low %v157_v44, %v161_v45  ;;  %v3194_v0 = vcombine.low %v119_v49, %v123_v50  ;;  %v163_v30 = vld [vmem:[%s5107_s1 + $0x430] sm:$0xff] }
  0x25   :  { %1801 = vmatprep.subr.bf16.mxu0 %v3171_v31  ;;  %v173_v17 = vld [vmem:[%s5107_s1 + $0x480] sm:$0xff]  ;;  %v3234_v42 = vcombine.low %v159_v29, %v163_v30  ;;  %v175_v45 = vld [vmem:[%s5107_s1 + $0x490] sm:$0xff] }
  0x26   :  { %1638 = vmatpush1.bf16.msra.mxu1 %v3166_v54  ;;  %v169_v54 = vld [vmem:[%s5107_s1 + $0x460] sm:$0xff] }
  0x27   :  { %1639 = vmatprep.subr.bf16.mxu1 %v3175_v57  ;;  %v3195_v57 = vcombine.high %v119_v49, %v123_v50  ;;  %v177_v63 = vld [vmem:[%s5107_s1 + $0x4a0] sm:$0xff]  ;;  %v3238_v2 = vcombine.low %v165_v53, %v169_v54 }
  0x28   :  { %1802 = vmatpush1.bf16.msra.mxu0 %v3170_v38  ;;  %v3247_v5 = vcombine.high %v173_v17, %v177_v63  ;;  %v185_v7 = vld [vmem:[%s5107_s1 + $0x4e0] sm:$0xff]  ;;  %v3246_v10 = vcombine.low %v173_v17, %v177_v63  ;;  %v171_v38 = vld [vmem:[%s5107_s1 + $0x470] sm:$0xff] }
  0x29   :  { %1803 = vmatprep.subr.bf16.mxu0 %v3179_v39  ;;  %v193_v15 = vld [vmem:[%s5107_s1 + $0x520] sm:$0xff]  ;;  %v3242_v50 = vcombine.low %v167_v37, %v171_v38  ;;  %v191_v63 = vld [vmem:[%s5107_s1 + $0x510] sm:$0xff] }
  0x2a   :  { %1640 = vmatpush1.bf16.msra.mxu1 %v3174_v62  ;;  %v3239_v62 = vcombine.high %v165_v53, %v169_v54  ;;  %v201_v25 = vld [vmem:[%s5107_s1 + $0x560] sm:$0xff]  ;;  %v183_v54 = vld [vmem:[%s5107_s1 + $0x4d0] sm:$0xff] }
  0x2b   :  { %1641 = vmatprep.subr.bf16.mxu1 %v3183_v1  ;;  %v3203_v1 = vcombine.high %v127_v60, %v131_v61  ;;  %v209_v33 = vld [vmem:[%s5107_s1 + $0x5a0] sm:$0xff] }
  0x2c   :  { %1804 = vmatpush1.bf16.msra.mxu0 %v3178_v46  ;;  %v217_v41 = vld [vmem:[%s5107_s1 + $0x5e0] sm:$0xff]  ;;  %v179_v46 = vld [vmem:[%s5107_s1 + $0x4b0] sm:$0xff] }
  0x2d   :  { %1805 = vmatprep.subr.bf16.mxu0 %v3187_v47  ;;  %v225_v49 = vld [vmem:[%s5107_s1 + $0x620] sm:$0xff]  ;;  %v3250_v61 = vcombine.low %v175_v45, %v179_v46 }
  0x2e   :  { %1642 = vmatpush1.bf16.msra.mxu1 %v3182_v6  ;;  %v181_v6 = vld [vmem:[%s5107_s1 + $0x4c0] sm:$0xff] }
  0x2f   :  { %1643 = vmatprep.subr.bf16.mxu1 %v3191_v9  ;;  %v3211_v9 = vcombine.high %v135_v3, %v139_v4  ;;  %v3255_v13 = vcombine.high %v181_v6, %v185_v7  ;;  %v3254_v20 = vcombine.low %v181_v6, %v185_v7  ;;  %v233_v60 = vld [vmem:[%s5107_s1 + $0x660] sm:$0xff]  ;;  %v199_v7 = vld [vmem:[%s5107_s1 + $0x550] sm:$0xff] }
  0x30   :  { %1806 = vmatpush1.bf16.msra.mxu0 %v3186_v55  ;;  %v187_v55 = vld [vmem:[%s5107_s1 + $0x4f0] sm:$0xff]  ;;  %v241_v3 = vld [vmem:[%s5107_s1 + $0x6a0] sm:$0xff] }
  0x31   :  { %1807 = vmatprep.subr.bf16.mxu0 %v3195_v57  ;;  %v3258_v4 = vcombine.low %v183_v54, %v187_v55 }
  0x32   :  { %1644 = vmatpush1.bf16.msra.mxu1 %v3190_v14  ;;  %v189_v14 = vld [vmem:[%s5107_s1 + $0x500] sm:$0xff] }
  0x33   :  { %1645 = vmatprep.subr.bf16.mxu1 %v3199_v19  ;;  %v3219_v19 = vcombine.high %v143_v11, %v147_v12  ;;  %v3263_v23 = vcombine.high %v189_v14, %v193_v15  ;;  %v3262_v28 = vcombine.low %v189_v14, %v193_v15  ;;  %v249_v11 = vld [vmem:[%s5107_s1 + $0x6e0] sm:$0xff]  ;;  %v207_v15 = vld [vmem:[%s5107_s1 + $0x590] sm:$0xff] }
  0x34   :  { %1808 = vmatpush1.bf16.msra.mxu0 %v3194_v0  ;;  %v195_v0 = vld [vmem:[%s5107_s1 + $0x530] sm:$0xff] }
  0x35   :  { %1809 = vmatprep.subr.bf16.mxu0 %v3203_v1  ;;  %v3266_v12 = vcombine.low %v191_v63, %v195_v0 }
  0x36   :  { %1646 = vmatpush1.bf16.msra.mxu1 %v3198_v24  ;;  %v197_v24 = vld [vmem:[%s5107_s1 + $0x540] sm:$0xff] }
  0x37   :  { %1647 = vmatprep.subr.bf16.mxu1 %v3207_v27  ;;  %v3227_v27 = vcombine.high %v151_v21, %v155_v22  ;;  %v3271_v31 = vcombine.high %v197_v24, %v201_v25  ;;  %v3270_v36 = vcombine.low %v197_v24, %v201_v25  ;;  %v257_v21 = vld [vmem:[%s5107_s1 + $0x720] sm:$0xff]  ;;  %v215_v25 = vld [vmem:[%s5107_s1 + $0x5d0] sm:$0xff] }
  0x38   :  { %1810 = vmatpush1.bf16.msra.mxu0 %v3202_v8  ;;  %v203_v8 = vld [vmem:[%s5107_s1 + $0x570] sm:$0xff] }
  0x39   :  { %1811 = vmatprep.subr.bf16.mxu0 %v3211_v9  ;;  %v3274_v22 = vcombine.low %v199_v7, %v203_v8 }
  0x3a   :  { %1648 = vmatpush1.bf16.msra.mxu1 %v3206_v32  ;;  %v205_v32 = vld [vmem:[%s5107_s1 + $0x580] sm:$0xff] }
  0x3b   :  { %1649 = vmatprep.subr.bf16.mxu1 %v3215_v35  ;;  %v3235_v35 = vcombine.high %v159_v29, %v163_v30  ;;  %v3279_v39 = vcombine.high %v205_v32, %v209_v33  ;;  %v3278_v44 = vcombine.low %v205_v32, %v209_v33  ;;  %v265_v29 = vld [vmem:[%s5107_s1 + $0x760] sm:$0xff]  ;;  %v223_v33 = vld [vmem:[%s5107_s1 + $0x610] sm:$0xff] }
  0x3c   :  { %1812 = vmatpush1.bf16.msra.mxu0 %v3210_v16  ;;  %v211_v16 = vld [vmem:[%s5107_s1 + $0x5b0] sm:$0xff] }
  0x3d   :  { %1813 = vmatprep.subr.bf16.mxu0 %v3219_v19  ;;  %v3282_v30 = vcombine.low %v207_v15, %v211_v16 }
  0x3e   :  { %1650 = vmatpush1.bf16.msra.mxu1 %v3214_v40  ;;  %v213_v40 = vld [vmem:[%s5107_s1 + $0x5c0] sm:$0xff] }
  0x3f   :  { %1651 = vmatprep.subr.bf16.mxu1 %v3223_v43  ;;  %v3243_v43 = vcombine.high %v167_v37, %v171_v38  ;;  %v3287_v47 = vcombine.high %v213_v40, %v217_v41  ;;  %v3286_v53 = vcombine.low %v213_v40, %v217_v41  ;;  %v273_v37 = vld [vmem:[%s5107_s1 + $0x7a0] sm:$0xff]  ;;  %v231_v41 = vld [vmem:[%s5107_s1 + $0x650] sm:$0xff] }
  0x40   :  { %1814 = vmatpush1.bf16.msra.mxu0 %v3218_v26  ;;  %v219_v26 = vld [vmem:[%s5107_s1 + $0x5f0] sm:$0xff] }
  0x41   :  { %1815 = vmatprep.subr.bf16.mxu0 %v3227_v27  ;;  %v3290_v38 = vcombine.low %v215_v25, %v219_v26 }
  0x42   :  { %1652 = vmatpush1.bf16.msra.mxu1 %v3222_v48  ;;  %v221_v48 = vld [vmem:[%s5107_s1 + $0x600] sm:$0xff] }
  0x43   :  { %1662 = vmatprep.subr.bf16.mxu1 %v3231_v51  ;;  %v3251_v51 = vcombine.high %v175_v45, %v179_v46  ;;  %v3295_v57 = vcombine.high %v221_v48, %v225_v49  ;;  %v3294_v17 = vcombine.low %v221_v48, %v225_v49  ;;  %v281_v45 = vld [vmem:[%s5107_s1 + $0x7e0] sm:$0xff]  ;;  %v239_v49 = vld [vmem:[%s5107_s1 + $0x690] sm:$0xff] }
  0x44   :  { %1816 = vmatpush1.bf16.msra.mxu0 %v3226_v34  ;;  %v227_v34 = vld [vmem:[%s5107_s1 + $0x630] sm:$0xff] }
  0x45   :  { %1654 = vmatmul.mubr.bf16.vlgmr.msra.gmra.mrb[0].mxu1 %v4015_v56  ;;  %1826 = vmatprep.subr.bf16.mxu0 %v3235_v35  ;;  %v3298_v46 = vcombine.low %v223_v33, %v227_v34 }
  0x46   :  { %1663 = vmatpush1.bf16.msra.mxu1 %v3230_v58  ;;  %1694 = vmatprep.mubr.bf16.mxu1 %v4019_v59  ;;  %v229_v58 = vld [vmem:[%s5107_s1 + $0x640] sm:$0xff] }
  0x47   :  { %1664 = vmatprep.subr.bf16.mxu1 %v3239_v62  ;;  %1818 = vmatmul.mubr.bf16.vlgmr.msra.gmra.mrb[0].mxu0 %v4015_v56  ;;  %v3259_v62 = vcombine.high %v183_v54, %v187_v55  ;;  %v3303_v1 = vcombine.high %v229_v58, %v233_v60  ;;  %v3302_v6 = vcombine.low %v229_v58, %v233_v60  ;;  %v34_v54 = vld [vmem:[%s5107_s1 + $0x28] sm:$0xff]  ;;  %v247_v60 = vld [vmem:[%s5107_s1 + $0x6d0] sm:$0xff] }
  0x48   :  { %1827 = vmatpush1.bf16.msra.mxu0 %v3234_v42  ;;  %1858 = vmatprep.mubr.bf16.mxu0 %v4019_v59  ;;  %v235_v42 = vld [vmem:[%s5107_s1 + $0x670] sm:$0xff] }
  0x49   :  { %1828 = vmatprep.subr.bf16.mxu0 %v3243_v43  ;;  %v3306_v55 = vcombine.low %v231_v41, %v235_v42 }
  0x4a   :  { %1665 = vmatpush1.bf16.msra.mxu1 %v3238_v2  ;;  %v237_v2 = vld [vmem:[%s5107_s1 + $0x680] sm:$0xff] }
  0x4b   :  { %1666 = vmatprep.subr.bf16.mxu1 %v3247_v5  ;;  %v3267_v5 = vcombine.high %v191_v63, %v195_v0  ;;  %v3311_v9 = vcombine.high %v237_v2, %v241_v3  ;;  %v3310_v14 = vcombine.low %v237_v2, %v241_v3  ;;  %v42_v63 = vld [vmem:[%s5107_s1 + $0x68] sm:$0xff] }
  0x4c   :  { %1829 = vmatpush1.bf16.msra.mxu0 %v3242_v50  ;;  %v243_v50 = vld [vmem:[%s5107_s1 + $0x6b0] sm:$0xff] }
  0x4d   :  { %1830 = vmatprep.subr.bf16.mxu0 %v3251_v51  ;;  %v3314_v0 = vcombine.low %v239_v49, %v243_v50 }
  0x4e   :  { %1667 = vmatpush1.bf16.msra.mxu1 %v3246_v10  ;;  %v245_v10 = vld [vmem:[%s5107_s1 + $0x6c0] sm:$0xff] }
  0x4f   :  { %1668 = vmatprep.subr.bf16.mxu1 %v3255_v13  ;;  %v3275_v13 = vcombine.high %v199_v7, %v203_v8  ;;  %v3319_v19 = vcombine.high %v245_v10, %v249_v11  ;;  %v3318_v24 = vcombine.low %v245_v10, %v249_v11  ;;  %v46_v7 = vld [vmem:[%s5107_s1 + $0x88] sm:$0xff]  ;;  %v263_v11 = vld [vmem:[%s5107_s1 + $0x750] sm:$0xff] }
  0x50   :  { %1831 = vmatpush1.bf16.msra.mxu0 %v3250_v61  ;;  %v251_v61 = vld [vmem:[%s5107_s1 + $0x6f0] sm:$0xff] }
  0x51   :  { %1832 = vmatprep.subr.bf16.mxu0 %v3259_v62  ;;  %v3323_v2 = vcombine.high %v247_v60, %v251_v61  ;;  %v3322_v8 = vcombine.low %v247_v60, %v251_v61  ;;  %v114_v60 = vld [vmem:[%s5107_s1 + $0x2a8] sm:$0xff] }
  0x52   :  { %1669 = vmatpush1.bf16.msra.mxu1 %v3254_v20  ;;  %v253_v20 = vld [vmem:[%s5107_s1 + $0x700] sm:$0xff] }
  0x53   :  { %1670 = vmatprep.subr.bf16.mxu1 %v3263_v23  ;;  %v3283_v23 = vcombine.high %v207_v15, %v211_v16  ;;  %v3327_v27 = vcombine.high %v253_v20, %v257_v21  ;;  %v3326_v32 = vcombine.low %v253_v20, %v257_v21  ;;  %v58_v15 = vld [vmem:[%s5107_s1 + $0xe8] sm:$0xff]  ;;  %v271_v21 = vld [vmem:[%s5107_s1 + $0x790] sm:$0xff] }
  0x54   :  { %1833 = vmatpush1.bf16.msra.mxu0 %v3258_v4  ;;  %v255_v4 = vld [vmem:[%s5107_s1 + $0x710] sm:$0xff] }
  0x55   :  { %1834 = vmatprep.subr.bf16.mxu0 %v3267_v5  ;;  %v259_v5 = vld [vmem:[%s5107_s1 + $0x730] sm:$0xff] }
  0x56   :  { %1671 = vmatpush1.bf16.msra.mxu1 %v3262_v28  ;;  %v261_v28 = vld [vmem:[%s5107_s1 + $0x740] sm:$0xff]  ;;  %v3330_v16 = vcombine.low %v255_v4, %v259_v5 }
  0x57   :  { %1672 = vmatprep.subr.bf16.mxu1 %v3271_v31  ;;  %v3291_v31 = vcombine.high %v215_v25, %v219_v26  ;;  %v3335_v35 = vcombine.high %v261_v28, %v265_v29  ;;  %v3334_v40 = vcombine.low %v261_v28, %v265_v29  ;;  %v66_v25 = vld [vmem:[%s5107_s1 + $0x128] sm:$0xff]  ;;  %v279_v29 = vld [vmem:[%s5107_s1 + $0x7d0] sm:$0xff] }
  0x58   :  { %1835 = vmatpush1.bf16.msra.mxu0 %v3266_v12  ;;  %v267_v12 = vld [vmem:[%s5107_s1 + $0x770] sm:$0xff] }
  0x59   :  { %1836 = vmatprep.subr.bf16.mxu0 %v3275_v13  ;;  %v3338_v26 = vcombine.low %v263_v11, %v267_v12 }
  0x5a   :  { %1673 = vmatpush1.bf16.msra.mxu1 %v3270_v36  ;;  %v269_v36 = vld [vmem:[%s5107_s1 + $0x780] sm:$0xff] }
  0x5b   :  { %1674 = vmatprep.subr.bf16.mxu1 %v3279_v39  ;;  %v3299_v39 = vcombine.high %v223_v33, %v227_v34  ;;  %v3343_v43 = vcombine.high %v269_v36, %v273_v37  ;;  %v3342_v48 = vcombine.low %v269_v36, %v273_v37  ;;  %v74_v33 = vld [vmem:[%s5107_s1 + $0x168] sm:$0xff] }
  0x5c   :  { %1837 = vmatpush1.bf16.msra.mxu0 %v3274_v22  ;;  %v275_v22 = vld [vmem:[%s5107_s1 + $0x7b0] sm:$0xff] }
  0x5d   :  { %1838 = vmatprep.subr.bf16.mxu0 %v3283_v23  ;;  %v3346_v34 = vcombine.low %v271_v21, %v275_v22 }
  0x5e   :  { %1675 = vmatpush1.bf16.msra.mxu1 %v3278_v44  ;;  %v277_v44 = vld [vmem:[%s5107_s1 + $0x7c0] sm:$0xff] }
  0x5f   :  { %1676 = vmatprep.subr.bf16.mxu1 %v3287_v47  ;;  %v3307_v47 = vcombine.high %v231_v41, %v235_v42  ;;  %v3351_v51 = vcombine.high %v277_v44, %v281_v45  ;;  %v3350_v58 = vcombine.low %v277_v44, %v281_v45  ;;  %v90_v44 = vld [vmem:[%s5107_s1 + $0x1e8] sm:$0xff] }
  0x60   :  { %1839 = vmatpush1.bf16.msra.mxu0 %v3282_v30  ;;  %v283_v30 = vld [vmem:[%s5107_s1 + $0x7f0] sm:$0xff] }
  0x61   :  { %1840 = vmatprep.subr.bf16.mxu0 %v3291_v31 }
  0x62   :  { %1677 = vmatpush1.bf16.msra.mxu1 %v3286_v53  ;;  %v30_v53 = vld [vmem:[%s5107_s1 + $0x8] sm:$0xff] }
  0x63   :  { %1678 = vmatprep.subr.bf16.mxu1 %v3295_v57  ;;  %v3315_v57 = vcombine.high %v239_v49, %v243_v50  ;;  %v3105_v62 = vcombine.high %v30_v53, %v34_v54  ;;  %v3104_v3 = vcombine.low %v30_v53, %v34_v54  ;;  %v102_v50 = vld [vmem:[%s5107_s1 + $0x248] sm:$0xff] }
  0x64   :  { %1841 = vmatpush1.bf16.msra.mxu0 %v3290_v38  ;;  %v78_v38 = vld [vmem:[%s5107_s1 + $0x188] sm:$0xff] }
  0x65   :  { %1842 = vmatprep.subr.bf16.mxu0 %v3299_v39  ;;  %v82_v39 = vld [vmem:[%s5107_s1 + $0x1a8] sm:$0xff] }
  0x66   :  { %1679 = vmatpush1.bf16.msra.mxu1 %v3294_v17  ;;  %v38_v17 = vld [vmem:[%s5107_s1 + $0x48] sm:$0xff]  ;;  %v3153_v42 = vcombine.high %v78_v38, %v82_v39  ;;  %v3152_v45 = vcombine.low %v78_v38, %v82_v39 }
  0x67   :  { %1680 = vmatprep.subr.bf16.mxu1 %v3303_v1  ;;  %v4219_v1 = vcombine.low %v4005_v52, %v4005_v52  ;;  %v50_v52 = vld [vmem:[%s5107_s1 + $0xa8] sm:$0xff]  ;;  %v3112_v10 = vcombine.low %v38_v17, %v42_v63 }
  0x68   :  { %1843 = vmatpush1.bf16.msra.mxu0 %v3298_v46  ;;  %v3121_v13 = vcombine.high %v46_v7, %v50_v52  ;;  %v3120_v20 = vcombine.low %v46_v7, %v50_v52  ;;  %v3567_v54 = vld [vmem:[%s5109_s3] ss:$8 sps:$4 sm:$0xff]  }
  0x69   :  { %1844 = vmatprep.subr.bf16.mxu0 %v3307_v47  ;;  %v94_v47 = vld [vmem:[%s5107_s1 + $0x208] sm:$0xff] }
  0x6a   :  { %1681 = vmatpush1.bf16.msra.mxu1 %v3302_v6  ;;  %v3113_v6 = vcombine.high %v38_v17, %v42_v63  ;;  %v3572_v17 = vld [vmem:[%s5109_s3 + $0x14] ss:$8 sps:$4 sm:$0xff]   ;;  %v126_v7 = vld [vmem:[%s5107_s1 + $0x308] sm:$0xff] }
  0x6b   :  { %1682 = vmatprep.subr.bf16.mxu1 %v3311_v9  ;;  %v3331_v9 = vcombine.high %v255_v4, %v259_v5  ;;  %v3573_v4 = vld [vmem:[%s5109_s3 + $0x20] ss:$8 sps:$4 sm:$0xff]   ;;  %v3575_v5 = vld [vmem:[%s5109_s3 + $0x24] ss:$8 sps:$4 sm:$0xff]  }
  0x6c   :  { %1845 = vmatpush1.bf16.msra.mxu0 %v3306_v55  ;;  %v3569_v55 = vld [vmem:[%s5109_s3 + $0x4] ss:$8 sps:$4 sm:$0xff]  }
  0x6d   :  { %1846 = vmatprep.subr.bf16.mxu0 %v3315_v57  ;;  %v130_v52 = vld [vmem:[%s5107_s1 + $0x328] sm:$0xff] }
  0x6e   :  { %1683 = vmatpush1.bf16.msra.mxu1 %v3310_v14  ;;  %v54_v14 = vld [vmem:[%s5107_s1 + $0xc8] sm:$0xff] }
  0x6f   :  { %1684 = vmatprep.subr.bf16.mxu1 %v3319_v19  ;;  %v3339_v19 = vcombine.high %v263_v11, %v267_v12  ;;  %v3129_v23 = vcombine.high %v54_v14, %v58_v15  ;;  %v3128_v28 = vcombine.low %v54_v14, %v58_v15  ;;  %v134_v12 = vld [vmem:[%s5107_s1 + $0x348] sm:$0xff]  ;;  %v3201_v14 = vcombine.high %v126_v7, %v130_v52 }
  0x70   :  { %1847 = vmatpush1.bf16.msra.mxu0 %v3314_v0  ;;  %v118_v0 = vld [vmem:[%s5107_s1 + $0x2c8] sm:$0xff] }
  0x71   :  { %1848 = vmatprep.subr.bf16.mxu0 %v3323_v2  ;;  %v122_v2 = vld [vmem:[%s5107_s1 + $0x2e8] sm:$0xff] }
  0x72   :  { %1685 = vmatpush1.bf16.msra.mxu1 %v3318_v24  ;;  %v62_v24 = vld [vmem:[%s5107_s1 + $0x108] sm:$0xff]  ;;  %v3192_v11 = vcombine.low %v118_v0, %v122_v2 }
  0x73   :  { %1686 = vmatprep.subr.bf16.mxu1 %v3327_v27  ;;  %v3347_v27 = vcombine.high %v271_v21, %v275_v22  ;;  %v3137_v31 = vcombine.high %v62_v24, %v66_v25  ;;  %v3136_v36 = vcombine.low %v62_v24, %v66_v25  ;;  %v3579_v15 = vld [vmem:[%s5109_s3 + $0x40] ss:$8 sps:$4 sm:$0xff]   ;;  %v3584_v24 = vld [vmem:[%s5109_s3 + $0x54] ss:$8 sps:$4 sm:$0xff]  }
  0x74   :  { %1849 = vmatpush1.bf16.msra.mxu0 %v3322_v8  ;;  %v3193_v8 = vcombine.high %v118_v0, %v122_v2  ;;  %v146_v21 = vld [vmem:[%s5107_s1 + $0x3a8] sm:$0xff] }
  0x75   :  { %1850 = vmatprep.subr.bf16.mxu0 %v3331_v9  ;;  %v3576_v9 = vld [vmem:[%s5109_s3 + $0x30] ss:$8 sps:$4 sm:$0xff]   ;;  %v166_v38 = vld [vmem:[%s5107_s1 + $0x448] sm:$0xff] }
  0x76   :  { %1687 = vmatpush1.bf16.msra.mxu1 %v3326_v32  ;;  %v70_v32 = vld [vmem:[%s5107_s1 + $0x148] sm:$0xff] }
  0x77   :  { %1688 = vmatprep.subr.bf16.mxu1 %v3335_v35  ;;  %v3355_v35 = vcombine.high %v279_v29, %v283_v30  ;;  %v3145_v37 = vcombine.high %v70_v32, %v74_v33  ;;  %v3144_v41 = vcombine.low %v70_v32, %v74_v33  ;;  %v158_v32 = vld [vmem:[%s5107_s1 + $0x408] sm:$0xff] }
  0x78   :  { %1851 = vmatpush1.bf16.msra.mxu0 %v3330_v16  ;;  %v3581_v16 = vld [vmem:[%s5109_s3 + $0x44] ss:$8 sps:$4 sm:$0xff]  }
  0x79   :  { %1852 = vmatprep.subr.bf16.mxu0 %v3339_v19  ;;  %v3200_v19 = vcombine.low %v126_v7, %v130_v52  ;;  %v162_v33 = vld [vmem:[%s5107_s1 + $0x428] sm:$0xff] }
  0x7a   :  { %1689 = vmatpush1.bf16.msra.mxu1 %v3334_v40  ;;  %v3354_v40 = vcombine.low %v279_v29, %v283_v30  ;;  %v3585_v29 = vld [vmem:[%s5109_s3 + $0x60] ss:$8 sps:$4 sm:$0xff]   ;;  %v3587_v30 = vld [vmem:[%s5109_s3 + $0x64] ss:$8 sps:$4 sm:$0xff]  }
  0x7b   :  { %1690 = vmatprep.subr.bf16.mxu1 %v3343_v43  ;;  %v86_v43 = vld [vmem:[%s5107_s1 + $0x1c8] sm:$0xff] }
  0x7c   :  { %1853 = vmatpush1.bf16.msra.mxu0 %v3338_v26  ;;  %v3161_v46 = vcombine.high %v86_v43, %v90_v44  ;;  %v3160_v49 = vcombine.low %v86_v43, %v90_v44  ;;  %v150_v26 = vld [vmem:[%s5107_s1 + $0x3c8] sm:$0xff]  ;;  %v3232_v43 = vcombine.low %v158_v32, %v162_v33 }
  0x7d   :  { %1854 = vmatprep.subr.bf16.mxu0 %v3347_v27  ;;  %v154_v27 = vld [vmem:[%s5107_s1 + $0x3e8] sm:$0xff] }
  0x7e   :  { %1691 = vmatpush1.bf16.msra.mxu1 %v3342_v48  ;;  %v98_v48 = vld [vmem:[%s5107_s1 + $0x228] sm:$0xff] }
  0x7f   :  { %1692 = vmatprep.subr.bf16.mxu1 %v3351_v51  ;;  %v106_v51 = vld [vmem:[%s5107_s1 + $0x268] sm:$0xff]  ;;  %v3169_v53 = vcombine.high %v94_v47, %v98_v48  ;;  %v3168_v57 = vcombine.low %v94_v47, %v98_v48  ;;  %v3594_v47 = vld [vmem:[%s5109_s3 + $0x90] ss:$8 sps:$4 sm:$0xff]   ;;  %v3596_v48 = vld [vmem:[%s5109_s3 + $0x94] ss:$8 sps:$4 sm:$0xff]  }
  0x80   :  { %1855 = vmatpush1.bf16.msra.mxu0 %v3346_v34  ;;  %v3177_v61 = vcombine.high %v102_v50, %v106_v51  ;;  %v3176_v63 = vcombine.low %v102_v50, %v106_v51  ;;  %v3225_v34 = vcombine.high %v150_v26, %v154_v27  ;;  %v170_v39 = vld [vmem:[%s5107_s1 + $0x468] sm:$0xff] }
  0x81   :  { %1856 = vmatprep.subr.bf16.mxu0 %v3355_v35  ;;  %v3588_v35 = vld [vmem:[%s5109_s3 + $0x70] ss:$8 sps:$4 sm:$0xff]   ;;  %v174_v44 = vld [vmem:[%s5107_s1 + $0x488] sm:$0xff] }
  0x82   :  { %1693 = vmatpush1.bf16.msra.mxu1 %v3350_v58  ;;  %v110_v58 = vld [vmem:[%s5107_s1 + $0x288] sm:$0xff] }
  0x83   :  { %1703 = vmatprep.subr.bf16.mxu1 %v3105_v62  ;;  %v3570_v62 = vld [vmem:[%s5109_s3 + $0x10] ss:$8 sps:$4 sm:$0xff]   ;;  %v182_v50 = vld [vmem:[%s5107_s1 + $0x4c8] sm:$0xff] }
  0x84   :  { %1857 = vmatpush1.bf16.msra.mxu0 %v3354_v40  ;;  %v3233_v40 = vcombine.high %v158_v32, %v162_v33  ;;  %v186_v51 = vld [vmem:[%s5107_s1 + $0x4e8] sm:$0xff] }
  0x85   :  { %1695 = vmatmul.mubr.bf16.vlgmr.msra.gmra.mrb[0].mxu1 %v4219_v1  ;;  %2745 = vmatprep.subr.bf16.mxu0 %v3569_v55  ;;  %v3599_v55 = vld [vmem:[%s5109_s3 + $0xa4] ss:$8 sps:$4 sm:$0xff]  }
  0x86   :  { %1704 = vmatpush1.bf16.msra.mxu1 %v3104_v3  ;;  %1735 = vmatprep.mubr.bf16.mxu1 %v3854_v18  ;;  %v3185_v3 = vcombine.high %v110_v58, %v114_v60  ;;  %v198_v0 = vld [vmem:[%s5107_s1 + $0x548] sm:$0xff] }
  0x87   :  { %1705 = vmatprep.subr.bf16.mxu1 %v3113_v6  ;;  %1859 = vmatmul.mubr.bf16.vlgmr.msra.gmra.mrb[0].mxu0 %v4219_v1  ;;  %v3184_v6 = vcombine.low %v110_v58, %v114_v60  ;;  %v190_v58 = vld [vmem:[%s5107_s1 + $0x508] sm:$0xff] }
  0x88   :  { %2746 = vmatpush1.bf16.msra.mxu0 %v3567_v54  ;;  %v3597_v54 = vld [vmem:[%s5109_s3 + $0xa0] ss:$8 sps:$4 sm:$0xff]  }
  0x89   :  { %2747 = vmatprep.subr.bf16.mxu0 %v3572_v17  ;;  %v194_v60 = vld [vmem:[%s5107_s1 + $0x528] sm:$0xff]  ;;  %v3602_v17 = vld [vmem:[%s5109_s3 + $0xb4] ss:$8 sps:$4 sm:$0xff]  }
  0x8a   :  { %1706 = vmatpush1.bf16.msra.mxu1 %v3112_v10  ;;  %v3578_v10 = vld [vmem:[%s5109_s3 + $0x34] ss:$8 sps:$4 sm:$0xff]   ;;  %v202_v2 = vld [vmem:[%s5107_s1 + $0x568] sm:$0xff] }
  0x8b   :  { %1707 = vmatprep.subr.bf16.mxu1 %v3121_v13  ;;  %v138_v13 = vld [vmem:[%s5107_s1 + $0x368] sm:$0xff] }
  0x8c   :  { %2748 = vmatpush1.bf16.msra.mxu0 %v3570_v62  ;;  %v3209_v22 = vcombine.high %v134_v12, %v138_v13  ;;  %v3208_v25 = vcombine.low %v134_v12, %v138_v13  ;;  %v3600_v62 = vld [vmem:[%s5109_s3 + $0xb0] ss:$8 sps:$4 sm:$0xff]   ;;  %v206_v7 = vld [vmem:[%s5107_s1 + $0x588] sm:$0xff] }
  0x8d   :  { %2749 = vmatprep.subr.bf16.mxu0 %v3575_v5  ;;  %v3605_v5 = vld [vmem:[%s5109_s3 + $0xc4] ss:$8 sps:$4 sm:$0xff]  }
  0x8e   :  { %1708 = vmatpush1.bf16.msra.mxu1 %v3120_v20  ;;  %v142_v20 = vld [vmem:[%s5107_s1 + $0x388] sm:$0xff] }
  0x8f   :  { %1709 = vmatprep.subr.bf16.mxu1 %v3129_v23  ;;  %v3582_v23 = vld [vmem:[%s5109_s3 + $0x50] ss:$8 sps:$4 sm:$0xff]   ;;  %v210_v52 = vld [vmem:[%s5107_s1 + $0x5a8] sm:$0xff] }
  0x90   :  { %2750 = vmatpush1.bf16.msra.mxu0 %v3573_v4  ;;  %v3603_v4 = vld [vmem:[%s5109_s3 + $0xc0] ss:$8 sps:$4 sm:$0xff]  }
  0x91   :  { %2751 = vmatprep.subr.bf16.mxu0 %v3578_v10  ;;  %v3608_v10 = vld [vmem:[%s5109_s3 + $0xd4] ss:$8 sps:$4 sm:$0xff]   ;;  %v214_v12 = vld [vmem:[%s5107_s1 + $0x5c8] sm:$0xff] }
  0x92   :  { %1710 = vmatpush1.bf16.msra.mxu1 %v3128_v28  ;;  %v3217_v28 = vcombine.high %v142_v20, %v146_v21  ;;  %v218_v13 = vld [vmem:[%s5107_s1 + $0x5e8] sm:$0xff] }
  0x93   :  { %1711 = vmatprep.subr.bf16.mxu1 %v3137_v31  ;;  %v3216_v31 = vcombine.low %v142_v20, %v146_v21  ;;  %v222_v20 = vld [vmem:[%s5107_s1 + $0x608] sm:$0xff] }
  0x94   :  { %2752 = vmatpush1.bf16.msra.mxu0 %v3576_v9  ;;  %v3606_v9 = vld [vmem:[%s5109_s3 + $0xd0] ss:$8 sps:$4 sm:$0xff]   ;;  %v226_v21 = vld [vmem:[%s5107_s1 + $0x628] sm:$0xff] }
  0x95   :  { %2753 = vmatprep.subr.bf16.mxu0 %v3581_v16  ;;  %v3609_v16 = vld [vmem:[%s5109_s3 + $0xe0] ss:$8 sps:$4 sm:$0xff]  }
  0x96   :  { %1712 = vmatpush1.bf16.msra.mxu1 %v3136_v36  ;;  %v3590_v36 = vld [vmem:[%s5109_s3 + $0x74] ss:$8 sps:$4 sm:$0xff]   ;;  %v242_v32 = vld [vmem:[%s5107_s1 + $0x6a8] sm:$0xff] }
  0x97   :  { %1713 = vmatprep.subr.bf16.mxu1 %v3145_v37  ;;  %v3224_v37 = vcombine.low %v150_v26, %v154_v27  ;;  %v3297_v26 = vcombine.high %v222_v20, %v226_v21  ;;  %v230_v27 = vld [vmem:[%s5107_s1 + $0x648] sm:$0xff] }
  0x98   :  { %2754 = vmatpush1.bf16.msra.mxu0 %v3579_v15  ;;  %v3611_v15 = vld [vmem:[%s5109_s3 + $0xe4] ss:$8 sps:$4 sm:$0xff]  }
  0x99   :  { %2755 = vmatprep.subr.bf16.mxu0 %v3584_v24  ;;  %v3612_v24 = vld [vmem:[%s5109_s3 + $0xf0] ss:$8 sps:$4 sm:$0xff]  }
  0x9a   :  { %1714 = vmatpush1.bf16.msra.mxu1 %v3144_v41  ;;  %v3591_v41 = vld [vmem:[%s5109_s3 + $0x80] ss:$8 sps:$4 sm:$0xff]  }
  0x9b   :  { %1715 = vmatprep.subr.bf16.mxu1 %v3153_v42  ;;  %v3593_v42 = vld [vmem:[%s5109_s3 + $0x84] ss:$8 sps:$4 sm:$0xff]  }
  0x9c   :  { %2756 = vmatpush1.bf16.msra.mxu0 %v3582_v23  ;;  %v3614_v23 = vld [vmem:[%s5109_s3 + $0xf4] ss:$8 sps:$4 sm:$0xff]  }
  0x9d   :  { %2757 = vmatprep.subr.bf16.mxu0 %v3587_v30 }
  0x9e   :  { %1716 = vmatpush1.bf16.msra.mxu1 %v3152_v45  ;;  %v178_v45 = vld [vmem:[%s5107_s1 + $0x4a8] sm:$0xff] }
  0x9f   :  { %1717 = vmatprep.subr.bf16.mxu1 %v3161_v46  ;;  %v3241_v46 = vcombine.high %v166_v38, %v170_v39 }
  0xa0   :  { %2758 = vmatpush1.bf16.msra.mxu0 %v3585_v29  ;;  %v3296_v29 = vcombine.low %v222_v20, %v226_v21  ;;  %v84_v20 = vld [vmem:[%s5107_s1 + $0x1b8] sm:$0xff] }
  0xa1   :  { %2759 = vmatprep.subr.bf16.mxu0 %v3590_v36  ;;  %v250_v36 = vld [vmem:[%s5107_s1 + $0x6e8] sm:$0xff] }
  0xa2   :  { %1718 = vmatpush1.bf16.msra.mxu1 %v3160_v49  ;;  %v3240_v49 = vcombine.low %v166_v38, %v170_v39  ;;  %v254_v39 = vld [vmem:[%s5107_s1 + $0x708] sm:$0xff] }
  0xa3   :  { %1719 = vmatprep.subr.bf16.mxu1 %v3169_v53  ;;  %v3249_v53 = vcombine.high %v174_v44, %v178_v45 }
  0xa4   :  { %2760 = vmatpush1.bf16.msra.mxu0 %v3588_v35  ;;  %v246_v35 = vld [vmem:[%s5107_s1 + $0x6c8] sm:$0xff] }
  0xa5   :  { %2761 = vmatprep.subr.bf16.mxu0 %v3593_v42  ;;  %v3321_v38 = vcombine.high %v246_v35, %v250_v36 }
  0xa6   :  { %1720 = vmatpush1.bf16.msra.mxu1 %v3168_v57  ;;  %v3248_v57 = vcombine.low %v174_v44, %v178_v45  ;;  %v266_v44 = vld [vmem:[%s5107_s1 + $0x768] sm:$0xff] }
  0xa7   :  { %1721 = vmatprep.subr.bf16.mxu1 %v3177_v61  ;;  %v3257_v61 = vcombine.high %v182_v50, %v186_v51 }
  0xa8   :  { %2762 = vmatpush1.bf16.msra.mxu0 %v3591_v41  ;;  %v3320_v41 = vcombine.low %v246_v35, %v250_v36  ;;  %v112_v35 = vld [vmem:[%s5107_s1 + $0x298] sm:$0xff] }
  0xa9   :  { %2763 = vmatprep.subr.bf16.mxu0 %v3596_v48  ;;  %v274_v48 = vld [vmem:[%s5107_s1 + $0x7a8] sm:$0xff]  ;;  %v116_v36 = vld [vmem:[%s5107_s1 + $0x2b8] sm:$0xff] }
  0xaa   :  { %1722 = vmatpush1.bf16.msra.mxu1 %v3176_v63  ;;  %v3256_v63 = vcombine.low %v182_v50, %v186_v51  ;;  %v278_v51 = vld [vmem:[%s5107_s1 + $0x7c8] sm:$0xff] }
  0xab   :  { %1723 = vmatprep.subr.bf16.mxu1 %v3185_v3  ;;  %v3265_v3 = vcombine.high %v190_v58, %v194_v60 }
  0xac   :  { %2764 = vmatpush1.bf16.msra.mxu0 %v3594_v47  ;;  %v270_v47 = vld [vmem:[%s5107_s1 + $0x788] sm:$0xff] }
  0xad   :  { %2765 = vmatprep.subr.bf16.mxu0 %v3599_v55  ;;  %v3345_v50 = vcombine.high %v270_v47, %v274_v48 }
  0xae   :  { %1724 = vmatpush1.bf16.msra.mxu1 %v3184_v6  ;;  %v3264_v6 = vcombine.low %v190_v58, %v194_v60  ;;  %v36_v58 = vld [vmem:[%s5107_s1 + $0x38] sm:$0xff] }
  0xaf   :  { %1725 = vmatprep.subr.bf16.mxu1 %v3193_v8  ;;  %v3273_v8 = vcombine.high %v198_v0, %v202_v2 }
  0xb0   :  { %2766 = vmatpush1.bf16.msra.mxu0 %v3597_v54  ;;  %v3344_v54 = vcombine.low %v270_v47, %v274_v48  ;;  %v136_v47 = vld [vmem:[%s5107_s1 + $0x358] sm:$0xff] }
  0xb1   :  { %2767 = vmatprep.subr.bf16.mxu0 %v3602_v17  ;;  %v44_v17 = vld [vmem:[%s5107_s1 + $0x78] sm:$0xff] }
  0xb2   :  { %1726 = vmatpush1.bf16.msra.mxu1 %v3192_v11  ;;  %v3272_v11 = vcombine.low %v198_v0, %v202_v2  ;;  %v48_v2 = vld [vmem:[%s5107_s1 + $0x98] sm:$0xff] }
  0xb3   :  { %1727 = vmatprep.subr.bf16.mxu1 %v3201_v14  ;;  %v3281_v14 = vcombine.high %v206_v7, %v210_v52  ;;  %v140_v48 = vld [vmem:[%s5107_s1 + $0x378] sm:$0xff] }
  0xb4   :  { %2768 = vmatpush1.bf16.msra.mxu0 %v3600_v62  ;;  %v40_v62 = vld [vmem:[%s5107_s1 + $0x58] sm:$0xff] }
  0xb5   :  { %2769 = vmatprep.subr.bf16.mxu0 %v3605_v5  ;;  %v3117_v0 = vcombine.high %v40_v62, %v44_v17  ;;  %v3116_v5 = vcombine.low %v40_v62, %v44_v17  ;;  %v160_v62 = vld [vmem:[%s5107_s1 + $0x418] sm:$0xff] }
  0xb6   :  { %1728 = vmatpush1.bf16.msra.mxu1 %v3200_v19  ;;  %v3280_v19 = vcombine.low %v206_v7, %v210_v52  ;;  %v56_v7 = vld [vmem:[%s5107_s1 + $0xd8] sm:$0xff] }
  0xb7   :  { %1729 = vmatprep.subr.bf16.mxu1 %v3209_v22  ;;  %v3289_v22 = vcombine.high %v214_v12, %v218_v13  ;;  %v60_v52 = vld [vmem:[%s5107_s1 + $0xf8] sm:$0xff] }
  0xb8   :  { %2770 = vmatpush1.bf16.msra.mxu0 %v3603_v4  ;;  %v3617_v4 = vld [vmem:[%s5109_s3 + $0x104] ss:$8 sps:$4 sm:$0xff]   ;;  %v164_v17 = vld [vmem:[%s5107_s1 + $0x438] sm:$0xff] }
  0xb9   :  { %2771 = vmatprep.subr.bf16.mxu0 %v3608_v10  ;;  %v64_v10 = vld [vmem:[%s5107_s1 + $0x118] sm:$0xff] }
  0xba   :  { %1730 = vmatpush1.bf16.msra.mxu1 %v3208_v25  ;;  %v3288_v25 = vcombine.low %v214_v12, %v218_v13  ;;  %v72_v13 = vld [vmem:[%s5107_s1 + $0x158] sm:$0xff] }
  0xbb   :  { %1731 = vmatprep.subr.bf16.mxu1 %v3217_v28  ;;  %v234_v28 = vld [vmem:[%s5107_s1 + $0x668] sm:$0xff] }
  0xbc   :  { %2772 = vmatpush1.bf16.msra.mxu0 %v3606_v9  ;;  %v3305_v30 = vcombine.high %v230_v27, %v234_v28  ;;  %v3304_v33 = vcombine.low %v230_v27, %v234_v28  ;;  %v3133_v9 = vcombine.high %v56_v7, %v60_v52  ;;  %v96_v27 = vld [vmem:[%s5107_s1 + $0x218] sm:$0xff] }
  0xbd   :  { %2773 = vmatprep.subr.bf16.mxu0 %v3611_v15  ;;  %v100_v28 = vld [vmem:[%s5107_s1 + $0x238] sm:$0xff] }
  0xbe   :  { %1732 = vmatpush1.bf16.msra.mxu1 %v3216_v31  ;;  %v238_v31 = vld [vmem:[%s5107_s1 + $0x688] sm:$0xff] }
  0xbf   :  { %1733 = vmatprep.subr.bf16.mxu1 %v3225_v34  ;;  %v3313_v34 = vcombine.high %v238_v31, %v242_v32 }
  0xc0   :  { %2774 = vmatpush1.bf16.msra.mxu0 %v3609_v16 }
  0xc1   :  { %2775 = vmatprep.subr.bf16.mxu0 %v3614_v23  ;;  %v88_v23 = vld [vmem:[%s5107_s1 + $0x1d8] sm:$0xff] }
  0xc2   :  { %1734 = vmatpush1.bf16.msra.mxu1 %v3224_v37  ;;  %v3312_v37 = vcombine.low %v238_v31, %v242_v32  ;;  %v104_v31 = vld [vmem:[%s5107_s1 + $0x258] sm:$0xff] }
  0xc3   :  { %1744 = vmatprep.subr.bf16.mxu1 %v3233_v40  ;;  %v258_v40 = vld [vmem:[%s5107_s1 + $0x728] sm:$0xff]  ;;  %v108_v32 = vld [vmem:[%s5107_s1 + $0x278] sm:$0xff] }
  0xc4   :  { %2776 = vmatpush1.bf16.msra.mxu0 %v3612_v24  ;;  %v3329_v42 = vcombine.high %v254_v39, %v258_v40  ;;  %v3328_v45 = vcombine.low %v254_v39, %v258_v40  ;;  %v92_v24 = vld [vmem:[%s5107_s1 + $0x1f8] sm:$0xff] }
  0xc5   :  { %1736 = vmatmul.mubr.bf16.vlgmr.msra.gmra.mrb[4].mxu1 %v4015_v56  ;;  %2786 = vmatprep.subr.bf16.mxu0 %v3617_v4  ;;  %v120_v39 = vld [vmem:[%s5107_s1 + $0x2d8] sm:$0xff]  ;;  %v3236_v4 = vcombine.low %v160_v62, %v164_v17 }
  0xc6   :  { %1745 = vmatpush1.bf16.msra.mxu1 %v3232_v43  ;;  %1776 = vmatprep.mubr.bf16.mxu1 %v4019_v59  ;;  %v262_v43 = vld [vmem:[%s5107_s1 + $0x748] sm:$0xff]  ;;  %v124_v40 = vld [vmem:[%s5107_s1 + $0x2f8] sm:$0xff] }
  0xc7   :  { %1746 = vmatprep.subr.bf16.mxu1 %v3241_v46  ;;  %v3337_v46 = vcombine.high %v262_v43, %v266_v44 }
  0xca   :  { %1747 = vmatpush1.bf16.msra.mxu1 %v3240_v49  ;;  %v3336_v49 = vcombine.low %v262_v43, %v266_v44  ;;  %v128_v43 = vld [vmem:[%s5107_s1 + $0x318] sm:$0xff] }
  0xcb   :  { %1748 = vmatprep.subr.bf16.mxu1 %v3249_v53  ;;  %v282_v53 = vld [vmem:[%s5107_s1 + $0x7e8] sm:$0xff]  ;;  %v132_v44 = vld [vmem:[%s5107_s1 + $0x338] sm:$0xff] }
  0xcc   :  { %v3353_v55 = vcombine.high %v278_v51, %v282_v53  ;;  %v3352_v60 = vcombine.low %v278_v51, %v282_v53  ;;  %v144_v51 = vld [vmem:[%s5107_s1 + $0x398] sm:$0xff] }
  0xcd   :  { %v148_v53 = vld [vmem:[%s5107_s1 + $0x3b8] sm:$0xff] }
  0xce   :  { %1749 = vmatpush1.bf16.msra.mxu1 %v3248_v57  ;;  %v32_v57 = vld [vmem:[%s5107_s1 + $0x18] sm:$0xff] }
  0xcf   :  { %1750 = vmatprep.subr.bf16.mxu1 %v3257_v61  ;;  %v3109_v61 = vcombine.high %v32_v57, %v36_v58 }
  0xd2   :  { %1751 = vmatpush1.bf16.msra.mxu1 %v3256_v63  ;;  %v3108_v63 = vcombine.low %v32_v57, %v36_v58  ;;  %v152_v57 = vld [vmem:[%s5107_s1 + $0x3d8] sm:$0xff] }
  0xd3   :  { %1752 = vmatprep.subr.bf16.mxu1 %v3265_v3  ;;  %v52_v3 = vld [vmem:[%s5107_s1 + $0xb8] sm:$0xff] }
  0xd4   :  { %v156_v58 = vld [vmem:[%s5107_s1 + $0x3f8] sm:$0xff] }
  0xd6   :  { %1753 = vmatpush1.bf16.msra.mxu1 %v3264_v6  ;;  %v3125_v6 = vcombine.high %v48_v2, %v52_v3 }
  0xd7   :  { %1754 = vmatprep.subr.bf16.mxu1 %v3273_v8  ;;  %v3124_v8 = vcombine.low %v48_v2, %v52_v3  ;;  %v168_v2 = vld [vmem:[%s5107_s1 + $0x458] sm:$0xff] }
  0xd8   :  { %v172_v3 = vld [vmem:[%s5107_s1 + $0x478] sm:$0xff] }
  0xda   :  { %1755 = vmatpush1.bf16.msra.mxu1 %v3272_v11  ;;  %v3132_v11 = vcombine.low %v56_v7, %v60_v52  ;;  %v180_v7 = vld [vmem:[%s5107_s1 + $0x4b8] sm:$0xff]  ;;  %v3244_v52 = vcombine.low %v168_v2, %v172_v3 }
  0xdb   :  { %1756 = vmatprep.subr.bf16.mxu1 %v3281_v14  ;;  %v76_v14 = vld [vmem:[%s5107_s1 + $0x178] sm:$0xff] }
  0xdc   :  { %v3149_v16 = vcombine.high %v72_v13, %v76_v14  ;;  %v3148_v21 = vcombine.low %v72_v13, %v76_v14 }
  0xde   :  { %1757 = vmatpush1.bf16.msra.mxu1 %v3280_v19  ;;  %v80_v19 = vld [vmem:[%s5107_s1 + $0x198] sm:$0xff] }
  0xdf   :  { %1758 = vmatprep.subr.bf16.mxu1 %v3289_v22  ;;  %v3157_v22 = vcombine.high %v80_v19, %v84_v20 }
  0xe2   :  { %1759 = vmatpush1.bf16.msra.mxu1 %v3288_v25  ;;  %v3156_v25 = vcombine.low %v80_v19, %v84_v20  ;;  %v204_v19 = vld [vmem:[%s5107_s1 + $0x578] sm:$0xff] }
  0xe3   :  { %1760 = vmatprep.subr.bf16.mxu1 %v3297_v26  ;;  %v3165_v26 = vcombine.high %v88_v23, %v92_v24 }
  0xe6   :  { %1761 = vmatpush1.bf16.msra.mxu1 %v3296_v29  ;;  %v3164_v29 = vcombine.low %v88_v23, %v92_v24 }
  0xe7   :  { %1762 = vmatprep.subr.bf16.mxu1 %v3305_v30  ;;  %v3173_v30 = vcombine.high %v96_v27, %v100_v28 }
  0xea   :  { %1763 = vmatpush1.bf16.msra.mxu1 %v3304_v33  ;;  %v3172_v33 = vcombine.low %v96_v27, %v100_v28 }
  0xeb   :  { %1764 = vmatprep.subr.bf16.mxu1 %v3313_v34  ;;  %v3181_v34 = vcombine.high %v104_v31, %v108_v32 }
  0xee   :  { %1765 = vmatpush1.bf16.msra.mxu1 %v3312_v37  ;;  %v3180_v37 = vcombine.low %v104_v31, %v108_v32  ;;  %v216_v32 = vld [vmem:[%s5107_s1 + $0x5d8] sm:$0xff] }
  0xef   :  { %1766 = vmatprep.subr.bf16.mxu1 %v3321_v38  ;;  %v3189_v38 = vcombine.high %v112_v35, %v116_v36 }
  0xf2   :  { %1767 = vmatpush1.bf16.msra.mxu1 %v3320_v41  ;;  %v3188_v41 = vcombine.low %v112_v35, %v116_v36 }
  0xf3   :  { %1768 = vmatprep.subr.bf16.mxu1 %v3329_v42  ;;  %v3197_v42 = vcombine.high %v120_v39, %v124_v40 }
  0xf6   :  { %1769 = vmatpush1.bf16.msra.mxu1 %v3328_v45  ;;  %v3196_v45 = vcombine.low %v120_v39, %v124_v40 }
  0xf7   :  { %1770 = vmatprep.subr.bf16.mxu1 %v3337_v46  ;;  %v3205_v46 = vcombine.high %v128_v43, %v132_v44 }
  0xfa   :  { %1771 = vmatpush1.bf16.msra.mxu1 %v3336_v49  ;;  %v3204_v49 = vcombine.low %v128_v43, %v132_v44  ;;  %v224_v43 = vld [vmem:[%s5107_s1 + $0x618] sm:$0xff] }
  0xfb   :  { %1772 = vmatprep.subr.bf16.mxu1 %v3345_v50  ;;  %v3213_v50 = vcombine.high %v136_v47, %v140_v48  ;;  %v228_v44 = vld [vmem:[%s5107_s1 + $0x638] sm:$0xff] }
  0xfe   :  { %1773 = vmatpush1.bf16.msra.mxu1 %v3344_v54  ;;  %v3212_v54 = vcombine.low %v136_v47, %v140_v48  ;;  %v3615_v47 = vld [vmem:[%s5109_s3 + $0x100] ss:$8 sps:$4 sm:$0xff]  }
  0xff   :  { %1774 = vmatprep.subr.bf16.mxu1 %v3353_v55  ;;  %v3221_v55 = vcombine.high %v144_v51, %v148_v53 }
 0x102   :  { %1775 = vmatpush1.bf16.msra.mxu1 %v3352_v60  ;;  %v3220_v60 = vcombine.low %v144_v51, %v148_v53  ;;  %v232_v51 = vld [vmem:[%s5107_s1 + $0x658] sm:$0xff] }
 0x103   :  { %1867 = vmatprep.subr.bf16.mxu1 %v3109_v61  ;;  %v3229_v61 = vcombine.high %v152_v57, %v156_v58  ;;  %v236_v53 = vld [vmem:[%s5107_s1 + $0x678] sm:$0xff] }
 0x105   :  { %1777 = vmatmul.mubr.bf16.vlgmr.msra.gmra.mrb[4].mxu1 %v4219_v1 }
 0x106   :  { %1868 = vmatpush1.bf16.msra.mxu1 %v3108_v63  ;;  %1899 = vmatprep.mubr.bf16.mxu1 %v3854_v18  ;;  %v68_v18 = vld [vmem:[%s5107_s1 + $0x138] sm:$0xff]  ;;  %v3228_v63 = vcombine.low %v152_v57, %v156_v58  ;;  %v3309_v57 = vcombine.high %v232_v51, %v236_v53  ;;  %v3623_v58 = vld [vmem:[%s5109_s3 + $0x124] ss:$8 sps:$4 sm:$0xff]  }
 0x107   :  { %1869 = vmatprep.subr.bf16.mxu1 %v3117_v0  ;;  %v3141_v12 = vcombine.high %v64_v10, %v68_v18  ;;  %v3140_v15 = vcombine.low %v64_v10, %v68_v18  ;;  %v3237_v0 = vcombine.high %v160_v62, %v164_v17  ;;  %v188_v10 = vld [vmem:[%s5107_s1 + $0x4f8] sm:$0xff]  ;;  %v287_v18 = vlaneseq  ;;  %v3621_v17 = vld [vmem:[%s5109_s3 + $0x120] ss:$8 sps:$4 sm:$0xff]  }
 0x108   :  { %v3308_v62 = vcombine.low %v232_v51, %v236_v53  ;;  %v3657_v51 = vld [vmem:[%s5109_s3 + $0x1e0] ss:$8 sps:$4 sm:$0xff]   ;;  %v3662_v53 = vld [vmem:[%s5109_s3 + $0x1f4] ss:$8 sps:$4 sm:$0xff]  }
 0x109   :  { %v4660_v13 = vshrl.u32 %v287_v18, 7 }
 0x10a   :  { %1870 = vmatpush1.bf16.msra.mxu1 %v3116_v5  ;;  %v3245_v5 = vcombine.high %v168_v2, %v172_v3  ;;  %v248_v2 = vld [vmem:[%s5107_s1 + $0x6d8] sm:$0xff] }
 0x10b   :  { %1871 = vmatprep.subr.bf16.mxu1 %v3125_v6  ;;  %v176_v6 = vld [vmem:[%s5107_s1 + $0x498] sm:$0xff]  ;;  %v289_v20 = vsub.s32 0, %v4660_v13  ;;  %v293_v23 = vsub.s32 1, %v4660_v13 }
 0x10c   :  { %v252_v3 = vld [vmem:[%s5107_s1 + $0x6f8] sm:$0xff] }
 0x10e   :  { %1872 = vmatpush1.bf16.msra.mxu1 %v3124_v8  ;;  %v3253_v8 = vcombine.high %v176_v6, %v180_v7 }
 0x10f   :  { %1873 = vmatprep.subr.bf16.mxu1 %v3133_v9  ;;  %v184_v9 = vld [vmem:[%s5107_s1 + $0x4d8] sm:$0xff] }
 0x110   :  { %v3260_v14 = vcombine.low %v184_v9, %v188_v10 }
 0x112   :  { %1874 = vmatpush1.bf16.msra.mxu1 %v3132_v11  ;;  %v3252_v11 = vcombine.low %v176_v6, %v180_v7  ;;  %v3325_v6 = vcombine.high %v248_v2, %v252_v3  ;;  %v3629_v7 = vld [vmem:[%s5109_s3 + $0x144] ss:$8 sps:$4 sm:$0xff]  }
 0x113   :  { %1875 = vmatprep.subr.bf16.mxu1 %v3141_v12  ;;  %v3261_v12 = vcombine.high %v184_v9, %v188_v10  ;;  %v3324_v9 = vcombine.low %v248_v2, %v252_v3  ;;  %v3627_v10 = vld [vmem:[%s5109_s3 + $0x140] ss:$8 sps:$4 sm:$0xff]  }
 0x116   :  { %1876 = vmatpush1.bf16.msra.mxu1 %v3140_v15 }
 0x117   :  { %1877 = vmatprep.subr.bf16.mxu1 %v3149_v16  ;;  %v200_v16 = vld [vmem:[%s5107_s1 + $0x558] sm:$0xff] }
 0x118   :  { %v3277_v24 = vcombine.high %v200_v16, %v204_v19 }
 0x11a   :  { %1878 = vmatpush1.bf16.msra.mxu1 %v3148_v21 }
 0x11b   :  { %1879 = vmatprep.subr.bf16.mxu1 %v3157_v22  ;;  %v4672_v22 = vld [vmem:[%s5110_s2] sm:$0xff] }
 0x11c   :  { %v290_v27 = vrot.slane %v4672_v22, %v289_v20  ;;  %v294_v28 = vrot.slane %v4672_v22, %v293_v23 }
 0x11e   :  { %1880 = vmatpush1.bf16.msra.mxu1 %v3156_v25  ;;  %v208_v25 = vld [vmem:[%s5107_s1 + $0x598] sm:$0xff] }
 0x11f   :  { %1881 = vmatprep.subr.bf16.mxu1 %v3165_v26  ;;  %v212_v26 = vld [vmem:[%s5107_s1 + $0x5b8] sm:$0xff] }
 0x122   :  { %1882 = vmatpush1.bf16.msra.mxu1 %v3164_v29  ;;  %v3276_v29 = vcombine.low %v200_v16, %v204_v19 }
 0x123   :  { %1883 = vmatprep.subr.bf16.mxu1 %v3173_v30  ;;  %v3285_v30 = vcombine.high %v208_v25, %v212_v26 }
 0x126   :  { %1884 = vmatpush1.bf16.msra.mxu1 %v3172_v33  ;;  %v220_v33 = vld [vmem:[%s5107_s1 + $0x5f8] sm:$0xff] }
 0x127   :  { %1885 = vmatprep.subr.bf16.mxu1 %v3181_v34 }
 0x12a   :  { %1886 = vmatpush1.bf16.msra.mxu1 %v3180_v37 }
 0x12b   :  { %1887 = vmatprep.subr.bf16.mxu1 %v3189_v38  ;;  %v3284_v38 = vcombine.low %v208_v25, %v212_v26  ;;  %v3635_v26 = vld [vmem:[%s5109_s3 + $0x164] ss:$8 sps:$4 sm:$0xff]  }
 0x12e   :  { %1888 = vmatpush1.bf16.msra.mxu1 %v3188_v41  ;;  %v3293_v41 = vcombine.high %v216_v32, %v220_v33 }
 0x12f   :  { %1889 = vmatprep.subr.bf16.mxu1 %v3197_v42 }
 0x132   :  { %1890 = vmatpush1.bf16.msra.mxu1 %v3196_v45 }
 0x133   :  { %1891 = vmatprep.subr.bf16.mxu1 %v3205_v46  ;;  %v3292_v46 = vcombine.low %v216_v32, %v220_v33  ;;  %v3638_v32 = vld [vmem:[%s5109_s3 + $0x174] ss:$8 sps:$4 sm:$0xff]  }
 0x134   :  { %v280_v33 = vld [vmem:[%s5107_s1 + $0x7d8] sm:$0xff] }
 0x136   :  { %1892 = vmatpush1.bf16.msra.mxu1 %v3204_v49  ;;  %v3301_v49 = vcombine.high %v224_v43, %v228_v44 }
 0x137   :  { %1893 = vmatprep.subr.bf16.mxu1 %v3213_v50  ;;  %v3620_v50 = vld [vmem:[%s5109_s3 + $0x114] ss:$8 sps:$4 sm:$0xff]  }
 0x13a   :  { %1894 = vmatpush1.bf16.msra.mxu1 %v3212_v54  ;;  %v3300_v54 = vcombine.low %v224_v43, %v228_v44  ;;  %v3647_v43 = vld [vmem:[%s5109_s3 + $0x1a4] ss:$8 sps:$4 sm:$0xff]   ;;  %v3645_v44 = vld [vmem:[%s5109_s3 + $0x1a0] ss:$8 sps:$4 sm:$0xff]  }
 0x13b   :  { %1895 = vmatprep.subr.bf16.mxu1 %v3221_v55  ;;  %v3618_v55 = vld [vmem:[%s5109_s3 + $0x110] ss:$8 sps:$4 sm:$0xff]  }
 0x13e   :  { %1896 = vmatpush1.bf16.msra.mxu1 %v3220_v60  ;;  %v240_v60 = vld [vmem:[%s5107_s1 + $0x698] sm:$0xff] }
 0x13f   :  { %1897 = vmatprep.subr.bf16.mxu1 %v3229_v61  ;;  %v244_v61 = vld [vmem:[%s5107_s1 + $0x6b8] sm:$0xff] }
 0x142   :  { %1898 = vmatpush1.bf16.msra.mxu1 %v3228_v63  ;;  %v3317_v63 = vcombine.high %v240_v60, %v244_v61 }
 0x143   :  { %1908 = vmatprep.subr.bf16.mxu1 %v3237_v0  ;;  %v3626_v0 = vld [vmem:[%s5109_s3 + $0x134] ss:$8 sps:$4 sm:$0xff]  }
 0x145   :  { %1900 = vmatmul.mubr.bf16.vlgmr.msra.gmra.mrb[8].mxu1 %v4015_v56  ;;  %v192_v56 = vld [vmem:[%s5107_s1 + $0x518] sm:$0xff] }
 0x146   :  { %1909 = vmatpush1.bf16.msra.mxu1 %v3236_v4  ;;  %1940 = vmatprep.mubr.bf16.mxu1 %v4019_v59  ;;  %v196_v59 = vld [vmem:[%s5107_s1 + $0x538] sm:$0xff]  ;;  %v3316_v4 = vcombine.low %v240_v60, %v244_v61  ;;  %v301_v61 = vsub.s32 3, %v4660_v13 }
 0x147   :  { %1910 = vmatprep.subr.bf16.mxu1 %v3245_v5  ;;  %v3269_v15 = vcombine.high %v192_v56, %v196_v59  ;;  %v3268_v21 = vcombine.low %v192_v56, %v196_v59  ;;  %v3624_v5 = vld [vmem:[%s5109_s3 + $0x130] ss:$8 sps:$4 sm:$0xff]   ;;  %v3632_v56 = vld [vmem:[%s5109_s3 + $0x154] ss:$8 sps:$4 sm:$0xff]  }
 0x14a   :  { %1911 = vmatpush1.bf16.msra.mxu1 %v3244_v52  ;;  %v256_v52 = vld [vmem:[%s5107_s1 + $0x718] sm:$0xff] }
 0x14b   :  { %1912 = vmatprep.subr.bf16.mxu1 %v3253_v8  ;;  %v260_v8 = vld [vmem:[%s5107_s1 + $0x738] sm:$0xff] }
 0x14e   :  { %1913 = vmatpush1.bf16.msra.mxu1 %v3252_v11 }
 0x14f   :  { %1914 = vmatprep.subr.bf16.mxu1 %v3261_v12  ;;  %v3333_v12 = vcombine.high %v256_v52, %v260_v8 }
 0x152   :  { %1915 = vmatpush1.bf16.msra.mxu1 %v3260_v14  ;;  %v264_v14 = vld [vmem:[%s5107_s1 + $0x758] sm:$0xff] }
 0x153   :  { %1916 = vmatprep.subr.bf16.mxu1 %v3269_v15  ;;  %v268_v15 = vld [vmem:[%s5107_s1 + $0x778] sm:$0xff] }
 0x154   :  { %v3341_v25 = vcombine.high %v264_v14, %v268_v15 }
 0x156   :  { %1917 = vmatpush1.bf16.msra.mxu1 %v3268_v21  ;;  %v3332_v21 = vcombine.low %v256_v52, %v260_v8 }
 0x157   :  { %1918 = vmatprep.subr.bf16.mxu1 %v3277_v24  ;;  %v3630_v24 = vld [vmem:[%s5109_s3 + $0x150] ss:$8 sps:$4 sm:$0xff]  }
 0x158   :  { %v1696_v31 = vpop.f32.mrb[0].mxu1 }
 0x159   :  { %v3525_v34 = vadd.f32 %v1696_v31, %v290_v27  ;;  %v1698_v35 = vpop.f32.mrb[1].mxu1  ;;  %v272_v27 = vld [vmem:[%s5107_s1 + $0x798] sm:$0xff] }
 0x15a   :  { %v3526_v36 = vadd.f32 %v1698_v35, %v294_v28  ;;  %v1700_v37 = vpop.f32.mrb[2].mxu1  ;;  %1919 = vmatpush1.bf16.msra.mxu1 %v3276_v29  ;;  %v4750_v11 = vpop.f32.mrb[0].mxu0  ;;  %v276_v28 = vld [vmem:[%s5107_s1 + $0x7b8] sm:$0xff]  ;;  %v3340_v29 = vcombine.low %v264_v14, %v268_v15  ;;  %v3671_v15 = vld [vmem:[%s5109_s3 + $0x224] ss:$8 sps:$4 sm:$0xff]  }
 0x15b   :  { %v1949_v39 = vmax.f32 %v3525_v34, 0.0  ;;  %v1701_v40 = vpop.f32.mrb[3].mxu1  ;;  %1920 = vmatprep.subr.bf16.mxu1 %v3285_v30  ;;  %v4755_v59 = vpop.f32.mrb[1].mxu0  ;;  %v3633_v30 = vld [vmem:[%s5109_s3 + $0x160] ss:$8 sps:$4 sm:$0xff]   ;;  %v3349_v31 = vcombine.high %v272_v27, %v276_v28  ;;  %v284_v34 = vld [vmem:[%s5107_s1 + $0x7f8] sm:$0xff]  ;;  %v3348_v35 = vcombine.low %v272_v27, %v276_v28 }
 0x15c   :  { %v1950_v42 = vmax.f32 %v3526_v36, 0.0  ;;  %v1864_v16 = vpop.f32.mrb[2].mxu0  ;;  %v3636_v36 = vld [vmem:[%s5109_s3 + $0x170] ss:$8 sps:$4 sm:$0xff]   ;;  %v3357_v37 = vcombine.high %v280_v33, %v284_v34  ;;  %v3639_v40 = vld [vmem:[%s5109_s3 + $0x180] ss:$8 sps:$4 sm:$0xff]  }
 0x15d   :  { %v1957_v48 = vpack.c.bf16 %v1949_v39, %v1949_v39  ;;  %v1865_v19 = vpop.f32.mrb[3].mxu0  ;;  %v3356_v39 = vcombine.low %v280_v33, %v284_v34  ;;  %v3666_v14 = vld [vmem:[%s5109_s3 + $0x210] ss:$8 sps:$4 sm:$0xff]   ;;  %v3759_v16 = vld [vmem:[%s5111_s5 + $0x40] sm:$0xff]   ;;  %v3674_v27 = vld [vmem:[%s5109_s3 + $0x234] ss:$8 sps:$4 sm:$0xff]  }
 0x15e   :  { %v1958_v45 = vpack.c.bf16 %v1950_v42, %v1950_v42  ;;  %1921 = vmatpush1.bf16.msra.mxu1 %v3284_v38  ;;  %v3641_v38 = vld [vmem:[%s5109_s3 + $0x184] ss:$8 sps:$4 sm:$0xff]   ;;  %v3642_v42 = vld [vmem:[%s5109_s3 + $0x190] ss:$8 sps:$4 sm:$0xff]   ;;  %v3680_v33 = vld [vmem:[%s5109_s3 + $0x254] ss:$8 sps:$4 sm:$0xff]  }
 0x15f   :  { %1922 = vmatprep.subr.bf16.mxu1 %v3293_v41  ;;  %v3644_v41 = vld [vmem:[%s5109_s3 + $0x194] ss:$8 sps:$4 sm:$0xff]   ;;  %v3760_v19 = vld [vmem:[%s5111_s5] sm:$0xff]   ;;  %v3672_v28 = vld [vmem:[%s5109_s3 + $0x230] ss:$8 sps:$4 sm:$0xff]  }
 0x160   :  { %2777 = vmatprep.mubr.bf16.mxu0 %v1958_v45  ;;  %v3650_v45 = vld [vmem:[%s5109_s3 + $0x1b4] ss:$8 sps:$4 sm:$0xff]  }
 0x161   :  { %2778 = vmatmul.mubr.bf16.vlgmr.msra.gmra.mrb[4].mxu0 %v1957_v48  ;;  %v3656_v48 = vld [vmem:[%s5109_s3 + $0x1d4] ss:$8 sps:$4 sm:$0xff]  }
 0x162   :  { %1923 = vmatpush1.bf16.msra.mxu1 %v3292_v46  ;;  %2787 = vmatpush1.bf16.msra.mxu0 %v3615_v47  ;;  %v3648_v46 = vld [vmem:[%s5109_s3 + $0x1b0] ss:$8 sps:$4 sm:$0xff]   ;;  %v3651_v47 = vld [vmem:[%s5109_s3 + $0x1c0] ss:$8 sps:$4 sm:$0xff]  }
 0x163   :  { %1924 = vmatprep.subr.bf16.mxu1 %v3301_v49  ;;  %2788 = vmatprep.subr.bf16.mxu0 %v3620_v50  ;;  %v3654_v49 = vld [vmem:[%s5109_s3 + $0x1d0] ss:$8 sps:$4 sm:$0xff]   ;;  %v3659_v50 = vld [vmem:[%s5109_s3 + $0x1e4] ss:$8 sps:$4 sm:$0xff]  }
 0x164   :  { %v3766_v34 = vld [vmem:[%s5111_s5 + $0x18] sm:$0xff]  }
 0x166   :  { %1925 = vmatpush1.bf16.msra.mxu1 %v3300_v54  ;;  %2789 = vmatpush1.bf16.msra.mxu0 %v3618_v55  ;;  %v3660_v54 = vld [vmem:[%s5109_s3 + $0x1f0] ss:$8 sps:$4 sm:$0xff]   ;;  %v3665_v55 = vld [vmem:[%s5109_s3 + $0x204] ss:$8 sps:$4 sm:$0xff]  }
 0x167   :  { %1926 = vmatprep.subr.bf16.mxu1 %v3309_v57  ;;  %2790 = vmatprep.subr.bf16.mxu0 %v3623_v58  ;;  %v309_v57 = vsub.s32 5, %v4660_v13  ;;  %v297_v58 = vsub.s32 2, %v4660_v13 }
 0x169   :  { %v310_v60 = vrot.slane %v4672_v22, %v309_v57  ;;  %v3702_v57 = vld [vmem:[%s5109_s3 + $0x2d0] ss:$8 sps:$4 sm:$0xff]  }
 0x16a   :  { %1927 = vmatpush1.bf16.msra.mxu1 %v3308_v62  ;;  %2791 = vmatpush1.bf16.msra.mxu0 %v3621_v17  ;;  %v298_v62 = vrot.slane %v4672_v22, %v297_v58 }
 0x16b   :  { %1928 = vmatprep.subr.bf16.mxu1 %v3317_v63  ;;  %2792 = vmatprep.subr.bf16.mxu0 %v3626_v0  ;;  %v3530_v17 = vadd.f32 %v4755_v59, %v310_v60  ;;  %v302_v63 = vrot.slane %v4672_v22, %v301_v61  ;;  %v3668_v59 = vld [vmem:[%s5109_s3 + $0x214] ss:$8 sps:$4 sm:$0xff]   ;;  %v3707_v60 = vld [vmem:[%s5109_s3 + $0x2e4] ss:$8 sps:$4 sm:$0xff]   ;;  %v3705_v61 = vld [vmem:[%s5109_s3 + $0x2e0] ss:$8 sps:$4 sm:$0xff]  }
 0x16e   :  { %1929 = vmatpush1.bf16.msra.mxu1 %v3316_v4  ;;  %2793 = vmatpush1.bf16.msra.mxu0 %v3624_v5  ;;  %v1954_v4 = vmax.f32 %v3530_v17, 0.0  ;;  %v3710_v17 = vld [vmem:[%s5109_s3 + $0x2f4] ss:$8 sps:$4 sm:$0xff]  }
 0x16f   :  { %1930 = vmatprep.subr.bf16.mxu1 %v3325_v6  ;;  %2794 = vmatprep.subr.bf16.mxu0 %v3629_v7 }
 0x172   :  { %1931 = vmatpush1.bf16.msra.mxu1 %v3324_v9  ;;  %2795 = vmatpush1.bf16.msra.mxu0 %v3627_v10  ;;  %v1962_v9 = vpack.c.bf16 %v1954_v4, %v1954_v4  ;;  %v3716_v4 = vld [vmem:[%s5109_s3 + $0x314] ss:$8 sps:$4 sm:$0xff]  }
 0x173   :  { %1932 = vmatprep.subr.bf16.mxu1 %v3333_v12  ;;  %2796 = vmatprep.subr.bf16.mxu0 %v3632_v56  ;;  %v3663_v12 = vld [vmem:[%s5109_s3 + $0x200] ss:$8 sps:$4 sm:$0xff]  }
 0x176   :  { %1933 = vmatpush1.bf16.msra.mxu1 %v3332_v21  ;;  %2797 = vmatpush1.bf16.msra.mxu0 %v3630_v24  ;;  %v3669_v21 = vld [vmem:[%s5109_s3 + $0x220] ss:$8 sps:$4 sm:$0xff]  }
 0x177   :  { %1934 = vmatprep.subr.bf16.mxu1 %v3341_v25  ;;  %2798 = vmatprep.subr.bf16.mxu0 %v3635_v26  ;;  %v3761_v24 = vld [vmem:[%s5111_s5 + $0x48] sm:$0xff]   ;;  %v3763_v26 = vld [vmem:[%s5111_s5 + $0x50] sm:$0xff]  }
 0x178   :  { %v3762_v25 = vld [vmem:[%s5111_s5 + $0x8] sm:$0xff]  }
 0x17a   :  { %1935 = vmatpush1.bf16.msra.mxu1 %v3340_v29  ;;  %2799 = vmatpush1.bf16.msra.mxu0 %v3633_v30  ;;  %v3764_v29 = vld [vmem:[%s5111_s5 + $0x10] sm:$0xff]   ;;  %v3765_v30 = vld [vmem:[%s5111_s5 + $0x58] sm:$0xff]  }
 0x17b   :  { %1936 = vmatprep.subr.bf16.mxu1 %v3349_v31  ;;  %2800 = vmatprep.subr.bf16.mxu0 %v3638_v32  ;;  %v3677_v31 = vld [vmem:[%s5109_s3 + $0x244] ss:$8 sps:$4 sm:$0xff]   ;;  %v3675_v32 = vld [vmem:[%s5109_s3 + $0x240] ss:$8 sps:$4 sm:$0xff]  }
 0x17e   :  { %1937 = vmatpush1.bf16.msra.mxu1 %v3348_v35  ;;  %2801 = vmatpush1.bf16.msra.mxu0 %v3636_v36  ;;  %v3767_v35 = vld [vmem:[%s5111_s5 + $0x60] sm:$0xff]  }
 0x17f   :  { %1938 = vmatprep.subr.bf16.mxu1 %v3357_v37  ;;  %2802 = vmatprep.subr.bf16.mxu0 %v3641_v38  ;;  %v3768_v36 = vld [vmem:[%s5111_s5 + $0x20] sm:$0xff]   ;;  %v3678_v37 = vld [vmem:[%s5109_s3 + $0x250] ss:$8 sps:$4 sm:$0xff]   ;;  %v3769_v38 = vld [vmem:[%s5111_s5 + $0x68] sm:$0xff]  }
 0x182   :  { %1939 = vmatpush1.bf16.msra.mxu1 %v3356_v39  ;;  %2803 = vmatpush1.bf16.msra.mxu0 %v3639_v40  ;;  %v3683_v39 = vld [vmem:[%s5109_s3 + $0x264] ss:$8 sps:$4 sm:$0xff]  }
 0x183   :  { %2804 = vmatprep.subr.bf16.mxu0 %v3644_v41  ;;  %3503 = vmatprep.subr.bf16.mxu1 %v3759_v16  ;;  %v3770_v40 = vld [vmem:[%s5111_s5 + $0x28] sm:$0xff]   ;;  %v3732_v16 = vld [vmem:[%s5109_s3 + $0x370] ss:$8 sps:$4 sm:$0xff]  }
 0x184   :  { %v3681_v41 = vld [vmem:[%s5109_s3 + $0x260] ss:$8 sps:$4 sm:$0xff]  }
 0x185   :  { %1941 = vmatmul.mubr.bf16.vlgmr.msra.gmra.mrb[8].mxu1 %v4219_v1  ;;  %v3653_v1 = vld [vmem:[%s5109_s3 + $0x1c4] ss:$8 sps:$4 sm:$0xff]  }
 0x186   :  { %2805 = vmatpush1.bf16.msra.mxu0 %v3642_v42  ;;  %3504 = vmatpush3.bf16.msra.mxu1 %v3760_v19  ;;  %v3686_v42 = vld [vmem:[%s5109_s3 + $0x274] ss:$8 sps:$4 sm:$0xff]   ;;  %v3737_v19 = vld [vmem:[%s5109_s3 + $0x384] ss:$8 sps:$4 sm:$0xff]  }
 0x187   :  { %2806 = vmatprep.subr.bf16.mxu0 %v3647_v43  ;;  %3505 = vmatprep.subr.bf16.mxu1 %v3761_v24  ;;  %v3684_v43 = vld [vmem:[%s5109_s3 + $0x270] ss:$8 sps:$4 sm:$0xff]   ;;  %v3740_v24 = vld [vmem:[%s5109_s3 + $0x394] ss:$8 sps:$4 sm:$0xff]  }
 0x18a   :  { %2807 = vmatpush1.bf16.msra.mxu0 %v3645_v44  ;;  %3506 = vmatpush3.bf16.msra.mxu1 %v3762_v25  ;;  %v3689_v44 = vld [vmem:[%s5109_s3 + $0x284] ss:$8 sps:$4 sm:$0xff]   ;;  %v3738_v25 = vld [vmem:[%s5109_s3 + $0x390] ss:$8 sps:$4 sm:$0xff]  }
 0x18b   :  { %2808 = vmatprep.subr.bf16.mxu0 %v3650_v45  ;;  %3507 = vmatprep.subr.bf16.mxu1 %v3763_v26  ;;  %v3687_v45 = vld [vmem:[%s5109_s3 + $0x280] ss:$8 sps:$4 sm:$0xff]   ;;  %v3743_v26 = vld [vmem:[%s5109_s3 + $0x3a4] ss:$8 sps:$4 sm:$0xff]  }
 0x18e   :  { %2809 = vmatpush1.bf16.msra.mxu0 %v3648_v46  ;;  %3508 = vmatpush3.bf16.msra.mxu1 %v3764_v29  ;;  %v3692_v46 = vld [vmem:[%s5109_s3 + $0x294] ss:$8 sps:$4 sm:$0xff]   ;;  %v3744_v29 = vld [vmem:[%s5109_s3 + $0x3b0] ss:$8 sps:$4 sm:$0xff]  }
 0x18f   :  { %2810 = vmatprep.subr.bf16.mxu0 %v3653_v1  ;;  %3509 = vmatprep.subr.bf16.mxu1 %v3765_v30  ;;  %v3690_v1 = vld [vmem:[%s5109_s3 + $0x290] ss:$8 sps:$4 sm:$0xff]   ;;  %v3749_v30 = vld [vmem:[%s5109_s3 + $0x3c4] ss:$8 sps:$4 sm:$0xff]  }
 0x192   :  { %2811 = vmatpush1.bf16.msra.mxu0 %v3651_v47  ;;  %3510 = vmatpush3.bf16.msra.mxu1 %v3766_v34  ;;  %v3695_v47 = vld [vmem:[%s5109_s3 + $0x2a4] ss:$8 sps:$4 sm:$0xff]   ;;  %v3750_v34 = vld [vmem:[%s5109_s3 + $0x3d0] ss:$8 sps:$4 sm:$0xff]  }
 0x193   :  { %2812 = vmatprep.subr.bf16.mxu0 %v3656_v48  ;;  %3511 = vmatprep.subr.bf16.mxu1 %v3767_v35  ;;  %v3693_v48 = vld [vmem:[%s5109_s3 + $0x2a0] ss:$8 sps:$4 sm:$0xff]   ;;  %v317_v35 = vsub.s32 7, %v4660_v13 }
 0x196   :  { %2813 = vmatpush1.bf16.msra.mxu0 %v3654_v49  ;;  %3512 = vmatpush3.bf16.msra.mxu1 %v3768_v36  ;;  %v3698_v49 = vld [vmem:[%s5109_s3 + $0x2b4] ss:$8 sps:$4 sm:$0xff]   ;;  %v3755_v36 = vld [vmem:[%s5109_s3 + $0x3e4] ss:$8 sps:$4 sm:$0xff]  }
 0x197   :  { %2814 = vmatprep.subr.bf16.mxu0 %v3659_v50  ;;  %3513 = vmatprep.subr.bf16.mxu1 %v3769_v38  ;;  %v3696_v50 = vld [vmem:[%s5109_s3 + $0x2b0] ss:$8 sps:$4 sm:$0xff]   ;;  %v318_v38 = vrot.slane %v4672_v22, %v317_v35 }
 0x19a   :  { %2815 = vmatpush1.bf16.msra.mxu0 %v3657_v51  ;;  %3514 = vmatpush3.bf16.msra.mxu1 %v3770_v40  ;;  %v3701_v51 = vld [vmem:[%s5109_s3 + $0x2c4] ss:$8 sps:$4 sm:$0xff]   ;;  %v3758_v40 = vld [vmem:[%s5109_s3 + $0x3f4] ss:$8 sps:$4 sm:$0xff]  }
 0x19b   :  { %2816 = vmatprep.subr.bf16.mxu0 %v3662_v53  ;;  %v3699_v53 = vld [vmem:[%s5109_s3 + $0x2c0] ss:$8 sps:$4 sm:$0xff]  }
 0x19e   :  { %2817 = vmatpush1.bf16.msra.mxu0 %v3660_v54  ;;  %v305_v54 = vsub.s32 4, %v4660_v13 }
 0x19f   :  { %2827 = vmatprep.subr.bf16.mxu0 %v3665_v55  ;;  %v3704_v55 = vld [vmem:[%s5109_s3 + $0x2d4] ss:$8 sps:$4 sm:$0xff]  }
 0x1a0   :  { %v306_v58 = vrot.slane %v4672_v22, %v305_v54  ;;  %v3774_v54 = vld [vmem:[%s5111_s5 + $0x38] sm:$0xff]  }
 0x1d8   :  { %v1778_v0 = vpop.f32.mrb[4].mxu1 }
 0x1d9   :  { %v3527_v2 = vadd.f32 %v1778_v0, %v298_v62  ;;  %v1780_v3 = vpop.f32.mrb[5].mxu1  ;;  %v3529_v62 = vadd.f32 %v4750_v11, %v306_v58  ;;  %v3711_v11 = vld [vmem:[%s5109_s3 + $0x300] ss:$8 sps:$4 sm:$0xff]  }
 0x1da   :  { %v3528_v5 = vadd.f32 %v1780_v3, %v302_v63  ;;  %v1782_v6 = vpop.f32.mrb[6].mxu1  ;;  %v3708_v63 = vld [vmem:[%s5109_s3 + $0x2f0] ss:$8 sps:$4 sm:$0xff]  }
 0x1db   :  { %v1951_v7 = vmax.f32 %v3527_v2, 0.0  ;;  %v1783_v52 = vpop.f32.mrb[7].mxu1  ;;  %v1953_v0 = vmax.f32 %v3529_v62, 0.0  ;;  %v3713_v2 = vld [vmem:[%s5109_s3 + $0x304] ss:$8 sps:$4 sm:$0xff]  }
 0x1dc   :  { %v1952_v8 = vmax.f32 %v3528_v5, 0.0  ;;  %v3714_v5 = vld [vmem:[%s5109_s3 + $0x310] ss:$8 sps:$4 sm:$0xff]   ;;  %v3719_v6 = vld [vmem:[%s5109_s3 + $0x324] ss:$8 sps:$4 sm:$0xff]  }
 0x1dd   :  { %v1959_v56 = vpack.c.bf16 %v1951_v7, %v1951_v7  ;;  %v1961_v3 = vpack.c.bf16 %v1953_v0, %v1953_v0  ;;  %v3717_v7 = vld [vmem:[%s5109_s3 + $0x320] ss:$8 sps:$4 sm:$0xff]   ;;  %v3722_v52 = vld [vmem:[%s5109_s3 + $0x334] ss:$8 sps:$4 sm:$0xff]  }
 0x1de   :  { %v1960_v10 = vpack.c.bf16 %v1952_v8, %v1952_v8  ;;  %v3720_v8 = vld [vmem:[%s5109_s3 + $0x330] ss:$8 sps:$4 sm:$0xff]  }
 0x1e0   :  { %2818 = vmatprep.mubr.bf16.mxu0 %v1960_v10  ;;  %v3723_v10 = vld [vmem:[%s5109_s3 + $0x340] ss:$8 sps:$4 sm:$0xff]  }
 0x1e1   :  { %2819 = vmatmul.mubr.bf16.vlgmr.msra.gmra.mrb[4].mxu0 %v1959_v56  ;;  %v3726_v56 = vld [vmem:[%s5109_s3 + $0x350] ss:$8 sps:$4 sm:$0xff]  }
 0x1e2   :  { %2828 = vmatpush1.bf16.msra.mxu0 %v3663_v12  ;;  %2859 = vmatprep.mubr.bf16.mxu0 %v1962_v9  ;;  %v3725_v9 = vld [vmem:[%s5109_s3 + $0x344] ss:$8 sps:$4 sm:$0xff]   ;;  %v3728_v12 = vld [vmem:[%s5109_s3 + $0x354] ss:$8 sps:$4 sm:$0xff]  }
 0x1e3   :  { %2829 = vmatprep.subr.bf16.mxu0 %v3668_v59  ;;  %v3731_v59 = vld [vmem:[%s5109_s3 + $0x364] ss:$8 sps:$4 sm:$0xff]  }
 0x1e6   :  { %2830 = vmatpush1.bf16.msra.mxu0 %v3666_v14  ;;  %v3729_v14 = vld [vmem:[%s5109_s3 + $0x360] ss:$8 sps:$4 sm:$0xff]  }
 0x1e7   :  { %2831 = vmatprep.subr.bf16.mxu0 %v3671_v15  ;;  %v3734_v15 = vld [vmem:[%s5109_s3 + $0x374] ss:$8 sps:$4 sm:$0xff]  }
 0x1ea   :  { %2832 = vmatpush1.bf16.msra.mxu0 %v3669_v21  ;;  %v3735_v21 = vld [vmem:[%s5109_s3 + $0x380] ss:$8 sps:$4 sm:$0xff]  }
 0x1eb   :  { %2833 = vmatprep.subr.bf16.mxu0 %v3674_v27  ;;  %v3741_v27 = vld [vmem:[%s5109_s3 + $0x3a0] ss:$8 sps:$4 sm:$0xff]  }
 0x1ee   :  { %2834 = vmatpush1.bf16.msra.mxu0 %v3672_v28  ;;  %v3746_v28 = vld [vmem:[%s5109_s3 + $0x3b4] ss:$8 sps:$4 sm:$0xff]  }
 0x1ef   :  { %2835 = vmatprep.subr.bf16.mxu0 %v3677_v31  ;;  %v3747_v31 = vld [vmem:[%s5109_s3 + $0x3c0] ss:$8 sps:$4 sm:$0xff]  }
 0x1f2   :  { %2836 = vmatpush1.bf16.msra.mxu0 %v3675_v32  ;;  %v3752_v32 = vld [vmem:[%s5109_s3 + $0x3d4] ss:$8 sps:$4 sm:$0xff]  }
 0x1f3   :  { %2837 = vmatprep.subr.bf16.mxu0 %v3680_v33  ;;  %v313_v33 = vsub.s32 6, %v4660_v13 }
 0x1f6   :  { %2838 = vmatpush1.bf16.msra.mxu0 %v3678_v37  ;;  %v314_v37 = vrot.slane %v4672_v22, %v313_v33 }
 0x1f7   :  { %2839 = vmatprep.subr.bf16.mxu0 %v3683_v39  ;;  %v3753_v39 = vld [vmem:[%s5109_s3 + $0x3e0] ss:$8 sps:$4 sm:$0xff]  }
 0x1fa   :  { %2840 = vmatpush1.bf16.msra.mxu0 %v3681_v41 }
 0x1fb   :  { %2841 = vmatprep.subr.bf16.mxu0 %v3686_v42 }
 0x1fe   :  { %2842 = vmatpush1.bf16.msra.mxu0 %v3684_v43 }
 0x1ff   :  { %2843 = vmatprep.subr.bf16.mxu0 %v3689_v44 }
 0x202   :  { %2844 = vmatpush1.bf16.msra.mxu0 %v3687_v45 }
 0x203   :  { %2845 = vmatprep.subr.bf16.mxu0 %v3692_v46  ;;  %v3756_v46 = vld [vmem:[%s5109_s3 + $0x3f0] ss:$8 sps:$4 sm:$0xff]  }
 0x206   :  { %2846 = vmatpush1.bf16.msra.mxu0 %v3690_v1 }
 0x207   :  { %2847 = vmatprep.subr.bf16.mxu0 %v3695_v47 }
 0x20a   :  { %2848 = vmatpush1.bf16.msra.mxu0 %v3693_v48 }
 0x20b   :  { %2849 = vmatprep.subr.bf16.mxu0 %v3698_v49 }
 0x20e   :  { %2850 = vmatpush1.bf16.msra.mxu0 %v3696_v50  ;;  %v3771_v50 = vld [vmem:[%s5111_s5 + $0x70] sm:$0xff]  }
 0x20f   :  { %2851 = vmatprep.subr.bf16.mxu0 %v3701_v51  ;;  %v3772_v51 = vld [vmem:[%s5111_s5 + $0x30] sm:$0xff]   ;;  %3515 = vmatprep.subr.bf16.mxu1 %v3771_v50 }
 0x210   :  { %3516 = vmatpush3.bf16.msra.mxu1 %v3772_v51 }
 0x212   :  { %2852 = vmatpush1.bf16.msra.mxu0 %v3699_v53  ;;  %v3773_v53 = vld [vmem:[%s5111_s5 + $0x78] sm:$0xff]  }
 0x213   :  { %2853 = vmatprep.subr.bf16.mxu0 %v3704_v55  ;;  %3517 = vmatprep.subr.bf16.mxu1 %v3773_v53  ;;  %v2093_v55 = vld [vmem:[%s5112_s4] sm:$0x3] }
 0x214   :  { %3518 = vmatpush3.bf16.msra.mxu1 %v3774_v54  ;;  %v2102_v58 = vrot.slane %v2093_v55, %v293_v23 }
 0x216   :  { %2854 = vmatpush1.bf16.msra.mxu0 %v3702_v57  ;;  %v2098_v57 = vrot.slane %v2093_v55, %v289_v20  ;;  %v3486_v20 = vld [vmem:[%s5113_s6] ss:$0 sm:$0xff] }
 0x217   :  { %2855 = vmatprep.subr.bf16.mxu0 %v3707_v60 }
 0x21a   :  { %2856 = vmatpush1.bf16.msra.mxu0 %v3705_v61 }
 0x21b   :  { %2857 = vmatprep.subr.bf16.mxu0 %v3710_v17 }
 0x21e   :  { %2858 = vmatpush1.bf16.msra.mxu0 %v3708_v63 }
 0x21f   :  { %2868 = vmatprep.subr.bf16.mxu0 %v3713_v2 }
 0x221   :  { %2860 = vmatmul.mubr.bf16.vlgmr.msra.gmra.mrb[4].mxu0 %v1961_v3 }
 0x222   :  { %2869 = vmatpush1.bf16.msra.mxu0 %v3711_v11 }
 0x223   :  { %2870 = vmatprep.subr.bf16.mxu0 %v3716_v4 }
 0x226   :  { %2871 = vmatpush1.bf16.msra.mxu0 %v3714_v5 }
 0x227   :  { %2872 = vmatprep.subr.bf16.mxu0 %v3719_v6 }
 0x22a   :  { %2873 = vmatpush1.bf16.msra.mxu0 %v3717_v7 }
 0x22b   :  { %2874 = vmatprep.subr.bf16.mxu0 %v3722_v52 }
 0x22e   :  { %2875 = vmatpush1.bf16.msra.mxu0 %v3720_v8  ;;  %v3089_v8 = vand.u32 127, %v287_v18 }
 0x22f   :  { %2876 = vmatprep.subr.bf16.mxu0 %v3725_v9 }
 0x230   :  { %vm3090_vm0 = vcmp.lt.s32.totalorder %v3089_v8, 3 }
 0x232   :  { %2877 = vmatpush1.bf16.msra.mxu0 %v3723_v10 }
 0x233   :  { %2878 = vmatprep.subr.bf16.mxu0 %v3728_v12 }
 0x236   :  { %2879 = vmatpush1.bf16.msra.mxu0 %v3726_v56 }
 0x237   :  { %2880 = vmatprep.subr.bf16.mxu0 %v3731_v59 }
 0x23a   :  { %2881 = vmatpush1.bf16.msra.mxu0 %v3729_v14 }
 0x23b   :  { %2882 = vmatprep.subr.bf16.mxu0 %v3734_v15 }
 0x23e   :  { %2883 = vmatpush1.bf16.msra.mxu0 %v3732_v16 }
 0x23f   :  { %2884 = vmatprep.subr.bf16.mxu0 %v3737_v19 }
 0x242   :  { %2885 = vmatpush1.bf16.msra.mxu0 %v3735_v21 }
 0x243   :  { %2886 = vmatprep.subr.bf16.mxu0 %v3740_v24 }
 0x246   :  { %2887 = vmatpush1.bf16.msra.mxu0 %v3738_v25 }
 0x247   :  { %2888 = vmatprep.subr.bf16.mxu0 %v3743_v26 }
 0x24a   :  { %2889 = vmatpush1.bf16.msra.mxu0 %v3741_v27 }
 0x24b   :  { %2890 = vmatprep.subr.bf16.mxu0 %v3746_v28 }
 0x24e   :  { %2891 = vmatpush1.bf16.msra.mxu0 %v3744_v29 }
 0x24f   :  { %2892 = vmatprep.subr.bf16.mxu0 %v3749_v30 }
 0x252   :  { %2893 = vmatpush1.bf16.msra.mxu0 %v3747_v31 }
 0x253   :  { %2894 = vmatprep.subr.bf16.mxu0 %v3752_v32 }
 0x256   :  { %2895 = vmatpush1.bf16.msra.mxu0 %v3750_v34 }
 0x257   :  { %2896 = vmatprep.subr.bf16.mxu0 %v3755_v36 }
 0x258   :  { %v1942_v41 = vpop.f32.mrb[8].mxu1 }
 0x259   :  { %v3531_v42 = vadd.f32 %v1942_v41, %v314_v37  ;;  %v1944_v43 = vpop.f32.mrb[9].mxu1 }
 0x25a   :  { %v3532_v44 = vadd.f32 %v1944_v43, %v318_v38  ;;  %v1946_v45 = vpop.f32.mrb[10].mxu1  ;;  %2897 = vmatpush1.bf16.msra.mxu0 %v3753_v39 }
 0x25b   :  { %v1955_v22 = vmax.f32 %v3531_v42, 0.0  ;;  %v1947_v1 = vpop.f32.mrb[11].mxu1  ;;  %2898 = vmatprep.subr.bf16.mxu0 %v3758_v40 }
 0x25c   :  { %v1956_v47 = vmax.f32 %v3532_v44, 0.0 }
 0x25d   :  { %v1963_v49 = vpack.c.bf16 %v1955_v22, %v1955_v22 }
 0x25e   :  { %v1964_v48 = vpack.c.bf16 %v1956_v47, %v1956_v47  ;;  %2899 = vmatpush1.bf16.msra.mxu0 %v3756_v46 }
 0x260   :  { %2900 = vmatprep.mubr.bf16.mxu0 %v1964_v48 }
 0x261   :  { %2901 = vmatmul.mubr.bf16.vlgmr.msra.gmra.mrb[4].mxu0 %v1963_v49 }
 0x334   :  { %v2902_v60 = vpop.f32.mrb[4].mxu0 }
 0x335   :  { %v3533_v61 = vadd.f32 %v2902_v60, %v2098_v57  ;;  %v2904_v62 = vpop.f32.mrb[5].mxu0 }
 0x336   :  { %v3534_v17 = vadd.f32 %v2904_v62, %v2102_v58  ;;  %v2906_v63 = vpop.f32.mrb[6].mxu0 }
 0x337   :  { %v2909_v0 = vmax.f32 %v3533_v61, 0.0  ;;  %v2907_v2 = vpop.f32.mrb[7].mxu0 }
 0x338   :  { %v2910_v11 = vmax.f32 %v3534_v17, 0.0 }
 0x339   :  { %v2911_v4 = vpack.c.bf16 %v2909_v0, %v2909_v0 }
 0x33a   :  { %v2912_v3 = vpack.c.bf16 %v2910_v11, %v2910_v11 }
 0x33c   :  { %3080 = vmatprep.mubr.bf16.mxu1 %v2912_v3 }
 0x33d   :  { %3081 = vmatmul.mubr.bf16.vlgmr.msra.gmra.mrb[12].mxu1 %v2911_v4 }
 0x410   :  { %v3519_v5 = vpop.f32.mrb[12].mxu1 }
 0x411   :  { %v3520_v6 = vpop.f32.mrb[13].mxu1 }
 0x412   :  { %v3521_v13 = vadd.f32 %v3520_v6, %v3519_v5  ;;  %v3522_v23 = vpop.f32.mrb[14].mxu1 }
 0x413   :  { %v3523_v7 = vpop.f32.mrb[15].mxu1 }
 0x414   :  { %v3083_v52 = vadd.f32 %v3521_v13, %v3486_v20 }
 0x416   :  { %3775 = vtanh.f32 %v3083_v52 }
 0x420   :  { %v3776_v9 = vpop.eup %3775 }
 0x421   :  { %v3092_v10 = vsel %vm3090_vm0, %v3776_v9, %v3083_v52 }
 0x422   :  { %3093 = vst [vmem:[%s5114_s7] sm:$0xff] %v3092_v10 }

</bundles_post_ra>
